<compile_context>
chip_gen: v5e
topology: v5e:2x2
jax: 0.10.0
libtpu: 0.0.40
codegen_flags: <defaults>
</compile_context>

<pallas_src>
import numpy as np
import jax
import jax.numpy as jnp
from jax.experimental import pallas as pl
from jax.experimental.pallas import tpu as pltpu


def _out_dim(d, stride):
    # PyTorch Conv2d(kernel=1, padding=1, stride=s): floor((d + 2 - 1)/s) + 1
    return (d + 1) // stride + 1


def _selection_matrix_t(h_in, w_in, stride):
    """One-hot (H_in*W_in, H_out*W_out) matrix implementing zero-pad(1) + stride
    subsampling on a row-major (h, w)-flattened spatial axis (channels-first
    layout: act[c, :] @ S^T).  All-zero output columns correspond to sampling
    the spatial zero padding."""
    h_out, w_out = _out_dim(h_in, stride), _out_dim(w_in, stride)
    sel = np.zeros((h_in * w_in, h_out * w_out), dtype=np.float32)
    for ho in range(h_out):
        hi = ho * stride - 1
        if hi < 0 or hi >= h_in:
            continue
        for wo in range(w_out):
            wi = wo * stride - 1
            if wi < 0 or wi >= w_in:
                continue
            sel[hi * w_in + wi, ho * w_out + wo] = 1.0
    return sel


def _fused_kernel(x_ref, s1_ref, w1_ref, b1_ref,
                  s2_ref, w2_ref, b2_ref,
                  s3_ref, w3_ref, b3_ref,
                  o1_ref, o2_ref, o3_ref):
    hi = jax.lax.Precision.HIGHEST
    f32 = jnp.float32
    n = x_ref.shape[0]
    for b in range(n):  # tiny static batch -> unrolled, everything VMEM-resident
        # layer-1 spatial pad/stride sampling, then conv1 (1x1 == matmul over Cin)
        xg = jnp.dot(x_ref[b], s1_ref[...], preferred_element_type=f32, precision=hi)
        v1 = jnp.dot(w1_ref[...], xg, preferred_element_type=f32, precision=hi) + b1_ref[...]
        o1_ref[b] = v1
        # layer-2 sampling, conv2, fused -256
        g2 = jnp.dot(v1, s2_ref[...], preferred_element_type=f32, precision=hi)
        v2 = (jnp.dot(w2_ref[...], g2, preferred_element_type=f32, precision=hi)
              + b2_ref[...] - f32(256.0))
        o2_ref[b] = v2
        # layer-3 sampling, conv3
        g3 = jnp.dot(v2, s3_ref[...], preferred_element_type=f32, precision=hi)
        o3_ref[b] = jnp.dot(w3_ref[...], g3, preferred_element_type=f32, precision=hi) + b3_ref[...]


def _model_forward(x, params):
    (w1, b1), (w2, b2), (w3, b3) = params
    n, cin, h, w = x.shape
    ho1, wo1 = _out_dim(h, 3), _out_dim(w, 3)
    ho2, wo2 = _out_dim(ho1, 2), _out_dim(wo1, 2)
    ho3, wo3 = _out_dim(ho2, 2), _out_dim(wo2, 2)
    c1, c2, c3 = w1.shape[0], w2.shape[0], w3.shape[0]

    # Trace-time constants (depend only on static shapes).
    s1t = jnp.asarray(_selection_matrix_t(h, w, 3))       # (h*w,       ho1*wo1)
    s2t = jnp.asarray(_selection_matrix_t(ho1, wo1, 2))   # (ho1*wo1,   ho2*wo2)
    s3t = jnp.asarray(_selection_matrix_t(ho2, wo2, 2))   # (ho2*wo2,   ho3*wo3)

    x_flat = x.reshape(n, cin, h * w)                      # contiguous, zero-cost

    vmem = pl.BlockSpec(memory_space=pltpu.MemorySpace.VMEM)
    o1, o2, o3 = pl.pallas_call(
        _fused_kernel,
        out_shape=(
            jax.ShapeDtypeStruct((n, c1, ho1 * wo1), jnp.float32),
            jax.ShapeDtypeStruct((n, c2, ho2 * wo2), jnp.float32),
            jax.ShapeDtypeStruct((n, c3, ho3 * wo3), jnp.float32),
        ),
        in_specs=[vmem] * 10,
        out_specs=(vmem, vmem, vmem),
    )(x_flat, s1t, w1, b1, s2t, w2, b2, s3t, w3, b3)

    # NCHW-ready: contiguous reshapes only (no transposes / extra dispatches).
    v1 = o1.reshape(n, c1, ho1, wo1)
    v2 = o2.reshape(n, c2, ho2, wo2)
    v3 = o3.reshape(n, c3, ho3, wo3)
    return v1, v2, v3


model_forward = jax.jit(_model_forward)


def init_conv_params(key, cin, cout):
    """PyTorch-ish init: uniform(-1/sqrt(fan_in), 1/sqrt(fan_in)).
    Weight stored as (Cout, Cin) (== PyTorch (Cout, Cin, 1, 1) squeezed),
    bias stored as (Cout, 1) so the kernel can broadcast it with zero prep."""
    kw, kb = jax.random.split(key)
    bound = 1.0 / float(np.sqrt(cin))
    w = jax.random.uniform(kw, (cout, cin), jnp.float32, -bound, bound)
    b = jax.random.uniform(kb, (cout, 1), jnp.float32, -bound, bound)
    return w, b


# ---------------- reference (XLA conv) used only for the sanity check ----------------
def _ref_conv1x1(x, w, b, stride):
    wk = w[:, :, None, None]                               # (Cout, Cin, 1, 1)
    y = jax.lax.conv_general_dilated(
        x, wk, window_strides=(stride, stride), padding=((1, 1), (1, 1)),
        dimension_numbers=("NCHW", "OIHW", "NCHW"),
        precision=jax.lax.Precision.HIGHEST)
    return y + b[None, :, :, None]                         # b is (Cout, 1)


def _ref_forward(x, params):
    (w1, b1), (w2, b2), (w3, b3) = params
    r1 = _ref_conv1x1(x, w1, b1, 3)
    r2 = _ref_conv1x1(r1, w2, b2, 2) - 256.0
    r3 = _ref_conv1x1(r2, w3, b3, 2)
    return r1, r2, r3


def _rel_err(a, b):
    return float(jnp.max(jnp.abs(a - b)) / (jnp.max(jnp.abs(b)) + 1e-6))


if __name__ == "__main__":
    key = jax.random.PRNGKey(0)
    kx, k1, k2, k3 = jax.random.split(key, 4)

    # Small NCHW input consistent with the module (3 input channels).
    x = jax.random.normal(kx, (2, 3, 16, 20), dtype=jnp.float32)

    params = (
        init_conv_params(k1, 3, 96),
        init_conv_params(k2, 96, 128),
        init_conv_params(k3, 128, 256),
    )

    v1, v2, v3 = model_forward(x, params)
    jax.block_until_ready((v1, v2, v3))

    # Shapes follow PyTorch conv arithmetic.
    assert v1.shape == (2, 96, 6, 8), v1.shape
    assert v2.shape == (2, 128, 4, 5), v2.shape
    assert v3.shape == (2, 256, 3, 4), v3.shape

    # Numerical sanity check vs an XLA conv reference (both paths use
    # Precision.HIGHEST, so the tolerance can be tight).
    r1, r2, r3 = jax.jit(_ref_forward)(x, params)
    jax.block_until_ready((r1, r2, r3))
    assert _rel_err(v1, r1) < 1e-3, _rel_err(v1, r1)
    assert _rel_err(v2, r2) < 1e-3, _rel_err(v2, r2)
    assert _rel_err(v3, r3) < 1e-3, _rel_err(v3, r3)

    print("KERNEL_OK")
</pallas_src>

<mosaic_0001>
module attributes {stable_mosaic.version = 11 : i64} {
  func.func @_fused_kernel(%arg0: memref<2x3x320xf32, #tpu.memory_space<vmem>>, %arg1: memref<320x48xf32, #tpu.memory_space<vmem>>, %arg2: memref<96x3xf32, #tpu.memory_space<vmem>>, %arg3: memref<96x1xf32, #tpu.memory_space<vmem>>, %arg4: memref<48x20xf32, #tpu.memory_space<vmem>>, %arg5: memref<128x96xf32, #tpu.memory_space<vmem>>, %arg6: memref<128x1xf32, #tpu.memory_space<vmem>>, %arg7: memref<20x12xf32, #tpu.memory_space<vmem>>, %arg8: memref<256x128xf32, #tpu.memory_space<vmem>>, %arg9: memref<256x1xf32, #tpu.memory_space<vmem>>, %arg10: memref<2x96x48xf32, #tpu.memory_space<vmem>>, %arg11: memref<2x128x20xf32, #tpu.memory_space<vmem>>, %arg12: memref<2x256x12xf32, #tpu.memory_space<vmem>>) attributes {dimension_semantics = [], scalar_prefetch = 0 : i64, scratch_operands = 0 : i64, tpu.core_type = #tpu.core_type<tc>} {
    %c0 = arith.constant 0 : index
    %c0_0 = arith.constant 0 : index
    %c0_1 = arith.constant 0 : index
    %0 = vector.load %arg0[%c0, %c0_0, %c0_1] : memref<2x3x320xf32, #tpu.memory_space<vmem>>, vector<1x3x320xf32>
    %1 = vector.shape_cast %0 : vector<1x3x320xf32> to vector<3x320xf32>
    %c0_2 = arith.constant 0 : index
    %c0_3 = arith.constant 0 : index
    %2 = vector.load %arg1[%c0_2, %c0_3] : memref<320x48xf32, #tpu.memory_space<vmem>>, vector<320x48xf32>
    %cst = arith.constant dense<0.000000e+00> : vector<3x48xf32>
    %3 = tpu.matmul %1, %2, %cst {dimension_numbers = #tpu.dot_dimension_numbers<[1], [0], [0], [1], [0, 0, 1, 1], [], []>, precision = #tpu.contract_precision<fp32>} : vector<3x320xf32>, vector<320x48xf32>, vector<3x48xf32> -> vector<3x48xf32>
    %c0_4 = arith.constant 0 : index
    %c0_5 = arith.constant 0 : index
    %4 = vector.load %arg2[%c0_4, %c0_5] : memref<96x3xf32, #tpu.memory_space<vmem>>, vector<96x3xf32>
    %cst_6 = arith.constant dense<0.000000e+00> : vector<96x48xf32>
    %5 = tpu.matmul %4, %3, %cst_6 {dimension_numbers = #tpu.dot_dimension_numbers<[1], [0], [0], [1], [0, 0, 1, 1], [], []>, precision = #tpu.contract_precision<fp32>} : vector<96x3xf32>, vector<3x48xf32>, vector<96x48xf32> -> vector<96x48xf32>
    %c0_7 = arith.constant 0 : index
    %c0_8 = arith.constant 0 : index
    %6 = vector.load %arg3[%c0_7, %c0_8] : memref<96x1xf32, #tpu.memory_space<vmem>>, vector<96x1xf32>
    %7 = vector.broadcast %6 : vector<96x1xf32> to vector<96x48xf32>
    %8 = arith.addf %5, %7 : vector<96x48xf32>
    %c0_9 = arith.constant 0 : index
    %c0_10 = arith.constant 0 : index
    %c0_11 = arith.constant 0 : index
    %9 = vector.load %arg10[%c0_9, %c0_10, %c0_11] : memref<2x96x48xf32, #tpu.memory_space<vmem>>, vector<1x96x48xf32>
    %10 = vector.shape_cast %9 : vector<1x96x48xf32> to vector<96x48xf32>
    %11 = vector.shape_cast %8 : vector<96x48xf32> to vector<1x96x48xf32>
    tpu.vector_store %arg10[%c0_9, %c0_10, %c0_11], %11 {strides = array<i32>} : memref<2x96x48xf32, #tpu.memory_space<vmem>>, vector<1x96x48xf32>,
    %c0_12 = arith.constant 0 : index
    %c0_13 = arith.constant 0 : index
    %12 = vector.load %arg4[%c0_12, %c0_13] : memref<48x20xf32, #tpu.memory_space<vmem>>, vector<48x20xf32>
    %cst_14 = arith.constant dense<0.000000e+00> : vector<96x20xf32>
    %13 = tpu.matmul %8, %12, %cst_14 {dimension_numbers = #tpu.dot_dimension_numbers<[1], [0], [0], [1], [0, 0, 1, 1], [], []>, precision = #tpu.contract_precision<fp32>} : vector<96x48xf32>, vector<48x20xf32>, vector<96x20xf32> -> vector<96x20xf32>
    %c0_15 = arith.constant 0 : index
    %c0_16 = arith.constant 0 : index
    %14 = vector.load %arg5[%c0_15, %c0_16] : memref<128x96xf32, #tpu.memory_space<vmem>>, vector<128x96xf32>
    %cst_17 = arith.constant dense<0.000000e+00> : vector<128x20xf32>
    %15 = tpu.matmul %14, %13, %cst_17 {dimension_numbers = #tpu.dot_dimension_numbers<[1], [0], [0], [1], [0, 0, 1, 1], [], []>, precision = #tpu.contract_precision<fp32>} : vector<128x96xf32>, vector<96x20xf32>, vector<128x20xf32> -> vector<128x20xf32>
    %c0_18 = arith.constant 0 : index
    %c0_19 = arith.constant 0 : index
    %16 = vector.load %arg6[%c0_18, %c0_19] : memref<128x1xf32, #tpu.memory_space<vmem>>, vector<128x1xf32>
    %17 = vector.broadcast %16 : vector<128x1xf32> to vector<128x20xf32>
    %18 = arith.addf %15, %17 : vector<128x20xf32>
    %cst_20 = arith.constant 2.560000e+02 : f32
    %19 = vector.broadcast %cst_20 : f32 to vector<128x20xf32>
    %20 = arith.subf %18, %19 : vector<128x20xf32>
    %c0_21 = arith.constant 0 : index
    %c0_22 = arith.constant 0 : index
    %c0_23 = arith.constant 0 : index
    %21 = vector.load %arg11[%c0_21, %c0_22, %c0_23] : memref<2x128x20xf32, #tpu.memory_space<vmem>>, vector<1x128x20xf32>
    %22 = vector.shape_cast %21 : vector<1x128x20xf32> to vector<128x20xf32>
    %23 = vector.shape_cast %20 : vector<128x20xf32> to vector<1x128x20xf32>
    tpu.vector_store %arg11[%c0_21, %c0_22, %c0_23], %23 {strides = array<i32>} : memref<2x128x20xf32, #tpu.memory_space<vmem>>, vector<1x128x20xf32>,
    %c0_24 = arith.constant 0 : index
    %c0_25 = arith.constant 0 : index
    %24 = vector.load %arg7[%c0_24, %c0_25] : memref<20x12xf32, #tpu.memory_space<vmem>>, vector<20x12xf32>
    %cst_26 = arith.constant dense<0.000000e+00> : vector<128x12xf32>
    %25 = tpu.matmul %20, %24, %cst_26 {dimension_numbers = #tpu.dot_dimension_numbers<[1], [0], [0], [1], [0, 0, 1, 1], [], []>, precision = #tpu.contract_precision<fp32>} : vector<128x20xf32>, vector<20x12xf32>, vector<128x12xf32> -> vector<128x12xf32>
    %c0_27 = arith.constant 0 : index
    %c0_28 = arith.constant 0 : index
    %26 = vector.load %arg8[%c0_27, %c0_28] : memref<256x128xf32, #tpu.memory_space<vmem>>, vector<256x128xf32>
    %cst_29 = arith.constant dense<0.000000e+00> : vector<256x12xf32>
    %27 = tpu.matmul %26, %25, %cst_29 {dimension_numbers = #tpu.dot_dimension_numbers<[1], [0], [0], [1], [0, 0, 1, 1], [], []>, precision = #tpu.contract_precision<fp32>} : vector<256x128xf32>, vector<128x12xf32>, vector<256x12xf32> -> vector<256x12xf32>
    %c0_30 = arith.constant 0 : index
    %c0_31 = arith.constant 0 : index
    %28 = vector.load %arg9[%c0_30, %c0_31] : memref<256x1xf32, #tpu.memory_space<vmem>>, vector<256x1xf32>
    %29 = vector.broadcast %28 : vector<256x1xf32> to vector<256x12xf32>
    %30 = arith.addf %27, %29 : vector<256x12xf32>
    %c0_32 = arith.constant 0 : index
    %c0_33 = arith.constant 0 : index
    %c0_34 = arith.constant 0 : index
    %31 = vector.load %arg12[%c0_32, %c0_33, %c0_34] : memref<2x256x12xf32, #tpu.memory_space<vmem>>, vector<1x256x12xf32>
    %32 = vector.shape_cast %31 : vector<1x256x12xf32> to vector<256x12xf32>
    %33 = vector.shape_cast %30 : vector<256x12xf32> to vector<1x256x12xf32>
    tpu.vector_store %arg12[%c0_32, %c0_33, %c0_34], %33 {strides = array<i32>} : memref<2x256x12xf32, #tpu.memory_space<vmem>>, vector<1x256x12xf32>,
    %c1 = arith.constant 1 : index
    %c0_35 = arith.constant 0 : index
    %c0_36 = arith.constant 0 : index
    %34 = vector.load %arg0[%c1, %c0_35, %c0_36] : memref<2x3x320xf32, #tpu.memory_space<vmem>>, vector<1x3x320xf32>
    %35 = vector.shape_cast %34 : vector<1x3x320xf32> to vector<3x320xf32>
    %c0_37 = arith.constant 0 : index
    %c0_38 = arith.constant 0 : index
    %36 = vector.load %arg1[%c0_37, %c0_38] : memref<320x48xf32, #tpu.memory_space<vmem>>, vector<320x48xf32>
    %cst_39 = arith.constant dense<0.000000e+00> : vector<3x48xf32>
    %37 = tpu.matmul %35, %36, %cst_39 {dimension_numbers = #tpu.dot_dimension_numbers<[1], [0], [0], [1], [0, 0, 1, 1], [], []>, precision = #tpu.contract_precision<fp32>} : vector<3x320xf32>, vector<320x48xf32>, vector<3x48xf32> -> vector<3x48xf32>
    %c0_40 = arith.constant 0 : index
    %c0_41 = arith.constant 0 : index
    %38 = vector.load %arg2[%c0_40, %c0_41] : memref<96x3xf32, #tpu.memory_space<vmem>>, vector<96x3xf32>
    %cst_42 = arith.constant dense<0.000000e+00> : vector<96x48xf32>
    %39 = tpu.matmul %38, %37, %cst_42 {dimension_numbers = #tpu.dot_dimension_numbers<[1], [0], [0], [1], [0, 0, 1, 1], [], []>, precision = #tpu.contract_precision<fp32>} : vector<96x3xf32>, vector<3x48xf32>, vector<96x48xf32> -> vector<96x48xf32>
    %c0_43 = arith.constant 0 : index
    %c0_44 = arith.constant 0 : index
    %40 = vector.load %arg3[%c0_43, %c0_44] : memref<96x1xf32, #tpu.memory_space<vmem>>, vector<96x1xf32>
    %41 = vector.broadcast %40 : vector<96x1xf32> to vector<96x48xf32>
    %42 = arith.addf %39, %41 : vector<96x48xf32>
    %c1_45 = arith.constant 1 : index
    %c0_46 = arith.constant 0 : index
    %c0_47 = arith.constant 0 : index
    %43 = vector.load %arg10[%c1_45, %c0_46, %c0_47] : memref<2x96x48xf32, #tpu.memory_space<vmem>>, vector<1x96x48xf32>
    %44 = vector.shape_cast %43 : vector<1x96x48xf32> to vector<96x48xf32>
    %45 = vector.shape_cast %42 : vector<96x48xf32> to vector<1x96x48xf32>
    tpu.vector_store %arg10[%c1_45, %c0_46, %c0_47], %45 {strides = array<i32>} : memref<2x96x48xf32, #tpu.memory_space<vmem>>, vector<1x96x48xf32>,
    %c0_48 = arith.constant 0 : index
    %c0_49 = arith.constant 0 : index
    %46 = vector.load %arg4[%c0_48, %c0_49] : memref<48x20xf32, #tpu.memory_space<vmem>>, vector<48x20xf32>
    %cst_50 = arith.constant dense<0.000000e+00> : vector<96x20xf32>
    %47 = tpu.matmul %42, %46, %cst_50 {dimension_numbers = #tpu.dot_dimension_numbers<[1], [0], [0], [1], [0, 0, 1, 1], [], []>, precision = #tpu.contract_precision<fp32>} : vector<96x48xf32>, vector<48x20xf32>, vector<96x20xf32> -> vector<96x20xf32>
    %c0_51 = arith.constant 0 : index
    %c0_52 = arith.constant 0 : index
    %48 = vector.load %arg5[%c0_51, %c0_52] : memref<128x96xf32, #tpu.memory_space<vmem>>, vector<128x96xf32>
    %cst_53 = arith.constant dense<0.000000e+00> : vector<128x20xf32>
    %49 = tpu.matmul %48, %47, %cst_53 {dimension_numbers = #tpu.dot_dimension_numbers<[1], [0], [0], [1], [0, 0, 1, 1], [], []>, precision = #tpu.contract_precision<fp32>} : vector<128x96xf32>, vector<96x20xf32>, vector<128x20xf32> -> vector<128x20xf32>
    %c0_54 = arith.constant 0 : index
    %c0_55 = arith.constant 0 : index
    %50 = vector.load %arg6[%c0_54, %c0_55] : memref<128x1xf32, #tpu.memory_space<vmem>>, vector<128x1xf32>
    %51 = vector.broadcast %50 : vector<128x1xf32> to vector<128x20xf32>
    %52 = arith.addf %49, %51 : vector<128x20xf32>
    %cst_56 = arith.constant 2.560000e+02 : f32
    %53 = vector.broadcast %cst_56 : f32 to vector<128x20xf32>
    %54 = arith.subf %52, %53 : vector<128x20xf32>
    %c1_57 = arith.constant 1 : index
    %c0_58 = arith.constant 0 : index
    %c0_59 = arith.constant 0 : index
    %55 = vector.load %arg11[%c1_57, %c0_58, %c0_59] : memref<2x128x20xf32, #tpu.memory_space<vmem>>, vector<1x128x20xf32>
    %56 = vector.shape_cast %55 : vector<1x128x20xf32> to vector<128x20xf32>
    %57 = vector.shape_cast %54 : vector<128x20xf32> to vector<1x128x20xf32>
    tpu.vector_store %arg11[%c1_57, %c0_58, %c0_59], %57 {strides = array<i32>} : memref<2x128x20xf32, #tpu.memory_space<vmem>>, vector<1x128x20xf32>,
    %c0_60 = arith.constant 0 : index
    %c0_61 = arith.constant 0 : index
    %58 = vector.load %arg7[%c0_60, %c0_61] : memref<20x12xf32, #tpu.memory_space<vmem>>, vector<20x12xf32>
    %cst_62 = arith.constant dense<0.000000e+00> : vector<128x12xf32>
    %59 = tpu.matmul %54, %58, %cst_62 {dimension_numbers = #tpu.dot_dimension_numbers<[1], [0], [0], [1], [0, 0, 1, 1], [], []>, precision = #tpu.contract_precision<fp32>} : vector<128x20xf32>, vector<20x12xf32>, vector<128x12xf32> -> vector<128x12xf32>
    %c0_63 = arith.constant 0 : index
    %c0_64 = arith.constant 0 : index
    %60 = vector.load %arg8[%c0_63, %c0_64] : memref<256x128xf32, #tpu.memory_space<vmem>>, vector<256x128xf32>
    %cst_65 = arith.constant dense<0.000000e+00> : vector<256x12xf32>
    %61 = tpu.matmul %60, %59, %cst_65 {dimension_numbers = #tpu.dot_dimension_numbers<[1], [0], [0], [1], [0, 0, 1, 1], [], []>, precision = #tpu.contract_precision<fp32>} : vector<256x128xf32>, vector<128x12xf32>, vector<256x12xf32> -> vector<256x12xf32>
    %c0_66 = arith.constant 0 : index
    %c0_67 = arith.constant 0 : index
    %62 = vector.load %arg9[%c0_66, %c0_67] : memref<256x1xf32, #tpu.memory_space<vmem>>, vector<256x1xf32>
    %63 = vector.broadcast %62 : vector<256x1xf32> to vector<256x12xf32>
    %64 = arith.addf %61, %63 : vector<256x12xf32>
    %c1_68 = arith.constant 1 : index
    %c0_69 = arith.constant 0 : index
    %c0_70 = arith.constant 0 : index
    %65 = vector.load %arg12[%c1_68, %c0_69, %c0_70] : memref<2x256x12xf32, #tpu.memory_space<vmem>>, vector<1x256x12xf32>
    %66 = vector.shape_cast %65 : vector<1x256x12xf32> to vector<256x12xf32>
    %67 = vector.shape_cast %64 : vector<256x12xf32> to vector<1x256x12xf32>
    tpu.vector_store %arg12[%c1_68, %c0_69, %c0_70], %67 {strides = array<i32>} : memref<2x256x12xf32, #tpu.memory_space<vmem>>, vector<1x256x12xf32>,
    return
  }
}

</mosaic_0001>

<bundles_post_ra>
// kernel: _model_forward.1
= control target key start
LH: loop header
LB: loop body
LE: loop exit
PB: predicated region body
PF: predicated region fallthrough
CT: control target
= control target key end

     0   :  { %vm90_vm0 = vcmask 523264   ;;  %vm1096_vm1 = vcmask 23552   ;;  %vm1133_vm2 = vcmask 1042432   ;;  %vm1624_vm3 = vcmask 392192   ;;  %s17517_s1 = inlined_call_operand.vmem [shape: f32[320,48], index: 1, kind: input, shape index: {}]   ;;  %s17518_s0 = inlined_call_operand.vmem [shape: f32[2,3,320], index: 0, kind: input, shape index: {}]   ;;  %s17519_s3 = inlined_call_operand.vmem [shape: f32[96,1], index: 3, kind: input, shape index: {}]   ;;  %s17520_s6 = inlined_call_operand.vmem [shape: f32[128,1], index: 6, kind: input, shape index: {}]   ;;  %s17521_s9 = inlined_call_operand.vmem [shape: f32[256,1], index: 9, kind: input, shape index: {}]   ;;  %s17522_s2 = inlined_call_operand.vmem [shape: f32[96,3], index: 2, kind: input, shape index: {}]   ;;  %s17523_s4 = inlined_call_operand.vmem [shape: f32[48,20], index: 4, kind: input, shape index: {}]   ;;  %s17524_s10 = inlined_call_operand.vmem [shape: f32[2,96,48], index: 10, kind: output, shape index: {0}]   ;;  %s17525_s5 = inlined_call_operand.vmem [shape: f32[128,96], index: 5, kind: input, shape index: {}]   ;;  %s17526_s7 = inlined_call_operand.vmem [shape: f32[20,12], index: 7, kind: input, shape index: {}]   ;;  %s17527_s11 = inlined_call_operand.vmem [shape: f32[2,128,20], index: 11, kind: output, shape index: {1}]   ;;  %s17528_s8 = inlined_call_operand.vmem [shape: f32[256,128], index: 8, kind: input, shape index: {}]   ;;  %s17529_s12 = inlined_call_operand.vmem [shape: f32[2,256,12], index: 12, kind: output, shape index: {2}]  }
   0x1   :  { %v55_v0 = vld [vmem:[%s17517_s1 + $0x78] sm:$0xff]  ;;  %v54_v1 = vld [vmem:[%s17517_s1 + $0x70] sm:$0xff]  ;;  %v53_v2 = vld [vmem:[%s17517_s1 + $0x68] sm:$0xff]  ;;  %vm2343_vm4 = vcmask 785408   ;;  %vm3230_vm5 = vcmask 1043456   ;;  %vm3162_vm6 = vcmask 162816  }
   0x2   :  { %v11027_v3 = vand.u32 4294901760, %v55_v0  ;;  %v11029_v4 = vand.u32 4294901760, %v54_v1  ;;  %v11031_v5 = vand.u32 4294901760, %v53_v2  ;;  %v52_v6 = vld [vmem:[%s17517_s1 + $0x60] sm:$0xff]  ;;  %v51_v7 = vld [vmem:[%s17517_s1 + $0x58] sm:$0xff]  ;;  %v50_v8 = vld [vmem:[%s17517_s1 + $0x50] sm:$0xff] }
   0x3   :  { %v11042_v9 = vand.u32 4294901760, %v52_v6  ;;  %v11044_v10 = vand.u32 4294901760, %v51_v7  ;;  %v11046_v11 = vand.u32 4294901760, %v50_v8  ;;  %v49_v12 = vld [vmem:[%s17517_s1 + $0x48] sm:$0xff]  ;;  %v48_v13 = vld [vmem:[%s17517_s1 + $0x40] sm:$0xff]  ;;  %v47_v18 = vld [vmem:[%s17517_s1 + $0x38] sm:$0xff] }
   0x4   :  { %94 = vmatpush.msra.mxu0 %v11027_v3  ;;  %v11056_v14 = vsub.f32 %v55_v0, %v11027_v3  ;;  %v11059_v15 = vsub.f32 %v54_v1, %v11029_v4  ;;  %290 = vmatpush.msra.mxu3 %v11027_v3  ;;  %v11063_v16 = vsub.f32 %v53_v2, %v11031_v5  ;;  %v11065_v17 = vand.u32 4294901760, %v49_v12  ;;  %v46_v26 = vld [vmem:[%s17517_s1 + $0x30] sm:$0xff]  ;;  %v45_v36 = vld [vmem:[%s17517_s1 + $0x28] sm:$0xff]  ;;  %v44_v42 = vld [vmem:[%s17517_s1 + $0x20] sm:$0xff] }
   0x5   :  { %v11071_v19 = vsub.f32 %v52_v6, %v11042_v9  ;;  %v11074_v20 = vsub.f32 %v51_v7, %v11044_v10  ;;  %v11077_v21 = vsub.f32 %v50_v8, %v11046_v11  ;;  %v11084_v25 = vand.u32 4294901760, %v48_v13  ;;  %v43_v48 = vld [vmem:[%s17517_s1 + $0x18] sm:$0xff]  ;;  %v42_v54 = vld [vmem:[%s17517_s1 + $0x10] sm:$0xff]  ;;  %v38_v60 = vld [vmem:[%s17518_s0] sm:$0x77] }
   0x6   :  { %96 = vmatpush.msra.mxu0 %v11029_v4  ;;  %237 = vmatpush.msra.mxu2 %v11056_v14  ;;  %v136_v22 = vand.u32 4294901760, %v11056_v14  ;;  %v142_v23 = vand.u32 4294901760, %v11059_v15  ;;  %v17543_v24 = vand.u32 4294901760, %v11063_v16  ;;  %v11091_v28 = vand.u32 4294901760, %v47_v18  ;;  %v71_v59 = vld [vmem:[%s17517_s1 + $0xf8] sm:$0xff]  ;;  %v41_v62 = vld [vmem:[%s17517_s1 + $0x8] sm:$0xff] }
   0x7   :  { %292 = vmatpush.msra.mxu3 %v11029_v4  ;;  %v17542_v27 = vand.u32 4294901760, %v11071_v19  ;;  %v11094_v29 = vsub.f32 %v49_v12, %v11065_v17  ;;  %v17539_v33 = vand.u32 4294901760, %v11074_v20  ;;  %v11109_v34 = vand.u32 4294901760, %v46_v26  ;;  %82 = vst [vmem:[#allocation1] ss:$2 sm:$0xff] %v38_v60  ;;  %v70_v6 = vld [vmem:[%s17517_s1 + $0xf0] sm:$0xff] }
   0x8   :  { %98 = vmatpush.msra.mxu0 %v11031_v5  ;;  %240 = vmatpush.msra.mxu2 %v11059_v15  ;;  %v137_v30 = vsub.f32 %v11056_v14, %v136_v22  ;;  %v143_v31 = vsub.f32 %v11059_v15, %v142_v23  ;;  %v149_v32 = vsub.f32 %v11063_v16, %v17543_v24  ;;  %v17538_v35 = vand.u32 4294901760, %v11077_v21  ;;  %v40_v8 = vld [vmem:[%s17517_s1] sm:$0xff]  ;;  %v67_v60 = vld [vmem:[%s17517_s1 + $0xd8] sm:$0xff] }
   0x9   :  { %294 = vmatpush.msra.mxu3 %v11031_v5  ;;  %v155_v39 = vsub.f32 %v11071_v19, %v17542_v27  ;;  %v11121_v40 = vsub.f32 %v48_v13, %v11084_v25  ;;  %v17536_v41 = vand.u32 4294901760, %v11094_v29  ;;  %v161_v44 = vsub.f32 %v11074_v20, %v17539_v33 }
   0xa   :  { %100 = vmatpush.msra.mxu0 %v11042_v9  ;;  %v138_v37 = vand.u32 4294901760, %v137_v30  ;;  %243 = vmatpush.msra.mxu2 %v11063_v16  ;;  %v144_v38 = vand.u32 4294901760, %v143_v31  ;;  %v150_v43 = vand.u32 4294901760, %v149_v32  ;;  %v11132_v45 = vand.u32 4294901760, %v45_v36  ;;  %v69_v31 = vld [vmem:[%s17517_s1 + $0xe8] sm:$0xff] }
   0xb   :  { %296 = vmatpush.msra.mxu3 %v11042_v9  ;;  %v11135_v46 = vsub.f32 %v47_v18, %v11091_v28  ;;  %v11140_v47 = vsub.f32 %v46_v26, %v11109_v34  ;;  %v156_v49 = vand.u32 4294901760, %v155_v39  ;;  %v167_v50 = vsub.f32 %v11077_v21, %v17538_v35 }
   0xc   :  { %102 = vmatpush.msra.mxu0 %v11044_v10  ;;  %139 = vmatpush.msra.mxu1 %v138_v37  ;;  %v11149_v51 = vand.u32 4294901760, %v44_v42  ;;  %v17535_v52 = vand.u32 4294901760, %v11121_v40  ;;  %v173_v53 = vsub.f32 %v11094_v29, %v17536_v41  ;;  %v162_v55 = vand.u32 4294901760, %v161_v44 }
   0xd   :  { %246 = vmatpush.msra.mxu2 %v11071_v19  ;;  %298 = vmatpush.msra.mxu3 %v11044_v10  ;;  %v11161_v56 = vand.u32 4294901760, %v43_v48  ;;  %v17534_v57 = vand.u32 4294901760, %v11135_v46  ;;  %v11165_v58 = vsub.f32 %v45_v36, %v11132_v45  ;;  %v17532_v61 = vand.u32 4294901760, %v11140_v47 }
   0xe   :  { %104 = vmatpush.msra.mxu0 %v11046_v11  ;;  %145 = vmatpush.msra.mxu1 %v144_v38  ;;  %v168_v63 = vand.u32 4294901760, %v167_v50  ;;  %v179_v0 = vsub.f32 %v11121_v40, %v17535_v52  ;;  %v11183_v1 = vand.u32 4294901760, %v42_v54  ;;  %v11186_v2 = vsub.f32 %v44_v42, %v11149_v51 }
   0xf   :  { %249 = vmatpush.msra.mxu2 %v11074_v20  ;;  %300 = vmatpush.msra.mxu3 %v11046_v11  ;;  %v174_v7 = vand.u32 4294901760, %v173_v53  ;;  %v11196_v12 = vand.u32 4294901760, %v71_v59  ;;  %v185_v13 = vsub.f32 %v11135_v46, %v17534_v57  ;;  %v11202_v18 = vand.u32 4294901760, %v41_v62 }
  0x10   :  { %106 = vmatpush.msra.mxu0 %v11065_v17  ;;  %151 = vmatpush.msra.mxu1 %v150_v43  ;;  %v17531_v26 = vand.u32 4294901760, %v11165_v58  ;;  %v11206_v30 = vsub.f32 %v43_v48, %v11161_v56  ;;  %v191_v32 = vsub.f32 %v11140_v47, %v17532_v61  ;;  %v11216_v36 = vand.u32 4294901760, %v70_v6  ;;  %v68_v48 = vld [vmem:[%s17517_s1 + $0xe0] sm:$0xff] }
  0x11   :  { %252 = vmatpush.msra.mxu2 %v11077_v21  ;;  %302 = vmatpush.msra.mxu3 %v11065_v17  ;;  %v180_v37 = vand.u32 4294901760, %v179_v0  ;;  %v11219_v38 = vand.u32 4294901760, %v40_v8  ;;  %v17530_v39 = vand.u32 4294901760, %v11186_v2  ;;  %v11223_v42 = vsub.f32 %v42_v54, %v11183_v1 }
  0x12   :  { %108 = vmatpush.msra.mxu0 %v11084_v25  ;;  %157 = vmatpush.msra.mxu1 %v156_v49  ;;  %17633 = vst [vmem:[#allocation2_spill] sm:$0xff] %v11216_v36  ;;  %v11228_v43 = vsub.f32 %v71_v59, %v11196_v12  ;;  %v11230_v44 = vand.u32 4294901760, %v69_v31  ;;  %v186_v49 = vand.u32 4294901760, %v185_v13  ;;  %v197_v50 = vsub.f32 %v11165_v58, %v17531_v26 }
  0x13   :  { %255 = vmatpush.msra.mxu2 %v11094_v29  ;;  %304 = vmatpush.msra.mxu3 %v11084_v25  ;;  %v17533_v53 = vand.u32 4294901760, %v11206_v30  ;;  %v11241_v54 = vsub.f32 %v41_v62, %v11202_v18  ;;  %v11246_v59 = vsub.f32 %v70_v6, %v11216_v36  ;;  %v203_v62 = vsub.f32 %v11186_v2, %v17530_v39  ;;  %v66_v6 = vld [vmem:[%s17517_s1 + $0xd0] sm:$0xff] }
  0x14   :  { %110 = vmatpush.msra.mxu0 %v11091_v28  ;;  %163 = vmatpush.msra.mxu1 %v162_v55  ;;  %v192_v55 = vand.u32 4294901760, %v191_v32  ;;  %v11257_v0 = vsub.f32 %v40_v8, %v11219_v38  ;;  %v17540_v13 = vand.u32 4294901760, %v11228_v43  ;;  %v11268_v32 = vsub.f32 %v69_v31, %v11230_v44 }
  0x15   :  { %258 = vmatpush.msra.mxu2 %v11121_v40  ;;  %306 = vmatpush.msra.mxu3 %v11091_v28  ;;  %v198_v8 = vand.u32 4294901760, %v197_v50  ;;  %v17541_v39 = vand.u32 4294901760, %v11241_v54  ;;  %v11275_v26 = vand.u32 4294901760, %v67_v60  ;;  %v17544_v61 = vand.u32 4294901760, %v11246_v59 }
  0x16   :  { %112 = vmatpush.msra.mxu0 %v11109_v34  ;;  %169 = vmatpush.msra.mxu1 %v168_v63  ;;  %v17537_v63 = vand.u32 4294901760, %v11223_v42  ;;  %v11280_v31 = vand.u32 4294901760, %v66_v6  ;;  %v204_v50 = vand.u32 4294901760, %v203_v62  ;;  %v17545_v57 = vand.u32 4294901760, %v11257_v0  ;;  %v64_v62 = vld [vmem:[%s17517_s1 + $0xc0] sm:$0xff] }
  0x17   :  { %261 = vmatpush.msra.mxu2 %v11135_v46  ;;  %308 = vmatpush.msra.mxu3 %v11109_v34  ;;  %v478_v41 = vsub.f32 %v11228_v43, %v17540_v13  ;;  %v11307_v35 = vsub.f32 %v67_v60, %v11275_v26  ;;  %v484_v13 = vsub.f32 %v11246_v59, %v17544_v61  ;;  %v11327_v24 = vand.u32 4294901760, %v64_v62 }
  0x18   :  { %114 = vmatpush.msra.mxu0 %v11132_v45  ;;  %175 = vmatpush.msra.mxu1 %v174_v7  ;;  %v11259_v7 = vand.u32 4294901760, %v68_v48  ;;  %vm5397_vm7 = vcmask 97280  }
  0x19   :  { %264 = vmatpush.msra.mxu2 %v11140_v47  ;;  %310 = vmatpush.msra.mxu3 %v11132_v45  ;;  %v11357_v15 = vsub.f32 %v64_v62, %v11327_v24 }
  0x1a   :  { %116 = vmatpush.msra.mxu0 %v11149_v51  ;;  %181 = vmatpush.msra.mxu1 %v180_v37  ;;  %v209_v37 = vsub.f32 %v11206_v30, %v17533_v53  ;;  %v215_v53 = vsub.f32 %v11223_v42, %v17537_v63  ;;  %v11291_v52 = vsub.f32 %v68_v48, %v11259_v7 }
  0x1b   :  { %267 = vmatpush.msra.mxu2 %v11165_v58  ;;  %312 = vmatpush.msra.mxu3 %v11149_v51  ;;  %v221_v48 = vsub.f32 %v11241_v54, %v17541_v39  ;;  %v227_v39 = vsub.f32 %v11257_v0, %v17545_v57  ;;  %v17548_v57 = vand.u32 4294901760, %v11307_v35 }
  0x1c   :  { %118 = vmatpush.msra.mxu0 %v11161_v56  ;;  %187 = vmatpush.msra.mxu1 %v186_v49  ;;  %v65_v49 = vld [vmem:[%s17517_s1 + $0xc8] sm:$0xff]  ;;  %v210_v63 = vand.u32 4294901760, %v209_v37  ;;  %v63_v37 = vld [vmem:[%s17517_s1 + $0xb8] sm:$0xff]  ;;  %v216_v60 = vand.u32 4294901760, %v215_v53  ;;  %v17547_v27 = vand.u32 4294901760, %v11291_v52  ;;  %v62_v53 = vld [vmem:[%s17517_s1 + $0xb0] sm:$0xff] }
  0x1d   :  { %270 = vmatpush.msra.mxu2 %v11186_v2  ;;  %314 = vmatpush.msra.mxu3 %v11161_v56  ;;  %v11309_v33 = vand.u32 4294901760, %v65_v49 }
  0x1e   :  { %120 = vmatpush.msra.mxu0 %v11183_v1  ;;  %193 = vmatpush.msra.mxu1 %v192_v55  ;;  %v17546_v55 = vand.u32 4294901760, %v11268_v32 }
  0x1f   :  { %273 = vmatpush.msra.mxu2 %v11206_v30  ;;  %316 = vmatpush.msra.mxu3 %v11183_v1  ;;  %v11341_v14 = vsub.f32 %v65_v49, %v11309_v33  ;;  %v496_v49 = vsub.f32 %v11291_v52, %v17547_v27 }
  0x20   :  { %122 = vmatpush.msra.mxu0 %v11202_v18  ;;  %199 = vmatpush.msra.mxu1 %v198_v8  ;;  %v11317_v8 = vsub.f32 %v66_v6, %v11280_v31  ;;  %v479_v6 = vand.u32 4294901760, %v478_v41  ;;  %v490_v61 = vsub.f32 %v11268_v32, %v17546_v55  ;;  %v485_v41 = vand.u32 4294901760, %v484_v13 }
  0x21   :  { %276 = vmatpush.msra.mxu2 %v11223_v42  ;;  %318 = vmatpush.msra.mxu3 %v11202_v18  ;;  %v17634_v13 = vand.u32 4294901760, %v11063_v16 }
  0x22   :  { %124 = vmatpush.msra.mxu0 %v11219_v38  ;;  %205 = vmatpush.msra.mxu1 %v204_v50  ;;  %v222_v50 = vand.u32 4294901760, %v221_v48  ;;  %v228_v48 = vand.u32 4294901760, %v227_v39  ;;  %v491_v55 = vand.u32 4294901760, %v490_v61  ;;  %v502_v39 = vsub.f32 %v11307_v35, %v17548_v57 }
  0x23   :  { %279 = vmatpush.msra.mxu2 %v11241_v54  ;;  %320 = vmatpush.msra.mxu3 %v11219_v38  ;;  %v17635_v61 = vand.u32 4294901760, %v11071_v19  ;;  %v17551_v57 = vand.u32 4294901760, %v11357_v15  ;;  %v59_v19 = vld [vmem:[%s17517_s1 + $0x98] sm:$0xff] }
  0x24   :  { %331 = vmatpush.msrb.mxu0 %v136_v22  ;;  %211 = vmatpush.msra.mxu1 %v210_v63  ;;  %v11343_v22 = vand.u32 4294901760, %v63_v37  ;;  %v61_v63 = vld [vmem:[%s17517_s1 + $0xa8] sm:$0xff] }
  0x25   :  { %282 = vmatpush.msra.mxu2 %v11257_v0  ;;  %480 = vmatpush.msrb.mxu3 %v479_v6  ;;  %v11374_v16 = vand.u32 4294901760, %v61_v63  ;;  %v17636_v6 = vand.u32 4294901760, %v11317_v8 }
  0x26   :  { %335 = vmatpush.msrb.mxu0 %v142_v23  ;;  %217 = vmatpush.msra.mxu1 %v216_v60  ;;  %v11359_v23 = vand.u32 4294901760, %v62_v53  ;;  %v60_v60 = vld [vmem:[%s17517_s1 + $0xa0] sm:$0xff]  ;;  %v11372_v27 = vsub.f32 %v63_v37, %v11343_v22 }
  0x27   :  { %435 = vmatpush.msrb.mxu2 %v11196_v12  ;;  %486 = vmatpush.msrb.mxu3 %v485_v41  ;;  %v11386_v37 = vand.u32 4294901760, %v60_v60  ;;  %v503_v41 = vand.u32 4294901760, %v502_v39 }
  0x28   :  { %339 = vmatpush.msrb.mxu0 %v17634_v13  ;;  %223 = vmatpush.msra.mxu1 %v222_v50  ;;  %v508_v50 = vsub.f32 %v11317_v8, %v17636_v6  ;;  %v497_v13 = vand.u32 4294901760, %v496_v49  ;;  %v11384_v62 = vsub.f32 %v62_v53, %v11359_v23  ;;  %v17552_v49 = vand.u32 4294901760, %v11372_v27 }
  0x29   :  { %437 = vmatpush.msrb.mxu2 %v11216_v36  ;;  %v17637_v36 = vand.u32 4294901760, %v11074_v20  ;;  %492 = vmatpush.msrb.mxu3 %v491_v55  ;;  %v85_v20 = vld.sshfl [vmem:[#allocation1] sm:$0xff pattern:$0x75316420]  ;;  %v520_v55 = vsub.f32 %v11357_v15, %v17551_v57  ;;  %v11410_v6 = vand.u32 4294901760, %v59_v19 }
  0x2a   :  { %343 = vmatpush.msrb.mxu0 %v17635_v61  ;;  %229 = vmatpush.msra.mxu1 %v228_v48  ;;  %v17638_v48 = vand.u32 4294901760, %v11341_v14  ;;  %v11400_v61 = vsub.f32 %v61_v63, %v11374_v16  ;;  %v531_v39 = vand.u32 4294901760, %v11384_v62  ;;  %v11413_v63 = vsub.f32 %v60_v60, %v11386_v37 }
  0x2b   :  { %439 = vmatpush.msrb.mxu2 %v11230_v44  ;;  %498 = vmatpush.msrb.mxu3 %v497_v13  ;;  %v11423_v13 = vld.sshfl [vmem:[#allocation1 + $0x8] sm:$0xff pattern:$0x75316420] }
  0x2c   :  { %347 = vmatpush.msrb.mxu0 %v17637_v36  ;;  %398 = vmatpush.msrb.mxu1 %v11027_v3  ;;  %v514_v53 = vsub.f32 %v11341_v14, %v17638_v48  ;;  %v17639_v3 = vand.u32 4294901760, %v11077_v21  ;;  %v509_v36 = vand.u32 4294901760, %v508_v50  ;;  %v58_v21 = vld [vmem:[%s17517_s1 + $0x90] sm:$0xff]  ;;  %v11421_v50 = vand.u32 4294901760, %v85_v20 }
  0x2d   :  { %441 = vmatpush.msrb.mxu2 %v11259_v7  ;;  %v10846_v48 = vld [vmem:[%s17518_s0 + $0xc] sm:$0x77]  ;;  %504 = vmatpush.msrb.mxu3 %v503_v41  ;;  %v11439_v57 = vand.u32 4294901760, %v58_v21  ;;  %v521_v41 = vand.u32 4294901760, %v520_v55 }
  0x2e   :  { %351 = vmatpush.msrb.mxu0 %v17639_v3  ;;  %400 = vmatpush.msrb.mxu1 %v11029_v4  ;;  %v17640_v4 = vand.u32 4294901760, %v11094_v29  ;;  %v515_v60 = vand.u32 4294901760, %v514_v53  ;;  %v526_v3 = vsub.f32 %v11372_v27, %v17552_v49  ;;  %5475 = vst [vmem:[#allocation1] ss:$2 sm:$0xff] %v10846_v48  ;;  %v532_v53 = vsub.f32 %v11384_v62, %v531_v39 }
  0x2f   :  { %443 = vmatpush.msrb.mxu2 %v11275_v26  ;;  %510 = vmatpush.msrb.mxu3 %v509_v36  ;;  %v543_v49 = vand.u32 4294901760, %v11413_v63  ;;  %v11447_v29 = vsub.f32 %v59_v19, %v11410_v6  ;;  %v56_v36 = vld [vmem:[%s17517_s1 + $0x80] sm:$0xff]  ;;  %v17643_v19 = vand.u32 4294901760, %v11400_v61 }
  0x30   :  { %355 = vmatpush.msrb.mxu0 %v17640_v4  ;;  %402 = vmatpush.msrb.mxu1 %v11031_v5  ;;  %v57_v5 = vld [vmem:[%s17517_s1 + $0x88] sm:$0xff]  ;;  %v17641_v4 = vand.u32 4294901760, %v11121_v40  ;;  %v17642_v40 = vand.u32 4294901760, %v11135_v46  ;;  %v527_v55 = vand.u32 4294901760, %v526_v3 }
  0x31   :  { %445 = vmatpush.msrb.mxu2 %v11280_v31  ;;  %v11455_v48 = vand.u32 4294901760, %v57_v5  ;;  %516 = vmatpush.msrb.mxu3 %v515_v60  ;;  %v538_v46 = vsub.f32 %v11400_v61, %v17643_v19  ;;  %v544_v60 = vsub.f32 %v11413_v63, %v543_v49  ;;  %v549_v3 = vand.u32 4294901760, %v11447_v29 }
  0x32   :  { %359 = vmatpush.msrb.mxu0 %v17641_v4  ;;  %404 = vmatpush.msrb.mxu1 %v11042_v9  ;;  %v11453_v9 = vsub.f32 %v85_v20, %v11421_v50  ;;  %v17644_v4 = vand.u32 4294901760, %v11140_v47  ;;  %v533_v20 = vand.u32 4294901760, %v532_v53  ;;  %v17645_v47 = vand.u32 4294901760, %v11165_v58 }
  0x33   :  { %447 = vmatpush.msrb.mxu2 %v11309_v33  ;;  %522 = vmatpush.msrb.mxu3 %v521_v41  ;;  %v539_v41 = vand.u32 4294901760, %v538_v46  ;;  %v17646_v53 = vand.u32 4294901760, %v11186_v2  ;;  %v550_v58 = vsub.f32 %v11447_v29, %v549_v3  ;;  %v11502_v46 = vand.u32 4294901760, %v11423_v13 }
  0x34   :  { %363 = vmatpush.msrb.mxu0 %v17642_v40  ;;  %406 = vmatpush.msrb.mxu1 %v11044_v10  ;;  %v11468_v10 = vsub.f32 %v58_v21, %v11439_v57  ;;  %v11475_v40 = vand.u32 4294901760, %v56_v36  ;;  %v11482_v21 = vsub.f32 %v57_v5, %v11455_v48 }
  0x35   :  { %449 = vmatpush.msrb.mxu2 %v11327_v24  ;;  %528 = vmatpush.msrb.mxu3 %v527_v55  ;;  %v17647_v55 = vand.u32 4294901760, %v11206_v30 }
  0x36   :  { %367 = vmatpush.msrb.mxu0 %v17644_v4  ;;  %408 = vmatpush.msrb.mxu1 %v11046_v11  ;;  %v127_v11 = vand.u32 4294901760, %v11453_v9  ;;  %v555_v19 = vand.u32 4294901760, %v11468_v10  ;;  %v11494_v5 = vsub.f32 %v56_v36, %v11475_v40  ;;  %v561_v2 = vand.u32 4294901760, %v11482_v21 }
  0x37   :  { %451 = vmatpush.msrb.mxu2 %v11343_v22  ;;  %534 = vmatpush.msrb.mxu3 %v533_v20  ;;  %v17648_v4 = vand.u32 4294901760, %v11223_v42  ;;  %v17649_v20 = vand.u32 4294901760, %v11241_v54  ;;  %v11519_v42 = vld [vmem:[%s17519_s3] sm:$0xff] }
  0x38   :  { %371 = vmatpush.msrb.mxu0 %v17645_v47  ;;  %410 = vmatpush.msrb.mxu1 %v11065_v17  ;;  %v545_v17 = vand.u32 4294901760, %v544_v60  ;;  %v556_v30 = vsub.f32 %v11468_v10, %v555_v19  ;;  %v567_v36 = vand.u32 4294901760, %v11494_v5  ;;  %v562_v60 = vsub.f32 %v11482_v21, %v561_v2 }
  0x39   :  { %453 = vmatpush.msrb.mxu2 %v11359_v23  ;;  %540 = vmatpush.msrb.mxu3 %v539_v41  ;;  %v11526_v47 = vsub.f32 %v11423_v13, %v11502_v46  ;;  %v10952_v41 = vmov 0  }
  0x3a   :  { %375 = vmatpush.msrb.mxu0 %v17646_v53  ;;  %412 = vmatpush.msrb.mxu1 %v11084_v25  ;;  %v128_v25 = vsub.f32 %v11453_v9, %v127_v11  ;;  %v557_v54 = vand.u32 4294901760, %v556_v30  ;;  %v568_v53 = vsub.f32 %v11494_v5, %v567_v36  ;;  %v563_v13 = vand.u32 4294901760, %v562_v60 }
  0x3b   :  { %455 = vmatpush.msrb.mxu2 %v11374_v16  ;;  %546 = vmatpush.msrb.mxu3 %v545_v17  ;;  %v468_v17 = vand.u32 4294901760, %v11526_v47 }
  0x3c   :  { %379 = vmatpush.msrb.mxu0 %v17647_v55  ;;  %414 = vmatpush.msrb.mxu1 %v11091_v28  ;;  %v551_v28 = vand.u32 4294901760, %v550_v58  ;;  %v17654_v58 = vld [vmem:[#allocation2_spill] sm:$0xff] }
  0x3d   :  { %457 = vmatpush.msrb.mxu2 %v11386_v37  ;;  %10949 = vset.pattern.permute.xlu0 %v10952_v41 }
  0x3e   :  { %383 = vmatpush.msrb.mxu0 %v17648_v4  ;;  %416 = vmatpush.msrb.mxu1 %v11109_v34  ;;  %v129_v34 = vand.u32 4294901760, %v128_v25 }
  0x3f   :  { %459 = vmatpush.msrb.mxu2 %v11410_v6  ;;  %552 = vmatpush.msrb.mxu3 %v551_v28 }
  0x40   :  { %387 = vmatpush.msrb.mxu0 %v17649_v20  ;;  %418 = vmatpush.msrb.mxu1 %v11132_v45  ;;  %v17650_v45 = vand.u32 4294901760, %v11257_v0  ;;  %v17651_v0 = vand.u32 4294901760, %v11228_v43 }
  0x41   :  { %461 = vmatpush.msrb.mxu2 %v11439_v57  ;;  %1038 = vperm.xlu0 %10949, %v11519_v42  }
  0x42   :  { %391 = vmatpush.msrb.mxu0 %v17650_v45  ;;  %420 = vmatpush.msrb.mxu1 %v11149_v51  ;;  %v569_v51 = vand.u32 4294901760, %v568_v53 }
  0x43   :  { %130 = vmatmul.f32.vlgmr.msra.gmra.mxu0 %v129_v34  ;;  %463 = vmatpush.msrb.mxu2 %v11455_v48 }
  0x44   :  { %422 = vmatpush.msrb.mxu1 %v11161_v56  ;;  %578 = vmatpush.msra.mxu0 %v11228_v43  ;;  %v469_v56 = vsub.f32 %v11526_v47, %v468_v17 }
  0x45   :  { %558 = vmatpush.msrb.mxu3 %v557_v54  ;;  %285 = vmatmul.f32.vlgmr.msra.gmra.mxu2 %v11453_v9  ;;  %v39_v9 = vld [vmem:[%s17518_s0 + $0x8] sm:$0x7] }
  0x46   :  { %581 = vmatpush.msra.mxu0 %v11246_v59  ;;  %424 = vmatpush.msrb.mxu1 %v11183_v1  ;;  %v11556_v1 = vld [vmem:[%s17519_s3 + $0x8] sm:$0xff]  ;;  %v470_v43 = vand.u32 4294901760, %v469_v56  ;;  %84 = vst [vmem:[#allocation1 + $0x10] ss:$2 sm:$0xff] %v39_v9  ;;  %v11779_v56 = vld [vmem:[%s17520_s6 + $0x18] sm:$0xff] }
  0x47   :  { %465 = vmatpush.msrb.mxu2 %v11475_v40  ;;  %564 = vmatpush.msrb.mxu3 %v563_v13 }
  0x48   :  { %324 = vmatmul.f32.vlgmr.msra.gmra.mxu3 %v127_v11  ;;  %584 = vmatpush.msra.mxu0 %v11268_v32  ;;  %v17652_v11 = vand.u32 4294901760, %v11246_v59  ;;  %v17655_v59 = vand.u32 4294901760, %v11291_v52 }
  0x49   :  { %672 = vmatpush.msra.mxu2 %v17651_v0  ;;  %426 = vmatpush.msrb.mxu1 %v11202_v18  ;;  %v17653_v18 = vand.u32 4294901760, %v11268_v32  ;;  %v11623_v32 = vld [vmem:[%s17519_s3 + $0x48] sm:$0xff] }
  0x4a   :  { %570 = vmatpush.msrb.mxu3 %v569_v51  ;;  %231 = vmatmul.f32.vlgmr.msra.gmra.mxu1 %v11421_v50 }
  0x4b   :  { %587 = vmatpush.msra.mxu0 %v11291_v52  ;;  %676 = vmatpush.msra.mxu2 %v17652_v11  ;;  %v11589_v52 = vld [vmem:[%s17519_s3 + $0x10] sm:$0xff] }
  0x4c   :  { %739 = vmatpush.msra.mxu3 %v11196_v12  ;;  %428 = vmatpush.msrb.mxu1 %v11219_v38  ;;  %v11594_v38 = vld [vmem:[%s17519_s3 + $0x30] sm:$0xff] }
  0x4d   :  { %1043 = vperm.xlu0 %10949, %v11556_v1   ;;  %590 = vmatpush.msra.mxu0 %v11307_v35 }
  0x4e   :  { %631 = vmatpush.msra.mxu1 %v11196_v12  ;;  %680 = vmatpush.msra.mxu2 %v17653_v18  ;;  %v17656_v12 = vand.u32 4294901760, %v11307_v35  ;;  %v17657_v35 = vand.u32 4294901760, %v11317_v8 }
  0x4f   :  { %741 = vmatpush.msra.mxu3 %v17654_v58  ;;  %471 = vmatmul.f32.vlgmr.msrb.gmra.mxu2 %v470_v43 }
  0x50   :  { %593 = vmatpush.msra.mxu0 %v11317_v8  ;;  %633 = vmatpush.msra.mxu1 %v17654_v58  ;;  %v79_v8 = vld [vmem:[%s17517_s1 + $0x138] sm:$0xff] }
  0x51   :  { %684 = vmatpush.msra.mxu2 %v17655_v59  ;;  %743 = vmatpush.msra.mxu3 %v11230_v44 }
  0x52   :  { %393 = vmatmul.f32.vlgmr.msrb.gmra.mxu0 %v11421_v50  ;;  %572 = vmatmul.f32.vlgmr.msrb.gmra.mxu3 %v11502_v46 }
  0x53   :  { %596 = vmatpush.msra.mxu0 %v11341_v14  ;;  %635 = vmatpush.msra.mxu1 %v11230_v44  ;;  %v17658_v44 = vand.u32 4294901760, %v11341_v14  ;;  %v10847_v14 = vld [vmem:[%s17518_s0 + $0x14] sm:$0x7] }
  0x54   :  { %688 = vmatpush.msra.mxu2 %v17656_v12  ;;  %745 = vmatpush.msra.mxu3 %v11259_v7 }
  0x55   :  { %430 = vmatmul.f32.vlgmr.msrb.gmra.mxu1 %v11421_v50  ;;  %599 = vmatpush.msra.mxu0 %v11357_v15 }
  0x56   :  { %637 = vmatpush.msra.mxu1 %v11259_v7  ;;  %692 = vmatpush.msra.mxu2 %v17657_v35  ;;  %v17659_v7 = vand.u32 4294901760, %v11357_v15  ;;  %v78_v15 = vld [vmem:[%s17517_s1 + $0x130] sm:$0xff] }
  0x57   :  { %747 = vmatpush.msra.mxu3 %v11275_v26  ;;  %10950 = vset.pattern.permute.xlu1 %v10952_v41 }
  0x58   :  { %1048 = vperm.xlu1 %10950, %v11589_v52   ;;  %1068 = vperm.xlu0 %10949, %v11594_v38  }
  0x59   :  { %602 = vmatpush.msra.mxu0 %v11372_v27  ;;  %639 = vmatpush.msra.mxu1 %v11275_v26  ;;  %v11618_v26 = vld [vmem:[%s17519_s3 + $0x18] sm:$0xff] }
  0x5a   :  { %696 = vmatpush.msra.mxu2 %v17658_v44  ;;  %749 = vmatpush.msra.mxu3 %v11280_v31 }
  0x5b   :  { %605 = vmatpush.msra.mxu0 %v11384_v62  ;;  %641 = vmatpush.msra.mxu1 %v11280_v31  ;;  %v17660_v31 = vand.u32 4294901760, %v11372_v27  ;;  %v11641_v27 = vand.u32 4294901760, %v79_v8  ;;  %v77_v62 = vld [vmem:[%s17517_s1 + $0x128] sm:$0xff] }
  0x5c   :  { %700 = vmatpush.msra.mxu2 %v17659_v7  ;;  %751 = vmatpush.msra.mxu3 %v11309_v33 }
  0x5d   :  { %608 = vmatpush.msra.mxu0 %v11400_v61  ;;  %643 = vmatpush.msra.mxu1 %v11309_v33  ;;  %v87_v33 = vld.sshfl [vmem:[#allocation1 + $0x10] sm:$0xff pattern:$0x75316420] }
  0x5e   :  { %704 = vmatpush.msra.mxu2 %v17660_v31  ;;  %753 = vmatpush.msra.mxu3 %v11327_v24  ;;  %5477 = vst [vmem:[#allocation1 + $0x10] ss:$2 sm:$0xff] %v10847_v14  ;;  %v91_v50 = vsel %vm90_vm0, %v87_v33, 0  ;;  %v11821_v33 = vld [vmem:[%s17520_s6 + $0x30] sm:$0xff] }
  0x5f   :  { %611 = vmatpush.msra.mxu0 %v11413_v63  ;;  %645 = vmatpush.msra.mxu1 %v11327_v24  ;;  %v17661_v24 = vand.u32 4294901760, %v11400_v61  ;;  %v76_v61 = vld [vmem:[%s17517_s1 + $0x120] sm:$0xff]  ;;  %v75_v63 = vld [vmem:[%s17517_s1 + $0x118] sm:$0xff]  ;;  %v11706_v4 = vand.u32 4294901760, %v91_v50 }
  0x60   :  { %708 = vmatpush.msra.mxu2 %v531_v39  ;;  %755 = vmatpush.msra.mxu3 %v11343_v22  ;;  %v11656_v39 = vand.u32 4294901760, %v78_v15 }
  0x61   :  { %1053 = vperm.xlu1 %10950, %v11618_v26   ;;  %1083 = vperm.xlu0 %10949, %v11623_v32   ;;  %v11738_v34 = vsub.f32 %v91_v50, %v11706_v4  ;;  %v11871_v50 = vld [vmem:[%s17520_s6 + $0x38] sm:$0xff] }
  0x62   :  { %614 = vmatpush.msra.mxu0 %v11447_v29  ;;  %647 = vmatpush.msra.mxu1 %v11343_v22  ;;  %v11662_v22 = vsub.f32 %v79_v8, %v11641_v27  ;;  %v11690_v29 = vand.u32 4294901760, %v76_v61  ;;  %v11816_v8 = vld [vmem:[%s17520_s6 + $0x8] sm:$0xff] }
  0x63   :  { %712 = vmatpush.msra.mxu2 %v17661_v24  ;;  %757 = vmatpush.msra.mxu3 %v11359_v23  ;;  %v801_v13 = vand.u32 4294901760, %v11738_v34 }
  0x64   :  { %617 = vmatpush.msra.mxu0 %v11468_v10  ;;  %649 = vmatpush.msra.mxu1 %v11359_v23  ;;  %v11669_v23 = vand.u32 4294901760, %v77_v62  ;;  %v818_v55 = vand.u32 4294901760, %v11662_v22  ;;  %v74_v10 = vld [vmem:[%s17517_s1 + $0x110] sm:$0xff]  ;;  %v11718_v30 = vsub.f32 %v76_v61, %v11690_v29  ;;  %v11849_v61 = vld [vmem:[%s17520_s6 + $0x20] sm:$0xff] }
  0x65   :  { %716 = vmatpush.msra.mxu2 %v543_v49  ;;  %759 = vmatpush.msra.mxu3 %v11374_v16  ;;  %v11677_v49 = vld [vmem:[%s17519_s3 + $0x38] sm:$0xff]  ;;  %v802_v43 = vsub.f32 %v11738_v34, %v801_v13 }
  0x66   :  { %620 = vmatpush.msra.mxu0 %v11482_v21  ;;  %651 = vmatpush.msra.mxu1 %v11374_v16  ;;  %v11688_v16 = vld [vmem:[%s17520_s6] sm:$0xff]  ;;  %v11704_v25 = vsub.f32 %v77_v62, %v11669_v23  ;;  %v819_v28 = vsub.f32 %v11662_v22, %v818_v55  ;;  %v11731_v21 = vand.u32 4294901760, %v74_v10  ;;  %v836_v60 = vand.u32 4294901760, %v11718_v30 }
  0x67   :  { %720 = vmatpush.msra.mxu2 %v549_v3  ;;  %761 = vmatpush.msra.mxu3 %v11386_v37  ;;  %v11693_v3 = vsub.f32 %v78_v15, %v11656_v39  ;;  %v803_v12 = vand.u32 4294901760, %v802_v43 }
  0x68   :  { %623 = vmatpush.msra.mxu0 %v11494_v5  ;;  %653 = vmatpush.msra.mxu1 %v11386_v37  ;;  %v11701_v37 = vand.u32 4294901760, %v75_v63  ;;  %v820_v45 = vand.u32 4294901760, %v819_v28  ;;  %v11761_v53 = vsub.f32 %v74_v10, %v11731_v21  ;;  %v837_v9 = vsub.f32 %v11718_v30, %v836_v60  ;;  %v11935_v28 = vld [vmem:[%s17521_s9 + $0x8] sm:$0xff] }
  0x69   :  { %724 = vmatpush.msra.mxu2 %v555_v19  ;;  %763 = vmatpush.msra.mxu3 %v11410_v6  ;;  %v824_v19 = vand.u32 4294901760, %v11693_v3 }
  0x6a   :  { %626 = vmatmul.f32.vlgmr.msra.gmra.mxu0 %v11526_v47  ;;  %1073 = vperm.xlu1 %10950, %v11677_v49   ;;  %v11735_v20 = vsub.f32 %v75_v63, %v11701_v37  ;;  %v848_v58 = vand.u32 4294901760, %v11761_v53  ;;  %v11855_v63 = vld [vmem:[%s17520_s6 + $0x48] sm:$0xff] }
  0x6b   :  { %784 = vmatpush.msrb.mxu0 %v11641_v27  ;;  %2265 = vperm.xlu0 %10949, %v11688_v16  }
  0x6c   :  { %655 = vmatpush.msra.mxu1 %v11410_v6  ;;  %728 = vmatpush.msra.mxu2 %v561_v2  ;;  %v73_v6 = vld [vmem:[%s17517_s1 + $0x108] sm:$0xff]  ;;  %v830_v2 = vand.u32 4294901760, %v11704_v25  ;;  %v842_v51 = vand.u32 4294901760, %v11735_v20  ;;  %v849_v44 = vsub.f32 %v11761_v53, %v848_v58 }
  0x6d   :  { %765 = vmatpush.msra.mxu3 %v11439_v57  ;;  %786 = vmatpush.msrb.mxu0 %v11656_v39  ;;  %v11747_v5 = vand.u32 4294901760, %v73_v6 }
  0x6e   :  { %657 = vmatpush.msra.mxu1 %v11439_v57  ;;  %732 = vmatpush.msra.mxu2 %v567_v36  ;;  %v825_v57 = vsub.f32 %v11693_v3, %v824_v19  ;;  %v72_v36 = vld [vmem:[%s17517_s1 + $0x100] sm:$0xff]  ;;  %v831_v54 = vsub.f32 %v11704_v25, %v830_v2  ;;  %v843_v18 = vsub.f32 %v11735_v20, %v842_v51  ;;  %v850_v14 = vand.u32 4294901760, %v849_v44  ;;  %v1013_v44 = vld [vmem:[%s17522_s2 + $0x8] sm:$0xff] }
  0x6f   :  { %767 = vmatpush.msra.mxu3 %v11455_v48  ;;  %734 = vmatmul.f32.vlgmr.msra.gmra.mxu2 %v11502_v46  ;;  %v11785_v11 = vsub.f32 %v73_v6, %v11747_v5 }
  0x70   :  { %788 = vmatpush.msrb.mxu0 %v11669_v23  ;;  %879 = vmatpush.msrb.mxu2 %v11662_v22  ;;  %v826_v0 = vand.u32 4294901760, %v825_v57  ;;  %v844_v35 = vand.u32 4294901760, %v843_v18  ;;  %v11838_v22 = vld [vmem:[%s17519_s3 + $0x20] sm:$0xff] }
  0x71   :  { %659 = vmatpush.msra.mxu1 %v11455_v48  ;;  %769 = vmatpush.msra.mxu3 %v11475_v40  ;;  %v11767_v48 = vand.u32 4294901760, %v72_v36  ;;  %v854_v59 = vand.u32 4294901760, %v11785_v11 }
  0x72   :  { %771 = vmatmul.f32.vlgmr.msra.gmra.mxu3 %v11502_v46  ;;  %790 = vmatpush.msrb.mxu0 %v11690_v29  ;;  %v11774_v46 = vld [vmem:[%s17519_s3 + $0x50] sm:$0xff] }
  0x73   :  { %882 = vmatpush.msrb.mxu2 %v11693_v3  ;;  %916 = vmatpush.msrb.mxu3 %v11641_v27  ;;  %v859_v47 = vsub.f32 %v72_v36, %v11767_v48  ;;  %v855_v31 = vsub.f32 %v11785_v11, %v854_v59  ;;  %v1035_v3 = vld [vmem:[%s17519_s3 + $0x58] sm:$0xff] }
  0x74   :  { %661 = vmatpush.msra.mxu1 %v11475_v40  ;;  %792 = vmatpush.msrb.mxu0 %v11701_v37  ;;  %v832_v40 = vand.u32 4294901760, %v831_v54  ;;  %v11954_v54 = vld [vmem:[%s17521_s9 + $0x38] sm:$0xff] }
  0x75   :  { %665 = vmatmul.f32.vlgmr.msra.gmra.mxu1 %v468_v17  ;;  %885 = vmatpush.msrb.mxu2 %v11704_v25  ;;  %v838_v17 = vand.u32 4294901760, %v837_v9  ;;  %v860_v7 = vand.u32 4294901760, %v859_v47  ;;  %v856_v24 = vand.u32 4294901760, %v855_v31  ;;  %v2252_v25 = vld [vmem:[%s17520_s6 + $0x28] sm:$0xff] }
  0x76   :  { %821 = vmatpush.msrb.mxu1 %v820_v45  ;;  %918 = vmatpush.msrb.mxu3 %v11656_v39 }
  0x77   :  { %1088 = vperm.xlu1 %10950, %v11774_v46   ;;  %2280 = vperm.xlu0 %10949, %v11779_v56   ;;  %v861_v15 = vsub.f32 %v859_v47, %v860_v7 }
  0x78   :  { %794 = vmatpush.msrb.mxu0 %v11731_v21  ;;  %827 = vmatpush.msrb.mxu1 %v826_v0  ;;  %v11967_v0 = vld [vmem:[%s17521_s9 + $0x50] sm:$0xff] }
  0x79   :  { %888 = vmatpush.msrb.mxu2 %v11718_v30  ;;  %920 = vmatpush.msrb.mxu3 %v11669_v23  ;;  %v862_v62 = vand.u32 4294901760, %v861_v15  ;;  %v12004_v15 = vld [vmem:[%s17521_s9 + $0x80] sm:$0xff] }
  0x7a   :  { %796 = vmatpush.msrb.mxu0 %v11747_v5  ;;  %833 = vmatpush.msrb.mxu1 %v832_v40 }
  0x7b   :  { %891 = vmatpush.msrb.mxu2 %v11735_v20  ;;  %922 = vmatpush.msrb.mxu3 %v11690_v29  ;;  %v11942_v20 = vld [vmem:[%s17521_s9 + $0x20] sm:$0xff] }
  0x7c   :  { %798 = vmatpush.msrb.mxu0 %v11767_v48  ;;  %839 = vmatpush.msrb.mxu1 %v838_v17  ;;  %v11984_v17 = vld [vmem:[%s17521_s9 + $0x68] sm:$0xff] }
  0x7d   :  { %894 = vmatpush.msrb.mxu2 %v11761_v53  ;;  %924 = vmatpush.msrb.mxu3 %v11701_v37 }
  0x7e   :  { %804 = vmatmul.f32.vlgmr.msrb.gmra.mxu0 %v803_v12  ;;  %845 = vmatpush.msrb.mxu1 %v844_v35 }
  0x7f   :  { %949 = vmatpush.msra.mxu0 %v818_v55  ;;  %897 = vmatpush.msrb.mxu2 %v11785_v11  ;;  %v11902_v55 = vld [vmem:[%s17520_s6 + $0x68] sm:$0xff]  ;;  %v1012_v11 = vld [vmem:[%s17522_s2] sm:$0xff] }
  0x80   :  { %926 = vmatpush.msrb.mxu3 %v11731_v21  ;;  %2270 = vperm.xlu1 %10950, %v11816_v8   ;;  %v1098_v18 = vsel %vm1096_vm1, %v1012_v11, 0 }
  0x81   :  { %2295 = vperm.xlu0 %10949, %v11821_v33   ;;  %953 = vmatpush.msra.mxu0 %v824_v19  ;;  %v11987_v12 = vand.u32 4294901760, %v1098_v18 }
  0x82   :  { %851 = vmatpush.msrb.mxu1 %v850_v14  ;;  %900 = vmatpush.msrb.mxu2 %v859_v47  ;;  %v11979_v47 = vld [vmem:[%s17521_s9 + $0x40] sm:$0xff]  ;;  %v11999_v14 = vld [vmem:[%s17521_s9 + $0x58] sm:$0xff] }
  0x83   :  { %928 = vmatpush.msrb.mxu3 %v11747_v5  ;;  %903 = vmatmul.f32.vlgmr.msrb.gmra.mxu2 %v11738_v34  ;;  %v1155_v31 = vsub.f32 %v1098_v18, %v11987_v12 }
  0x84   :  { %957 = vmatpush.msra.mxu0 %v830_v2  ;;  %857 = vmatpush.msrb.mxu1 %v856_v24 }
  0x85   :  { %930 = vmatpush.msrb.mxu3 %v11767_v48  ;;  %10951 = vset.pattern.permute.xlu2 %v10952_v41  ;;  %v1029_v41 = vld [vmem:[%s17519_s3 + $0x28] sm:$0xff] }
  0x86   :  { %934 = vmatmul.f32.vlgmr.msrb.gmra.mxu3 %v801_v13  ;;  %961 = vmatpush.msra.mxu0 %v836_v60  ;;  %v11949_v60 = vld [vmem:[%s17521_s9 + $0x10] sm:$0xff] }
  0x87   :  { %863 = vmatpush.msrb.mxu1 %v862_v62  ;;  %1058 = vperm.xlu2 %10951, %v11838_v22   ;;  %v1156_v62 = vand.u32 4294901760, %v1155_v31 }
  0x88   :  { %865 = vmatmul.f32.vlgmr.msrb.gmra.mxu1 %v11706_v4  ;;  %965 = vmatpush.msra.mxu0 %v842_v51 }
  0x89   :  { %992 = vmatpush.msra.mxu1 %v11641_v27  ;;  %2285 = vperm.xlu1 %10950, %v11849_v61   ;;  %v2259_v27 = vld [vmem:[%s17520_s6 + $0x60] sm:$0xff] }
  0x8a   :  { %2310 = vperm.xlu0 %10949, %v11855_v63   ;;  %969 = vmatpush.msra.mxu0 %v848_v58 }
  0x8b   :  { %994 = vmatpush.msra.mxu1 %v11656_v39  ;;  %v1032_v39 = vld [vmem:[%s17519_s3 + $0x40] sm:$0xff] }
  0x8c   :  { %973 = vmatpush.msra.mxu0 %v854_v59 }
  0x8d   :  { %996 = vmatpush.msra.mxu1 %v11669_v23  ;;  %v11888_v23 = vld [vmem:[%s17520_s6 + $0x50] sm:$0xff] }
  0x8e   :  { %977 = vmatpush.msra.mxu0 %v860_v7 }
  0x8f   :  { %998 = vmatpush.msra.mxu1 %v11690_v29  ;;  %979 = vmatmul.f32.vlgmr.msra.gmra.mxu0 %v11706_v4  ;;  %v2262_v29 = vld [vmem:[%s17520_s6 + $0x78] sm:$0xff] }
  0x90   :  { %1063 = vperm.xlu2 %10951, %v1029_v41  }
  0x91   :  { %1000 = vmatpush.msra.mxu1 %v11701_v37  ;;  %2300 = vperm.xlu1 %10950, %v11871_v50   ;;  %v2249_v37 = vld [vmem:[%s17520_s6 + $0x10] sm:$0xff] }
  0x92   :  { %2325 = vperm.xlu0 %10949, %v2259_v27  }
  0x93   :  { %1002 = vmatpush.msra.mxu1 %v11731_v21 }
  0x95   :  { %1004 = vmatpush.msra.mxu1 %v11747_v5 }
  0x97   :  { %1006 = vmatpush.msra.mxu1 %v11767_v48 }
  0x98   :  { %1008 = vmatmul.f32.vlgmr.msra.gmra.mxu1 %v11706_v4  ;;  %1078 = vperm.xlu2 %10951, %v1032_v39  }
  0x99   :  { %2315 = vperm.xlu1 %10950, %v11888_v23  }
  0x9a   :  { %2340 = vperm.xlu0 %10949, %v2262_v29  }
  0xa0   :  { %1093 = vperm.xlu2 %10951, %v1035_v3  }
  0xa1   :  { %2330 = vperm.xlu1 %10950, %v11902_v55  }
  0xa2   :  { %6440 = vperm.xlu0 %10949, %v11589_v52   ;;  %v2255_v52 = vld [vmem:[%s17520_s6 + $0x40] sm:$0xff] }
  0xa8   :  { %2275 = vperm.xlu2 %10951, %v2249_v37  }
  0xa9   :  { %6430 = vperm.xlu1 %10950, %v11519_v42   ;;  %v2258_v42 = vld [vmem:[%s17520_s6 + $0x58] sm:$0xff] }
  0xaa   :  { %6455 = vperm.xlu0 %10949, %v1029_v41  }
  0xb0   :  { %2290 = vperm.xlu2 %10951, %v2252_v25  }
  0xb1   :  { %6445 = vperm.xlu1 %10950, %v11618_v26   ;;  %v2261_v26 = vld [vmem:[%s17520_s6 + $0x70] sm:$0xff] }
  0xb2   :  { %6470 = vperm.xlu0 %10949, %v1032_v39  }
  0xb8   :  { %2305 = vperm.xlu2 %10951, %v2255_v52  }
  0xb9   :  { %6460 = vperm.xlu1 %10950, %v11594_v38  }
  0xba   :  { %6485 = vperm.xlu0 %10949, %v1035_v3  }
  0xc0   :  { %2320 = vperm.xlu2 %10951, %v2258_v42  }
  0xc1   :  { %6475 = vperm.xlu1 %10950, %v11623_v32   ;;  %v131_v32 = vpop.f32.mrf.mxu0 }
  0xc2   :  { %7665 = vperm.xlu0 %10949, %v2249_v37   ;;  %v12029_v37 = vld [vmem:[%s17521_s9 + $0x98] sm:$0xff] }
  0xc7   :  { %v232_v38 = vpop.f32.mrf.mxu1 }
  0xc8   :  { %2335 = vperm.xlu2 %10951, %v2261_v26   ;;  %v233_v4 = vadd.f32 %v232_v38, %v131_v32  ;;  %v286_v10 = vpop.f32.mrf.mxu2  ;;  %v1015_v32 = vld [vmem:[%s17522_s2 + $0x18] sm:$0xff] }
  0xc9   :  { %7655 = vperm.xlu1 %10950, %v11688_v16  }
  0xca   :  { %7680 = vperm.xlu0 %10949, %v2252_v25   ;;  %v287_v16 = vadd.f32 %v286_v10, %v233_v4 }
  0xcb   :  { %v325_v19 = vpop.f32.mrf.mxu3 }
  0xcf   :  { %v394_v30 = vpop.f32.mrf.mxu0 }
  0xd0   :  { %6435 = vperm.xlu2 %10951, %v11556_v1   ;;  %v326_v1 = vadd.f32 %v325_v19, %v287_v16 }
  0xd1   :  { %7670 = vperm.xlu1 %10950, %v11779_v56  }
  0xd2   :  { %7695 = vperm.xlu0 %10949, %v2255_v52   ;;  %v395_v6 = vadd.f32 %v394_v30, %v326_v1  ;;  %v431_v21 = vpop.f32.mrf.mxu1  ;;  %v472_v2 = vpop.f32.mrf.mxu2  ;;  %v12044_v1 = vld [vmem:[%s17521_s9 + $0x18] sm:$0xff]  ;;  %v1107_v30 = vsel %vm1096_vm1, %v1015_v32, 0 }
  0xd5   :  { %v573_v57 = vpop.f32.mrf.mxu3 }
  0xd8   :  { %6450 = vperm.xlu2 %10951, %v11838_v22  }
  0xd9   :  { %7685 = vperm.xlu1 %10950, %v11821_v33   ;;  %v1101_v33 = vsel %vm1096_vm1, %v1013_v44, 0  ;;  %v12102_v44 = vld [vmem:[%s17521_s9 + $0xb8] sm:$0xff] }
  0xda   :  { %7710 = vperm.xlu0 %10949, %v2258_v42   ;;  %v12007_v22 = vand.u32 4294901760, %v1101_v33 }
  0xe0   :  { %6465 = vperm.xlu2 %10951, %v11677_v49   ;;  %v432_v49 = vadd.f32 %v431_v21, %v395_v6  ;;  %v12050_v6 = vld [vmem:[%s17521_s9 + $0x88] sm:$0xff]  ;;  %v12055_v21 = vld [vmem:[%s17521_s9 + $0xb0] sm:$0xff] }
  0xe1   :  { %7700 = vperm.xlu1 %10950, %v11855_v63   ;;  %v1014_v63 = vld [vmem:[%s17522_s2 + $0x10] sm:$0xff] }
  0xe2   :  { %7725 = vperm.xlu0 %10949, %v2261_v26   ;;  %v473_v34 = vadd.f32 %v472_v2, %v432_v49 }
  0xe4   :  { %v574_v36 = vadd.f32 %v573_v57, %v473_v34  ;;  %v12058_v57 = vand.u32 4294901760, %v1107_v30 }
  0xe7   :  { %v627_v5 = vpop.f32.mrf.mxu0 }
  0xe8   :  { %6480 = vperm.xlu2 %10951, %v11774_v46   ;;  %v628_v53 = vadd.f32 %v627_v5, %v574_v36  ;;  %v11962_v46 = vld [vmem:[%s17521_s9 + $0x28] sm:$0xff]  ;;  %v1016_v36 = vld [vmem:[%s17522_s2 + $0x20] sm:$0xff] }
  0xe9   :  { %7715 = vperm.xlu1 %10950, %v2259_v27   ;;  %v1163_v27 = vsub.f32 %v1101_v33, %v12007_v22 }
  0xea   :  { %3942 = vperm.xlu0 %10949, %v11935_v28  }
  0xeb   :  { %v1164_v42 = vand.u32 4294901760, %v1163_v27 }
  0xed   :  { %v1165_v10 = vsub.f32 %v1163_v27, %v1164_v42 }
  0xef   :  { %v1166_v2 = vand.u32 4294901760, %v1165_v10 }
  0xf0   :  { %7660 = vperm.xlu2 %10951, %v11816_v8  }
  0xf1   :  { %7730 = vperm.xlu1 %10950, %v2262_v29   ;;  %v1104_v29 = vsel %vm1096_vm1, %v1014_v63, 0  ;;  %v12122_v63 = vld [vmem:[%s17521_s9 + $0x60] sm:$0xff] }
  0xf2   :  { %3957 = vperm.xlu0 %10949, %v11942_v20   ;;  %v666_v45 = vpop.f32.mrf.mxu1  ;;  %v735_v51 = vpop.f32.mrf.mxu2  ;;  %v12033_v26 = vand.u32 4294901760, %v1104_v29 }
  0xf3   :  { %v667_v13 = vadd.f32 %v666_v45, %v628_v53  ;;  %v1179_v53 = vsub.f32 %v1107_v30, %v12058_v57  ;;  %v1020_v30 = vld [vmem:[%s17522_s2 + $0x40] sm:$0xff] }
  0xf4   :  { %v1171_v16 = vsub.f32 %v1104_v29, %v12033_v26 }
  0xf5   :  { %v736_v48 = vadd.f32 %v735_v51, %v667_v13  ;;  %v772_v56 = vpop.f32.mrf.mxu3  ;;  %v12070_v13 = vld [vmem:[%s17521_s9 + $0x30] sm:$0xff]  ;;  %v1110_v51 = vsel %vm1096_vm1, %v1016_v36, 0  ;;  %v1180_v11 = vand.u32 4294901760, %v1179_v53 }
  0xf6   :  { %v1172_v34 = vand.u32 4294901760, %v1171_v16 }
  0xf7   :  { %v773_v9 = vadd.f32 %v772_v56, %v736_v48  ;;  %v12076_v48 = vld [vmem:[%s17521_s9 + $0xa0] sm:$0xff]  ;;  %v12081_v56 = vld [vmem:[%s17521_s9 + $0xc8] sm:$0xff]  ;;  %v1181_v18 = vsub.f32 %v1179_v53, %v1180_v11 }
  0xf8   :  { %7675 = vperm.xlu2 %10951, %v11849_v61   ;;  %v1173_v45 = vsub.f32 %v1171_v16, %v1172_v34 }
  0xf9   :  { %3947 = vperm.xlu1 %10950, %v11949_v60  }
  0xfa   :  { %3972 = vperm.xlu0 %10949, %v11954_v54  }
  0xfb   :  { %v805_v40 = vpop.f32.mrf.mxu0 }
  0xfc   :  { %v806_v58 = vadd.f32 %v805_v40, %v773_v9  ;;  %v1174_v9 = vand.u32 4294901760, %v1173_v45  ;;  %v12084_v40 = vand.u32 4294901760, %v1110_v51 }
 0x100   :  { %7690 = vperm.xlu2 %10951, %v11871_v50   ;;  %v1157_v50 = vsub.f32 %v1155_v31, %v1156_v62 }
 0x101   :  { %3962 = vperm.xlu1 %10950, %v11962_v46  }
 0x102   :  { %3987 = vperm.xlu0 %10949, %v11967_v0   ;;  %v1158_v52 = vand.u32 4294901760, %v1157_v50  ;;  %v12128_v50 = vld [vmem:[%s17521_s9 + $0xd0] sm:$0xff] }
 0x105   :  { %v866_v43 = vpop.f32.mrf.mxu1 }
 0x106   :  { %v867_v59 = vadd.f32 %v866_v43, %v806_v58  ;;  %v904_v35 = vpop.f32.mrf.mxu2  ;;  %v1017_v43 = vld [vmem:[%s17522_s2 + $0x28] sm:$0xff]  ;;  %v1187_v58 = vsub.f32 %v1110_v51, %v12084_v40 }
 0x108   :  { %7705 = vperm.xlu2 %10951, %v11888_v23   ;;  %v905_v7 = vadd.f32 %v904_v35, %v867_v59  ;;  %v12018_v23 = vld [vmem:[%s17521_s9] sm:$0xff]  ;;  %v12096_v59 = vld [vmem:[%s17521_s9 + $0x48] sm:$0xff]  ;;  %v1113_v35 = vsel %vm1096_vm1, %v1017_v43, 0 }
 0x109   :  { %3977 = vperm.xlu1 %10950, %v11979_v47   ;;  %v935_v8 = vpop.f32.mrf.mxu3  ;;  %v12110_v33 = vand.u32 4294901760, %v1113_v35 }
 0x10a   :  { %4002 = vperm.xlu0 %10949, %v11984_v17   ;;  %v936_v24 = vadd.f32 %v935_v8, %v905_v7  ;;  %v12107_v7 = vld [vmem:[%s17521_s9 + $0xe0] sm:$0xff]  ;;  %v1188_v8 = vand.u32 4294901760, %v1187_v58 }
 0x10c   :  { %v980_v61 = vpop.f32.mrf.mxu0 }
 0x10d   :  { %v981_v41 = vadd.f32 %v980_v61, %v936_v24  ;;  %v1018_v24 = vld [vmem:[%s17522_s2 + $0x30] sm:$0xff]  ;;  %v1195_v61 = vsub.f32 %v1113_v35, %v12110_v33 }
 0x10f   :  { %v1196_v29 = vand.u32 4294901760, %v1195_v61 }
 0x110   :  { %7720 = vperm.xlu2 %10951, %v11902_v55   ;;  %v12024_v55 = vld [vmem:[%s17521_s9 + $0x70] sm:$0xff] }
 0x111   :  { %3992 = vperm.xlu1 %10950, %v11999_v14  }
 0x112   :  { %4017 = vperm.xlu0 %10949, %v12004_v15  }
 0x115   :  { %v1009_v39 = vpop.f32.mrf.mxu1 }
 0x116   :  { %v1010_v3 = vadd.f32 %v1009_v39, %v981_v41  ;;  %v1116_v41 = vsel %vm1096_vm1, %v1018_v24, 0 }
 0x118   :  { %v1135_v25 = vsel %vm1133_vm2, %v1010_v3, 0  ;;  %3937 = vperm.xlu2 %10951, %v12018_v23   ;;  %v12136_v3 = vand.u32 4294901760, %v1116_v41 }
 0x119   :  { %v1152_v38 = vand.u32 4294901760, %v1135_v25  ;;  %4007 = vperm.xlu1 %10950, %v12024_v55  }
 0x11a   :  { %4032 = vperm.xlu0 %10949, %v12029_v37  }
 0x11b   :  { %v1267_v4 = vsub.f32 %v1135_v25, %v1152_v38  ;;  %1153 = vmatpush.msra.mxu2 %v1152_v38  ;;  %1416 = vmatpush.msrb.mxu1 %v1152_v38  ;;  %v1019_v25 = vld [vmem:[%s17522_s2 + $0x38] sm:$0xff] }
 0x11c   :  { %1159 = vmatmul.f32.vlgmr.msra.gmra.mxu2 %v1158_v52  ;;  %1420 = vmatmul.f32.vlgmr.msrb.gmra.mxu1 %v1156_v62  ;;  %v1189_v62 = vsub.f32 %v1187_v58, %v1188_v8  ;;  %v1197_v52 = vsub.f32 %v1195_v61, %v1196_v29  ;;  %v1119_v32 = vsel %vm1096_vm1, %v1019_v25, 0 }
 0x11d   :  { %1338 = vmatpush.msrb.mxu0 %v1267_v4  ;;  %v1268_v19 = vand.u32 4294901760, %v1267_v4 }
 0x11e   :  { %1341 = vmatmul.f32.vlgmr.msrb.gmra.mxu0 %v1155_v31  ;;  %v1182_v31 = vand.u32 4294901760, %v1181_v18  ;;  %v1190_v39 = vand.u32 4294901760, %v1189_v62  ;;  %v1198_v10 = vand.u32 4294901760, %v1197_v52 }
 0x11f   :  { %1508 = vmatpush.msrb.mxu2 %v1268_v19  ;;  %v1269_v49 = vsub.f32 %v1267_v4, %v1268_v19  ;;  %v12154_v4 = vld [vmem:[%s17521_s9 + $0xe8] sm:$0xff]  ;;  %v12157_v19 = vand.u32 4294901760, %v1119_v32 }
 0x120   :  { %3952 = vperm.xlu2 %10951, %v12044_v1  }
 0x121   :  { %4022 = vperm.xlu1 %10950, %v12050_v6   ;;  %v1270_v5 = vand.u32 4294901760, %v1269_v49 }
 0x122   :  { %4047 = vperm.xlu0 %10949, %v12055_v21  }
 0x123   :  { %1271 = vmatpush.msra.mxu3 %v1270_v5  ;;  %v1122_v5 = vsel %vm1096_vm1, %v1020_v30, 0 }
 0x124   :  { %1167 = vmatmul.f32.gmra.mxu2 %v1166_v2  ;;  %1273 = vmatmul.f32.vlgmr.msra.gmra.mxu3 %v11987_v12  ;;  %v1211_v2 = vsub.f32 %v1119_v32, %v12157_v19  ;;  %v12173_v45 = vand.u32 4294901760, %v1122_v5 }
 0x125   :  { %1574 = vmatpush.msrb.mxu3 %v1152_v38  ;;  %1426 = vmatmul.f32.gmra.mxu1 %v1164_v42  ;;  %v1203_v42 = vsub.f32 %v1116_v41, %v12136_v3  ;;  %v12148_v38 = vld [vmem:[%s17521_s9 + $0x78] sm:$0xff] }
 0x126   :  { %1346 = vmatmul.f32.gmra.mxu0 %v1163_v27  ;;  %v12133_v27 = vld [vmem:[%s17521_s9 + $0xf8] sm:$0xff]  ;;  %v1212_v36 = vand.u32 4294901760, %v1211_v2 }
 0x128   :  { %3967 = vperm.xlu2 %10951, %v12070_v13   ;;  %v1213_v51 = vsub.f32 %v1211_v2, %v1212_v36 }
 0x129   :  { %4037 = vperm.xlu1 %10950, %v12076_v48  }
 0x12a   :  { %4062 = vperm.xlu0 %10949, %v12081_v56  }
 0x12c   :  { %1175 = vmatmul.f32.gmra.mxu2 %v1174_v9  ;;  %1277 = vmatmul.f32.gmra.mxu3 %v12007_v22  ;;  %v1219_v9 = vsub.f32 %v1122_v5, %v12173_v45 }
 0x12d   :  { %1432 = vmatmul.f32.gmra.mxu1 %v1172_v34  ;;  %v12169_v34 = vld [vmem:[%s17521_s9 + $0x90] sm:$0xff] }
 0x12e   :  { %1351 = vmatmul.f32.gmra.mxu0 %v1171_v16  ;;  %v1204_v16 = vand.u32 4294901760, %v1203_v42  ;;  %v1220_v43 = vand.u32 4294901760, %v1219_v9 }
 0x130   :  { %3982 = vperm.xlu2 %10951, %v12096_v59   ;;  %v1205_v49 = vsub.f32 %v1203_v42, %v1204_v16  ;;  %v1221_v35 = vsub.f32 %v1219_v9, %v1220_v43 }
 0x131   :  { %4052 = vperm.xlu1 %10950, %v12102_v44  }
 0x132   :  { %4077 = vperm.xlu0 %10949, %v12107_v7  }
 0x134   :  { %1183 = vmatmul.f32.gmra.mxu2 %v1182_v31  ;;  %1281 = vmatmul.f32.gmra.mxu3 %v12033_v26 }
 0x135   :  { %1438 = vmatmul.f32.gmra.mxu1 %v1180_v11  ;;  %v12185_v11 = vld [vmem:[%s17521_s9 + $0xa8] sm:$0xff] }
 0x136   :  { %1356 = vmatmul.f32.gmra.mxu0 %v1179_v53  ;;  %v1021_v53 = vld [vmem:[%s17522_s2 + $0x48] sm:$0xff] }
 0x138   :  { %3997 = vperm.xlu2 %10951, %v12122_v63  }
 0x139   :  { %4067 = vperm.xlu1 %10950, %v12128_v50  }
 0x13a   :  { %4092 = vperm.xlu0 %10949, %v12133_v27  }
 0x13c   :  { %1191 = vmatmul.f32.gmra.mxu2 %v1190_v39  ;;  %1285 = vmatmul.f32.gmra.mxu3 %v12058_v57 }
 0x13d   :  { %1444 = vmatmul.f32.gmra.mxu1 %v1188_v8  ;;  %v3927_v8 = vld [vmem:[%s17521_s9 + $0xc0] sm:$0xff] }
 0x13e   :  { %1361 = vmatmul.f32.gmra.mxu0 %v1187_v58  ;;  %v1022_v58 = vld [vmem:[%s17522_s2 + $0x50] sm:$0xff] }
 0x13f   :  { %v1128_v24 = vsel %vm1096_vm1, %v1022_v58, 0 }
 0x140   :  { %4012 = vperm.xlu2 %10951, %v12148_v38   ;;  %v12202_v62 = vand.u32 4294901760, %v1128_v24 }
 0x141   :  { %4082 = vperm.xlu1 %10950, %v12154_v4  }
 0x142   :  { %9335 = vperm.xlu0 %10949, %v11949_v60   ;;  %v1206_v60 = vand.u32 4294901760, %v1205_v49  ;;  %v1235_v39 = vsub.f32 %v1128_v24, %v12202_v62 }
 0x144   :  { %1199 = vmatmul.f32.gmra.mxu2 %v1198_v10  ;;  %1289 = vmatmul.f32.gmra.mxu3 %v12084_v40  ;;  %v3933_v10 = vld [vmem:[%s17521_s9 + $0xf0] sm:$0xff] }
 0x145   :  { %1450 = vmatmul.f32.gmra.mxu1 %v1196_v29  ;;  %v3930_v29 = vld [vmem:[%s17521_s9 + $0xd8] sm:$0xff] }
 0x146   :  { %1366 = vmatmul.f32.gmra.mxu0 %v1195_v61  ;;  %v1023_v61 = vld [vmem:[%s17522_s2 + $0x58] sm:$0xff] }
 0x147   :  { %v1131_v25 = vsel %vm1096_vm1, %v1023_v61, 0 }
 0x148   :  { %4027 = vperm.xlu2 %10951, %v12169_v34   ;;  %v12215_v52 = vand.u32 4294901760, %v1131_v25 }
 0x149   :  { %9325 = vperm.xlu1 %10950, %v12018_v23   ;;  %v1125_v23 = vsel %vm1096_vm1, %v1021_v53, 0 }
 0x14a   :  { %9350 = vperm.xlu0 %10949, %v11962_v46   ;;  %v1214_v46 = vand.u32 4294901760, %v1213_v51  ;;  %v12189_v18 = vand.u32 4294901760, %v1125_v23  ;;  %v1243_v32 = vsub.f32 %v1131_v25, %v12215_v52 }
 0x14c   :  { %1207 = vmatmul.f32.gmra.mxu2 %v1206_v60  ;;  %1293 = vmatmul.f32.gmra.mxu3 %v12110_v33  ;;  %v1227_v31 = vsub.f32 %v1125_v23, %v12189_v18  ;;  %v1244_v30 = vand.u32 4294901760, %v1243_v32  ;;  %v1637_v23 = vld [vmem:[%s17523_s4] sm:$0xff] }
 0x14d   :  { %1456 = vmatmul.f32.gmra.mxu1 %v1204_v16  ;;  %v1699_v58 = vand.u32 4294901760, %v1637_v23 }
 0x14e   :  { %1371 = vmatmul.f32.gmra.mxu0 %v1203_v42 }
 0x14f   :  { %v1839_v24 = vsub.f32 %v1637_v23, %v1699_v58 }
 0x150   :  { %4042 = vperm.xlu2 %10951, %v12185_v11  }
 0x151   :  { %9340 = vperm.xlu1 %10950, %v12044_v1   ;;  %v1228_v1 = vand.u32 4294901760, %v1227_v31 }
 0x152   :  { %9365 = vperm.xlu0 %10949, %v11979_v47   ;;  %v1222_v47 = vand.u32 4294901760, %v1221_v35 }
 0x153   :  { %v1229_v41 = vsub.f32 %v1227_v31, %v1228_v1 }
 0x154   :  { %1215 = vmatmul.f32.gmra.mxu2 %v1214_v46  ;;  %1297 = vmatmul.f32.gmra.mxu3 %v12136_v3 }
 0x155   :  { %1462 = vmatmul.f32.gmra.mxu1 %v1212_v36  ;;  %v1638_v36 = vld [vmem:[%s17523_s4 + $0x8] sm:$0xff] }
 0x156   :  { %1376 = vmatmul.f32.gmra.mxu0 %v1211_v2 }
 0x158   :  { %4057 = vperm.xlu2 %10951, %v3927_v8  }
 0x159   :  { %9355 = vperm.xlu1 %10950, %v12070_v13   ;;  %v1236_v13 = vand.u32 4294901760, %v1235_v39 }
 0x15a   :  { %9380 = vperm.xlu0 %10949, %v11999_v14   ;;  %v1230_v14 = vand.u32 4294901760, %v1229_v41 }
 0x15b   :  { %v1237_v42 = vsub.f32 %v1235_v39, %v1236_v13 }
 0x15c   :  { %1223 = vmatmul.f32.gmra.mxu2 %v1222_v47  ;;  %1301 = vmatmul.f32.gmra.mxu3 %v12157_v19 }
 0x15d   :  { %1468 = vmatmul.f32.gmra.mxu1 %v1220_v43  ;;  %v1238_v16 = vand.u32 4294901760, %v1237_v42 }
 0x15e   :  { %1381 = vmatmul.f32.gmra.mxu0 %v1219_v9 }
 0x160   :  { %4072 = vperm.xlu2 %10951, %v3930_v29  }
 0x161   :  { %9370 = vperm.xlu1 %10950, %v12096_v59  }
 0x162   :  { %9395 = vperm.xlu0 %10949, %v12024_v55   ;;  %v1245_v55 = vsub.f32 %v1243_v32, %v1244_v30 }
 0x164   :  { %1231 = vmatmul.f32.gmra.mxu2 %v1230_v14  ;;  %1305 = vmatmul.f32.gmra.mxu3 %v12173_v45  ;;  %v1246_v59 = vand.u32 4294901760, %v1245_v55 }
 0x165   :  { %1474 = vmatmul.f32.gmra.mxu1 %v1228_v1 }
 0x166   :  { %1386 = vmatmul.f32.gmra.mxu0 %v1227_v31 }
 0x168   :  { %4087 = vperm.xlu2 %10951, %v3933_v10  }
 0x169   :  { %9385 = vperm.xlu1 %10950, %v12122_v63  }
 0x16a   :  { %9410 = vperm.xlu0 %10949, %v12050_v6  }
 0x16c   :  { %1239 = vmatmul.f32.gmra.mxu2 %v1238_v16  ;;  %1309 = vmatmul.f32.gmra.mxu3 %v12189_v18  ;;  %v1039_v16 = vpop.permute.xlu0 %1038 }
 0x16d   :  { %1480 = vmatmul.f32.gmra.mxu1 %v1236_v13 }
 0x16e   :  { %1391 = vmatmul.f32.gmra.mxu0 %v1235_v39  ;;  %v1840_v39 = vand.u32 4294901760, %v1839_v24 }
 0x170   :  { %9330 = vperm.xlu2 %10951, %v11935_v28   ;;  %v1841_v25 = vsub.f32 %v1839_v24, %v1840_v39 }
 0x171   :  { %9400 = vperm.xlu1 %10950, %v12148_v38  }
 0x172   :  { %9425 = vperm.xlu0 %10949, %v12076_v48  }
 0x174   :  { %1247 = vmatmul.f32.gmra.mxu2 %v1246_v59  ;;  %1313 = vmatmul.f32.gmra.mxu3 %v12202_v62 }
 0x175   :  { %1486 = vmatmul.f32.gmra.mxu1 %v1244_v30 }
 0x176   :  { %1396 = vmatmul.f32.gmra.mxu0 %v1243_v32 }
 0x178   :  { %9345 = vperm.xlu2 %10951, %v11942_v20  }
 0x179   :  { %9415 = vperm.xlu1 %10950, %v12169_v34  }
 0x17a   :  { %9440 = vperm.xlu0 %10949, %v12102_v44  }
 0x17c   :  { %1317 = vmatmul.f32.gmra.mxu3 %v12215_v52  ;;  %1510 = vmatmul.f32.vlgmr.msrb.gmra.mxu2 %v11987_v12 }
 0x180   :  { %9360 = vperm.xlu2 %10951, %v11954_v54  }
 0x181   :  { %9430 = vperm.xlu1 %10950, %v12185_v11   ;;  %v1697_v11 = vand.u32 4294901760, %v1638_v36 }
 0x182   :  { %9455 = vperm.xlu0 %10949, %v12128_v50   ;;  %v1640_v50 = vld [vmem:[%s17523_s4 + $0x18] sm:$0xff] }
 0x183   :  { %v12318_v38 = vand.u32 4294901760, %v1640_v50  ;;  %v1833_v35 = vsub.f32 %v1638_v36, %v1697_v11 }
 0x184   :  { %1514 = vmatmul.f32.gmra.mxu2 %v12007_v22  ;;  %1576 = vmatmul.f32.vlgmr.msrb.gmra.mxu3 %v11987_v12 }
 0x185   :  { %v1821_v5 = vsub.f32 %v1640_v50, %v12318_v38  ;;  %v1834_v1 = vand.u32 4294901760, %v1833_v35 }
 0x187   :  { %v1822_v51 = vand.u32 4294901760, %v1821_v5 }
 0x188   :  { %9375 = vperm.xlu2 %10951, %v11967_v0  }
 0x189   :  { %9445 = vperm.xlu1 %10950, %v3927_v8   ;;  %v1823_v43 = vsub.f32 %v1821_v5, %v1822_v51 }
 0x18a   :  { %9470 = vperm.xlu0 %10949, %v12154_v4   ;;  %v1639_v4 = vld [vmem:[%s17523_s4 + $0x10] sm:$0xff] }
 0x18b   :  { %v1695_v60 = vand.u32 4294901760, %v1639_v4  ;;  %v1824_v31 = vand.u32 4294901760, %v1823_v43 }
 0x18c   :  { %1518 = vmatmul.f32.gmra.mxu2 %v12033_v26  ;;  %1580 = vmatmul.f32.gmra.mxu3 %v12007_v22 }
 0x18d   :  { %v1827_v9 = vsub.f32 %v1639_v4, %v1695_v60  ;;  %v1049_v4 = vpop.permute.xlu1 %1048 }
 0x190   :  { %9390 = vperm.xlu2 %10951, %v11984_v17  }
 0x191   :  { %9460 = vperm.xlu1 %10950, %v3930_v29   ;;  %v1835_v29 = vsub.f32 %v1833_v35, %v1834_v1 }
 0x193   :  { %v1836_v13 = vand.u32 4294901760, %v1835_v29  ;;  %v1059_v29 = vpop.permute.xlu2 %1058 }
 0x194   :  { %1522 = vmatmul.f32.gmra.mxu2 %v12058_v57  ;;  %1584 = vmatmul.f32.gmra.mxu3 %v12033_v26 }
 0x198   :  { %9405 = vperm.xlu2 %10951, %v12004_v15  }
 0x199   :  { %9475 = vperm.xlu1 %10950, %v3933_v10   ;;  %v1421_v14 = vpop.f32.mrf.mxu1 }
 0x19b   :  { %v1342_v47 = vpop.f32.mrf.mxu0 }
 0x19c   :  { %1526 = vmatmul.f32.gmra.mxu2 %v12084_v40  ;;  %1588 = vmatmul.f32.gmra.mxu3 %v12058_v57 }
 0x19f   :  { %v12251_v28 = vpop.f32.mrf.mxu2 }
 0x1a0   :  { %9420 = vperm.xlu2 %10951, %v12029_v37  }
 0x1a2   :  { %v1427_v30 = vpop.f32.mrf.mxu1 }
 0x1a3   :  { %v1347_v10 = vpop.f32.mrf.mxu0 }
 0x1a4   :  { %1530 = vmatmul.f32.gmra.mxu2 %v12110_v33  ;;  %1592 = vmatmul.f32.gmra.mxu3 %v12084_v40  ;;  %v1642_v40 = vld [vmem:[%s17523_s4 + $0x28] sm:$0xff] }
 0x1a5   :  { %v12303_v44 = vand.u32 4294901760, %v1642_v40 }
 0x1a7   :  { %v12256_v20 = vpop.f32.mrf.mxu2  ;;  %v12258_v54 = vpop.f32.mrf.mxu3  ;;  %1993 = vmatpush.msra.mxu3 %v12303_v44  ;;  %1690 = vmatpush.msra.mxu0 %v12303_v44 }
 0x1a8   :  { %9435 = vperm.xlu2 %10951, %v12055_v21  }
 0x1aa   :  { %v1433_v50 = vpop.f32.mrf.mxu1 }
 0x1ac   :  { %1534 = vmatmul.f32.gmra.mxu2 %v12136_v3  ;;  %1596 = vmatmul.f32.gmra.mxu3 %v12110_v33  ;;  %v1809_v33 = vsub.f32 %v1642_v40, %v12303_v44  ;;  %v1161_v40 = vadd.f32 %v12251_v28, %v1039_v16 }
 0x1ae   :  { %1905 = vmatpush.msra.mxu2 %v1809_v33 }
 0x1af   :  { %v12263_v0 = vpop.f32.mrf.mxu2  ;;  %v12265_v17 = vpop.f32.mrf.mxu3 }
 0x1b0   :  { %9450 = vperm.xlu2 %10951, %v12081_v56  }
 0x1b4   :  { %1538 = vmatmul.f32.gmra.mxu2 %v12157_v19  ;;  %1600 = vmatmul.f32.gmra.mxu3 %v12136_v3 }
 0x1b7   :  { %v12270_v12 = vpop.f32.mrf.mxu2  ;;  %v12272_v15 = vpop.f32.mrf.mxu3 }
 0x1b8   :  { %9465 = vperm.xlu2 %10951, %v12107_v7   ;;  %v1641_v7 = vld [vmem:[%s17523_s4 + $0x20] sm:$0xff] }
 0x1b9   :  { %v12309_v63 = vand.u32 4294901760, %v1641_v7 }
 0x1bb   :  { %v1815_v3 = vsub.f32 %v1641_v7, %v12309_v63  ;;  %1995 = vmatpush.msra.mxu3 %v12309_v63  ;;  %1692 = vmatpush.msra.mxu0 %v12309_v63  ;;  %v1352_v7 = vpop.f32.mrf.mxu0 }
 0x1bc   :  { %1542 = vmatmul.f32.gmra.mxu2 %v12173_v45  ;;  %1604 = vmatmul.f32.gmra.mxu3 %v12157_v19 }
 0x1bd   :  { %v1816_v34 = vand.u32 4294901760, %v1815_v3  ;;  %1908 = vmatpush.msra.mxu2 %v1815_v3  ;;  %1997 = vmatpush.msra.mxu3 %v12318_v38 }
 0x1be   :  { %1694 = vmatpush.msra.mxu0 %v12318_v38 }
 0x1bf   :  { %v12277_v22 = vpop.f32.mrf.mxu2  ;;  %v12279_v37 = vpop.f32.mrf.mxu3  ;;  %v1817_v53 = vsub.f32 %v1815_v3, %v1816_v34  ;;  %1911 = vmatpush.msra.mxu2 %v1821_v5  ;;  %1999 = vmatpush.msra.mxu3 %v1695_v60 }
 0x1c0   :  { %9480 = vperm.xlu2 %10951, %v12133_v27   ;;  %v1810_v27 = vand.u32 4294901760, %v1809_v33  ;;  %1696 = vmatpush.msra.mxu0 %v1695_v60 }
 0x1c1   :  { %v1818_v46 = vand.u32 4294901760, %v1817_v53  ;;  %1914 = vmatpush.msra.mxu2 %v1827_v9  ;;  %2001 = vmatpush.msra.mxu3 %v1697_v11  ;;  %v1439_v53 = vpop.f32.mrf.mxu1 }
 0x1c2   :  { %v1811_v2 = vsub.f32 %v1809_v33, %v1810_v27  ;;  %1698 = vmatpush.msra.mxu0 %v1697_v11  ;;  %v1044_v33 = vpop.permute.xlu0 %1043 }
 0x1c3   :  { %1917 = vmatpush.msra.mxu2 %v1833_v35  ;;  %2003 = vmatpush.msra.mxu3 %v1699_v58  ;;  %v1169_v3 = vadd.f32 %v12256_v20, %v1044_v33  ;;  %v1357_v5 = vpop.f32.mrf.mxu0 }
 0x1c4   :  { %1546 = vmatmul.f32.gmra.mxu2 %v12189_v18  ;;  %1608 = vmatmul.f32.gmra.mxu3 %v12173_v45  ;;  %v1812_v45 = vand.u32 4294901760, %v1811_v2 }
 0x1c5   :  { %1700 = vmatpush.msra.mxu0 %v1699_v58  ;;  %1920 = vmatpush.msra.mxu2 %v1839_v24 }
 0x1c6   :  { %1813 = vmatpush.msra.mxu1 %v1812_v45  ;;  %v1177_v45 = vadd.f32 %v12263_v0, %v1049_v4  ;;  %v1054_v0 = vpop.permute.xlu1 %1053 }
 0x1c7   :  { %v12284_v26 = vpop.f32.mrf.mxu2  ;;  %v12286_v6 = vpop.f32.mrf.mxu3  ;;  %2090 = vmatpush.msrb.mxu0 %v1810_v27 }
 0x1c8   :  { %1819 = vmatpush.msra.mxu1 %v1818_v46 }
 0x1c9   :  { %2094 = vmatpush.msrb.mxu0 %v1816_v34  ;;  %v1279_v34 = vadd.f32 %v12265_v17, %v1169_v3 }
 0x1ca   :  { %1825 = vmatpush.msra.mxu1 %v1824_v31  ;;  %v1185_v31 = vadd.f32 %v12270_v12, %v1054_v0  ;;  %v1069_v0 = vpop.permute.xlu0 %1068 }
 0x1cb   :  { %2098 = vmatpush.msrb.mxu0 %v1822_v51  ;;  %v1362_v46 = vpop.f32.mrf.mxu0 }
 0x1cc   :  { %1550 = vmatmul.f32.gmra.mxu2 %v12202_v62  ;;  %1612 = vmatmul.f32.gmra.mxu3 %v12189_v18  ;;  %v1828_v18 = vand.u32 4294901760, %v1827_v9 }
 0x1ce   :  { %v1829_v8 = vsub.f32 %v1827_v9, %v1828_v18  ;;  %2102 = vmatpush.msrb.mxu0 %v1828_v18 }
 0x1cf   :  { %v12290_v21 = vpop.f32.mrf.mxu2  ;;  %v12292_v57 = vpop.f32.mrf.mxu3 }
 0x1d0   :  { %v1830_v41 = vand.u32 4294901760, %v1829_v8  ;;  %2106 = vmatpush.msrb.mxu0 %v1834_v1  ;;  %v1445_v1 = vpop.f32.mrf.mxu1 }
 0x1d2   :  { %1831 = vmatpush.msra.mxu1 %v1830_v41  ;;  %2110 = vmatpush.msrb.mxu0 %v1840_v39 }
 0x1d4   :  { %1554 = vmatmul.f32.gmra.mxu2 %v12215_v52  ;;  %1616 = vmatmul.f32.gmra.mxu3 %v12202_v62 }
 0x1d5   :  { %1837 = vmatpush.msra.mxu1 %v1836_v13 }
 0x1d7   :  { %v12296_v48 = vpop.f32.mrf.mxu2  ;;  %v12298_v56 = vpop.f32.mrf.mxu3 }
 0x1d8   :  { %v1451_v4 = vpop.f32.mrf.mxu1 }
 0x1dc   :  { %1620 = vmatmul.f32.gmra.mxu3 %v12215_v52  ;;  %v1842_v52 = vand.u32 4294901760, %v1841_v25 }
 0x1de   :  { %1843 = vmatpush.msra.mxu1 %v1842_v52 }
 0x1df   :  { %v12325_v19 = vpop.f32.mrf.mxu2  ;;  %v12327_v49 = vpop.f32.mrf.mxu3 }
 0x1e0   :  { %2171 = vmatpush.msrb.mxu1 %v12303_v44  ;;  %v1275_v44 = vadd.f32 %v12258_v54, %v1161_v40  ;;  %v1348_v54 = vadd.f32 %v1347_v10, %v1279_v34 }
 0x1e2   :  { %2173 = vmatpush.msrb.mxu1 %v12309_v63  ;;  %v1428_v17 = vadd.f32 %v1427_v30, %v1348_v54  ;;  %v1193_v30 = vadd.f32 %v12277_v22, %v1059_v29 }
 0x1e4   :  { %2175 = vmatpush.msrb.mxu1 %v12318_v38  ;;  %v1343_v38 = vadd.f32 %v1342_v47, %v1275_v44 }
 0x1e6   :  { %2177 = vmatpush.msrb.mxu1 %v1695_v60  ;;  %v1422_v2 = vadd.f32 %v1421_v14, %v1343_v38  ;;  %v1287_v14 = vadd.f32 %v12279_v37, %v1185_v31  ;;  %v1291_v38 = vadd.f32 %v12286_v6, %v1193_v30  ;;  %v1209_v31 = vadd.f32 %v12290_v21, %v1069_v0 }
 0x1e7   :  { %v12338_v62 = vpop.f32.mrf.mxu2  ;;  %v12340_v61 = vpop.f32.mrf.mxu3 }
 0x1e8   :  { %2179 = vmatpush.msrb.mxu1 %v1697_v11  ;;  %v1283_v11 = vadd.f32 %v12272_v15, %v1177_v45  ;;  %v1358_v40 = vadd.f32 %v1357_v5, %v1287_v14  ;;  %v1363_v45 = vadd.f32 %v1362_v46, %v1291_v38  ;;  %v1457_v46 = vpop.f32.mrf.mxu1  ;;  %v1299_v29 = vadd.f32 %v12298_v56, %v1209_v31  ;;  %v1074_v14 = vpop.permute.xlu1 %1073 }
 0x1ea   :  { %2181 = vmatpush.msrb.mxu1 %v1699_v58  ;;  %v1353_v8 = vadd.f32 %v1352_v7, %v1283_v11  ;;  %v1367_v7 = vpop.f32.mrf.mxu0  ;;  %v1440_v3 = vadd.f32 %v1439_v53, %v1358_v40  ;;  %v1446_v11 = vadd.f32 %v1445_v1, %v1363_v45 }
 0x1ec   :  { %v1434_v25 = vadd.f32 %v1433_v50, %v1353_v8 }
 0x1ef   :  { %v12342_v42 = vpop.f32.mrf.mxu2  ;;  %v12344_v32 = vpop.f32.mrf.mxu3 }
 0x1f7   :  { %v12349_v55 = vpop.f32.mrf.mxu2  ;;  %v12351_v59 = vpop.f32.mrf.mxu3 }
 0x1ff   :  { %v12355_v63 = vpop.f32.mrf.mxu3  ;;  %v1511_v27 = vpop.f32.mrf.mxu2 }
 0x200   :  { %v1512_v60 = vadd.f32 %v1511_v27, %v1422_v2  ;;  %v1064_v2 = vpop.permute.xlu2 %1063 }
 0x207   :  { %v1515_v36 = vpop.f32.mrf.mxu2  ;;  %v1577_v28 = vpop.f32.mrf.mxu3 }
 0x208   :  { %v1578_v51 = vadd.f32 %v1577_v28, %v1512_v60  ;;  %v1516_v43 = vadd.f32 %v1515_v36, %v1428_v17  ;;  %v1201_v28 = vadd.f32 %v12284_v26, %v1064_v2  ;;  %v1079_v38 = vpop.permute.xlu2 %1078 }
 0x20a   :  { %1625 = vst.msk [vmem:[%s17524_s10] sm:$0xff] %vm1624_vm3, %v1578_v51  ;;  %v1644_v20 = vsel %vm1624_vm3, %v1578_v51, 0  ;;  %v1372_v51 = vpop.f32.mrf.mxu0 }
 0x20b   :  { %v12365_v9 = vand.u32 4294901760, %v1644_v20  ;;  %v1373_v30 = vadd.f32 %v1372_v51, %v1299_v29 }
 0x20d   :  { %v1702_v23 = vsub.f32 %v1644_v20, %v12365_v9  ;;  %1845 = vmatmul.f32.vlgmr.msra.gmra.mxu1 %v12365_v9 }
 0x20f   :  { %v1703_v18 = vand.u32 4294901760, %v1702_v23  ;;  %v1519_v58 = vpop.f32.mrf.mxu2  ;;  %v1581_v35 = vpop.f32.mrf.mxu3  ;;  %1923 = vmatmul.f32.vlgmr.msra.gmra.mxu2 %v1702_v23 }
 0x210   :  { %v1582_v24 = vadd.f32 %v1581_v35, %v1516_v43  ;;  %v1520_v13 = vadd.f32 %v1519_v58, %v1434_v25 }
 0x211   :  { %2007 = vmatmul.f32.vlgmr.msra.gmra.mxu3 %v1703_v18  ;;  %v1704_v47 = vsub.f32 %v1702_v23, %v1703_v18  ;;  %v1295_v23 = vadd.f32 %v12292_v57, %v1201_v28 }
 0x212   :  { %1626 = vst.msk [vmem:[%s17524_s10 + $0x8] sm:$0xff] %vm1624_vm3, %v1582_v24  ;;  %v1647_v15 = vsel %vm1624_vm3, %v1582_v24, 0  ;;  %v1377_v25 = vpop.f32.mrf.mxu0 }
 0x213   :  { %v12376_v41 = vand.u32 4294901760, %v1647_v15  ;;  %v1705_v39 = vand.u32 4294901760, %v1704_v47  ;;  %v1368_v8 = vadd.f32 %v1367_v7, %v1295_v23  ;;  %v1463_v7 = vpop.f32.mrf.mxu1 }
 0x215   :  { %1706 = vmatmul.f32.vlgmr.msra.gmra.mxu0 %v1705_v39  ;;  %1849 = vmatmul.f32.gmra.mxu1 %v12376_v41  ;;  %v1710_v12 = vsub.f32 %v1647_v15, %v12376_v41  ;;  %v1452_v39 = vadd.f32 %v1451_v4, %v1368_v8 }
 0x217   :  { %v1523_v52 = vpop.f32.mrf.mxu2  ;;  %v1585_v10 = vpop.f32.mrf.mxu3  ;;  %1928 = vmatmul.f32.gmra.mxu2 %v1710_v12  ;;  %v1711_v16 = vand.u32 4294901760, %v1710_v12 }
 0x218   :  { %v1586_v44 = vadd.f32 %v1585_v10, %v1520_v13  ;;  %v1524_v34 = vadd.f32 %v1523_v52, %v1440_v3 }
 0x219   :  { %2013 = vmatmul.f32.gmra.mxu3 %v1711_v16  ;;  %v1712_v33 = vsub.f32 %v1710_v12, %v1711_v16  ;;  %v1217_v16 = vadd.f32 %v12296_v48, %v1074_v14 }
 0x21a   :  { %1627 = vst.msk [vmem:[%s17524_s10 + $0x10] sm:$0xff] %vm1624_vm3, %v1586_v44  ;;  %v1650_v37 = vsel %vm1624_vm3, %v1586_v44, 0  ;;  %v1382_v4 = vpop.f32.mrf.mxu0 }
 0x21b   :  { %v12387_v50 = vand.u32 4294901760, %v1650_v37  ;;  %v1713_v27 = vand.u32 4294901760, %v1712_v33  ;;  %v1303_v3 = vadd.f32 %v12327_v49, %v1217_v16 }
 0x21d   :  { %1714 = vmatmul.f32.gmra.mxu0 %v1713_v27  ;;  %1853 = vmatmul.f32.gmra.mxu1 %v12387_v50  ;;  %v1718_v22 = vsub.f32 %v1650_v37, %v12387_v50  ;;  %v1458_v27 = vadd.f32 %v1457_v46, %v1373_v30 }
 0x21f   :  { %v1527_v5 = vpop.f32.mrf.mxu2  ;;  %v1589_v60 = vpop.f32.mrf.mxu3  ;;  %1933 = vmatmul.f32.gmra.mxu2 %v1718_v22  ;;  %v1719_v36 = vand.u32 4294901760, %v1718_v22 }
 0x220   :  { %v1590_v54 = vadd.f32 %v1589_v60, %v1524_v34  ;;  %v1528_v43 = vadd.f32 %v1527_v5, %v1446_v11  ;;  %v1225_v60 = vadd.f32 %v12325_v19, %v1079_v38  ;;  %v1084_v11 = vpop.permute.xlu0 %1083 }
 0x221   :  { %2019 = vmatmul.f32.gmra.mxu3 %v1719_v36  ;;  %v1720_v53 = vsub.f32 %v1718_v22, %v1719_v36  ;;  %v1378_v36 = vadd.f32 %v1377_v25, %v1303_v3 }
 0x222   :  { %1628 = vst.msk [vmem:[%s17524_s10 + $0x18] sm:$0xff] %vm1624_vm3, %v1590_v54  ;;  %v1653_v6 = vsel %vm1624_vm3, %v1590_v54, 0  ;;  %v1469_v54 = vpop.f32.mrf.mxu1 }
 0x223   :  { %v12398_v20 = vand.u32 4294901760, %v1653_v6  ;;  %v1721_v17 = vand.u32 4294901760, %v1720_v53 }
 0x225   :  { %1722 = vmatmul.f32.gmra.mxu0 %v1721_v17  ;;  %1857 = vmatmul.f32.gmra.mxu1 %v12398_v20  ;;  %v1726_v26 = vsub.f32 %v1653_v6, %v12398_v20  ;;  %v1464_v6 = vadd.f32 %v1463_v7, %v1378_v36  ;;  %v1307_v17 = vadd.f32 %v12340_v61, %v1225_v60 }
 0x227   :  { %v1531_v18 = vpop.f32.mrf.mxu2  ;;  %v1593_v58 = vpop.f32.mrf.mxu3  ;;  %1938 = vmatmul.f32.gmra.mxu2 %v1726_v26  ;;  %v1727_v35 = vand.u32 4294901760, %v1726_v26 }
 0x228   :  { %v1594_v24 = vadd.f32 %v1593_v58, %v1528_v43  ;;  %v1532_v12 = vadd.f32 %v1531_v18, %v1452_v39  ;;  %v1233_v43 = vadd.f32 %v12338_v62, %v1084_v11  ;;  %v1383_v18 = vadd.f32 %v1382_v4, %v1307_v17  ;;  %v1089_v39 = vpop.permute.xlu1 %1088 }
 0x229   :  { %2025 = vmatmul.f32.gmra.mxu3 %v1727_v35  ;;  %v1728_v47 = vsub.f32 %v1726_v26, %v1727_v35  ;;  %v1387_v35 = vpop.f32.mrf.mxu0 }
 0x22a   :  { %1629 = vst.msk [vmem:[%s17524_s10 + $0x20] sm:$0xff] %vm1624_vm3, %v1594_v24  ;;  %v1656_v57 = vsel %vm1624_vm3, %v1594_v24, 0 }
 0x22b   :  { %v12409_v1 = vand.u32 4294901760, %v1656_v57  ;;  %v1729_v15 = vand.u32 4294901760, %v1728_v47  ;;  %v1470_v47 = vadd.f32 %v1469_v54, %v1383_v18 }
 0x22d   :  { %1730 = vmatmul.f32.gmra.mxu0 %v1729_v15  ;;  %1861 = vmatmul.f32.gmra.mxu1 %v12409_v1  ;;  %v1734_v21 = vsub.f32 %v1656_v57, %v12409_v1  ;;  %v1311_v57 = vadd.f32 %v12344_v32, %v1233_v43  ;;  %v1475_v15 = vpop.f32.mrf.mxu1 }
 0x22f   :  { %v1535_v13 = vpop.f32.mrf.mxu2  ;;  %v1597_v52 = vpop.f32.mrf.mxu3  ;;  %1943 = vmatmul.f32.gmra.mxu2 %v1734_v21  ;;  %v1735_v10 = vand.u32 4294901760, %v1734_v21 }
 0x230   :  { %v1598_v40 = vadd.f32 %v1597_v52, %v1532_v12  ;;  %v1536_v22 = vadd.f32 %v1535_v13, %v1458_v27  ;;  %v1241_v12 = vadd.f32 %v12342_v42, %v1089_v39  ;;  %v1388_v13 = vadd.f32 %v1387_v35, %v1311_v57 }
 0x231   :  { %2031 = vmatmul.f32.gmra.mxu3 %v1735_v10  ;;  %v1736_v44 = vsub.f32 %v1734_v21, %v1735_v10  ;;  %v1392_v16 = vpop.f32.mrf.mxu0 }
 0x232   :  { %1630 = vst.msk [vmem:[%s17524_s10 + $0x28] sm:$0xff] %vm1624_vm3, %v1598_v40  ;;  %v1659_v56 = vsel %vm1624_vm3, %v1598_v40, 0  ;;  %v1476_v7 = vadd.f32 %v1475_v15, %v1388_v13 }
 0x233   :  { %v12420_v33 = vand.u32 4294901760, %v1659_v56  ;;  %v1737_v37 = vand.u32 4294901760, %v1736_v44  ;;  %v1315_v44 = vadd.f32 %v12351_v59, %v1241_v12 }
 0x235   :  { %1738 = vmatmul.f32.gmra.mxu0 %v1737_v37  ;;  %1865 = vmatmul.f32.gmra.mxu1 %v12420_v33  ;;  %v1742_v48 = vsub.f32 %v1659_v56, %v12420_v33  ;;  %v1094_v56 = vpop.permute.xlu2 %1093  ;;  %v1481_v27 = vpop.f32.mrf.mxu1  ;;  %v1393_v4 = vadd.f32 %v1392_v16, %v1315_v44 }
 0x236   :  { %v1249_v38 = vadd.f32 %v12349_v55, %v1094_v56 }
 0x237   :  { %v1539_v2 = vpop.f32.mrf.mxu2  ;;  %v1601_v34 = vpop.f32.mrf.mxu3  ;;  %1948 = vmatmul.f32.gmra.mxu2 %v1742_v48  ;;  %v1743_v5 = vand.u32 4294901760, %v1742_v48  ;;  %v1482_v36 = vadd.f32 %v1481_v27, %v1393_v4 }
 0x238   :  { %v1602_v28 = vadd.f32 %v1601_v34, %v1536_v22  ;;  %v1540_v23 = vadd.f32 %v1539_v2, %v1464_v6 }
 0x239   :  { %2037 = vmatmul.f32.gmra.mxu3 %v1743_v5  ;;  %v1744_v45 = vsub.f32 %v1742_v48, %v1743_v5 }
 0x23a   :  { %1631 = vst.msk [vmem:[%s17524_s10 + $0x30] sm:$0xff] %vm1624_vm3, %v1602_v28  ;;  %v1662_v49 = vsel %vm1624_vm3, %v1602_v28, 0  ;;  %v1319_v28 = vadd.f32 %v12355_v63, %v1249_v38 }
 0x23b   :  { %v12431_v53 = vand.u32 4294901760, %v1662_v49  ;;  %v1745_v51 = vand.u32 4294901760, %v1744_v45  ;;  %v1397_v45 = vpop.f32.mrf.mxu0 }
 0x23c   :  { %v1398_v6 = vadd.f32 %v1397_v45, %v1319_v28 }
 0x23d   :  { %1746 = vmatmul.f32.gmra.mxu0 %v1745_v51  ;;  %1869 = vmatmul.f32.gmra.mxu1 %v12431_v53  ;;  %v1750_v19 = vsub.f32 %v1662_v49, %v12431_v53 }
 0x23f   :  { %v1543_v26 = vpop.f32.mrf.mxu2  ;;  %v1605_v0 = vpop.f32.mrf.mxu3  ;;  %1953 = vmatmul.f32.gmra.mxu2 %v1750_v19  ;;  %v1751_v46 = vand.u32 4294901760, %v1750_v19 }
 0x240   :  { %v1606_v58 = vadd.f32 %v1605_v0, %v1540_v23  ;;  %v1544_v29 = vadd.f32 %v1543_v26, %v1470_v47 }
 0x241   :  { %2043 = vmatmul.f32.gmra.mxu3 %v1751_v46  ;;  %v1752_v31 = vsub.f32 %v1750_v19, %v1751_v46  ;;  %v1487_v19 = vpop.f32.mrf.mxu1 }
 0x242   :  { %1632 = vst.msk [vmem:[%s17524_s10 + $0x38] sm:$0xff] %vm1624_vm3, %v1606_v58  ;;  %v1665_v61 = vsel %vm1624_vm3, %v1606_v58, 0  ;;  %v1488_v46 = vadd.f32 %v1487_v19, %v1398_v6 }
 0x243   :  { %v12442_v8 = vand.u32 4294901760, %v1665_v61  ;;  %v1753_v24 = vand.u32 4294901760, %v1752_v31 }
 0x245   :  { %1754 = vmatmul.f32.gmra.mxu0 %v1753_v24  ;;  %1873 = vmatmul.f32.gmra.mxu1 %v12442_v8  ;;  %v1758_v62 = vsub.f32 %v1665_v61, %v12442_v8 }
 0x247   :  { %v1547_v25 = vpop.f32.mrf.mxu2  ;;  %v1609_v21 = vpop.f32.mrf.mxu3  ;;  %1958 = vmatmul.f32.gmra.mxu2 %v1758_v62  ;;  %v1759_v14 = vand.u32 4294901760, %v1758_v62 }
 0x248   :  { %v1610_v52 = vadd.f32 %v1609_v21, %v1544_v29  ;;  %v1548_v37 = vadd.f32 %v1547_v25, %v1476_v7 }
 0x249   :  { %2049 = vmatmul.f32.gmra.mxu3 %v1759_v14  ;;  %v1760_v10 = vsub.f32 %v1758_v62, %v1759_v14 }
 0x24a   :  { %1633 = vst.msk [vmem:[%s17524_s10 + $0x40] sm:$0xff] %vm1624_vm3, %v1610_v52  ;;  %v1668_v32 = vsel %vm1624_vm3, %v1610_v52, 0 }
 0x24b   :  { %v12453_v30 = vand.u32 4294901760, %v1668_v32  ;;  %v1761_v40 = vand.u32 4294901760, %v1760_v10 }
 0x24d   :  { %1762 = vmatmul.f32.gmra.mxu0 %v1761_v40  ;;  %1877 = vmatmul.f32.gmra.mxu1 %v12453_v30  ;;  %v1766_v42 = vsub.f32 %v1668_v32, %v12453_v30 }
 0x24f   :  { %v1613_v3 = vpop.f32.mrf.mxu3  ;;  %1963 = vmatmul.f32.gmra.mxu2 %v1766_v42  ;;  %v1767_v48 = vand.u32 4294901760, %v1766_v42  ;;  %v1551_v2 = vpop.f32.mrf.mxu2 }
 0x250   :  { %v1614_v22 = vadd.f32 %v1613_v3, %v1548_v37  ;;  %v1552_v49 = vadd.f32 %v1551_v2, %v1482_v36 }
 0x251   :  { %2055 = vmatmul.f32.gmra.mxu3 %v1767_v48  ;;  %v1768_v34 = vsub.f32 %v1766_v42, %v1767_v48 }
 0x252   :  { %1634 = vst.msk [vmem:[%s17524_s10 + $0x48] sm:$0xff] %vm1624_vm3, %v1614_v22  ;;  %v1671_v59 = vsel %vm1624_vm3, %v1614_v22, 0 }
 0x253   :  { %v12464_v5 = vand.u32 4294901760, %v1671_v59  ;;  %v1769_v60 = vand.u32 4294901760, %v1768_v34 }
 0x255   :  { %1770 = vmatmul.f32.gmra.mxu0 %v1769_v60  ;;  %1881 = vmatmul.f32.gmra.mxu1 %v12464_v5  ;;  %v1774_v55 = vsub.f32 %v1671_v59, %v12464_v5 }
 0x257   :  { %v1617_v54 = vpop.f32.mrf.mxu3  ;;  %1968 = vmatmul.f32.gmra.mxu2 %v1774_v55  ;;  %v1775_v51 = vand.u32 4294901760, %v1774_v55  ;;  %v1555_v23 = vpop.f32.mrf.mxu2 }
 0x258   :  { %v1618_v17 = vadd.f32 %v1617_v54, %v1552_v49  ;;  %v1556_v18 = vadd.f32 %v1555_v23, %v1488_v46 }
 0x259   :  { %2061 = vmatmul.f32.gmra.mxu3 %v1775_v51  ;;  %v1776_v11 = vsub.f32 %v1774_v55, %v1775_v51 }
 0x25a   :  { %1635 = vst.msk [vmem:[%s17524_s10 + $0x50] sm:$0xff] %vm1624_vm3, %v1618_v17  ;;  %v1674_v63 = vsel %vm1624_vm3, %v1618_v17, 0 }
 0x25b   :  { %v1781_v26 = vand.u32 4294901760, %v1674_v63  ;;  %v1777_v0 = vand.u32 4294901760, %v1776_v11 }
 0x25d   :  { %1778 = vmatmul.f32.gmra.mxu0 %v1777_v0  ;;  %1885 = vmatmul.f32.gmra.mxu1 %v1781_v26  ;;  %v1782_v43 = vsub.f32 %v1674_v63, %v1781_v26 }
 0x25f   :  { %v1621_v58 = vpop.f32.mrf.mxu3  ;;  %1973 = vmatmul.f32.gmra.mxu2 %v1782_v43  ;;  %v1783_v35 = vand.u32 4294901760, %v1782_v43 }
 0x260   :  { %v1622_v31 = vadd.f32 %v1621_v58, %v1556_v18 }
 0x261   :  { %2067 = vmatmul.f32.gmra.mxu3 %v1783_v35  ;;  %v1784_v61 = vsub.f32 %v1782_v43, %v1783_v35 }
 0x262   :  { %1636 = vst.msk [vmem:[%s17524_s10 + $0x58] sm:$0xff] %vm1624_vm3, %v1622_v31  ;;  %v1677_v24 = vsel %vm1624_vm3, %v1622_v31, 0 }
 0x263   :  { %v1789_v47 = vand.u32 4294901760, %v1677_v24  ;;  %v1785_v57 = vand.u32 4294901760, %v1784_v61 }
 0x265   :  { %1786 = vmatmul.f32.gmra.mxu0 %v1785_v57  ;;  %1889 = vmatmul.f32.gmra.mxu1 %v1789_v47  ;;  %v1790_v15 = vsub.f32 %v1677_v24, %v1789_v47 }
 0x267   :  { %1978 = vmatmul.f32.gmra.mxu2 %v1790_v15  ;;  %v1791_v62 = vand.u32 4294901760, %v1790_v15 }
 0x269   :  { %2073 = vmatmul.f32.gmra.mxu3 %v1791_v62  ;;  %v1792_v39 = vsub.f32 %v1790_v15, %v1791_v62 }
 0x26b   :  { %v1793_v29 = vand.u32 4294901760, %v1792_v39 }
 0x26d   :  { %1794 = vmatmul.f32.gmra.mxu0 %v1793_v29  ;;  %2183 = vmatmul.f32.vlgmr.msrb.gmra.mxu1 %v12365_v9 }
 0x275   :  { %2112 = vmatmul.f32.vlgmr.msrb.gmra.mxu0 %v12365_v9  ;;  %2187 = vmatmul.f32.gmra.mxu1 %v12376_v41 }
 0x27d   :  { %2116 = vmatmul.f32.gmra.mxu0 %v12376_v41  ;;  %2191 = vmatmul.f32.gmra.mxu1 %v12387_v50 }
 0x285   :  { %2120 = vmatmul.f32.gmra.mxu0 %v12387_v50  ;;  %2195 = vmatmul.f32.gmra.mxu1 %v12398_v20 }
 0x28a   :  { %v12486_v25 = vpop.f32.mrf.mxu1 }
 0x28d   :  { %2124 = vmatmul.f32.gmra.mxu0 %v12398_v20  ;;  %2199 = vmatmul.f32.gmra.mxu1 %v12409_v1 }
 0x292   :  { %v12490_v21 = vpop.f32.mrf.mxu0  ;;  %v12492_v14 = vpop.f32.mrf.mxu1 }
 0x293   :  { %v12525_v44 = vpop.f32.mrf.mxu2 }
 0x294   :  { %17662 = vst [vmem:[#allocation2_spill] sm:$0xff] %v12525_v44 }
 0x295   :  { %2128 = vmatmul.f32.gmra.mxu0 %v12409_v1  ;;  %2203 = vmatmul.f32.gmra.mxu1 %v12420_v33 }
 0x29a   :  { %v12496_v9 = vpop.f32.mrf.mxu0  ;;  %v12498_v41 = vpop.f32.mrf.mxu1 }
 0x29b   :  { %v12529_v37 = vpop.f32.mrf.mxu2 }
 0x29d   :  { %2132 = vmatmul.f32.gmra.mxu0 %v12420_v33  ;;  %2207 = vmatmul.f32.gmra.mxu1 %v12431_v53 }
 0x2a2   :  { %v12502_v50 = vpop.f32.mrf.mxu0  ;;  %v12504_v20 = vpop.f32.mrf.mxu1 }
 0x2a3   :  { %v12533_v38 = vpop.f32.mrf.mxu2 }
 0x2a5   :  { %2136 = vmatmul.f32.gmra.mxu0 %v12431_v53  ;;  %2211 = vmatmul.f32.gmra.mxu1 %v12442_v8 }
 0x2aa   :  { %v12508_v12 = vpop.f32.mrf.mxu0  ;;  %v12510_v1 = vpop.f32.mrf.mxu1 }
 0x2ad   :  { %2140 = vmatmul.f32.gmra.mxu0 %v12442_v8  ;;  %2215 = vmatmul.f32.gmra.mxu1 %v12453_v30 }
 0x2b2   :  { %v12514_v13 = vpop.f32.mrf.mxu0  ;;  %v12516_v33 = vpop.f32.mrf.mxu1 }
 0x2b5   :  { %2144 = vmatmul.f32.gmra.mxu0 %v12453_v30  ;;  %2219 = vmatmul.f32.gmra.mxu1 %v12464_v5  ;;  %v12527_v30 = vpop.f32.mrf.mxu3 }
 0x2b6   :  { %17663 = vst [vmem:[#allocation3_spill] sm:$0xff] %v12527_v30 }
 0x2ba   :  { %v12520_v52 = vpop.f32.mrf.mxu0  ;;  %v12522_v53 = vpop.f32.mrf.mxu1 }
 0x2bd   :  { %2148 = vmatmul.f32.gmra.mxu0 %v12464_v5  ;;  %2223 = vmatmul.f32.gmra.mxu1 %v1781_v26  ;;  %v12531_v48 = vpop.f32.mrf.mxu3  ;;  %v12543_v5 = vpop.f32.mrf.mxu2 }
 0x2be   :  { %17664 = vst [vmem:[#allocation4_spill] sm:$0xff] %v12531_v48 }
 0x2c2   :  { %v1755_v10 = vpop.f32.mrf.mxu0  ;;  %v1874_v32 = vpop.f32.mrf.mxu1 }
 0x2c5   :  { %2152 = vmatmul.f32.gmra.mxu0 %v1781_v26  ;;  %2227 = vmatmul.f32.gmra.mxu1 %v1789_v47  ;;  %v12537_v2 = vpop.f32.mrf.mxu3  ;;  %v1944_v45 = vpop.f32.mrf.mxu2 }
 0x2c6   :  { %17666 = vst [vmem:[#allocation6_spill] sm:$0xff] %v12537_v2 }
 0x2ca   :  { %v1763_v8 = vpop.f32.mrf.mxu0  ;;  %v1878_v16 = vpop.f32.mrf.mxu1 }
 0x2cd   :  { %2156 = vmatmul.f32.gmra.mxu0 %v1789_v47  ;;  %v12545_v60 = vpop.f32.mrf.mxu3  ;;  %v1949_v51 = vpop.f32.mrf.mxu2 }
 0x2d2   :  { %v1771_v40 = vpop.f32.mrf.mxu0  ;;  %v1882_v7 = vpop.f32.mrf.mxu1 }
 0x2d5   :  { %v12551_v55 = vpop.f32.mrf.mxu3  ;;  %v1954_v11 = vpop.f32.mrf.mxu2 }
 0x2da   :  { %v1779_v42 = vpop.f32.mrf.mxu0  ;;  %v1886_v56 = vpop.f32.mrf.mxu1 }
 0x2db   :  { %v1883_v29 = vadd.f32 %v1882_v7, %v1779_v42  ;;  %v1863_v7 = vadd.f32 %v12510_v1, %v12514_v13 }
 0x2dd   :  { %v2038_v19 = vpop.f32.mrf.mxu3  ;;  %v1959_v43 = vpop.f32.mrf.mxu2 }
 0x2e2   :  { %v1787_v27 = vpop.f32.mrf.mxu0  ;;  %v1890_v3 = vpop.f32.mrf.mxu1 }
 0x2e5   :  { %v2044_v26 = vpop.f32.mrf.mxu3  ;;  %v1964_v31 = vpop.f32.mrf.mxu2 }
 0x2ea   :  { %v1795_v4 = vpop.f32.mrf.mxu0  ;;  %v12535_v22 = vpop.f32.mrf.mxu1 }
 0x2eb   :  { %17665 = vst [vmem:[#allocation5_spill] sm:$0xff] %v12535_v22  ;;  %v1887_v22 = vadd.f32 %v1886_v56, %v1787_v27 }
 0x2ed   :  { %v2050_v18 = vpop.f32.mrf.mxu3  ;;  %v1969_v57 = vpop.f32.mrf.mxu2 }
 0x2f2   :  { %v12539_v34 = vpop.f32.mrf.mxu0  ;;  %v12541_v59 = vpop.f32.mrf.mxu1 }
 0x2f3   :  { %17667 = vst [vmem:[#allocation7_spill] sm:$0xff] %v12539_v34  ;;  %v1879_v34 = vadd.f32 %v1878_v16, %v1771_v40 }
 0x2f4   :  { %17668 = vst [vmem:[#allocation8_spill] sm:$0xff] %v12541_v59 }
 0x2f5   :  { %v2056_v61 = vpop.f32.mrf.mxu3  ;;  %v1974_v59 = vpop.f32.mrf.mxu2  ;;  %v1965_v48 = vadd.f32 %v1964_v31, %v1879_v34  ;;  %v2231_v31 = vld [vmem:[%s17525_s5] sm:$0xff] }
 0x2f6   :  { %v1975_v30 = vadd.f32 %v1974_v59, %v1887_v22 }
 0x2fa   :  { %v12547_v36 = vpop.f32.mrf.mxu0  ;;  %v12549_v28 = vpop.f32.mrf.mxu1 }
 0x2fb   :  { %17669 = vst [vmem:[#allocation9_spill] sm:$0xff] %v12547_v36  ;;  %v1970_v36 = vadd.f32 %v1969_v57, %v1883_v29 }
 0x2fc   :  { %17670 = vst [vmem:[#allocation10_spill] sm:$0xff] %v12549_v28 }
 0x2fd   :  { %v2062_v62 = vpop.f32.mrf.mxu3  ;;  %v1979_v27 = vpop.f32.mrf.mxu2 }
 0x2fe   :  { %v2063_v2 = vadd.f32 %v2062_v62, %v1970_v36 }
 0x302   :  { %v12553_v49 = vpop.f32.mrf.mxu0  ;;  %v12555_v54 = vpop.f32.mrf.mxu1 }
 0x303   :  { %17671 = vst [vmem:[#allocation11_spill] sm:$0xff] %v12553_v49 }
 0x304   :  { %17672 = vst [vmem:[#allocation12_spill] sm:$0xff] %v12555_v54  ;;  %v1875_v54 = vadd.f32 %v1874_v32, %v1763_v8  ;;  %v2057_v32 = vadd.f32 %v2056_v61, %v1965_v48  ;;  %v1851_v48 = vadd.f32 %v12492_v14, %v12496_v9  ;;  %v17682_v61 = vld [vmem:[#allocation4_spill] sm:$0xff] }
 0x305   :  { %v2068_v49 = vpop.f32.mrf.mxu3 }
 0x306   :  { %v2069_v44 = vadd.f32 %v2068_v49, %v1975_v30  ;;  %v1855_v30 = vadd.f32 %v12498_v41, %v12502_v50  ;;  %v1847_v49 = vadd.f32 %v12486_v25, %v12490_v21 }
 0x308   :  { %v1935_v41 = vadd.f32 %v12533_v38, %v1855_v30 }
 0x30a   :  { %v12557_v6 = vpop.f32.mrf.mxu0  ;;  %v12559_v17 = vpop.f32.mrf.mxu1 }
 0x30b   :  { %17673 = vst [vmem:[#allocation13_spill] sm:$0xff] %v12557_v6  ;;  %v1960_v6 = vadd.f32 %v1959_v43, %v1875_v54 }
 0x30c   :  { %17674 = vst [vmem:[#allocation14_spill] sm:$0xff] %v12559_v17  ;;  %v1871_v17 = vadd.f32 %v12522_v53, %v1755_v10  ;;  %v1859_v53 = vadd.f32 %v12504_v20, %v12508_v12 }
 0x30d   :  { %v2051_v22 = vadd.f32 %v2050_v18, %v1960_v6  ;;  %v2074_v20 = vpop.f32.mrf.mxu3 }
 0x30e   :  { %v1955_v42 = vadd.f32 %v1954_v11, %v1871_v17 }
 0x310   :  { %v2045_v1 = vadd.f32 %v2044_v26, %v1955_v42 }
 0x312   :  { %v12561_v63 = vpop.f32.mrf.mxu0  ;;  %v12563_v23 = vpop.f32.mrf.mxu1  ;;  %v17680_v43 = vld [vmem:[#allocation13_spill] sm:$0xff] }
 0x313   :  { %17675 = vst [vmem:[#allocation15_spill] sm:$0xff] %v12563_v23  ;;  %v1867_v23 = vadd.f32 %v12516_v33, %v12520_v52 }
 0x315   :  { %v1950_v10 = vadd.f32 %v1949_v51, %v1867_v23 }
 0x31a   :  { %v2133_v0 = vpop.f32.mrf.mxu0  ;;  %v12565_v46 = vpop.f32.mrf.mxu1 }
 0x31b   :  { %17676 = vst [vmem:[#allocation16_spill] sm:$0xff] %v12565_v46  ;;  %v1891_v46 = vadd.f32 %v1890_v3, %v1795_v4  ;;  %v1945_v3 = vadd.f32 %v1944_v45, %v1863_v7 }
 0x31d   :  { %v1980_v33 = vadd.f32 %v1979_v27, %v1891_v46  ;;  %v2033_v50 = vadd.f32 %v12551_v55, %v1945_v3  ;;  %v17678_v55 = vld [vmem:[#allocation2_spill] sm:$0xff] }
 0x31e   :  { %v1925_v26 = vadd.f32 %v17678_v55, %v1847_v49  ;;  %v17689_v3 = vld [vmem:[#allocation10_spill] sm:$0xff] }
 0x31f   :  { %v2075_v59 = vadd.f32 %v2074_v20, %v1980_v33  ;;  %v2130_v17 = vadd.f32 %v12561_v63, %v2033_v50 }
 0x322   :  { %v2137_v58 = vpop.f32.mrf.mxu0  ;;  %v2212_v35 = vpop.f32.mrf.mxu1 }
 0x323   :  { %v2138_v12 = vadd.f32 %v2137_v58, %v2045_v1 }
 0x32a   :  { %v2141_v24 = vpop.f32.mrf.mxu0  ;;  %v2216_v47 = vpop.f32.mrf.mxu1 }
 0x32b   :  { %v2142_v13 = vadd.f32 %v2141_v24, %v2051_v22 }
 0x32d   :  { %v2213_v51 = vadd.f32 %v2212_v35, %v2142_v13 }
 0x332   :  { %v2145_v15 = vpop.f32.mrf.mxu0  ;;  %v2220_v39 = vpop.f32.mrf.mxu1 }
 0x333   :  { %v2146_v52 = vadd.f32 %v2145_v15, %v2057_v32  ;;  %v17684_v15 = vld [vmem:[#allocation14_spill] sm:$0xff]  ;;  %v17686_v32 = vld [vmem:[#allocation9_spill] sm:$0xff] }
 0x334   :  { %v2201_v62 = vadd.f32 %v17684_v15, %v2130_v17 }
 0x335   :  { %v2217_v36 = vadd.f32 %v2216_v47, %v2146_v52  ;;  %v17683_v47 = vld [vmem:[#allocation11_spill] sm:$0xff] }
 0x336   :  { %v12639_v13 = vand.u32 4294901760, %v2201_v62 }
 0x337   :  { %v12591_v25 = vand.u32 4294901760, %v2217_v36 }
 0x339   :  { %v12616_v29 = vsub.f32 %v2217_v36, %v12591_v25 }
 0x33a   :  { %v2149_v28 = vpop.f32.mrf.mxu0  ;;  %v2224_v56 = vpop.f32.mrf.mxu1 }
 0x33b   :  { %v2150_v8 = vadd.f32 %v2149_v28, %v2063_v2  ;;  %v2039_v2 = vadd.f32 %v2038_v19, %v1950_v10  ;;  %v17677_v19 = vld [vmem:[#allocation16_spill] sm:$0xff]  ;;  %v2345_v10 = vsel %vm2343_vm4, %v2231_v31, 0 }
 0x33c   :  { %v2209_v11 = vadd.f32 %v17677_v19, %v2138_v12  ;;  %v12654_v20 = vand.u32 4294901760, %v2345_v10  ;;  %v17690_v12 = vld [vmem:[#allocation8_spill] sm:$0xff] }
 0x33d   :  { %v2221_v4 = vadd.f32 %v2220_v39, %v2150_v8  ;;  %v2134_v45 = vadd.f32 %v2133_v0, %v2039_v2  ;;  %v17679_v0 = vld [vmem:[#allocation6_spill] sm:$0xff]  ;;  %v2573_v2 = vand.u32 4294901760, %v12616_v29 }
 0x33e   :  { %v2021_v46 = vadd.f32 %v17679_v0, %v1935_v41  ;;  %v12613_v39 = vand.u32 4294901760, %v2209_v11 }
 0x33f   :  { %v12585_v14 = vand.u32 4294901760, %v2221_v4  ;;  %v2574_v19 = vsub.f32 %v12616_v29, %v2573_v2 }
 0x340   :  { %v2122_v57 = vadd.f32 %v17683_v47, %v2021_v46 }
 0x341   :  { %v12603_v63 = vsub.f32 %v2221_v4, %v12585_v14  ;;  %v12642_v4 = vsub.f32 %v2209_v11, %v12613_v39  ;;  %v2575_v31 = vand.u32 4294901760, %v2574_v19 }
 0x342   :  { %v2153_v16 = vpop.f32.mrf.mxu0  ;;  %v2228_v23 = vpop.f32.mrf.mxu1  ;;  %v2193_v1 = vadd.f32 %v17689_v3, %v2122_v57 }
 0x343   :  { %v2154_v40 = vadd.f32 %v2153_v16, %v2069_v44  ;;  %v1940_v44 = vadd.f32 %v12543_v5, %v1859_v53  ;;  %v1930_v5 = vadd.f32 %v12529_v37, %v1851_v48  ;;  %v17681_v37 = vld [vmem:[#allocation15_spill] sm:$0xff]  ;;  %v2567_v52 = vand.u32 4294901760, %v12603_v63 }
 0x344   :  { %v2205_v58 = vadd.f32 %v17681_v37, %v2134_v45  ;;  %v2585_v11 = vand.u32 4294901760, %v12642_v4 }
 0x345   :  { %v2225_v34 = vadd.f32 %v2224_v56, %v2154_v40  ;;  %v2027_v6 = vadd.f32 %v12545_v60, %v1940_v44  ;;  %v12600_v60 = vand.u32 4294901760, %v2213_v51  ;;  %v2015_v24 = vadd.f32 %v17682_v61, %v1930_v5  ;;  %v17685_v56 = vld [vmem:[#allocation3_spill] sm:$0xff]  ;;  %v17687_v40 = vld [vmem:[#allocation12_spill] sm:$0xff] }
 0x346   :  { %v2009_v16 = vadd.f32 %v17685_v56, %v1925_v26  ;;  %v12628_v27 = vand.u32 4294901760, %v2205_v58  ;;  %v2568_v50 = vsub.f32 %v12603_v63, %v2567_v52  ;;  %v12673_v5 = vand.u32 4294901760, %v2193_v1 }
 0x347   :  { %v12579_v28 = vand.u32 4294901760, %v2225_v34  ;;  %v2126_v18 = vadd.f32 %v17680_v43, %v2027_v6  ;;  %v2118_v8 = vadd.f32 %v17686_v32, %v2015_v24  ;;  %v12631_v22 = vsub.f32 %v2213_v51, %v12600_v60  ;;  %v17691_v51 = vld [vmem:[#allocation5_spill] sm:$0xff] }
 0x348   :  { %v12661_v49 = vsub.f32 %v2205_v58, %v12628_v27  ;;  %v12676_v6 = vsub.f32 %v2201_v62, %v12639_v13  ;;  %v2569_v0 = vand.u32 4294901760, %v2568_v50  ;;  %v12703_v37 = vsub.f32 %v2193_v1, %v12673_v5 }
 0x349   :  { %v12594_v21 = vsub.f32 %v2225_v34, %v12579_v28  ;;  %v2197_v53 = vadd.f32 %v17687_v40, %v2126_v18  ;;  %v17688_v34 = vld [vmem:[#allocation7_spill] sm:$0xff]  ;;  %v2579_v45 = vand.u32 4294901760, %v12631_v22  ;;  %v2586_v61 = vsub.f32 %v12642_v4, %v2585_v11 }
 0x34a   :  { %v2157_v54 = vpop.f32.mrf.mxu0  ;;  %v2114_v30 = vadd.f32 %v17688_v34, %v2009_v16  ;;  %v2591_v43 = vand.u32 4294901760, %v12661_v49  ;;  %v2597_v58 = vand.u32 4294901760, %v12676_v6  ;;  %v2233_v16 = vld [vmem:[%s17525_s5 + $0x10] sm:$0xff] }
 0x34b   :  { %v2158_v9 = vadd.f32 %v2157_v54, %v2075_v59  ;;  %v2561_v42 = vand.u32 4294901760, %v12594_v21  ;;  %v2189_v59 = vadd.f32 %v17690_v12, %v2118_v8  ;;  %v12657_v36 = vand.u32 4294901760, %v2197_v53  ;;  %v2232_v54 = vld [vmem:[%s17525_s5 + $0x8] sm:$0xff] }
 0x34c   :  { %v2348_v55 = vsel %vm2343_vm4, %v2232_v54, 0  ;;  %v2580_v46 = vsub.f32 %v12631_v22, %v2579_v45  ;;  %v2592_v62 = vsub.f32 %v12661_v49, %v2591_v43  ;;  %v2609_v8 = vand.u32 4294901760, %v12703_v37 }
 0x34d   :  { %v2229_v38 = vadd.f32 %v2228_v23, %v2158_v9  ;;  %v2562_v44 = vsub.f32 %v12594_v21, %v2561_v42  ;;  %v2185_v9 = vadd.f32 %v17691_v51, %v2114_v30  ;;  %v12685_v23 = vsub.f32 %v2345_v10, %v12654_v20 }
 0x34e   :  { %v12693_v26 = vsub.f32 %v2197_v53, %v12657_v36  ;;  %v12713_v47 = vand.u32 4294901760, %v2348_v55  ;;  %v2581_v15 = vand.u32 4294901760, %v2580_v46  ;;  %v2587_v40 = vand.u32 4294901760, %v2586_v61 }
 0x34f   :  { %v12605_v35 = vand.u32 4294901760, %v2229_v38  ;;  %v2563_v17 = vand.u32 4294901760, %v2562_v44  ;;  %v12700_v18 = vand.u32 4294901760, %v2185_v9  ;;  %v2422_v24 = vand.u32 4294901760, %v12685_v23 }
 0x350   :  { %v2603_v56 = vand.u32 4294901760, %v12693_v26  ;;  %v2598_v53 = vsub.f32 %v12676_v6, %v2597_v58  ;;  %v12740_v34 = vsub.f32 %v2348_v55, %v12713_v47  ;;  %v2351_v30 = vsel %vm2343_vm4, %v2233_v16, 0 }
 0x351   :  { %v12619_v7 = vsub.f32 %v2229_v38, %v12605_v35  ;;  %2397 = vmatpush.msrb.mxu2 %v12605_v35  ;;  %2816 = vmatpush.msra.mxu1 %v12605_v35  ;;  %v12687_v38 = vand.u32 4294901760, %v2189_v59  ;;  %v12729_v32 = vsub.f32 %v2185_v9, %v12700_v18  ;;  %v2423_v10 = vsub.f32 %v12685_v23, %v2422_v24 }
 0x352   :  { %v2593_v3 = vand.u32 4294901760, %v2592_v62  ;;  %v2604_v1 = vsub.f32 %v12693_v26, %v2603_v56  ;;  %v2610_v44 = vsub.f32 %v12703_v37, %v2609_v8  ;;  %v2430_v50 = vand.u32 4294901760, %v12740_v34 }
 0x353   :  { %2399 = vmatpush.msrb.mxu2 %v12579_v28  ;;  %2696 = vmatpush.msra.mxu0 %v12619_v7  ;;  %v2555_v33 = vand.u32 4294901760, %v12619_v7  ;;  %v12718_v57 = vsub.f32 %v2189_v59, %v12687_v38  ;;  %v2621_v12 = vand.u32 4294901760, %v12729_v32  ;;  %v2599_v59 = vand.u32 4294901760, %v2598_v53 }
 0x354   :  { %2818 = vmatpush.msra.mxu1 %v12579_v28  ;;  %v12758_v54 = vand.u32 4294901760, %v2351_v30  ;;  %v2605_v51 = vand.u32 4294901760, %v2604_v1  ;;  %v2611_v19 = vand.u32 4294901760, %v2610_v44  ;;  %v2236_v44 = vld [vmem:[%s17525_s5 + $0x28] sm:$0xff] }
 0x355   :  { %2401 = vmatpush.msrb.mxu2 %v12585_v14  ;;  %2699 = vmatpush.msra.mxu0 %v12594_v21  ;;  %v2556_v48 = vsub.f32 %v12619_v7, %v2555_v33  ;;  %v2622_v55 = vsub.f32 %v12729_v32, %v2621_v12 }
 0x356   :  { %2820 = vmatpush.msra.mxu1 %v12585_v14  ;;  %v12778_v46 = vsub.f32 %v2351_v30, %v12758_v54 }
 0x357   :  { %2403 = vmatpush.msrb.mxu2 %v12591_v25  ;;  %2702 = vmatpush.msra.mxu0 %v12603_v63  ;;  %v2557_v41 = vand.u32 4294901760, %v2556_v48  ;;  %v2615_v48 = vand.u32 4294901760, %v12718_v57 }
 0x358   :  { %2822 = vmatpush.msra.mxu1 %v12591_v25  ;;  %v2438_v16 = vand.u32 4294901760, %v12778_v46 }
 0x359   :  { %2405 = vmatpush.msrb.mxu2 %v12600_v60  ;;  %2558 = vmatpush.msrb.mxu3 %v2557_v41  ;;  %v2424_v41 = vand.u32 4294901760, %v2423_v10  ;;  %v2616_v9 = vsub.f32 %v12718_v57, %v2615_v48 }
 0x35a   :  { %2705 = vmatpush.msra.mxu0 %v12616_v29  ;;  %2824 = vmatpush.msra.mxu1 %v12600_v60 }
 0x35b   :  { %2407 = vmatpush.msrb.mxu2 %v12613_v39  ;;  %2564 = vmatpush.msrb.mxu3 %v2563_v17  ;;  %v2234_v17 = vld [vmem:[%s17525_s5 + $0x18] sm:$0xff] }
 0x35c   :  { %2708 = vmatpush.msra.mxu0 %v12631_v22  ;;  %2826 = vmatpush.msra.mxu1 %v12613_v39  ;;  %v2354_v61 = vsel %vm2343_vm4, %v2234_v17, 0 }
 0x35d   :  { %2409 = vmatpush.msrb.mxu2 %v12628_v27  ;;  %2570 = vmatpush.msrb.mxu3 %v2569_v0  ;;  %v2431_v0 = vsub.f32 %v12740_v34, %v2430_v50 }
 0x35e   :  { %2711 = vmatpush.msra.mxu0 %v12642_v4  ;;  %2828 = vmatpush.msra.mxu1 %v12628_v27 }
 0x35f   :  { %2411 = vmatpush.msrb.mxu2 %v12639_v13  ;;  %2576 = vmatpush.msrb.mxu3 %v2575_v31  ;;  %v2617_v31 = vand.u32 4294901760, %v2616_v9  ;;  %v2432_v62 = vand.u32 4294901760, %v2431_v0 }
 0x360   :  { %2714 = vmatpush.msra.mxu0 %v12661_v49  ;;  %2830 = vmatpush.msra.mxu1 %v12639_v13 }
 0x361   :  { %2413 = vmatpush.msrb.mxu2 %v12657_v36  ;;  %2582 = vmatpush.msrb.mxu3 %v2581_v15  ;;  %v2623_v15 = vand.u32 4294901760, %v2622_v55  ;;  %v2237_v55 = vld [vmem:[%s17525_s5 + $0x30] sm:$0xff] }
 0x362   :  { %2717 = vmatpush.msra.mxu0 %v12676_v6  ;;  %2832 = vmatpush.msra.mxu1 %v12657_v36 }
 0x363   :  { %2415 = vmatpush.msrb.mxu2 %v12673_v5  ;;  %2588 = vmatpush.msrb.mxu3 %v2587_v40  ;;  %v12787_v40 = vand.u32 4294901760, %v2354_v61 }
 0x364   :  { %2720 = vmatpush.msra.mxu0 %v12693_v26  ;;  %2834 = vmatpush.msra.mxu1 %v12673_v5 }
 0x365   :  { %2417 = vmatpush.msrb.mxu2 %v12687_v38  ;;  %2594 = vmatpush.msrb.mxu3 %v2593_v3  ;;  %v12800_v53 = vsub.f32 %v2354_v61, %v12787_v40  ;;  %v2363_v61 = vsel %vm2343_vm4, %v2237_v55, 0 }
 0x366   :  { %2723 = vmatpush.msra.mxu0 %v12703_v37  ;;  %2836 = vmatpush.msra.mxu1 %v12687_v38 }
 0x367   :  { %2419 = vmatpush.msrb.mxu2 %v12700_v18  ;;  %2600 = vmatpush.msrb.mxu3 %v2599_v59  ;;  %v2446_v3 = vand.u32 4294901760, %v12800_v53 }
 0x368   :  { %2726 = vmatpush.msra.mxu0 %v12718_v57  ;;  %2838 = vmatpush.msra.mxu1 %v12700_v18 }
 0x369   :  { %2425 = vmatmul.f32.vlgmr.msrb.gmra.mxu2 %v2424_v41  ;;  %2606 = vmatpush.msrb.mxu3 %v2605_v51  ;;  %v2447_v59 = vsub.f32 %v12800_v53, %v2446_v3  ;;  %v2360_v51 = vsel %vm2343_vm4, %v2236_v44, 0 }
 0x36a   :  { %10924 = vmatpush.msra.mxu2 %v12619_v7  ;;  %2729 = vmatpush.msra.mxu0 %v12729_v32 }
 0x36b   :  { %2612 = vmatpush.msrb.mxu3 %v2611_v19  ;;  %2732 = vmatmul.f32.vlgmr.msra.gmra.mxu0 %v12685_v23  ;;  %v2235_v23 = vld [vmem:[%s17525_s5 + $0x20] sm:$0xff]  ;;  %v2448_v9 = vand.u32 4294901760, %v2447_v59  ;;  %v12830_v19 = vand.u32 4294901760, %v2360_v51 }
 0x36c   :  { %10925 = vmatpush.msra.mxu2 %v12594_v21  ;;  %2842 = vmatmul.f32.vlgmr.msra.gmra.mxu1 %v2422_v24  ;;  %v2439_v24 = vsub.f32 %v12778_v46, %v2438_v16  ;;  %v2357_v10 = vsel %vm2343_vm4, %v2235_v23, 0  ;;  %v2238_v21 = vld [vmem:[%s17525_s5 + $0x38] sm:$0xff]  ;;  %v2243_v23 = vld [vmem:[%s17525_s5 + $0x60] sm:$0xff] }
 0x36d   :  { %2618 = vmatpush.msrb.mxu3 %v2617_v31  ;;  %v12808_v1 = vand.u32 4294901760, %v2357_v10  ;;  %v12845_v31 = vsub.f32 %v2360_v51, %v12830_v19 }
 0x36e   :  { %10926 = vmatpush.msra.mxu2 %v12603_v63  ;;  %v2440_v30 = vand.u32 4294901760, %v2439_v24 }
 0x36f   :  { %2624 = vmatpush.msrb.mxu3 %v2623_v15  ;;  %v12822_v41 = vsub.f32 %v2357_v10, %v12808_v1  ;;  %v12855_v15 = vand.u32 4294901760, %v2363_v61 }
 0x370   :  { %10927 = vmatpush.msra.mxu2 %v12616_v29  ;;  %2626 = vmatmul.f32.vlgmr.msrb.gmra.mxu3 %v12654_v20 }
 0x371   :  { %2433 = vmatmul.f32.gmra.mxu2 %v2432_v62  ;;  %10936 = vmatpush.msra.mxu3 %v12605_v35  ;;  %v2454_v17 = vand.u32 4294901760, %v12822_v41  ;;  %v12872_v29 = vsub.f32 %v2363_v61, %v12855_v15 }
 0x372   :  { %10928 = vmatpush.msra.mxu2 %v12631_v22 }
 0x373   :  { %10937 = vmatpush.msra.mxu3 %v12579_v28  ;;  %v2455_v0 = vsub.f32 %v12822_v41, %v2454_v17 }
 0x374   :  { %10929 = vmatpush.msra.mxu2 %v12642_v4 }
 0x375   :  { %10938 = vmatpush.msra.mxu3 %v12585_v14  ;;  %v2456_v7 = vand.u32 4294901760, %v2455_v0 }
 0x376   :  { %10930 = vmatpush.msra.mxu2 %v12661_v49  ;;  %v2240_v49 = vld [vmem:[%s17525_s5 + $0x48] sm:$0xff] }
 0x377   :  { %10939 = vmatpush.msra.mxu3 %v12591_v25 }
 0x378   :  { %10931 = vmatpush.msra.mxu2 %v12676_v6  ;;  %2630 = vmatmul.f32.gmra.mxu3 %v12713_v47 }
 0x379   :  { %2441 = vmatmul.f32.gmra.mxu2 %v2440_v30  ;;  %10940 = vmatpush.msra.mxu3 %v12600_v60  ;;  %v2381_v30 = vsel %vm2343_vm4, %v2243_v23, 0 }
 0x37a   :  { %10932 = vmatpush.msra.mxu2 %v12693_v26  ;;  %v12970_v51 = vand.u32 4294901760, %v2381_v30 }
 0x37b   :  { %10941 = vmatpush.msra.mxu3 %v12613_v39 }
 0x37c   :  { %10933 = vmatpush.msra.mxu2 %v12703_v37  ;;  %v12980_v0 = vsub.f32 %v2381_v30, %v12970_v51 }
 0x37d   :  { %10942 = vmatpush.msra.mxu3 %v12628_v27 }
 0x37e   :  { %10934 = vmatpush.msra.mxu2 %v12718_v57  ;;  %v2242_v57 = vld [vmem:[%s17525_s5 + $0x58] sm:$0xff] }
 0x37f   :  { %10943 = vmatpush.msra.mxu3 %v12639_v13 }
 0x380   :  { %10935 = vmatpush.msra.mxu2 %v12729_v32  ;;  %2634 = vmatmul.f32.gmra.mxu3 %v12758_v54 }
 0x381   :  { %10944 = vmatpush.msra.mxu3 %v12657_v36  ;;  %2449 = vmatmul.f32.gmra.mxu2 %v2448_v9  ;;  %v2244_v9 = vld [vmem:[%s17525_s5 + $0x68] sm:$0xff] }
 0x382   :  { %2943 = vmatpush.msrb.mxu2 %v2555_v33  ;;  %v2462_v33 = vand.u32 4294901760, %v12845_v31  ;;  %v2384_v61 = vsel %vm2343_vm4, %v2244_v9, 0 }
 0x383   :  { %10945 = vmatpush.msra.mxu3 %v12673_v5 }
 0x384   :  { %2947 = vmatpush.msrb.mxu2 %v2561_v42  ;;  %v2463_v63 = vsub.f32 %v12845_v31, %v2462_v33  ;;  %v2470_v42 = vand.u32 4294901760, %v12872_v29 }
 0x385   :  { %10946 = vmatpush.msra.mxu3 %v12687_v38 }
 0x386   :  { %2951 = vmatpush.msrb.mxu2 %v2567_v52  ;;  %v2239_v52 = vld [vmem:[%s17525_s5 + $0x40] sm:$0xff] }
 0x387   :  { %10947 = vmatpush.msra.mxu3 %v12700_v18 }
 0x388   :  { %2955 = vmatpush.msrb.mxu2 %v2573_v2  ;;  %2638 = vmatmul.f32.gmra.mxu3 %v12787_v40 }
 0x389   :  { %3058 = vmatpush.msrb.mxu3 %v12605_v35  ;;  %2457 = vmatmul.f32.gmra.mxu2 %v2456_v7  ;;  %v2366_v35 = vsel %vm2343_vm4, %v2238_v21, 0  ;;  %v2518_v21 = vand.u32 4294901760, %v12980_v0 }
 0x38a   :  { %2959 = vmatpush.msrb.mxu2 %v2579_v45  ;;  %v12882_v22 = vand.u32 4294901760, %v2366_v35  ;;  %v2372_v45 = vsel %vm2343_vm4, %v2240_v49, 0 }
 0x38b   :  { %3060 = vmatpush.msrb.mxu3 %v12579_v28  ;;  %v2464_v28 = vand.u32 4294901760, %v2463_v63  ;;  %v12984_v63 = vand.u32 4294901760, %v2384_v61 }
 0x38c   :  { %2963 = vmatpush.msrb.mxu2 %v2585_v11  ;;  %v12928_v11 = vand.u32 4294901760, %v2372_v45 }
 0x38d   :  { %3062 = vmatpush.msrb.mxu3 %v12585_v14  ;;  %v2471_v14 = vsub.f32 %v12872_v29, %v2470_v42 }
 0x38e   :  { %2967 = vmatpush.msrb.mxu2 %v2591_v43 }
 0x38f   :  { %3064 = vmatpush.msrb.mxu3 %v12591_v25  ;;  %v12898_v25 = vsub.f32 %v2366_v35, %v12882_v22  ;;  %v2245_v35 = vld [vmem:[%s17525_s5 + $0x70] sm:$0xff] }
 0x390   :  { %2971 = vmatpush.msrb.mxu2 %v2597_v58  ;;  %2642 = vmatmul.f32.gmra.mxu3 %v12808_v1 }
 0x391   :  { %3066 = vmatpush.msrb.mxu3 %v12600_v60  ;;  %2465 = vmatmul.f32.gmra.mxu2 %v2464_v28  ;;  %v2369_v60 = vsel %vm2343_vm4, %v2239_v52, 0  ;;  %v2478_v4 = vand.u32 4294901760, %v12898_v25  ;;  %v2519_v28 = vsub.f32 %v12980_v0, %v2518_v21  ;;  %v12994_v52 = vsub.f32 %v2384_v61, %v12984_v63 }
 0x392   :  { %2975 = vmatpush.msrb.mxu2 %v2603_v56  ;;  %v12908_v2 = vand.u32 4294901760, %v2369_v60 }
 0x393   :  { %3068 = vmatpush.msrb.mxu3 %v12613_v39  ;;  %v2472_v39 = vand.u32 4294901760, %v2471_v14  ;;  %v2387_v14 = vsel %vm2343_vm4, %v2245_v35, 0  ;;  %v2271_v35 = vpop.permute.xlu1 %2270 }
 0x394   :  { %2979 = vmatpush.msrb.mxu2 %v2609_v8  ;;  %v2378_v8 = vsel %vm2343_vm4, %v2242_v57, 0  ;;  %v12998_v49 = vand.u32 4294901760, %v2387_v14 }
 0x395   :  { %3070 = vmatpush.msrb.mxu3 %v12628_v27  ;;  %v2479_v27 = vsub.f32 %v12898_v25, %v2478_v4  ;;  %v12956_v62 = vand.u32 4294901760, %v2378_v8 }
 0x396   :  { %2983 = vmatpush.msrb.mxu2 %v2615_v48 }
 0x397   :  { %3072 = vmatpush.msrb.mxu3 %v12639_v13  ;;  %v12922_v13 = vsub.f32 %v2369_v60, %v12908_v2  ;;  %v12966_v10 = vsub.f32 %v2378_v8, %v12956_v62  ;;  %v2520_v60 = vand.u32 4294901760, %v2519_v28 }
 0x398   :  { %2987 = vmatpush.msrb.mxu2 %v2621_v12  ;;  %2646 = vmatmul.f32.gmra.mxu3 %v12830_v19 }
 0x399   :  { %3074 = vmatpush.msrb.mxu3 %v12657_v36  ;;  %2473 = vmatmul.f32.gmra.mxu2 %v2472_v39  ;;  %v2480_v36 = vand.u32 4294901760, %v2479_v27  ;;  %v2486_v6 = vand.u32 4294901760, %v12922_v13  ;;  %v2510_v59 = vand.u32 4294901760, %v12966_v10  ;;  %v2526_v39 = vand.u32 4294901760, %v12994_v52  ;;  %v2246_v27 = vld [vmem:[%s17525_s5 + $0x78] sm:$0xff] }
 0x39b   :  { %3076 = vmatpush.msrb.mxu3 %v12673_v5  ;;  %v2241_v5 = vld [vmem:[%s17525_s5 + $0x50] sm:$0xff]  ;;  %v2487_v26 = vsub.f32 %v12922_v13, %v2486_v6  ;;  %v2511_v55 = vsub.f32 %v12966_v10, %v2510_v59 }
 0x39c   :  { %v2375_v43 = vsel %vm2343_vm4, %v2241_v5, 0  ;;  %v2390_v5 = vsel %vm2343_vm4, %v2246_v27, 0 }
 0x39d   :  { %3078 = vmatpush.msrb.mxu3 %v12687_v38  ;;  %v12938_v38 = vsub.f32 %v2372_v45, %v12928_v11  ;;  %v12942_v58 = vand.u32 4294901760, %v2375_v43  ;;  %v2512_v7 = vand.u32 4294901760, %v2511_v55  ;;  %v2527_v45 = vsub.f32 %v12994_v52, %v2526_v39 }
 0x39f   :  { %3080 = vmatpush.msrb.mxu3 %v12700_v18  ;;  %v2488_v18 = vand.u32 4294901760, %v2487_v26  ;;  %v2494_v37 = vand.u32 4294901760, %v12938_v38  ;;  %v12952_v32 = vsub.f32 %v2375_v43, %v12942_v58  ;;  %v2528_v26 = vand.u32 4294901760, %v2527_v45 }
 0x3a0   :  { %2650 = vmatmul.f32.gmra.mxu3 %v12855_v15 }
 0x3a1   :  { %2481 = vmatmul.f32.gmra.mxu2 %v2480_v36  ;;  %v2495_v56 = vsub.f32 %v12938_v38, %v2494_v37  ;;  %v2502_v12 = vand.u32 4294901760, %v12952_v32  ;;  %v13008_v36 = vsub.f32 %v2387_v14, %v12998_v49 }
 0x3a3   :  { %v2496_v48 = vand.u32 4294901760, %v2495_v56  ;;  %v2503_v24 = vsub.f32 %v12952_v32, %v2502_v12  ;;  %v2534_v43 = vand.u32 4294901760, %v13008_v36 }
 0x3a5   :  { %v2504_v44 = vand.u32 4294901760, %v2503_v24  ;;  %v2535_v57 = vsub.f32 %v13008_v36, %v2534_v43 }
 0x3a7   :  { %v2536_v8 = vand.u32 4294901760, %v2535_v57 }
 0x3a8   :  { %2654 = vmatmul.f32.gmra.mxu3 %v12882_v22 }
 0x3a9   :  { %2489 = vmatmul.f32.gmra.mxu2 %v2488_v18  ;;  %v13012_v18 = vand.u32 4294901760, %v2390_v5 }
 0x3ab   :  { %v13019_v56 = vsub.f32 %v2390_v5, %v13012_v18 }
 0x3b0   :  { %2658 = vmatmul.f32.gmra.mxu3 %v12908_v2 }
 0x3b1   :  { %2497 = vmatmul.f32.gmra.mxu2 %v2496_v48  ;;  %v2542_v48 = vand.u32 4294901760, %v13019_v56 }
 0x3b3   :  { %v2543_v23 = vsub.f32 %v13019_v56, %v2542_v48 }
 0x3b5   :  { %v2544_v24 = vand.u32 4294901760, %v2543_v23 }
 0x3b8   :  { %2662 = vmatmul.f32.gmra.mxu3 %v12928_v11 }
 0x3b9   :  { %2505 = vmatmul.f32.gmra.mxu2 %v2504_v44  ;;  %v2266_v44 = vpop.permute.xlu0 %2265 }
 0x3c0   :  { %2666 = vmatmul.f32.gmra.mxu3 %v12942_v58 }
 0x3c1   :  { %2513 = vmatmul.f32.gmra.mxu2 %v2512_v7 }
 0x3c8   :  { %2670 = vmatmul.f32.gmra.mxu3 %v12956_v62 }
 0x3c9   :  { %2521 = vmatmul.f32.gmra.mxu2 %v2520_v60 }
 0x3d0   :  { %2674 = vmatmul.f32.gmra.mxu3 %v12970_v51 }
 0x3d1   :  { %2529 = vmatmul.f32.gmra.mxu2 %v2528_v26 }
 0x3d8   :  { %2678 = vmatmul.f32.gmra.mxu3 %v12984_v63 }
 0x3d9   :  { %2537 = vmatmul.f32.gmra.mxu2 %v2536_v8 }
 0x3e0   :  { %2682 = vmatmul.f32.gmra.mxu3 %v12998_v49 }
 0x3e1   :  { %2545 = vmatmul.f32.gmra.mxu2 %v2544_v24 }
 0x3e8   :  { %2686 = vmatmul.f32.gmra.mxu3 %v13012_v18 }
 0x3e9   :  { %2737 = vmatmul.f32.vlgmr.msra.gmra.mxu2 %v12740_v34  ;;  %v2276_v34 = vpop.permute.xlu2 %2275 }
 0x3ec   :  { %v2426_v30 = vpop.f32.mrf.mxu2 }
 0x3ed   :  { %v2427_v9 = vadd.f32 %v2426_v30, %v2266_v44 }
 0x3f0   :  { %2848 = vmatmul.f32.vlgmr.msra.gmra.mxu3 %v2430_v50 }
 0x3f1   :  { %2742 = vmatmul.f32.gmra.mxu2 %v12778_v46  ;;  %v2281_v46 = vpop.permute.xlu0 %2280 }
 0x3f3   :  { %v2627_v55 = vpop.f32.mrf.mxu3 }
 0x3f4   :  { %v2434_v61 = vpop.f32.mrf.mxu2  ;;  %v13032_v7 = vadd.f32 %v2627_v55, %v2427_v9 }
 0x3f5   :  { %v2435_v28 = vadd.f32 %v2434_v61, %v2271_v35 }
 0x3f8   :  { %2854 = vmatmul.f32.gmra.mxu3 %v2438_v16 }
 0x3f9   :  { %2747 = vmatmul.f32.gmra.mxu2 %v12800_v53  ;;  %v2286_v53 = vpop.permute.xlu1 %2285 }
 0x3fb   :  { %v2631_v14 = vpop.f32.mrf.mxu3 }
 0x3fc   :  { %v2442_v60 = vpop.f32.mrf.mxu2  ;;  %v13037_v27 = vadd.f32 %v2631_v14, %v2435_v28 }
 0x3fd   :  { %v2443_v50 = vadd.f32 %v2442_v60, %v2276_v34 }
 0x400   :  { %2860 = vmatmul.f32.gmra.mxu3 %v2446_v3 }
 0x401   :  { %2752 = vmatmul.f32.gmra.mxu2 %v12822_v41  ;;  %v2291_v41 = vpop.permute.xlu2 %2290 }
 0x403   :  { %v2635_v45 = vpop.f32.mrf.mxu3 }
 0x404   :  { %v13042_v5 = vadd.f32 %v2635_v45, %v2443_v50  ;;  %v2450_v26 = vpop.f32.mrf.mxu2 }
 0x405   :  { %v2451_v16 = vadd.f32 %v2450_v26, %v2281_v46 }
 0x408   :  { %2866 = vmatmul.f32.gmra.mxu3 %v2454_v17 }
 0x409   :  { %2757 = vmatmul.f32.gmra.mxu2 %v12845_v31  ;;  %v2296_v31 = vpop.permute.xlu0 %2295 }
 0x40b   :  { %v2639_v57 = vpop.f32.mrf.mxu3 }
 0x40c   :  { %v2458_v8 = vpop.f32.mrf.mxu2  ;;  %v13047_v23 = vadd.f32 %v2639_v57, %v2451_v16 }
 0x40d   :  { %v2459_v3 = vadd.f32 %v2458_v8, %v2286_v53 }
 0x410   :  { %2872 = vmatmul.f32.gmra.mxu3 %v2462_v33 }
 0x411   :  { %2762 = vmatmul.f32.gmra.mxu2 %v12872_v29  ;;  %v2301_v29 = vpop.permute.xlu1 %2300 }
 0x413   :  { %v2643_v24 = vpop.f32.mrf.mxu3 }
 0x414   :  { %v2466_v30 = vpop.f32.mrf.mxu2  ;;  %v13052_v44 = vadd.f32 %v2643_v24, %v2459_v3 }
 0x415   :  { %v2467_v17 = vadd.f32 %v2466_v30, %v2291_v41 }
 0x418   :  { %2878 = vmatmul.f32.gmra.mxu3 %v2470_v42 }
 0x419   :  { %2767 = vmatmul.f32.gmra.mxu2 %v12898_v25  ;;  %v2306_v25 = vpop.permute.xlu2 %2305 }
 0x41b   :  { %v2647_v9 = vpop.f32.mrf.mxu3 }
 0x41c   :  { %v2474_v55 = vpop.f32.mrf.mxu2  ;;  %v13057_v61 = vadd.f32 %v2647_v9, %v2467_v17 }
 0x41d   :  { %v2475_v33 = vadd.f32 %v2474_v55, %v2296_v31 }
 0x420   :  { %2884 = vmatmul.f32.gmra.mxu3 %v2478_v4 }
 0x421   :  { %2772 = vmatmul.f32.gmra.mxu2 %v12922_v13  ;;  %v2311_v13 = vpop.permute.xlu0 %2310 }
 0x423   :  { %v2651_v35 = vpop.f32.mrf.mxu3 }
 0x424   :  { %v2482_v28 = vpop.f32.mrf.mxu2  ;;  %v13062_v14 = vadd.f32 %v2651_v35, %v2475_v33 }
 0x425   :  { %v2483_v42 = vadd.f32 %v2482_v28, %v2301_v29 }
 0x428   :  { %2890 = vmatmul.f32.gmra.mxu3 %v2486_v6 }
 0x429   :  { %2777 = vmatmul.f32.gmra.mxu2 %v12938_v38  ;;  %v2316_v38 = vpop.permute.xlu1 %2315 }
 0x42b   :  { %v2655_v60 = vpop.f32.mrf.mxu3 }
 0x42c   :  { %v2490_v34 = vpop.f32.mrf.mxu2  ;;  %v13067_v50 = vadd.f32 %v2655_v60, %v2483_v42 }
 0x42d   :  { %v2491_v4 = vadd.f32 %v2490_v34, %v2306_v25 }
 0x430   :  { %2896 = vmatmul.f32.gmra.mxu3 %v2494_v37 }
 0x431   :  { %2782 = vmatmul.f32.gmra.mxu2 %v12952_v32  ;;  %v2321_v32 = vpop.permute.xlu2 %2320 }
 0x433   :  { %v2659_v45 = vpop.f32.mrf.mxu3 }
 0x434   :  { %v2498_v26 = vpop.f32.mrf.mxu2  ;;  %v13072_v46 = vadd.f32 %v2659_v45, %v2491_v4 }
 0x435   :  { %v2499_v6 = vadd.f32 %v2498_v26, %v2311_v13 }
 0x438   :  { %2902 = vmatmul.f32.gmra.mxu3 %v2502_v12 }
 0x439   :  { %2787 = vmatmul.f32.gmra.mxu2 %v12966_v10  ;;  %v2326_v10 = vpop.permute.xlu0 %2325 }
 0x43b   :  { %v2663_v16 = vpop.f32.mrf.mxu3 }
 0x43c   :  { %v2506_v57 = vpop.f32.mrf.mxu2  ;;  %v13077_v8 = vadd.f32 %v2663_v16, %v2499_v6 }
 0x43d   :  { %v2507_v37 = vadd.f32 %v2506_v57, %v2316_v38 }
 0x440   :  { %2908 = vmatmul.f32.gmra.mxu3 %v2510_v59 }
 0x441   :  { %2792 = vmatmul.f32.gmra.mxu2 %v12980_v0  ;;  %v2331_v0 = vpop.permute.xlu1 %2330 }
 0x443   :  { %v2667_v53 = vpop.f32.mrf.mxu3 }
 0x444   :  { %v2514_v3 = vpop.f32.mrf.mxu2  ;;  %v13082_v24 = vadd.f32 %v2667_v53, %v2507_v37 }
 0x445   :  { %v2515_v12 = vadd.f32 %v2514_v3, %v2321_v32 }
 0x448   :  { %2914 = vmatmul.f32.gmra.mxu3 %v2518_v21 }
 0x449   :  { %2797 = vmatmul.f32.gmra.mxu2 %v12994_v52  ;;  %v2336_v52 = vpop.permute.xlu2 %2335 }
 0x44b   :  { %v2671_v30 = vpop.f32.mrf.mxu3 }
 0x44c   :  { %v2522_v41 = vpop.f32.mrf.mxu2  ;;  %v13087_v17 = vadd.f32 %v2671_v30, %v2515_v12 }
 0x44d   :  { %v2523_v59 = vadd.f32 %v2522_v41, %v2326_v10 }
 0x450   :  { %2920 = vmatmul.f32.gmra.mxu3 %v2526_v39 }
 0x451   :  { %2802 = vmatmul.f32.gmra.mxu2 %v13008_v36  ;;  %v2341_v36 = vpop.permute.xlu0 %2340 }
 0x453   :  { %v2675_v9 = vpop.f32.mrf.mxu3 }
 0x454   :  { %v2530_v55 = vpop.f32.mrf.mxu2  ;;  %v13092_v31 = vadd.f32 %v2675_v9, %v2523_v59 }
 0x455   :  { %v2531_v21 = vadd.f32 %v2530_v55, %v2331_v0 }
 0x458   :  { %2926 = vmatmul.f32.gmra.mxu3 %v2534_v43 }
 0x459   :  { %2807 = vmatmul.f32.gmra.mxu2 %v13019_v56 }
 0x45b   :  { %v2679_v33 = vpop.f32.mrf.mxu3 }
 0x45c   :  { %v2538_v35 = vpop.f32.mrf.mxu2  ;;  %v13097_v28 = vadd.f32 %v2679_v33, %v2531_v21  ;;  %v3180_v21 = vld [vmem:[%s17526_s7 + $0x8] sm:$0xff] }
 0x45d   :  { %v2539_v39 = vadd.f32 %v2538_v35, %v2336_v52  ;;  %v3179_v35 = vld [vmem:[%s17526_s7] sm:$0xff] }
 0x460   :  { %2932 = vmatmul.f32.gmra.mxu3 %v2542_v48 }
 0x461   :  { %2989 = vmatmul.f32.vlgmr.msrb.gmra.mxu2 %v12654_v20 }
 0x463   :  { %v2683_v29 = vpop.f32.mrf.mxu3 }
 0x464   :  { %v2546_v42 = vpop.f32.mrf.mxu2  ;;  %v13102_v60 = vadd.f32 %v2683_v29, %v2539_v39  ;;  %v3251_v29 = vand.u32 4294901760, %v3179_v35 }
 0x465   :  { %v2547_v43 = vadd.f32 %v2546_v42, %v2341_v36 }
 0x468   :  { %3082 = vmatmul.f32.vlgmr.msrb.gmra.mxu3 %v12654_v20 }
 0x469   :  { %2993 = vmatmul.f32.gmra.mxu2 %v12713_v47 }
 0x46b   :  { %v2687_v34 = vpop.f32.mrf.mxu3 }
 0x46c   :  { %v13106_v25 = vadd.f32 %v2687_v34, %v2547_v43  ;;  %v2738_v4 = vpop.f32.mrf.mxu2  ;;  %v3408_v34 = vsub.f32 %v3179_v35, %v3251_v29 }
 0x46d   :  { %v2739_v56 = vadd.f32 %v2738_v4, %v13037_v27 }
 0x470   :  { %3086 = vmatmul.f32.gmra.mxu3 %v12713_v47 }
 0x471   :  { %2997 = vmatmul.f32.gmra.mxu2 %v12758_v54 }
 0x473   :  { %v2849_v48 = vpop.f32.mrf.mxu3 }
 0x474   :  { %v2743_v45 = vpop.f32.mrf.mxu2  ;;  %v13111_v26 = vadd.f32 %v2849_v48, %v2739_v56  ;;  %v3409_v48 = vand.u32 4294901760, %v3408_v34 }
 0x475   :  { %v2744_v20 = vadd.f32 %v2743_v45, %v13042_v5 }
 0x478   :  { %3090 = vmatmul.f32.gmra.mxu3 %v12758_v54 }
 0x479   :  { %3001 = vmatmul.f32.gmra.mxu2 %v12787_v40 }
 0x47b   :  { %v2855_v13 = vpop.f32.mrf.mxu3 }
 0x47c   :  { %v2748_v6 = vpop.f32.mrf.mxu2  ;;  %v13116_v16 = vadd.f32 %v2855_v13, %v2744_v20  ;;  %v3410_v20 = vsub.f32 %v3408_v34, %v3409_v48 }
 0x47d   :  { %v2749_v27 = vadd.f32 %v2748_v6, %v13047_v23 }
 0x47e   :  { %v3411_v13 = vand.u32 4294901760, %v3410_v20 }
 0x480   :  { %3094 = vmatmul.f32.gmra.mxu3 %v12787_v40 }
 0x481   :  { %3005 = vmatmul.f32.gmra.mxu2 %v12808_v1 }
 0x483   :  { %v2861_v47 = vpop.f32.mrf.mxu3 }
 0x484   :  { %v2753_v57 = vpop.f32.mrf.mxu2  ;;  %v13121_v38 = vadd.f32 %v2861_v47, %v2749_v27 }
 0x485   :  { %v2754_v5 = vadd.f32 %v2753_v57, %v13052_v44  ;;  %v2733_v57 = vpop.f32.mrf.mxu0 }
 0x488   :  { %3098 = vmatmul.f32.gmra.mxu3 %v12808_v1 }
 0x489   :  { %3009 = vmatmul.f32.gmra.mxu2 %v12830_v19 }
 0x48b   :  { %v2867_v54 = vpop.f32.mrf.mxu3 }
 0x48c   :  { %v2758_v37 = vpop.f32.mrf.mxu2  ;;  %v13126_v53 = vadd.f32 %v2867_v54, %v2754_v5  ;;  %v2734_v54 = vadd.f32 %v2733_v57, %v13032_v7 }
 0x48d   :  { %v2759_v23 = vadd.f32 %v2758_v37, %v13057_v61 }
 0x490   :  { %3102 = vmatmul.f32.gmra.mxu3 %v12830_v19 }
 0x491   :  { %3013 = vmatmul.f32.gmra.mxu2 %v12855_v15 }
 0x493   :  { %v2873_v40 = vpop.f32.mrf.mxu3 }
 0x494   :  { %v2763_v3 = vpop.f32.mrf.mxu2  ;;  %v13131_v32 = vadd.f32 %v2873_v40, %v2759_v23  ;;  %v2843_v23 = vpop.f32.mrf.mxu1 }
 0x495   :  { %v2764_v44 = vadd.f32 %v2763_v3, %v13062_v14  ;;  %v2844_v40 = vadd.f32 %v2843_v23, %v2734_v54 }
 0x498   :  { %3106 = vmatmul.f32.gmra.mxu3 %v12855_v15 }
 0x499   :  { %3017 = vmatmul.f32.gmra.mxu2 %v12882_v22 }
 0x49b   :  { %v2879_v1 = vpop.f32.mrf.mxu3 }
 0x49c   :  { %v2768_v12 = vpop.f32.mrf.mxu2  ;;  %v13136_v30 = vadd.f32 %v2879_v1, %v2764_v44 }
 0x49d   :  { %v2769_v61 = vadd.f32 %v2768_v12, %v13067_v50 }
 0x4a0   :  { %3110 = vmatmul.f32.gmra.mxu3 %v12882_v22 }
 0x4a1   :  { %3021 = vmatmul.f32.gmra.mxu2 %v12908_v2 }
 0x4a3   :  { %v2885_v19 = vpop.f32.mrf.mxu3 }
 0x4a4   :  { %v13141_v41 = vpop.f32.mrf.mxu2  ;;  %v13143_v10 = vadd.f32 %v2885_v19, %v2769_v61 }
 0x4a8   :  { %3114 = vmatmul.f32.gmra.mxu3 %v12908_v2 }
 0x4a9   :  { %3025 = vmatmul.f32.gmra.mxu2 %v12928_v11 }
 0x4ab   :  { %v13147_v15 = vpop.f32.mrf.mxu3 }
 0x4ac   :  { %v13149_v14 = vpop.f32.mrf.mxu2 }
 0x4b0   :  { %3118 = vmatmul.f32.gmra.mxu3 %v12928_v11  ;;  %v3181_v11 = vld [vmem:[%s17526_s7 + $0x10] sm:$0xf] }
 0x4b1   :  { %3029 = vmatmul.f32.gmra.mxu2 %v12942_v58 }
 0x4b3   :  { %v13153_v22 = vpop.f32.mrf.mxu3 }
 0x4b4   :  { %v13155_v50 = vpop.f32.mrf.mxu2 }
 0x4b8   :  { %3122 = vmatmul.f32.gmra.mxu3 %v12942_v58  ;;  %v3232_v58 = vsel %vm3230_vm5, %v3181_v11, 0 }
 0x4b9   :  { %3033 = vmatmul.f32.gmra.mxu2 %v12956_v62  ;;  %v3247_v0 = vand.u32 4294901760, %v3232_v58 }
 0x4bb   :  { %v13159_v59 = vpop.f32.mrf.mxu3  ;;  %v3396_v33 = vsub.f32 %v3232_v58, %v3247_v0  ;;  %3595 = vmatpush.msra.mxu3 %v3247_v0  ;;  %3248 = vmatpush.msrb.mxu0 %v3247_v0 }
 0x4bc   :  { %v13161_v2 = vpop.f32.mrf.mxu2 }
 0x4bd   :  { %v3397_v52 = vand.u32 4294901760, %v3396_v33  ;;  %3493 = vmatpush.msra.mxu2 %v3396_v33 }
 0x4bf   :  { %v3398_v36 = vsub.f32 %v3396_v33, %v3397_v52 }
 0x4c0   :  { %3126 = vmatmul.f32.gmra.mxu3 %v12956_v62  ;;  %v3249_v62 = vand.u32 4294901760, %v3180_v21 }
 0x4c1   :  { %3037 = vmatmul.f32.gmra.mxu2 %v12970_v51 }
 0x4c2   :  { %v3402_v39 = vsub.f32 %v3180_v21, %v3249_v62  ;;  %3597 = vmatpush.msra.mxu3 %v3249_v62  ;;  %3250 = vmatpush.msrb.mxu0 %v3249_v62 }
 0x4c3   :  { %v13165_v9 = vpop.f32.mrf.mxu3 }
 0x4c4   :  { %v13170_v55 = vpop.f32.mrf.mxu2  ;;  %v3403_v43 = vand.u32 4294901760, %v3402_v39  ;;  %3599 = vmatpush.msra.mxu3 %v3251_v29  ;;  %3496 = vmatpush.msra.mxu2 %v3402_v39 }
 0x4c5   :  { %3252 = vmatpush.msrb.mxu0 %v3251_v29 }
 0x4c6   :  { %v3404_v56 = vsub.f32 %v3402_v39, %v3403_v43  ;;  %3499 = vmatpush.msra.mxu2 %v3408_v34 }
 0x4c7   :  { %3713 = vmatpush.msra.mxu0 %v3397_v52 }
 0x4c8   :  { %3130 = vmatmul.f32.gmra.mxu3 %v12970_v51  ;;  %v3399_v51 = vand.u32 4294901760, %v3398_v36  ;;  %v3405_v45 = vand.u32 4294901760, %v3404_v56 }
 0x4c9   :  { %3041 = vmatmul.f32.gmra.mxu2 %v12984_v63  ;;  %3717 = vmatpush.msra.mxu0 %v3403_v43 }
 0x4ca   :  { %3400 = vmatpush.msrb.mxu1 %v3399_v51 }
 0x4cb   :  { %v13181_v42 = vpop.f32.mrf.mxu3  ;;  %3721 = vmatpush.msra.mxu0 %v3409_v48 }
 0x4cc   :  { %v13183_v4 = vpop.f32.mrf.mxu2  ;;  %3406 = vmatpush.msrb.mxu1 %v3405_v45 }
 0x4ce   :  { %3412 = vmatpush.msrb.mxu1 %v3411_v13 }
 0x4d0   :  { %3134 = vmatmul.f32.gmra.mxu3 %v12984_v63  ;;  %3801 = vmatpush.msra.mxu1 %v3247_v0 }
 0x4d1   :  { %3045 = vmatmul.f32.gmra.mxu2 %v12998_v49 }
 0x4d2   :  { %3803 = vmatpush.msra.mxu1 %v3249_v62 }
 0x4d3   :  { %v13187_v6 = vpop.f32.mrf.mxu3 }
 0x4d4   :  { %v13189_v27 = vpop.f32.mrf.mxu2  ;;  %3805 = vmatpush.msra.mxu1 %v3251_v29 }
 0x4d8   :  { %3138 = vmatmul.f32.gmra.mxu3 %v12998_v49 }
 0x4d9   :  { %3049 = vmatmul.f32.gmra.mxu2 %v13012_v18 }
 0x4db   :  { %v13193_v47 = vpop.f32.mrf.mxu3 }
 0x4dc   :  { %v13195_v63 = vpop.f32.mrf.mxu2 }
 0x4e0   :  { %3142 = vmatmul.f32.gmra.mxu3 %v13012_v18 }
 0x4e3   :  { %v13198_v5 = vpop.f32.mrf.mxu3 }
 0x4e4   :  { %v2990_v37 = vpop.f32.mrf.mxu2 }
 0x4e5   :  { %v2991_v3 = vadd.f32 %v2990_v37, %v2844_v40 }
 0x4eb   :  { %v3083_v44 = vpop.f32.mrf.mxu3 }
 0x4ec   :  { %v2994_v49 = vpop.f32.mrf.mxu2  ;;  %v3084_v1 = vadd.f32 %v3083_v44, %v2991_v3 }
 0x4ed   :  { %v2995_v7 = vadd.f32 %v2994_v49, %v13111_v26 }
 0x4ee   :  { %v10830_v12 = vadd.f32 -256.0, %v3084_v1 }
 0x4f0   :  { %3163 = vst.msk [vmem:[%s17527_s11] sm:$0xff] %vm3162_vm6, %v10830_v12  ;;  %v3183_v18 = vsel %vm3162_vm6, %v10830_v12, 0 }
 0x4f1   :  { %v13206_v61 = vand.u32 4294901760, %v3183_v18 }
 0x4f3   :  { %v3254_v19 = vsub.f32 %v3183_v18, %v13206_v61  ;;  %v3087_v11 = vpop.f32.mrf.mxu3  ;;  %3414 = vmatmul.f32.vlgmr.msrb.gmra.mxu1 %v13206_v61 }
 0x4f4   :  { %v2998_v58 = vpop.f32.mrf.mxu2  ;;  %v3088_v0 = vadd.f32 %v3087_v11, %v2995_v7 }
 0x4f5   :  { %v3255_v21 = vand.u32 4294901760, %v3254_v19  ;;  %3502 = vmatmul.f32.vlgmr.msra.gmra.mxu2 %v3254_v19  ;;  %v2999_v39 = vadd.f32 %v2998_v58, %v13116_v16 }
 0x4f6   :  { %v10831_v33 = vadd.f32 -256.0, %v3088_v0 }
 0x4f7   :  { %v3256_v62 = vsub.f32 %v3254_v19, %v3255_v21  ;;  %3603 = vmatmul.f32.vlgmr.msra.gmra.mxu3 %v3255_v21 }
 0x4f8   :  { %3164 = vst.msk [vmem:[%s17527_s11 + $0x8] sm:$0xff] %vm3162_vm6, %v10831_v33  ;;  %v3186_v35 = vsel %vm3162_vm6, %v10831_v33, 0 }
 0x4f9   :  { %v3257_v26 = vand.u32 4294901760, %v3256_v62  ;;  %v13216_v52 = vand.u32 4294901760, %v3186_v35 }
 0x4fb   :  { %v3091_v29 = vpop.f32.mrf.mxu3  ;;  %3258 = vmatmul.f32.vlgmr.msrb.gmra.mxu0 %v3257_v26  ;;  %3418 = vmatmul.f32.gmra.mxu1 %v13216_v52  ;;  %v3262_v36 = vsub.f32 %v3186_v35, %v13216_v52 }
 0x4fc   :  { %v3002_v43 = vpop.f32.mrf.mxu2  ;;  %v3092_v34 = vadd.f32 %v3091_v29, %v2999_v39 }
 0x4fd   :  { %3507 = vmatmul.f32.gmra.mxu2 %v3262_v36  ;;  %v3263_v51 = vand.u32 4294901760, %v3262_v36  ;;  %v3003_v13 = vadd.f32 %v3002_v43, %v13121_v38 }
 0x4fe   :  { %v10832_v56 = vadd.f32 -256.0, %v3092_v34 }
 0x4ff   :  { %3609 = vmatmul.f32.gmra.mxu3 %v3263_v51  ;;  %v3264_v48 = vsub.f32 %v3262_v36, %v3263_v51 }
 0x500   :  { %3165 = vst.msk [vmem:[%s17527_s11 + $0x10] sm:$0xff] %vm3162_vm6, %v10832_v56  ;;  %v3189_v16 = vsel %vm3162_vm6, %v10832_v56, 0 }
 0x501   :  { %v13226_v45 = vand.u32 4294901760, %v3189_v16  ;;  %v3265_v20 = vand.u32 4294901760, %v3264_v48 }
 0x503   :  { %v3095_v57 = vpop.f32.mrf.mxu3  ;;  %3266 = vmatmul.f32.gmra.mxu0 %v3265_v20  ;;  %3422 = vmatmul.f32.gmra.mxu1 %v13226_v45  ;;  %v3270_v54 = vsub.f32 %v3189_v16, %v13226_v45 }
 0x504   :  { %v3006_v37 = vpop.f32.mrf.mxu2  ;;  %v3096_v23 = vadd.f32 %v3095_v57, %v3003_v13 }
 0x505   :  { %3512 = vmatmul.f32.gmra.mxu2 %v3270_v54  ;;  %v3271_v40 = vand.u32 4294901760, %v3270_v54  ;;  %v3007_v12 = vadd.f32 %v3006_v37, %v13126_v53 }
 0x506   :  { %v10833_v3 = vadd.f32 -256.0, %v3096_v23 }
 0x507   :  { %3615 = vmatmul.f32.gmra.mxu3 %v3271_v40  ;;  %v3272_v44 = vsub.f32 %v3270_v54, %v3271_v40 }
 0x508   :  { %3166 = vst.msk [vmem:[%s17527_s11 + $0x18] sm:$0xff] %vm3162_vm6, %v10833_v3  ;;  %v3192_v38 = vsel %vm3162_vm6, %v10833_v3, 0 }
 0x509   :  { %v13236_v49 = vand.u32 4294901760, %v3192_v38  ;;  %v3273_v1 = vand.u32 4294901760, %v3272_v44 }
 0x50b   :  { %v3099_v18 = vpop.f32.mrf.mxu3  ;;  %3274 = vmatmul.f32.gmra.mxu0 %v3273_v1  ;;  %3426 = vmatmul.f32.gmra.mxu1 %v13236_v49  ;;  %v3278_v7 = vsub.f32 %v3192_v38, %v13236_v49 }
 0x50c   :  { %v3010_v19 = vpop.f32.mrf.mxu2  ;;  %v3100_v11 = vadd.f32 %v3099_v18, %v3007_v12 }
 0x50d   :  { %3517 = vmatmul.f32.gmra.mxu2 %v3278_v7  ;;  %v3279_v58 = vand.u32 4294901760, %v3278_v7  ;;  %v3011_v35 = vadd.f32 %v3010_v19, %v13131_v32 }
 0x50e   :  { %v10834_v0 = vadd.f32 -256.0, %v3100_v11  ;;  %v2774_v11 = vadd.f32 %v13141_v41, %v13072_v46 }
 0x50f   :  { %3621 = vmatmul.f32.gmra.mxu3 %v3279_v58  ;;  %v3280_v21 = vsub.f32 %v3278_v7, %v3279_v58 }
 0x510   :  { %3167 = vst.msk [vmem:[%s17527_s11 + $0x20] sm:$0xff] %vm3162_vm6, %v10834_v0  ;;  %v3195_v53 = vsel %vm3162_vm6, %v10834_v0, 0 }
 0x511   :  { %v13246_v33 = vand.u32 4294901760, %v3195_v53  ;;  %v3281_v62 = vand.u32 4294901760, %v3280_v21  ;;  %v2892_v21 = vadd.f32 %v13147_v15, %v2774_v11 }
 0x513   :  { %v3103_v26 = vpop.f32.mrf.mxu3  ;;  %3282 = vmatmul.f32.gmra.mxu0 %v3281_v62  ;;  %3430 = vmatmul.f32.gmra.mxu1 %v13246_v33  ;;  %v3286_v39 = vsub.f32 %v3195_v53, %v13246_v33 }
 0x514   :  { %v3014_v29 = vpop.f32.mrf.mxu2  ;;  %v3104_v36 = vadd.f32 %v3103_v26, %v3011_v35 }
 0x515   :  { %3522 = vmatmul.f32.gmra.mxu2 %v3286_v39  ;;  %v3287_v43 = vand.u32 4294901760, %v3286_v39  ;;  %v3015_v16 = vadd.f32 %v3014_v29, %v13136_v30  ;;  %v2779_v29 = vadd.f32 %v13149_v14, %v13077_v8 }
 0x516   :  { %v10835_v34 = vadd.f32 -256.0, %v3104_v36 }
 0x517   :  { %3627 = vmatmul.f32.gmra.mxu3 %v3287_v43  ;;  %v3288_v51 = vsub.f32 %v3286_v39, %v3287_v43 }
 0x518   :  { %3168 = vst.msk [vmem:[%s17527_s11 + $0x28] sm:$0xff] %vm3162_vm6, %v10835_v34  ;;  %v3198_v32 = vsel %vm3162_vm6, %v10835_v34, 0  ;;  %v2898_v34 = vadd.f32 %v13153_v22, %v2779_v29 }
 0x519   :  { %v13256_v56 = vand.u32 4294901760, %v3198_v32  ;;  %v3289_v48 = vand.u32 4294901760, %v3288_v51 }
 0x51b   :  { %v3107_v20 = vpop.f32.mrf.mxu3  ;;  %3290 = vmatmul.f32.gmra.mxu0 %v3289_v48  ;;  %3434 = vmatmul.f32.gmra.mxu1 %v13256_v56  ;;  %v3294_v13 = vsub.f32 %v3198_v32, %v13256_v56 }
 0x51c   :  { %v3018_v57 = vpop.f32.mrf.mxu2  ;;  %v3108_v54 = vadd.f32 %v3107_v20, %v3015_v16 }
 0x51d   :  { %3527 = vmatmul.f32.gmra.mxu2 %v3294_v13  ;;  %v3295_v37 = vand.u32 4294901760, %v3294_v13  ;;  %v3019_v38 = vadd.f32 %v3018_v57, %v13143_v10  ;;  %v2784_v57 = vadd.f32 %v13155_v50, %v13082_v24 }
 0x51e   :  { %v10836_v23 = vadd.f32 -256.0, %v3108_v54 }
 0x51f   :  { %3633 = vmatmul.f32.gmra.mxu3 %v3295_v37  ;;  %v3296_v40 = vsub.f32 %v3294_v13, %v3295_v37 }
 0x520   :  { %3169 = vst.msk [vmem:[%s17527_s11 + $0x30] sm:$0xff] %vm3162_vm6, %v10836_v23  ;;  %v3201_v30 = vsel %vm3162_vm6, %v10836_v23, 0  ;;  %v2904_v23 = vadd.f32 %v13159_v59, %v2784_v57 }
 0x521   :  { %v13266_v3 = vand.u32 4294901760, %v3201_v30  ;;  %v3297_v44 = vand.u32 4294901760, %v3296_v40 }
 0x523   :  { %v3111_v1 = vpop.f32.mrf.mxu3  ;;  %3298 = vmatmul.f32.gmra.mxu0 %v3297_v44  ;;  %3438 = vmatmul.f32.gmra.mxu1 %v13266_v3  ;;  %v3302_v12 = vsub.f32 %v3201_v30, %v13266_v3 }
 0x524   :  { %v3022_v18 = vpop.f32.mrf.mxu2  ;;  %v3112_v7 = vadd.f32 %v3111_v1, %v3019_v38 }
 0x525   :  { %3532 = vmatmul.f32.gmra.mxu2 %v3302_v12  ;;  %v3303_v19 = vand.u32 4294901760, %v3302_v12  ;;  %v3023_v35 = vadd.f32 %v3022_v18, %v2892_v21  ;;  %v2789_v18 = vadd.f32 %v13161_v2, %v13087_v17 }
 0x526   :  { %v10837_v58 = vadd.f32 -256.0, %v3112_v7 }
 0x527   :  { %3639 = vmatmul.f32.gmra.mxu3 %v3303_v19  ;;  %v3304_v0 = vsub.f32 %v3302_v12, %v3303_v19  ;;  %v2910_v11 = vadd.f32 %v13165_v9, %v2789_v18  ;;  %v2809_v18 = vadd.f32 %v13195_v63, %v13106_v25 }
 0x528   :  { %3170 = vst.msk [vmem:[%s17527_s11 + $0x38] sm:$0xff] %vm3162_vm6, %v10837_v58  ;;  %v3204_v10 = vsel %vm3162_vm6, %v10837_v58, 0 }
 0x529   :  { %v13279_v53 = vand.u32 4294901760, %v3204_v10  ;;  %v3305_v62 = vand.u32 4294901760, %v3304_v0 }
 0x52b   :  { %v3115_v26 = vpop.f32.mrf.mxu3  ;;  %3306 = vmatmul.f32.gmra.mxu0 %v3305_v62  ;;  %3442 = vmatmul.f32.gmra.mxu1 %v13279_v53  ;;  %v3310_v46 = vsub.f32 %v3204_v10, %v13279_v53 }
 0x52c   :  { %v3026_v41 = vpop.f32.mrf.mxu2  ;;  %v3116_v39 = vadd.f32 %v3115_v26, %v3023_v35  ;;  %v2794_v26 = vadd.f32 %v13170_v55, %v13092_v31 }
 0x52d   :  { %3537 = vmatmul.f32.gmra.mxu2 %v3310_v46  ;;  %v3311_v15 = vand.u32 4294901760, %v3310_v46  ;;  %v3027_v16 = vadd.f32 %v3026_v41, %v2898_v34 }
 0x52e   :  { %v10838_v36 = vadd.f32 -256.0, %v3116_v39  ;;  %v2916_v39 = vadd.f32 %v13181_v42, %v2794_v26 }
 0x52f   :  { %3645 = vmatmul.f32.gmra.mxu3 %v3311_v15  ;;  %v3312_v43 = vsub.f32 %v3310_v46, %v3311_v15 }
 0x530   :  { %3171 = vst.msk [vmem:[%s17527_s11 + $0x40] sm:$0xff] %vm3162_vm6, %v10838_v36  ;;  %v3207_v51 = vsel %vm3162_vm6, %v10838_v36, 0 }
 0x531   :  { %v13291_v32 = vand.u32 4294901760, %v3207_v51  ;;  %v3313_v48 = vand.u32 4294901760, %v3312_v43 }
 0x533   :  { %v3119_v20 = vpop.f32.mrf.mxu3  ;;  %3314 = vmatmul.f32.gmra.mxu0 %v3313_v48  ;;  %3446 = vmatmul.f32.gmra.mxu1 %v13291_v32  ;;  %v3318_v8 = vsub.f32 %v3207_v51, %v13291_v32  ;;  %v2799_v48 = vadd.f32 %v13183_v4, %v13097_v28 }
 0x534   :  { %v3030_v14 = vpop.f32.mrf.mxu2  ;;  %v3120_v13 = vadd.f32 %v3119_v20, %v3027_v16 }
 0x535   :  { %3542 = vmatmul.f32.gmra.mxu2 %v3318_v8  ;;  %v3319_v22 = vand.u32 4294901760, %v3318_v8  ;;  %v3031_v38 = vadd.f32 %v3030_v14, %v2904_v23  ;;  %v2804_v23 = vadd.f32 %v13189_v27, %v13102_v60 }
 0x536   :  { %v10839_v54 = vadd.f32 -256.0, %v3120_v13 }
 0x537   :  { %3651 = vmatmul.f32.gmra.mxu3 %v3319_v22  ;;  %v3320_v37 = vsub.f32 %v3318_v8, %v3319_v22  ;;  %v2922_v8 = vadd.f32 %v13187_v6, %v2799_v48 }
 0x538   :  { %3172 = vst.msk [vmem:[%s17527_s11 + $0x48] sm:$0xff] %vm3162_vm6, %v10839_v54  ;;  %v3210_v40 = vsel %vm3162_vm6, %v10839_v54, 0 }
 0x539   :  { %v13303_v30 = vand.u32 4294901760, %v3210_v40  ;;  %v3321_v44 = vand.u32 4294901760, %v3320_v37 }
 0x53b   :  { %v3123_v1 = vpop.f32.mrf.mxu3  ;;  %3322 = vmatmul.f32.gmra.mxu0 %v3321_v44  ;;  %3450 = vmatmul.f32.gmra.mxu1 %v13303_v30  ;;  %v3326_v24 = vsub.f32 %v3210_v40, %v13303_v30 }
 0x53c   :  { %v3034_v50 = vpop.f32.mrf.mxu2  ;;  %v3124_v12 = vadd.f32 %v3123_v1, %v3031_v38  ;;  %v2928_v38 = vadd.f32 %v13193_v47, %v2804_v23 }
 0x53d   :  { %3547 = vmatmul.f32.gmra.mxu2 %v3326_v24  ;;  %v3327_v59 = vand.u32 4294901760, %v3326_v24  ;;  %v3035_v10 = vadd.f32 %v3034_v50, %v2910_v11 }
 0x53e   :  { %v10840_v7 = vadd.f32 -256.0, %v3124_v12 }
 0x53f   :  { %3657 = vmatmul.f32.gmra.mxu3 %v3327_v59  ;;  %v3328_v19 = vsub.f32 %v3326_v24, %v3327_v59 }
 0x540   :  { %3173 = vst.msk [vmem:[%s17527_s11 + $0x50] sm:$0xff] %vm3162_vm6, %v10840_v7  ;;  %v3213_v58 = vsel %vm3162_vm6, %v10840_v7, 0 }
 0x541   :  { %v13315_v0 = vand.u32 4294901760, %v3213_v58  ;;  %v3329_v21 = vand.u32 4294901760, %v3328_v19 }
 0x543   :  { %v3127_v62 = vpop.f32.mrf.mxu3  ;;  %3330 = vmatmul.f32.gmra.mxu0 %v3329_v21  ;;  %3454 = vmatmul.f32.gmra.mxu1 %v13315_v0  ;;  %v3334_v17 = vsub.f32 %v3213_v58, %v13315_v0  ;;  %v2934_v58 = vadd.f32 %v13198_v5, %v2809_v18 }
 0x544   :  { %v3038_v2 = vpop.f32.mrf.mxu2  ;;  %v3128_v35 = vadd.f32 %v3127_v62, %v3035_v10 }
 0x545   :  { %3552 = vmatmul.f32.gmra.mxu2 %v3334_v17  ;;  %v3335_v9 = vand.u32 4294901760, %v3334_v17  ;;  %v3039_v43 = vadd.f32 %v3038_v2, %v2916_v39 }
 0x546   :  { %v10841_v46 = vadd.f32 -256.0, %v3128_v35 }
 0x547   :  { %3663 = vmatmul.f32.gmra.mxu3 %v3335_v9  ;;  %v3336_v41 = vsub.f32 %v3334_v17, %v3335_v9 }
 0x548   :  { %3174 = vst.msk [vmem:[%s17527_s11 + $0x58] sm:$0xff] %vm3162_vm6, %v10841_v46  ;;  %v3216_v15 = vsel %vm3162_vm6, %v10841_v46, 0 }
 0x549   :  { %v13327_v29 = vand.u32 4294901760, %v3216_v15  ;;  %v3337_v36 = vand.u32 4294901760, %v3336_v41 }
 0x54b   :  { %v3131_v34 = vpop.f32.mrf.mxu3  ;;  %3338 = vmatmul.f32.gmra.mxu0 %v3337_v36  ;;  %3458 = vmatmul.f32.gmra.mxu1 %v13327_v29  ;;  %v3342_v31 = vsub.f32 %v3216_v15, %v13327_v29 }
 0x54c   :  { %v3042_v55 = vpop.f32.mrf.mxu2  ;;  %v3132_v51 = vadd.f32 %v3131_v34, %v3039_v43 }
 0x54d   :  { %3557 = vmatmul.f32.gmra.mxu2 %v3342_v31  ;;  %v3343_v42 = vand.u32 4294901760, %v3342_v31  ;;  %v3043_v57 = vadd.f32 %v3042_v55, %v2922_v8 }
 0x54e   :  { %v10842_v16 = vadd.f32 -256.0, %v3132_v51 }
 0x54f   :  { %3669 = vmatmul.f32.gmra.mxu3 %v3343_v42  ;;  %v3344_v20 = vsub.f32 %v3342_v31, %v3343_v42 }
 0x550   :  { %3175 = vst.msk [vmem:[%s17527_s11 + $0x60] sm:$0xff] %vm3162_vm6, %v10842_v16  ;;  %v3219_v14 = vsel %vm3162_vm6, %v10842_v16, 0 }
 0x551   :  { %v13339_v13 = vand.u32 4294901760, %v3219_v14  ;;  %v3345_v22 = vand.u32 4294901760, %v3344_v20 }
 0x553   :  { %v3135_v54 = vpop.f32.mrf.mxu3  ;;  %3346 = vmatmul.f32.gmra.mxu0 %v3345_v22  ;;  %3462 = vmatmul.f32.gmra.mxu1 %v13339_v13  ;;  %v3350_v28 = vsub.f32 %v3219_v14, %v13339_v13 }
 0x554   :  { %v3136_v4 = vadd.f32 %v3135_v54, %v3043_v57  ;;  %v3046_v37 = vpop.f32.mrf.mxu2 }
 0x555   :  { %3562 = vmatmul.f32.gmra.mxu2 %v3350_v28  ;;  %v3351_v6 = vand.u32 4294901760, %v3350_v28  ;;  %v3047_v12 = vadd.f32 %v3046_v37, %v2928_v38 }
 0x556   :  { %v10843_v40 = vadd.f32 -256.0, %v3136_v4 }
 0x557   :  { %3675 = vmatmul.f32.gmra.mxu3 %v3351_v6  ;;  %v3352_v44 = vsub.f32 %v3350_v28, %v3351_v6 }
 0x558   :  { %3176 = vst.msk [vmem:[%s17527_s11 + $0x68] sm:$0xff] %vm3162_vm6, %v10843_v40  ;;  %v3222_v1 = vsel %vm3162_vm6, %v10843_v40, 0 }
 0x559   :  { %v13351_v24 = vand.u32 4294901760, %v3222_v1  ;;  %v3353_v50 = vand.u32 4294901760, %v3352_v44 }
 0x55b   :  { %v3139_v59 = vpop.f32.mrf.mxu3  ;;  %3354 = vmatmul.f32.gmra.mxu0 %v3353_v50  ;;  %3466 = vmatmul.f32.gmra.mxu1 %v13351_v24  ;;  %v3358_v60 = vsub.f32 %v3222_v1, %v13351_v24 }
 0x55c   :  { %v3140_v27 = vadd.f32 %v3139_v59, %v3047_v12  ;;  %v3050_v19 = vpop.f32.mrf.mxu2 }
 0x55d   :  { %3567 = vmatmul.f32.gmra.mxu2 %v3358_v60  ;;  %v3359_v47 = vand.u32 4294901760, %v3358_v60  ;;  %v3051_v17 = vadd.f32 %v3050_v19, %v2934_v58 }
 0x55e   :  { %v10844_v7 = vadd.f32 -256.0, %v3140_v27 }
 0x55f   :  { %3681 = vmatmul.f32.gmra.mxu3 %v3359_v47  ;;  %v3360_v11 = vsub.f32 %v3358_v60, %v3359_v47 }
 0x560   :  { %3177 = vst.msk [vmem:[%s17527_s11 + $0x70] sm:$0xff] %vm3162_vm6, %v10844_v7  ;;  %v3225_v21 = vsel %vm3162_vm6, %v10844_v7, 0 }
 0x561   :  { %v13363_v10 = vand.u32 4294901760, %v3225_v21  ;;  %v3361_v62 = vand.u32 4294901760, %v3360_v11 }
 0x563   :  { %v3143_v2 = vpop.f32.mrf.mxu3  ;;  %3362 = vmatmul.f32.gmra.mxu0 %v3361_v62  ;;  %3470 = vmatmul.f32.gmra.mxu1 %v13363_v10  ;;  %v3366_v25 = vsub.f32 %v3225_v21, %v13363_v10 }
 0x564   :  { %v3144_v63 = vadd.f32 %v3143_v2, %v3051_v17 }
 0x565   :  { %3572 = vmatmul.f32.gmra.mxu2 %v3366_v25  ;;  %v3367_v5 = vand.u32 4294901760, %v3366_v25 }
 0x566   :  { %v10845_v35 = vadd.f32 -256.0, %v3144_v63 }
 0x567   :  { %3687 = vmatmul.f32.gmra.mxu3 %v3367_v5  ;;  %v3368_v9 = vsub.f32 %v3366_v25, %v3367_v5 }
 0x568   :  { %3178 = vst.msk [vmem:[%s17527_s11 + $0x78] sm:$0xff] %vm3162_vm6, %v10845_v35  ;;  %v3228_v26 = vsel %vm3162_vm6, %v10845_v35, 0 }
 0x569   :  { %v13372_v46 = vand.u32 4294901760, %v3228_v26  ;;  %v3369_v41 = vand.u32 4294901760, %v3368_v9 }
 0x56b   :  { %3370 = vmatmul.f32.gmra.mxu0 %v3369_v41  ;;  %3474 = vmatmul.f32.gmra.mxu1 %v13372_v46  ;;  %v3374_v39 = vsub.f32 %v3228_v26, %v13372_v46 }
 0x56d   :  { %3577 = vmatmul.f32.gmra.mxu2 %v3374_v39  ;;  %v3375_v15 = vand.u32 4294901760, %v3374_v39 }
 0x56f   :  { %3693 = vmatmul.f32.gmra.mxu3 %v3375_v15  ;;  %v3376_v36 = vsub.f32 %v3374_v39, %v3375_v15 }
 0x570   :  { %v13376_v43 = vpop.f32.mrf.mxu1 }
 0x571   :  { %v3377_v34 = vand.u32 4294901760, %v3376_v36 }
 0x573   :  { %3378 = vmatmul.f32.gmra.mxu0 %v3377_v34  ;;  %3807 = vmatmul.f32.vlgmr.msra.gmra.mxu1 %v13206_v61 }
 0x578   :  { %v13379_v31 = vpop.f32.mrf.mxu0  ;;  %v13381_v55 = vpop.f32.mrf.mxu1 }
 0x579   :  { %v13449_v6 = vpop.f32.mrf.mxu2 }
 0x57a   :  { %17694 = vst [vmem:[#allocation6_spill] sm:$0xff] %v13449_v6 }
 0x57b   :  { %3723 = vmatmul.f32.vlgmr.msra.gmra.mxu0 %v13206_v61  ;;  %3811 = vmatmul.f32.gmra.mxu1 %v13216_v52 }
 0x580   :  { %v13385_v51 = vpop.f32.mrf.mxu0  ;;  %v13387_v42 = vpop.f32.mrf.mxu1 }
 0x581   :  { %17692 = vst [vmem:[#allocation16_spill] sm:$0xff] %v13387_v42 }
 0x583   :  { %3727 = vmatmul.f32.gmra.mxu0 %v13216_v52  ;;  %3815 = vmatmul.f32.gmra.mxu1 %v13226_v45 }
 0x588   :  { %v13391_v48 = vpop.f32.mrf.mxu0  ;;  %v13393_v16 = vpop.f32.mrf.mxu1 }
 0x589   :  { %17693 = vst [vmem:[#allocation2_spill] sm:$0xff] %v13391_v48 }
 0x58b   :  { %3731 = vmatmul.f32.gmra.mxu0 %v13226_v45  ;;  %3819 = vmatmul.f32.gmra.mxu1 %v13236_v49 }
 0x590   :  { %v13397_v20 = vpop.f32.mrf.mxu0  ;;  %v13399_v61 = vpop.f32.mrf.mxu1 }
 0x593   :  { %3735 = vmatmul.f32.gmra.mxu0 %v13236_v49  ;;  %3823 = vmatmul.f32.gmra.mxu1 %v13246_v33 }
 0x598   :  { %v13403_v8 = vpop.f32.mrf.mxu0  ;;  %v13405_v52 = vpop.f32.mrf.mxu1 }
 0x59b   :  { %3739 = vmatmul.f32.gmra.mxu0 %v13246_v33  ;;  %3827 = vmatmul.f32.gmra.mxu1 %v13256_v56 }
 0x5a0   :  { %v13409_v14 = vpop.f32.mrf.mxu0  ;;  %v13411_v45 = vpop.f32.mrf.mxu1 }
 0x5a3   :  { %3743 = vmatmul.f32.gmra.mxu0 %v13256_v56  ;;  %3831 = vmatmul.f32.gmra.mxu1 %v13266_v3 }
 0x5a8   :  { %v13415_v22 = vpop.f32.mrf.mxu0  ;;  %v13417_v49 = vpop.f32.mrf.mxu1 }
 0x5ab   :  { %3747 = vmatmul.f32.gmra.mxu0 %v13266_v3  ;;  %3835 = vmatmul.f32.gmra.mxu1 %v13279_v53 }
 0x5b0   :  { %v13421_v57 = vpop.f32.mrf.mxu0  ;;  %v13423_v33 = vpop.f32.mrf.mxu1 }
 0x5b3   :  { %3751 = vmatmul.f32.gmra.mxu0 %v13279_v53  ;;  %3839 = vmatmul.f32.gmra.mxu1 %v13291_v32 }
 0x5b8   :  { %v13427_v54 = vpop.f32.mrf.mxu0  ;;  %v13429_v56 = vpop.f32.mrf.mxu1 }
 0x5bb   :  { %3755 = vmatmul.f32.gmra.mxu0 %v13291_v32  ;;  %3843 = vmatmul.f32.gmra.mxu1 %v13303_v30 }
 0x5c0   :  { %v13433_v28 = vpop.f32.mrf.mxu0  ;;  %v13435_v3 = vpop.f32.mrf.mxu1 }
 0x5c3   :  { %3759 = vmatmul.f32.gmra.mxu0 %v13303_v30  ;;  %3847 = vmatmul.f32.gmra.mxu1 %v13315_v0  ;;  %v13453_v30 = vpop.f32.mrf.mxu3 }
 0x5c4   :  { %17695 = vst [vmem:[#allocation13_spill] sm:$0xff] %v13453_v30 }
 0x5c8   :  { %v13439_v4 = vpop.f32.mrf.mxu0  ;;  %v13441_v53 = vpop.f32.mrf.mxu1 }
 0x5cb   :  { %3763 = vmatmul.f32.gmra.mxu0 %v13315_v0  ;;  %3851 = vmatmul.f32.gmra.mxu1 %v13327_v29  ;;  %v13461_v0 = vpop.f32.mrf.mxu2  ;;  %v13463_v1 = vpop.f32.mrf.mxu3 }
 0x5cc   :  { %17696 = vst [vmem:[#allocation15_spill] sm:$0xff] %v13461_v0 }
 0x5cd   :  { %17697 = vst [vmem:[#allocation4_spill] sm:$0xff] %v13463_v1 }
 0x5d0   :  { %v13445_v37 = vpop.f32.mrf.mxu0  ;;  %v13447_v32 = vpop.f32.mrf.mxu1 }
 0x5d3   :  { %3767 = vmatmul.f32.gmra.mxu0 %v13327_v29  ;;  %3855 = vmatmul.f32.gmra.mxu1 %v13339_v13  ;;  %v13467_v29 = vpop.f32.mrf.mxu2  ;;  %v13471_v59 = vpop.f32.mrf.mxu3 }
 0x5d4   :  { %17698 = vst [vmem:[#allocation11_spill] sm:$0xff] %v13467_v29 }
 0x5d5   :  { %17699 = vst [vmem:[#allocation14_spill] sm:$0xff] %v13471_v59 }
 0x5d8   :  { %v13455_v23 = vpop.f32.mrf.mxu0  ;;  %v13457_v40 = vpop.f32.mrf.mxu1 }
 0x5db   :  { %3771 = vmatmul.f32.gmra.mxu0 %v13339_v13  ;;  %3859 = vmatmul.f32.gmra.mxu1 %v13351_v24  ;;  %v13479_v27 = vpop.f32.mrf.mxu2 }
 0x5dc   :  { %17701 = vst [vmem:[#allocation9_spill] sm:$0xff] %v13479_v27 }
 0x5e0   :  { %v3363_v44 = vpop.f32.mrf.mxu0  ;;  %v3471_v38 = vpop.f32.mrf.mxu1 }
 0x5e3   :  { %3775 = vmatmul.f32.gmra.mxu0 %v13351_v24  ;;  %3863 = vmatmul.f32.gmra.mxu1 %v13363_v10  ;;  %v13482_v24 = vpop.f32.mrf.mxu3  ;;  %v13488_v7 = vpop.f32.mrf.mxu2 }
 0x5e4   :  { %17702 = vst [vmem:[#allocation12_spill] sm:$0xff] %v13482_v24 }
 0x5e5   :  { %17705 = vst [vmem:[#allocation8_spill] sm:$0xff] %v13488_v7 }
 0x5e8   :  { %v3371_v50 = vpop.f32.mrf.mxu0  ;;  %v13469_v12 = vpop.f32.mrf.mxu1 }
 0x5eb   :  { %3779 = vmatmul.f32.gmra.mxu0 %v13363_v10  ;;  %3867 = vmatmul.f32.gmra.mxu1 %v13372_v46  ;;  %v13490_v19 = vpop.f32.mrf.mxu3  ;;  %v13496_v21 = vpop.f32.mrf.mxu2 }
 0x5ec   :  { %17706 = vst [vmem:[#allocation5_spill] sm:$0xff] %v13490_v19 }
 0x5f0   :  { %v13475_v13 = vpop.f32.mrf.mxu0  ;;  %v13477_v60 = vpop.f32.mrf.mxu1 }
 0x5f1   :  { %17700 = vst [vmem:[#allocation3_spill] sm:$0xff] %v13477_v60 }
 0x5f3   :  { %3783 = vmatmul.f32.gmra.mxu0 %v13372_v46  ;;  %v13502_v17 = vpop.f32.mrf.mxu3  ;;  %v13504_v2 = vpop.f32.mrf.mxu2 }
 0x5f4   :  { %17711 = vst [vmem:[#allocation21_spill] sm:$0xff] %v13502_v17  ;;  %v3472_v17 = vadd.f32 %v3471_v38, %v3371_v50  ;;  %v3476_v50 = vadd.f32 %v13469_v12, %v13475_v13 }
 0x5f8   :  { %v13484_v47 = vpop.f32.mrf.mxu0  ;;  %v13486_v18 = vpop.f32.mrf.mxu1 }
 0x5f9   :  { %17703 = vst [vmem:[#allocation7_spill] sm:$0xff] %v13484_v47 }
 0x5fa   :  { %17704 = vst [vmem:[#allocation10_spill] sm:$0xff] %v13486_v18 }
 0x5fb   :  { %v13510_v5 = vpop.f32.mrf.mxu3  ;;  %v13516_v26 = vpop.f32.mrf.mxu2 }
 0x5fc   :  { %17714 = vst [vmem:[#allocation24_spill] sm:$0xff] %v13510_v5  ;;  %v3460_v5 = vadd.f32 %v13441_v53, %v13445_v37 }
 0x600   :  { %v13492_v11 = vpop.f32.mrf.mxu0  ;;  %v13494_v58 = vpop.f32.mrf.mxu1 }
 0x601   :  { %17707 = vst [vmem:[#allocation17_spill] sm:$0xff] %v13492_v11 }
 0x602   :  { %17708 = vst [vmem:[#allocation18_spill] sm:$0xff] %v13494_v58 }
 0x603   :  { %v13518_v46 = vpop.f32.mrf.mxu3  ;;  %v3543_v15 = vpop.f32.mrf.mxu2 }
 0x604   :  { %17717 = vst [vmem:[#allocation27_spill] sm:$0xff] %v13518_v46  ;;  %v3452_v46 = vadd.f32 %v13429_v56, %v13433_v28 }
 0x608   :  { %v13498_v10 = vpop.f32.mrf.mxu0  ;;  %v13500_v62 = vpop.f32.mrf.mxu1 }
 0x609   :  { %17709 = vst [vmem:[#allocation19_spill] sm:$0xff] %v13498_v10 }
 0x60a   :  { %17710 = vst [vmem:[#allocation20_spill] sm:$0xff] %v13500_v62 }
 0x60b   :  { %v13524_v36 = vpop.f32.mrf.mxu3  ;;  %v3548_v18 = vpop.f32.mrf.mxu2 }
 0x610   :  { %v13506_v25 = vpop.f32.mrf.mxu0  ;;  %v13508_v63 = vpop.f32.mrf.mxu1 }
 0x611   :  { %17712 = vst [vmem:[#allocation22_spill] sm:$0xff] %v13506_v25 }
 0x612   :  { %17713 = vst [vmem:[#allocation23_spill] sm:$0xff] %v13508_v63 }
 0x613   :  { %v3658_v11 = vpop.f32.mrf.mxu3  ;;  %v3553_v30 = vpop.f32.mrf.mxu2 }
 0x618   :  { %v13512_v35 = vpop.f32.mrf.mxu0  ;;  %v13514_v9 = vpop.f32.mrf.mxu1 }
 0x619   :  { %17715 = vst [vmem:[#allocation25_spill] sm:$0xff] %v13512_v35 }
 0x61a   :  { %17716 = vst [vmem:[#allocation26_spill] sm:$0xff] %v13514_v9 }
 0x61b   :  { %v3664_v1 = vpop.f32.mrf.mxu3  ;;  %v3558_v6 = vpop.f32.mrf.mxu2 }
 0x620   :  { %v13520_v41 = vpop.f32.mrf.mxu0  ;;  %v13522_v39 = vpop.f32.mrf.mxu1 }
 0x621   :  { %17718 = vst [vmem:[#allocation28_spill] sm:$0xff] %v13520_v41 }
 0x622   :  { %17719 = vst [vmem:[#allocation29_spill] sm:$0xff] %v13522_v39 }
 0x623   :  { %v3670_v9 = vpop.f32.mrf.mxu3  ;;  %v3563_v39 = vpop.f32.mrf.mxu2 }
 0x628   :  { %v13526_v34 = vpop.f32.mrf.mxu0  ;;  %v13528_v60 = vpop.f32.mrf.mxu1 }
 0x629   :  { %17720 = vst [vmem:[#allocation30_spill] sm:$0xff] %v13526_v34  ;;  %v3468_v34 = vadd.f32 %v13457_v40, %v3363_v44  ;;  %v3559_v40 = vadd.f32 %v3558_v6, %v3460_v5 }
 0x62a   :  { %17721 = vst [vmem:[#allocation31_spill] sm:$0xff] %v13528_v60 }
 0x62b   :  { %v3676_v35 = vpop.f32.mrf.mxu3  ;;  %v3568_v41 = vpop.f32.mrf.mxu2  ;;  %v3671_v28 = vadd.f32 %v3670_v9, %v3559_v40  ;;  %v17731_v9 = vld [vmem:[#allocation16_spill] sm:$0xff] }
 0x62c   :  { %v3569_v7 = vadd.f32 %v3568_v41, %v3468_v34 }
 0x630   :  { %v13530_v58 = vpop.f32.mrf.mxu0  ;;  %v13532_v47 = vpop.f32.mrf.mxu1 }
 0x631   :  { %17722 = vst [vmem:[#allocation32_spill] sm:$0xff] %v13530_v58  ;;  %v3464_v58 = vadd.f32 %v13447_v32, %v13455_v23  ;;  %v3448_v32 = vadd.f32 %v13423_v33, %v13427_v54 }
 0x632   :  { %17723 = vst [vmem:[#allocation33_spill] sm:$0xff] %v13532_v47 }
 0x633   :  { %v3682_v29 = vpop.f32.mrf.mxu3  ;;  %v3573_v27 = vpop.f32.mrf.mxu2  ;;  %v3544_v12 = vadd.f32 %v3543_v15, %v3448_v32 }
 0x634   :  { %v3574_v42 = vadd.f32 %v3573_v27, %v3472_v17  ;;  %v3683_v44 = vadd.f32 %v3682_v29, %v3569_v7  ;;  %v3440_v29 = vadd.f32 %v13411_v45, %v13415_v22  ;;  %v3420_v45 = vadd.f32 %v13381_v55, %v13385_v51  ;;  %v17727_v55 = vld [vmem:[#allocation27_spill] sm:$0xff] }
 0x635   :  { %v3432_v22 = vadd.f32 %v13399_v61, %v13403_v8 }
 0x638   :  { %v13534_v62 = vpop.f32.mrf.mxu0  ;;  %v13536_v10 = vpop.f32.mrf.mxu1 }
 0x639   :  { %17724 = vst [vmem:[#allocation34_spill] sm:$0xff] %v13534_v62  ;;  %v3564_v62 = vadd.f32 %v3563_v39, %v3464_v58  ;;  %v17734_v39 = vld [vmem:[#allocation32_spill] sm:$0xff] }
 0x63a   :  { %17725 = vst [vmem:[#allocation35_spill] sm:$0xff] %v13536_v10 }
 0x63b   :  { %v3688_v48 = vpop.f32.mrf.mxu3  ;;  %v3677_v27 = vadd.f32 %v3676_v35, %v3564_v62  ;;  %v3578_v56 = vpop.f32.mrf.mxu2 }
 0x63c   :  { %v3689_v38 = vadd.f32 %v3688_v48, %v3574_v42  ;;  %v3579_v6 = vadd.f32 %v3578_v56, %v3476_v50  ;;  %v17736_v50 = vld [vmem:[#allocation9_spill] sm:$0xff] }
 0x640   :  { %v13538_v63 = vpop.f32.mrf.mxu0  ;;  %v13540_v59 = vpop.f32.mrf.mxu1  ;;  %v17728_v62 = vld [vmem:[#allocation34_spill] sm:$0xff] }
 0x641   :  { %17726 = vst [vmem:[#allocation36_spill] sm:$0xff] %v13540_v59  ;;  %v3456_v59 = vadd.f32 %v13435_v3, %v13439_v4  ;;  %v3444_v3 = vadd.f32 %v13417_v49, %v13421_v57  ;;  %v3549_v4 = vadd.f32 %v3548_v18, %v3452_v46  ;;  %v3436_v49 = vadd.f32 %v13405_v52, %v13409_v14  ;;  %v17732_v46 = vld [vmem:[#allocation8_spill] sm:$0xff] }
 0x643   :  { %v3554_v23 = vadd.f32 %v3553_v30, %v3456_v59  ;;  %v13561_v30 = vadd.f32 %v13376_v43, %v13379_v31  ;;  %v3539_v57 = vadd.f32 %v13516_v26, %v3444_v3  ;;  %v3659_v59 = vadd.f32 %v3658_v11, %v3549_v4  ;;  %v3694_v18 = vpop.f32.mrf.mxu3 }
 0x644   :  { %v3695_v7 = vadd.f32 %v3694_v18, %v3579_v6  ;;  %v3534_v43 = vadd.f32 %v13504_v2, %v3440_v29  ;;  %v3653_v31 = vadd.f32 %v13524_v36, %v3544_v12  ;;  %v3529_v11 = vadd.f32 %v13496_v21, %v3436_v49  ;;  %v17735_v36 = vld [vmem:[#allocation35_spill] sm:$0xff]  ;;  %v17742_v12 = vld [vmem:[#allocation28_spill] sm:$0xff] }
 0x645   :  { %v3665_v33 = vadd.f32 %v3664_v1, %v3554_v23  ;;  %v3761_v14 = vadd.f32 %v13538_v63, %v3659_v59  ;;  %v3647_v51 = vadd.f32 %v17727_v55, %v3539_v57  ;;  %v17730_v63 = vld [vmem:[#allocation2_spill] sm:$0xff]  ;;  %v17740_v6 = vld [vmem:[#allocation11_spill] sm:$0xff] }
 0x646   :  { %v3757_v61 = vadd.f32 %v17728_v62, %v3653_v31  ;;  %v3424_v26 = vadd.f32 %v17731_v9, %v17730_v63  ;;  %v17738_v23 = vld [vmem:[#allocation30_spill] sm:$0xff] }
 0x647   :  { %v3753_v15 = vadd.f32 %v17734_v39, %v3647_v51  ;;  %v3845_v34 = vadd.f32 %v17735_v36, %v3761_v14  ;;  %v17748_v51 = vld [vmem:[#allocation22_spill] sm:$0xff] }
 0x648   :  { %v3764_v25 = vpop.f32.mrf.mxu0  ;;  %v3852_v0 = vpop.f32.mrf.mxu1  ;;  %v17729_v2 = vld [vmem:[#allocation36_spill] sm:$0xff]  ;;  %v17750_v9 = vld [vmem:[#allocation6_spill] sm:$0xff] }
 0x649   :  { %v13620_v49 = vand.u32 4294901760, %v3845_v34 }
 0x64b   :  { %v13659_v63 = vsub.f32 %v3845_v34, %v13620_v49 }
 0x650   :  { %v3768_v24 = vpop.f32.mrf.mxu0  ;;  %v3856_v60 = vpop.f32.mrf.mxu1 }
 0x651   :  { %v3769_v54 = vadd.f32 %v3768_v24, %v3671_v28 }
 0x653   :  { %v3853_v1 = vadd.f32 %v3852_v0, %v3769_v54  ;;  %v17743_v54 = vld [vmem:[#allocation31_spill] sm:$0xff] }
 0x655   :  { %v13594_v40 = vand.u32 4294901760, %v3853_v1 }
 0x657   :  { %v13626_v59 = vsub.f32 %v3853_v1, %v13594_v40 }
 0x658   :  { %v3772_v19 = vpop.f32.mrf.mxu0  ;;  %v3860_v47 = vpop.f32.mrf.mxu1 }
 0x659   :  { %v3773_v42 = vadd.f32 %v3772_v19, %v3677_v27  ;;  %v3765_v19 = vadd.f32 %v3764_v25, %v3665_v33 }
 0x65b   :  { %v3857_v58 = vadd.f32 %v3856_v60, %v3773_v42  ;;  %v3428_v60 = vadd.f32 %v13393_v16, %v13397_v20  ;;  %v3849_v25 = vadd.f32 %v17729_v2, %v3765_v19  ;;  %v3524_v16 = vadd.f32 %v17732_v46, %v3432_v22  ;;  %v17733_v20 = vld [vmem:[#allocation24_spill] sm:$0xff]  ;;  %v17751_v46 = vld [vmem:[#allocation14_spill] sm:$0xff] }
 0x65c   :  { %v3641_v21 = vadd.f32 %v17733_v20, %v3534_v43  ;;  %v3514_v42 = vadd.f32 %v17740_v6, %v3424_v26  ;;  %v17746_v43 = vld [vmem:[#allocation29_spill] sm:$0xff]  ;;  %v3504_v26 = vadd.f32 %v17750_v9, %v13561_v30  ;;  %v17752_v20 = vld [vmem:[#allocation23_spill] sm:$0xff]  ;;  %v17760_v9 = vld [vmem:[#allocation10_spill] sm:$0xff] }
 0x65d   :  { %v13583_v5 = vand.u32 4294901760, %v3857_v58  ;;  %v3519_v32 = vadd.f32 %v17736_v50, %v3428_v60  ;;  %v13605_v3 = vand.u32 4294901760, %v3849_v25  ;;  %v17753_v50 = vld [vmem:[#allocation4_spill] sm:$0xff]  ;;  %v3871_v6 = vld [vmem:[%s17528_s8] sm:$0xff] }
 0x65e   :  { %v3749_v27 = vadd.f32 %v17738_v23, %v3641_v21  ;;  %v17755_v23 = vld [vmem:[#allocation20_spill] sm:$0xff] }
 0x65f   :  { %v13613_v56 = vsub.f32 %v3857_v58, %v13583_v5  ;;  %v17745_v58 = vld [vmem:[#allocation25_spill] sm:$0xff] }
 0x660   :  { %v3776_v10 = vpop.f32.mrf.mxu0  ;;  %v3864_v53 = vpop.f32.mrf.mxu1  ;;  %v3833_v31 = vadd.f32 %v17746_v43, %v3749_v27 }
 0x661   :  { %v3777_v17 = vadd.f32 %v3776_v10, %v3683_v44  ;;  %v4404_v60 = vand.u32 4294901760, %v13613_v56 }
 0x662   :  { %v13666_v39 = vand.u32 4294901760, %v3833_v31 }
 0x663   :  { %v3861_v13 = vadd.f32 %v3860_v47, %v3777_v17  ;;  %v17739_v17 = vld [vmem:[#allocation33_spill] sm:$0xff]  ;;  %v4405_v36 = vsub.f32 %v13613_v56, %v4404_v60 }
 0x665   :  { %v13575_v24 = vand.u32 4294901760, %v3861_v13 }
 0x668   :  { %v3780_v37 = vpop.f32.mrf.mxu0  ;;  %v3868_v8 = vpop.f32.mrf.mxu1 }
 0x669   :  { %v3781_v41 = vadd.f32 %v3780_v37, %v3689_v38  ;;  %v13599_v38 = vsub.f32 %v3861_v13, %v13575_v24  ;;  %v3837_v13 = vadd.f32 %v17743_v54, %v3753_v15  ;;  %v17757_v54 = vld [vmem:[#allocation17_spill] sm:$0xff] }
 0x66b   :  { %v3865_v48 = vadd.f32 %v3864_v53, %v3781_v41  ;;  %v17737_v53 = vld [vmem:[#allocation21_spill] sm:$0xff]  ;;  %v3841_v41 = vadd.f32 %v17739_v17, %v3757_v61  ;;  %v4398_v18 = vand.u32 4294901760, %v13599_v38  ;;  %v17749_v61 = vld [vmem:[#allocation26_spill] sm:$0xff]  ;;  %v13650_v2 = vand.u32 4294901760, %v3837_v13 }
 0x66c   :  { %v3635_v37 = vadd.f32 %v17737_v53, %v3529_v11  ;;  %v17747_v11 = vld [vmem:[#allocation15_spill] sm:$0xff] }
 0x66d   :  { %v13566_v10 = vand.u32 4294901760, %v3865_v48  ;;  %v3509_v55 = vadd.f32 %v17747_v11, %v3420_v45  ;;  %v4410_v45 = vand.u32 4294901760, %v13626_v59  ;;  %v17754_v53 = vld [vmem:[#allocation19_spill] sm:$0xff] }
 0x66e   :  { %v3745_v33 = vadd.f32 %v17742_v12, %v3635_v37  ;;  %v17756_v12 = vld [vmem:[#allocation13_spill] sm:$0xff] }
 0x66f   :  { %v13586_v0 = vsub.f32 %v3865_v48, %v13566_v10  ;;  %v17741_v48 = vld [vmem:[#allocation5_spill] sm:$0xff] }
 0x670   :  { %v3784_v52 = vpop.f32.mrf.mxu0  ;;  %v3629_v29 = vadd.f32 %v17741_v48, %v3524_v16  ;;  %v3617_v16 = vadd.f32 %v17751_v46, %v3514_v42  ;;  %v4411_v42 = vsub.f32 %v13626_v59, %v4410_v45  ;;  %v13692_v48 = vsub.f32 %v3837_v13, %v13650_v2 }
 0x671   :  { %v3785_v47 = vadd.f32 %v3784_v52, %v3695_v7  ;;  %v4392_v28 = vand.u32 4294901760, %v13586_v0  ;;  %v17744_v7 = vld [vmem:[#allocation12_spill] sm:$0xff]  ;;  %v13632_v52 = vand.u32 4294901760, %v3841_v41  ;;  %v4406_v13 = vand.u32 4294901760, %v4405_v36  ;;  %v17761_v36 = vld [vmem:[#allocation3_spill] sm:$0xff] }
 0x672   :  { %v3623_v19 = vadd.f32 %v17744_v7, %v3519_v32  ;;  %v3741_v22 = vadd.f32 %v17745_v58, %v3629_v29  ;;  %v3611_v32 = vadd.f32 %v17753_v50, %v3509_v55  ;;  %v3733_v37 = vadd.f32 %v17754_v53, %v3617_v16  ;;  %v17759_v55 = vld [vmem:[#allocation18_spill] sm:$0xff] }
 0x673   :  { %v3869_v35 = vadd.f32 %v3868_v8, %v3785_v47  ;;  %v4393_v1 = vsub.f32 %v13586_v0, %v4392_v28  ;;  %v13644_v47 = vsub.f32 %v3849_v25, %v13605_v3  ;;  %v3829_v8 = vadd.f32 %v17749_v61, %v3745_v33 }
 0x674   :  { %v3737_v62 = vadd.f32 %v17748_v51, %v3623_v19  ;;  %v4399_v25 = vsub.f32 %v13599_v38, %v4398_v18  ;;  %v3825_v21 = vadd.f32 %v17752_v20, %v3741_v22  ;;  %v13674_v34 = vsub.f32 %v3841_v41, %v13632_v52 }
 0x675   :  { %v13596_v44 = vand.u32 4294901760, %v3869_v35  ;;  %v4394_v15 = vand.u32 4294901760, %v4393_v1  ;;  %v4416_v30 = vand.u32 4294901760, %v13644_v47  ;;  %v13680_v17 = vand.u32 4294901760, %v3829_v8  ;;  %v17758_v1 = vld [vmem:[#allocation7_spill] sm:$0xff] }
 0x676   :  { %v3821_v27 = vadd.f32 %v17755_v23, %v3737_v62  ;;  %v4400_v41 = vand.u32 4294901760, %v4399_v25  ;;  %v4422_v29 = vand.u32 4294901760, %v13659_v63  ;;  %v3605_v33 = vadd.f32 %v17756_v12, %v3504_v26 }
 0x677   :  { %v13608_v4 = vsub.f32 %v3869_v35, %v13596_v44  ;;  %4096 = vmatpush.msrb.mxu2 %v13596_v44  ;;  %4819 = vmatpush.msrb.mxu1 %v13596_v44  ;;  %v3729_v7 = vadd.f32 %v17757_v54, %v3611_v32  ;;  %v13697_v19 = vand.u32 4294901760, %v3825_v21  ;;  %v13702_v58 = vsub.f32 %v3833_v31, %v13666_v39 }
 0x678   :  { %v4417_v22 = vsub.f32 %v13644_v47, %v4416_v30  ;;  %v4428_v43 = vand.u32 4294901760, %v13674_v34  ;;  %v3725_v11 = vadd.f32 %v17758_v1, %v3605_v33  ;;  %v3817_v51 = vadd.f32 %v17759_v55, %v3733_v37 }
 0x679   :  { %4098 = vmatpush.msrb.mxu2 %v13566_v10  ;;  %4611 = vmatpush.msrb.mxu0 %v13608_v4  ;;  %v4386_v57 = vand.u32 4294901760, %v13608_v4  ;;  %v13713_v62 = vand.u32 4294901760, %v3821_v27  ;;  %v4412_v31 = vand.u32 4294901760, %v4411_v42  ;;  %v4423_v61 = vsub.f32 %v13659_v63, %v4422_v29 }
 0x67a   :  { %4821 = vmatpush.msrb.mxu1 %v13566_v10  ;;  %v4434_v25 = vand.u32 4294901760, %v13692_v48  ;;  %v3813_v26 = vadd.f32 %v17760_v9, %v3729_v7  ;;  %v13729_v46 = vsub.f32 %v3825_v21, %v13697_v19  ;;  %v4418_v16 = vand.u32 4294901760, %v4417_v22  ;;  %v3872_v21 = vld [vmem:[%s17528_s8 + $0x8] sm:$0xff] }
 0x67b   :  { %4100 = vmatpush.msrb.mxu2 %v13575_v24  ;;  %4614 = vmatpush.msrb.mxu0 %v13586_v0  ;;  %v4387_v14 = vsub.f32 %v13608_v4, %v4386_v57  ;;  %v4440_v20 = vand.u32 4294901760, %v13702_v58  ;;  %v3809_v50 = vadd.f32 %v17761_v36, %v3725_v11  ;;  %v13740_v32 = vand.u32 4294901760, %v3817_v51 }
 0x67c   :  { %4823 = vmatpush.msrb.mxu1 %v13575_v24  ;;  %v4424_v53 = vand.u32 4294901760, %v4423_v61  ;;  %v4435_v37 = vsub.f32 %v13692_v48, %v4434_v25  ;;  %v13752_v23 = vsub.f32 %v3821_v27, %v13713_v62  ;;  %v4452_v42 = vand.u32 4294901760, %v13729_v46 }
 0x67d   :  { %4102 = vmatpush.msrb.mxu2 %v13583_v5  ;;  %4617 = vmatpush.msrb.mxu0 %v13599_v38  ;;  %v4388_v35 = vand.u32 4294901760, %v4387_v14  ;;  %v13709_v14 = vand.u32 4294901760, %v3871_v6  ;;  %v4441_v33 = vsub.f32 %v13702_v58, %v4440_v20  ;;  %v13765_v54 = vand.u32 4294901760, %v3872_v21  ;;  %v3875_v38 = vld [vmem:[%s17528_s8 + $0x20] sm:$0xff] }
 0x67e   :  { %4825 = vmatpush.msrb.mxu1 %v13583_v5  ;;  %v13767_v7 = vand.u32 4294901760, %v3809_v50  ;;  %v4436_v22 = vand.u32 4294901760, %v4435_v37  ;;  %v4458_v11 = vand.u32 4294901760, %v13752_v23 }
 0x67f   :  { %4104 = vmatpush.msrb.mxu2 %v13594_v40  ;;  %4389 = vmatpush.msrb.mxu3 %v4388_v35  ;;  %v13722_v35 = vsub.f32 %v3829_v8, %v13680_v17  ;;  %v4429_v8 = vsub.f32 %v13674_v34, %v4428_v43  ;;  %v4136_v9 = vsub.f32 %v3872_v21, %v13765_v54 }
 0x680   :  { %4620 = vmatpush.msrb.mxu0 %v13613_v56  ;;  %4827 = vmatpush.msrb.mxu1 %v13594_v40  ;;  %v4459_v21 = vsub.f32 %v13752_v23, %v4458_v11 }
 0x681   :  { %4106 = vmatpush.msrb.mxu2 %v13605_v3  ;;  %4395 = vmatpush.msrb.mxu3 %v4394_v15  ;;  %v13737_v15 = vsub.f32 %v3871_v6, %v13709_v14  ;;  %v4446_v6 = vand.u32 4294901760, %v13722_v35  ;;  %v4430_v12 = vand.u32 4294901760, %v4429_v8  ;;  %v3873_v8 = vld [vmem:[%s17528_s8 + $0x10] sm:$0xff] }
 0x682   :  { %4623 = vmatpush.msrb.mxu0 %v13626_v59  ;;  %4829 = vmatpush.msrb.mxu1 %v13605_v3 }
 0x683   :  { %4108 = vmatpush.msrb.mxu2 %v13620_v49  ;;  %4401 = vmatpush.msrb.mxu3 %v4400_v41  ;;  %v13755_v41 = vand.u32 4294901760, %v3813_v26  ;;  %v4129_v27 = vand.u32 4294901760, %v13737_v15  ;;  %v4447_v1 = vsub.f32 %v13722_v35, %v4446_v6 }
 0x684   :  { %4626 = vmatpush.msrb.mxu0 %v13644_v47  ;;  %4831 = vmatpush.msrb.mxu1 %v13620_v49 }
 0x685   :  { %4110 = vmatpush.msrb.mxu2 %v13632_v52  ;;  %4407 = vmatpush.msrb.mxu3 %v4406_v13  ;;  %v13772_v13 = vsub.f32 %v3817_v51, %v13740_v32  ;;  %v13782_v55 = vsub.f32 %v3813_v26, %v13755_v41  ;;  %v4442_v51 = vand.u32 4294901760, %v4441_v33  ;;  %v4130_v61 = vsub.f32 %v13737_v15, %v4129_v27 }
 0x686   :  { %4629 = vmatpush.msrb.mxu0 %v13659_v63  ;;  %4833 = vmatpush.msrb.mxu1 %v13632_v52  ;;  %v4448_v36 = vand.u32 4294901760, %v4447_v1  ;;  %v13807_v33 = vand.u32 4294901760, %v3873_v8 }
 0x687   :  { %4112 = vmatpush.msrb.mxu2 %v13650_v2  ;;  %4413 = vmatpush.msrb.mxu3 %v4412_v31  ;;  %v4453_v31 = vsub.f32 %v13729_v46, %v4452_v42  ;;  %v17553_v26 = vand.u32 4294901760, %v13772_v13  ;;  %v4131_v37 = vand.u32 4294901760, %v4130_v61  ;;  %v17762_v63 = vand.u32 4294901760, %v13772_v13 }
 0x688   :  { %4632 = vmatpush.msrb.mxu0 %v13674_v34  ;;  %4835 = vmatpush.msrb.mxu1 %v13650_v2 }
 0x689   :  { %4114 = vmatpush.msrb.mxu2 %v13666_v39  ;;  %4419 = vmatpush.msrb.mxu3 %v4418_v16  ;;  %v13793_v16 = vsub.f32 %v3809_v50, %v13767_v7  ;;  %v4470_v50 = vand.u32 4294901760, %v13782_v55 }
 0x68a   :  { %4635 = vmatpush.msrb.mxu0 %v13692_v48  ;;  %4837 = vmatpush.msrb.mxu1 %v13666_v39 }
 0x68b   :  { %4116 = vmatpush.msrb.mxu2 %v13680_v17  ;;  %4425 = vmatpush.msrb.mxu3 %v4424_v53  ;;  %v4454_v53 = vand.u32 4294901760, %v4453_v31  ;;  %v4476_v1 = vand.u32 4294901760, %v13793_v16  ;;  %v4471_v31 = vsub.f32 %v13782_v55, %v4470_v50 }
 0x68c   :  { %4638 = vmatpush.msrb.mxu0 %v13702_v58  ;;  %4839 = vmatpush.msrb.mxu1 %v13680_v17 }
 0x68d   :  { %4118 = vmatpush.msrb.mxu2 %v13697_v19  ;;  %4431 = vmatpush.msrb.mxu3 %v4430_v12  ;;  %v4137_v12 = vand.u32 4294901760, %v4136_v9  ;;  %v4472_v4 = vand.u32 4294901760, %v4471_v31  ;;  %v3882_v31 = vld [vmem:[%s17528_s8 + $0x58] sm:$0xff] }
 0x68e   :  { %4641 = vmatpush.msrb.mxu0 %v13722_v35  ;;  %4841 = vmatpush.msrb.mxu1 %v13697_v19 }
 0x68f   :  { %4120 = vmatpush.msrb.mxu2 %v13713_v62  ;;  %4437 = vmatpush.msrb.mxu3 %v4436_v22  ;;  %v4465_v22 = vsub.f32 %v13772_v13, %v17553_v26  ;;  %v4138_v61 = vsub.f32 %v4136_v9, %v4137_v12  ;;  %v3874_v26 = vld [vmem:[%s17528_s8 + $0x18] sm:$0xff] }
 0x690   :  { %4644 = vmatpush.msrb.mxu0 %v13729_v46  ;;  %4843 = vmatpush.msrb.mxu1 %v13713_v62  ;;  %v13915_v46 = vpop.permute.xlu2 %6435 }
 0x691   :  { %4122 = vmatpush.msrb.mxu2 %v13740_v32  ;;  %4443 = vmatpush.msrb.mxu3 %v4442_v51  ;;  %v4460_v51 = vand.u32 4294901760, %v4459_v21  ;;  %v4477_v21 = vsub.f32 %v13793_v16, %v4476_v1  ;;  %17765 = vst [vmem:[#allocation36_spill] sm:$0xff] %v13915_v46 }
 0x692   :  { %4647 = vmatpush.msrb.mxu0 %v13752_v23  ;;  %4845 = vmatpush.msrb.mxu1 %v13740_v32 }
 0x693   :  { %4124 = vmatpush.msrb.mxu2 %v13755_v41  ;;  %4449 = vmatpush.msrb.mxu3 %v4448_v36  ;;  %v4144_v36 = vsub.f32 %v3873_v8, %v13807_v33 }
 0x694   :  { %4650 = vmatpush.msrb.mxu0 %v13772_v13  ;;  %4847 = vmatpush.msrb.mxu1 %v13755_v41 }
 0x695   :  { %4126 = vmatpush.msrb.mxu2 %v13767_v7  ;;  %4455 = vmatpush.msrb.mxu3 %v4454_v53  ;;  %v4466_v53 = vand.u32 4294901760, %v4465_v22  ;;  %v4145_v8 = vand.u32 4294901760, %v4144_v36  ;;  %v4478_v22 = vand.u32 4294901760, %v4477_v21  ;;  %v13948_v21 = vand.u32 4294901760, %v3882_v31 }
 0x696   :  { %4653 = vmatpush.msrb.mxu0 %v13782_v55  ;;  %4849 = vmatpush.msrb.mxu1 %v13767_v7  ;;  %v3881_v55 = vld [vmem:[%s17528_s8 + $0x50] sm:$0xff] }
 0x697   :  { %4132 = vmatmul.f32.vlgmr.msrb.gmra.mxu2 %v4131_v37  ;;  %4461 = vmatpush.msrb.mxu3 %v4460_v51  ;;  %v13834_v37 = vand.u32 4294901760, %v3874_v26  ;;  %v4146_v0 = vsub.f32 %v4144_v36, %v4145_v8  ;;  %17774 = vst [vmem:[#allocation30_spill] sm:$0xff] %v13948_v21 }
 0x698   :  { %5046 = vmatpush.msra.mxu2 %v4386_v57  ;;  %4656 = vmatpush.msrb.mxu0 %v13793_v16  ;;  %v4139_v57 = vand.u32 4294901760, %v4138_v61 }
 0x699   :  { %4659 = vmatmul.f32.vlgmr.msrb.gmra.mxu0 %v13737_v15  ;;  %4853 = vmatmul.f32.vlgmr.msrb.gmra.mxu1 %v4129_v27  ;;  %v4147_v56 = vand.u32 4294901760, %v4146_v0  ;;  %v13926_v27 = vpop.permute.xlu0 %6440 }
 0x69a   :  { %5050 = vmatpush.msra.mxu2 %v4392_v28  ;;  %4467 = vmatpush.msrb.mxu3 %v4466_v53  ;;  %v4152_v28 = vsub.f32 %v3874_v26, %v13834_v37  ;;  %17768 = vst [vmem:[#allocation8_spill] sm:$0xff] %v13926_v27  ;;  %v13935_v26 = vand.u32 4294901760, %v3881_v55 }
 0x69c   :  { %5054 = vmatpush.msra.mxu2 %v4398_v18  ;;  %4473 = vmatpush.msrb.mxu3 %v4472_v4  ;;  %v4153_v18 = vand.u32 4294901760, %v4152_v28  ;;  %17770 = vst [vmem:[#allocation32_spill] sm:$0xff] %v13935_v26  ;;  %v4208_v51 = vsub.f32 %v3881_v55, %v13935_v26  ;;  %v3887_v55 = vld [vmem:[%s17528_s8 + $0x80] sm:$0xff] }
 0x69e   :  { %5058 = vmatpush.msra.mxu2 %v4404_v60  ;;  %4479 = vmatpush.msrb.mxu3 %v4478_v22  ;;  %v13851_v60 = vand.u32 4294901760, %v3875_v38  ;;  %v4209_v53 = vand.u32 4294901760, %v4208_v51  ;;  %v3883_v22 = vld [vmem:[%s17528_s8 + $0x60] sm:$0xff] }
 0x69f   :  { %4140 = vmatmul.f32.gmra.mxu2 %v4139_v57  ;;  %4481 = vmatmul.f32.vlgmr.msrb.gmra.mxu3 %v13709_v14  ;;  %v4216_v57 = vsub.f32 %v3882_v31, %v13948_v21 }
 0x6a0   :  { %5062 = vmatpush.msra.mxu2 %v4410_v45  ;;  %5237 = vmatpush.msra.mxu3 %v13596_v44  ;;  %v4154_v44 = vsub.f32 %v4152_v28, %v4153_v18  ;;  %v4210_v4 = vsub.f32 %v4208_v51, %v4209_v53 }
 0x6a1   :  { %4664 = vmatmul.f32.gmra.mxu0 %v4136_v9  ;;  %4859 = vmatmul.f32.gmra.mxu1 %v4137_v12  ;;  %v13939_v12 = vpop.permute.xlu0 %6455 }
 0x6a2   :  { %5066 = vmatpush.msra.mxu2 %v4416_v30  ;;  %5239 = vmatpush.msra.mxu3 %v13566_v10  ;;  %v4160_v10 = vsub.f32 %v3875_v38, %v13851_v60  ;;  %v3878_v30 = vld [vmem:[%s17528_s8 + $0x38] sm:$0xff]  ;;  %17772 = vst [vmem:[#allocation9_spill] sm:$0xff] %v13939_v12  ;;  %v4211_v38 = vand.u32 4294901760, %v4210_v4  ;;  %v3888_v4 = vld [vmem:[%s17528_s8 + $0x88] sm:$0xff] }
 0x6a4   :  { %5070 = vmatpush.msra.mxu2 %v4422_v29  ;;  %5241 = vmatpush.msra.mxu3 %v13575_v24  ;;  %v3876_v24 = vld [vmem:[%s17528_s8 + $0x28] sm:$0xff]  ;;  %v4161_v59 = vand.u32 4294901760, %v4160_v10  ;;  %v13904_v29 = vand.u32 4294901760, %v3878_v30 }
 0x6a5   :  { %v13870_v47 = vand.u32 4294901760, %v3876_v24 }
 0x6a6   :  { %5074 = vmatpush.msra.mxu2 %v4428_v43  ;;  %5243 = vmatpush.msra.mxu3 %v13583_v5  ;;  %v4155_v5 = vand.u32 4294901760, %v4154_v44  ;;  %17763 = vst [vmem:[#allocation27_spill] sm:$0xff] %v13904_v29  ;;  %v4184_v58 = vsub.f32 %v3878_v30, %v13904_v29  ;;  %v3879_v43 = vld [vmem:[%s17528_s8 + $0x40] sm:$0xff] }
 0x6a7   :  { %4148 = vmatmul.f32.gmra.mxu2 %v4147_v56  ;;  %4485 = vmatmul.f32.gmra.mxu3 %v13765_v54  ;;  %v4217_v56 = vand.u32 4294901760, %v4216_v57 }
 0x6a8   :  { %5078 = vmatpush.msra.mxu2 %v4434_v25  ;;  %5245 = vmatpush.msra.mxu3 %v13594_v40  ;;  %v4162_v40 = vsub.f32 %v4160_v10, %v4161_v59  ;;  %v4185_v35 = vand.u32 4294901760, %v4184_v58  ;;  %v13913_v25 = vand.u32 4294901760, %v3879_v43 }
 0x6a9   :  { %4669 = vmatmul.f32.gmra.mxu0 %v4144_v36  ;;  %4865 = vmatmul.f32.gmra.mxu1 %v4145_v8  ;;  %v13957_v0 = vpop.permute.xlu0 %6470  ;;  %v4218_v44 = vsub.f32 %v4216_v57, %v4217_v56 }
 0x6aa   :  { %5082 = vmatpush.msra.mxu2 %v4440_v20  ;;  %5247 = vmatpush.msra.mxu3 %v13605_v3  ;;  %v4168_v3 = vsub.f32 %v3876_v24, %v13870_v47  ;;  %17764 = vst [vmem:[#allocation34_spill] sm:$0xff] %v13913_v25  ;;  %v4186_v20 = vsub.f32 %v4184_v58, %v4185_v35  ;;  %v3884_v24 = vld [vmem:[%s17528_s8 + $0x68] sm:$0xff] }
 0x6ab   :  { %v4192_v15 = vsub.f32 %v3879_v43, %v13913_v25  ;;  %17776 = vst [vmem:[#allocation11_spill] sm:$0xff] %v13957_v0 }
 0x6ac   :  { %5086 = vmatpush.msra.mxu2 %v4446_v6  ;;  %5249 = vmatpush.msra.mxu3 %v13620_v49  ;;  %v3877_v49 = vld [vmem:[%s17528_s8 + $0x30] sm:$0xff]  ;;  %v4169_v45 = vand.u32 4294901760, %v4168_v3  ;;  %v4187_v23 = vand.u32 4294901760, %v4186_v20 }
 0x6ad   :  { %v13889_v34 = vand.u32 4294901760, %v3877_v49  ;;  %v4193_v6 = vand.u32 4294901760, %v4192_v15 }
 0x6ae   :  { %5090 = vmatpush.msra.mxu2 %v4452_v42  ;;  %5251 = vmatpush.msra.mxu3 %v13632_v52  ;;  %v4163_v52 = vand.u32 4294901760, %v4162_v40  ;;  %v13924_v42 = vpop.permute.xlu1 %6430  ;;  %v4219_v40 = vand.u32 4294901760, %v4218_v44  ;;  %v14020_v44 = vand.u32 4294901760, %v3888_v4 }
 0x6af   :  { %4156 = vmatmul.f32.gmra.mxu2 %v4155_v5  ;;  %4489 = vmatmul.f32.gmra.mxu3 %v13807_v33  ;;  %17767 = vst [vmem:[#allocation16_spill] sm:$0xff] %v13924_v42  ;;  %v4194_v13 = vsub.f32 %v4192_v15, %v4193_v6 }
 0x6b0   :  { %5094 = vmatpush.msra.mxu2 %v4458_v11  ;;  %5253 = vmatpush.msra.mxu3 %v13650_v2  ;;  %v4170_v2 = vsub.f32 %v4168_v3, %v4169_v45  ;;  %17795 = vst [vmem:[#allocation18_spill] sm:$0xff] %v14020_v44 }
 0x6b1   :  { %4674 = vmatmul.f32.gmra.mxu0 %v4152_v28  ;;  %4871 = vmatmul.f32.gmra.mxu1 %v4153_v18  ;;  %v4195_v9 = vand.u32 4294901760, %v4194_v13  ;;  %v13961_v18 = vand.u32 4294901760, %v3883_v22 }
 0x6b2   :  { %5098 = vmatpush.msra.mxu2 %v17762_v63  ;;  %5255 = vmatpush.msra.mxu3 %v13666_v39  ;;  %v4176_v39 = vsub.f32 %v3877_v49, %v13889_v34  ;;  %v13972_v49 = vand.u32 4294901760, %v3884_v24 }
 0x6b3   :  { %17778 = vst [vmem:[#allocation28_spill] sm:$0xff] %v13961_v18 }
 0x6b4   :  { %5102 = vmatpush.msra.mxu2 %v4470_v50  ;;  %5257 = vmatpush.msra.mxu3 %v13680_v17  ;;  %v4171_v17 = vand.u32 4294901760, %v4170_v2  ;;  %v4177_v48 = vand.u32 4294901760, %v4176_v39  ;;  %17781 = vst [vmem:[#allocation25_spill] sm:$0xff] %v13972_v49  ;;  %v3885_v2 = vld [vmem:[%s17528_s8 + $0x70] sm:$0xff] }
 0x6b6   :  { %5106 = vmatpush.msra.mxu2 %v4476_v1  ;;  %5259 = vmatpush.msra.mxu3 %v13697_v19  ;;  %v4178_v19 = vsub.f32 %v4176_v39, %v4177_v48  ;;  %v13937_v50 = vpop.permute.xlu1 %6445 }
 0x6b7   :  { %4164 = vmatmul.f32.gmra.mxu2 %v4163_v52  ;;  %4493 = vmatmul.f32.gmra.mxu3 %v13834_v37  ;;  %17771 = vst [vmem:[#allocation35_spill] sm:$0xff] %v13937_v50 }
 0x6b8   :  { %5261 = vmatpush.msra.mxu3 %v13713_v62  ;;  %v4179_v62 = vand.u32 4294901760, %v4178_v19 }
 0x6b9   :  { %4679 = vmatmul.f32.gmra.mxu0 %v4160_v10  ;;  %4877 = vmatmul.f32.gmra.mxu1 %v4161_v59  ;;  %v4224_v10 = vsub.f32 %v3883_v22, %v13961_v18  ;;  %v13970_v59 = vpop.permute.xlu0 %6485 }
 0x6ba   :  { %5263 = vmatpush.msra.mxu3 %v13740_v32  ;;  %v3880_v32 = vld [vmem:[%s17528_s8 + $0x48] sm:$0xff]  ;;  %17780 = vst [vmem:[#allocation12_spill] sm:$0xff] %v13970_v59 }
 0x6bc   :  { %5265 = vmatpush.msra.mxu3 %v13755_v41  ;;  %v13922_v41 = vand.u32 4294901760, %v3880_v32 }
 0x6be   :  { %5267 = vmatpush.msra.mxu3 %v13767_v7  ;;  %17766 = vst [vmem:[#allocation2_spill] sm:$0xff] %v13922_v41  ;;  %v13928_v7 = vpop.permute.xlu2 %6450  ;;  %v4200_v11 = vsub.f32 %v3880_v32, %v13922_v41  ;;  %v13952_v8 = vpop.permute.xlu1 %6460 }
 0x6bf   :  { %4172 = vmatmul.f32.gmra.mxu2 %v4171_v17  ;;  %4497 = vmatmul.f32.gmra.mxu3 %v13851_v60  ;;  %17769 = vst [vmem:[#allocation24_spill] sm:$0xff] %v13928_v7  ;;  %v13981_v17 = vand.u32 4294901760, %v3885_v2 }
 0x6c0   :  { %v4201_v16 = vand.u32 4294901760, %v4200_v11  ;;  %17775 = vst [vmem:[#allocation33_spill] sm:$0xff] %v13952_v8 }
 0x6c1   :  { %4684 = vmatmul.f32.gmra.mxu0 %v4168_v3  ;;  %4883 = vmatmul.f32.gmra.mxu1 %v4169_v45  ;;  %v4225_v3 = vand.u32 4294901760, %v4224_v10  ;;  %v4232_v45 = vsub.f32 %v3884_v24, %v13972_v49  ;;  %17783 = vst [vmem:[#allocation15_spill] sm:$0xff] %v13981_v17  ;;  %v13985_v19 = vpop.permute.xlu0 %7665  ;;  %v4264_v24 = vsub.f32 %v3888_v4, %v14020_v44 }
 0x6c2   :  { %v4202_v1 = vsub.f32 %v4200_v11, %v4201_v16  ;;  %17785 = vst [vmem:[#allocation26_spill] sm:$0xff] %v13985_v19  ;;  %v5444_v19 = vld [vmem:[%s17517_s1 + $0x58] sm:$0xff] }
 0x6c3   :  { %v4226_v52 = vsub.f32 %v4224_v10, %v4225_v3  ;;  %v4233_v30 = vand.u32 4294901760, %v4232_v45 }
 0x6c4   :  { %v4203_v36 = vand.u32 4294901760, %v4202_v1 }
 0x6c5   :  { %v4234_v43 = vsub.f32 %v4232_v45, %v4233_v30 }
 0x6c6   :  { %v13946_v61 = vpop.permute.xlu2 %6465  ;;  %v13968_v5 = vpop.permute.xlu1 %6475 }
 0x6c7   :  { %4180 = vmatmul.f32.gmra.mxu2 %v4179_v62  ;;  %4501 = vmatmul.f32.gmra.mxu3 %v13870_v47  ;;  %17773 = vst [vmem:[#allocation21_spill] sm:$0xff] %v13946_v61  ;;  %v4240_v62 = vsub.f32 %v3885_v2, %v13981_v17  ;;  %v4235_v20 = vand.u32 4294901760, %v4234_v43  ;;  %v4265_v2 = vand.u32 4294901760, %v4264_v24 }
 0x6c8   :  { %17779 = vst [vmem:[#allocation31_spill] sm:$0xff] %v13968_v5  ;;  %v14141_v5 = vand.u32 4294901760, %v5444_v19 }
 0x6c9   :  { %4689 = vmatmul.f32.gmra.mxu0 %v4176_v39  ;;  %4889 = vmatmul.f32.gmra.mxu1 %v4177_v48  ;;  %v4227_v39 = vand.u32 4294901760, %v4226_v52 }
 0x6ce   :  { %v13959_v28 = vpop.permute.xlu2 %6480  ;;  %v13983_v48 = vpop.permute.xlu1 %7655 }
 0x6cf   :  { %4188 = vmatmul.f32.gmra.mxu2 %v4187_v23  ;;  %4505 = vmatmul.f32.gmra.mxu3 %v13889_v34  ;;  %17777 = vst [vmem:[#allocation5_spill] sm:$0xff] %v13959_v28 }
 0x6d0   :  { %17784 = vst [vmem:[#allocation22_spill] sm:$0xff] %v13983_v48 }
 0x6d1   :  { %4694 = vmatmul.f32.gmra.mxu0 %v4184_v58  ;;  %4895 = vmatmul.f32.gmra.mxu1 %v4185_v35  ;;  %v3886_v35 = vld [vmem:[%s17528_s8 + $0x78] sm:$0xff] }
 0x6d2   :  { %v13994_v32 = vand.u32 4294901760, %v3886_v35 }
 0x6d4   :  { %17787 = vst [vmem:[#allocation14_spill] sm:$0xff] %v13994_v32 }
 0x6d6   :  { %v13974_v63 = vpop.permute.xlu2 %7660  ;;  %v13996_v23 = vpop.permute.xlu1 %7670 }
 0x6d7   :  { %4196 = vmatmul.f32.gmra.mxu2 %v4195_v9  ;;  %4509 = vmatmul.f32.gmra.mxu3 %v13904_v29  ;;  %17782 = vst [vmem:[#allocation29_spill] sm:$0xff] %v13974_v63 }
 0x6d8   :  { %17788 = vst [vmem:[#allocation23_spill] sm:$0xff] %v13996_v23 }
 0x6d9   :  { %4699 = vmatmul.f32.gmra.mxu0 %v4192_v15  ;;  %4901 = vmatmul.f32.gmra.mxu1 %v4193_v6  ;;  %v4241_v15 = vand.u32 4294901760, %v4240_v62  ;;  %v13998_v6 = vpop.permute.xlu0 %7680 }
 0x6da   :  { %17789 = vst [vmem:[#allocation4_spill] sm:$0xff] %v13998_v6 }
 0x6db   :  { %v4242_v13 = vsub.f32 %v4240_v62, %v4241_v15 }
 0x6de   :  { %v13987_v58 = vpop.permute.xlu2 %7675 }
 0x6df   :  { %4204 = vmatmul.f32.gmra.mxu2 %v4203_v36  ;;  %4513 = vmatmul.f32.gmra.mxu3 %v13913_v25  ;;  %17786 = vst [vmem:[#allocation6_spill] sm:$0xff] %v13987_v58 }
 0x6e1   :  { %4704 = vmatmul.f32.gmra.mxu0 %v4200_v11  ;;  %4907 = vmatmul.f32.gmra.mxu1 %v4201_v16  ;;  %v4248_v11 = vsub.f32 %v3886_v35, %v13994_v32  ;;  %v4243_v16 = vand.u32 4294901760, %v4242_v13  ;;  %v4266_v35 = vsub.f32 %v4264_v24, %v4265_v2 }
 0x6e3   :  { %v4249_v1 = vand.u32 4294901760, %v4248_v11 }
 0x6e5   :  { %v4250_v31 = vsub.f32 %v4248_v11, %v4249_v1 }
 0x6e6   :  { %v14005_v9 = vpop.permute.xlu2 %7690 }
 0x6e7   :  { %4212 = vmatmul.f32.gmra.mxu2 %v4211_v38  ;;  %4517 = vmatmul.f32.gmra.mxu3 %v13922_v41  ;;  %17790 = vst [vmem:[#allocation19_spill] sm:$0xff] %v14005_v9  ;;  %v4251_v38 = vand.u32 4294901760, %v4250_v31 }
 0x6e9   :  { %4709 = vmatmul.f32.gmra.mxu0 %v4208_v51  ;;  %4913 = vmatmul.f32.gmra.mxu1 %v4209_v53  ;;  %v14007_v51 = vand.u32 4294901760, %v3887_v55  ;;  %v14011_v53 = vpop.permute.xlu1 %7685 }
 0x6ea   :  { %17792 = vst [vmem:[#allocation13_spill] sm:$0xff] %v14011_v53 }
 0x6eb   :  { %17791 = vst [vmem:[#allocation20_spill] sm:$0xff] %v14007_v51  ;;  %v4256_v36 = vsub.f32 %v3887_v55, %v14007_v51 }
 0x6ee   :  { %v14018_v22 = vpop.permute.xlu2 %7705 }
 0x6ef   :  { %4220 = vmatmul.f32.gmra.mxu2 %v4219_v40  ;;  %4521 = vmatmul.f32.gmra.mxu3 %v13935_v26  ;;  %17794 = vst [vmem:[#allocation7_spill] sm:$0xff] %v14018_v22  ;;  %v3889_v40 = vld [vmem:[%s17528_s8 + $0x90] sm:$0xff] }
 0x6f1   :  { %4714 = vmatmul.f32.gmra.mxu0 %v4216_v57  ;;  %4919 = vmatmul.f32.gmra.mxu1 %v4217_v56  ;;  %v14016_v57 = vpop.permute.xlu0 %7695  ;;  %v4257_v56 = vand.u32 4294901760, %v4256_v36 }
 0x6f2   :  { %17793 = vst [vmem:[#allocation17_spill] sm:$0xff] %v14016_v57 }
 0x6f7   :  { %4228 = vmatmul.f32.gmra.mxu2 %v4227_v39  ;;  %4525 = vmatmul.f32.gmra.mxu3 %v13948_v21  ;;  %v14031_v39 = vand.u32 4294901760, %v3889_v40 }
 0x6f9   :  { %4719 = vmatmul.f32.gmra.mxu0 %v4224_v10  ;;  %4925 = vmatmul.f32.gmra.mxu1 %v4225_v3  ;;  %v4258_v10 = vsub.f32 %v4256_v36, %v4257_v56  ;;  %v14027_v3 = vpop.permute.xlu1 %7700  ;;  %v14029_v52 = vpop.permute.xlu0 %7710  ;;  %17798 = vst [vmem:[#allocation37_spill] sm:$0xff] %v14031_v39 }
 0x6fa   :  { %17796 = vst [vmem:[#allocation10_spill] sm:$0xff] %v14027_v3 }
 0x6fb   :  { %17797 = vst [vmem:[#allocation3_spill] sm:$0xff] %v14029_v52 }
 0x6ff   :  { %4236 = vmatmul.f32.gmra.mxu2 %v4235_v20  ;;  %4529 = vmatmul.f32.gmra.mxu3 %v13961_v18  ;;  %v4272_v20 = vsub.f32 %v3889_v40, %v14031_v39 }
 0x701   :  { %4724 = vmatmul.f32.gmra.mxu0 %v4232_v45  ;;  %4931 = vmatmul.f32.gmra.mxu1 %v4233_v30  ;;  %v4259_v45 = vand.u32 4294901760, %v4258_v10  ;;  %v14033_v30 = vpop.permute.xlu2 %7720  ;;  %v4273_v55 = vand.u32 4294901760, %v4272_v20  ;;  %v14044_v31 = vpop.permute.xlu0 %7725 }
 0x702   :  { %17799 = vst [vmem:[#allocation38_spill] sm:$0xff] %v14033_v30 }
 0x703   :  { %17802 = vst [vmem:[#allocation41_spill] sm:$0xff] %v14044_v31  ;;  %v4274_v10 = vsub.f32 %v4272_v20, %v4273_v55 }
 0x705   :  { %v4275_v31 = vand.u32 4294901760, %v4274_v10 }
 0x707   :  { %4244 = vmatmul.f32.gmra.mxu2 %v4243_v16  ;;  %4533 = vmatmul.f32.gmra.mxu3 %v13972_v49 }
 0x709   :  { %4729 = vmatmul.f32.gmra.mxu0 %v4240_v62  ;;  %4937 = vmatmul.f32.gmra.mxu1 %v4241_v15  ;;  %v3890_v15 = vld [vmem:[%s17528_s8 + $0x98] sm:$0xff] }
 0x70a   :  { %v14040_v16 = vand.u32 4294901760, %v3890_v15 }
 0x70c   :  { %17800 = vst [vmem:[#allocation39_spill] sm:$0xff] %v14040_v16  ;;  %v4280_v40 = vsub.f32 %v3890_v15, %v14040_v16 }
 0x70e   :  { %v4281_v52 = vand.u32 4294901760, %v4280_v40 }
 0x70f   :  { %4252 = vmatmul.f32.gmra.mxu2 %v4251_v38  ;;  %4537 = vmatmul.f32.gmra.mxu3 %v13981_v17 }
 0x710   :  { %v4282_v9 = vsub.f32 %v4280_v40, %v4281_v52 }
 0x711   :  { %4734 = vmatmul.f32.gmra.mxu0 %v4248_v11  ;;  %4943 = vmatmul.f32.gmra.mxu1 %v4249_v1  ;;  %v4267_v11 = vand.u32 4294901760, %v4266_v35  ;;  %v14042_v1 = vpop.permute.xlu1 %7715 }
 0x712   :  { %17801 = vst [vmem:[#allocation40_spill] sm:$0xff] %v14042_v1 }
 0x716   :  { %v4660_v43 = vpop.f32.mrf.mxu0  ;;  %v4854_v62 = vpop.f32.mrf.mxu1 }
 0x717   :  { %4260 = vmatmul.f32.gmra.mxu2 %v4259_v45  ;;  %4541 = vmatmul.f32.gmra.mxu3 %v13994_v32  ;;  %v3938_v45 = vpop.permute.xlu2 %3937 }
 0x719   :  { %4739 = vmatmul.f32.gmra.mxu0 %v4256_v36  ;;  %4949 = vmatmul.f32.gmra.mxu1 %v4257_v56  ;;  %v3891_v36 = vld [vmem:[%s17528_s8 + $0xa0] sm:$0xff]  ;;  %v14053_v3 = vpop.permute.xlu1 %7730 }
 0x71a   :  { %v4133_v13 = vpop.f32.mrf.mxu2  ;;  %v14051_v22 = vand.u32 4294901760, %v3891_v36  ;;  %17804 = vst [vmem:[#allocation43_spill] sm:$0xff] %v14053_v3 }
 0x71b   :  { %v4134_v56 = vadd.f32 %v4133_v13, %v3938_v45 }
 0x71c   :  { %17803 = vst [vmem:[#allocation42_spill] sm:$0xff] %v14051_v22  ;;  %v4288_v13 = vsub.f32 %v3891_v36, %v14051_v22 }
 0x71e   :  { %v4665_v4 = vpop.f32.mrf.mxu0  ;;  %v4860_v38 = vpop.f32.mrf.mxu1 }
 0x71f   :  { %4268 = vmatmul.f32.gmra.mxu2 %v4267_v11  ;;  %4545 = vmatmul.f32.gmra.mxu3 %v14007_v51 }
 0x721   :  { %4744 = vmatmul.f32.gmra.mxu0 %v4264_v24  ;;  %4955 = vmatmul.f32.gmra.mxu1 %v4265_v2  ;;  %v3943_v2 = vpop.permute.xlu0 %3942 }
 0x722   :  { %v4141_v35 = vpop.f32.mrf.mxu2  ;;  %v4482_v30 = vpop.f32.mrf.mxu3 }
 0x723   :  { %v4483_v1 = vadd.f32 %v4482_v30, %v4134_v56  ;;  %v3892_v30 = vld [vmem:[%s17528_s8 + $0xa8] sm:$0xff]  ;;  %v4142_v10 = vadd.f32 %v4141_v35, %v3943_v2  ;;  %v4283_v56 = vand.u32 4294901760, %v4282_v9  ;;  %v3948_v35 = vpop.permute.xlu1 %3947 }
 0x724   :  { %v14062_v3 = vand.u32 4294901760, %v3892_v30 }
 0x725   :  { %v4661_v11 = vadd.f32 %v4660_v43, %v4483_v1 }
 0x726   :  { %v4670_v57 = vpop.f32.mrf.mxu0  ;;  %v4866_v15 = vpop.f32.mrf.mxu1  ;;  %17806 = vst [vmem:[#allocation45_spill] sm:$0xff] %v14062_v3  ;;  %v14066_v36 = vsub.f32 %v3892_v30, %v14062_v3 }
 0x727   :  { %4276 = vmatmul.f32.gmra.mxu2 %v4275_v31  ;;  %4549 = vmatmul.f32.gmra.mxu3 %v14020_v44  ;;  %v14057_v24 = vadd.f32 %v4854_v62, %v4661_v11  ;;  %v4289_v31 = vand.u32 4294901760, %v4288_v13 }
 0x728   :  { %v17554_v30 = vand.u32 4294901760, %v14066_v36 }
 0x729   :  { %17805 = vst [vmem:[#allocation44_spill] sm:$0xff] %v14057_v24  ;;  %4749 = vmatmul.f32.gmra.mxu0 %v4272_v20  ;;  %4961 = vmatmul.f32.gmra.mxu1 %v4273_v55  ;;  %v4290_v62 = vsub.f32 %v4288_v13, %v4289_v31  ;;  %v3893_v20 = vld [vmem:[%s17528_s8 + $0xb0] sm:$0xff] }
 0x72a   :  { %v4149_v43 = vpop.f32.mrf.mxu2  ;;  %v4486_v1 = vpop.f32.mrf.mxu3 }
 0x72b   :  { %v4487_v45 = vadd.f32 %v4486_v1, %v4142_v10  ;;  %v4150_v9 = vadd.f32 %v4149_v43, %v3948_v35  ;;  %v14075_v10 = vand.u32 4294901760, %v3893_v20  ;;  %v5446_v35 = vld [vmem:[%s17517_s1 + $0x68] sm:$0xff] }
 0x72d   :  { %v4666_v53 = vadd.f32 %v4665_v4, %v4487_v45  ;;  %17808 = vst [vmem:[#allocation47_spill] sm:$0xff] %v14075_v10  ;;  %v4291_v45 = vand.u32 4294901760, %v4290_v62 }
 0x72e   :  { %v4675_v6 = vpop.f32.mrf.mxu0  ;;  %v14073_v11 = vpop.f32.mrf.mxu1 }
 0x72f   :  { %4284 = vmatmul.f32.gmra.mxu2 %v4283_v56  ;;  %4553 = vmatmul.f32.gmra.mxu3 %v14031_v39  ;;  %v14071_v55 = vadd.f32 %v4860_v38, %v4666_v53  ;;  %v5448_v56 = vld [vmem:[%s17517_s1 + $0x78] sm:$0xff] }
 0x730   :  { %v14081_v53 = vand.u32 4294901760, %v5448_v56 }
 0x731   :  { %17807 = vst [vmem:[#allocation46_spill] sm:$0xff] %v14071_v55  ;;  %4754 = vmatmul.f32.gmra.mxu0 %v4280_v40  ;;  %4967 = vmatmul.f32.gmra.mxu1 %v4281_v52  ;;  %v5447_v40 = vld [vmem:[%s17517_s1 + $0x70] sm:$0xff]  ;;  %v14087_v52 = vsub.f32 %v3893_v20, %v14075_v10 }
 0x732   :  { %v4157_v4 = vpop.f32.mrf.mxu2  ;;  %v4490_v2 = vpop.f32.mrf.mxu3  ;;  %5486 = vmatpush.msra.mxu0 %v14081_v53  ;;  %v14091_v43 = vsub.f32 %v5448_v56, %v14081_v53  ;;  %v14093_v62 = vand.u32 4294901760, %v5447_v40 }
 0x733   :  { %v4491_v1 = vadd.f32 %v4490_v2, %v4150_v9  ;;  %v3953_v9 = vpop.permute.xlu2 %3952  ;;  %v3894_v2 = vld [vmem:[%s17528_s8 + $0xb8] sm:$0xff] }
 0x734   :  { %5488 = vmatpush.msra.mxu0 %v14093_v62  ;;  %v14112_v56 = vsub.f32 %v5447_v40, %v14093_v62  ;;  %v14129_v48 = vand.u32 4294901760, %v3894_v2 }
 0x735   :  { %v4671_v38 = vadd.f32 %v4670_v57, %v4491_v1  ;;  %v4298_v57 = vsub.f32 %v14066_v36, %v17554_v30  ;;  %v17555_v1 = vand.u32 4294901760, %v14091_v43  ;;  %v4158_v30 = vadd.f32 %v4157_v4, %v3953_v9 }
 0x736   :  { %v14114_v58 = vpop.f32.mrf.mxu0  ;;  %v17556_v4 = vand.u32 4294901760, %v14112_v56  ;;  %17810 = vst [vmem:[#allocation49_spill] sm:$0xff] %v14129_v48 }
 0x737   :  { %4292 = vmatmul.f32.gmra.mxu2 %v4291_v45  ;;  %4557 = vmatmul.f32.gmra.mxu3 %v14040_v16  ;;  %v14102_v20 = vadd.f32 %v4866_v15, %v4671_v38  ;;  %v14109_v45 = vand.u32 4294901760, %v5446_v35  ;;  %v5445_v15 = vld [vmem:[%s17517_s1 + $0x60] sm:$0xff]  ;;  %v5529_v63 = vsub.f32 %v14091_v43, %v17555_v1  ;;  %v4299_v9 = vand.u32 4294901760, %v4298_v57 }
 0x738   :  { %v14125_v40 = vand.u32 4294901760, %v5445_v15  ;;  %v5535_v28 = vsub.f32 %v14112_v56, %v17556_v4  ;;  %v3895_v4 = vld [vmem:[%s17528_s8 + $0xc0] sm:$0xff] }
 0x739   :  { %17809 = vst [vmem:[#allocation48_spill] sm:$0xff] %v14102_v20  ;;  %4759 = vmatmul.f32.gmra.mxu0 %v4288_v13  ;;  %4973 = vmatmul.f32.gmra.mxu1 %v4289_v31  ;;  %v14127_v13 = vpop.f32.mrf.mxu1  ;;  %v14132_v59 = vsub.f32 %v5446_v35, %v14109_v45  ;;  %v5530_v1 = vand.u32 4294901760, %v5529_v63  ;;  %v5443_v35 = vld [vmem:[%s17517_s1 + $0x50] sm:$0xff]  ;;  %v17811_v63 = vand.u32 4294901760, %v14087_v52  ;;  %v14186_v7 = vand.u32 4294901760, %v3895_v4 }
 0x73a   :  { %v4165_v38 = vpop.f32.mrf.mxu2  ;;  %v4494_v23 = vpop.f32.mrf.mxu3  ;;  %5490 = vmatpush.msra.mxu0 %v14109_v45  ;;  %v14145_v57 = vsub.f32 %v5445_v15, %v14125_v40  ;;  %v5536_v61 = vand.u32 4294901760, %v5535_v28  ;;  %v14160_v15 = vsub.f32 %v5444_v19, %v14141_v5  ;;  %v5442_v28 = vld [vmem:[%s17517_s1 + $0x48] sm:$0xff] }
 0x73b   :  { %v4495_v31 = vadd.f32 %v4494_v23, %v4158_v30  ;;  %v17557_v30 = vand.u32 4294901760, %v14132_v59  ;;  %v4306_v0 = vsub.f32 %v14087_v52, %v17811_v63  ;;  %5531 = vmatpush.msra.mxu1 %v5530_v1  ;;  %v3958_v19 = vpop.permute.xlu0 %3957  ;;  %v17813_v1 = vand.u32 4294901760, %v14066_v36  ;;  %v3968_v49 = vpop.permute.xlu2 %3967 }
 0x73c   :  { %5492 = vmatpush.msra.mxu0 %v14125_v40 }
 0x73d   :  { %v4676_v23 = vadd.f32 %v4675_v6, %v4495_v31  ;;  %v14157_v6 = vand.u32 4294901760, %v5443_v35  ;;  %v14164_v31 = vsub.f32 %v3894_v2, %v14129_v48  ;;  %v5541_v63 = vsub.f32 %v14132_v59, %v17557_v30  ;;  %5537 = vmatpush.msra.mxu1 %v5536_v61  ;;  %v5441_v2 = vld [vmem:[%s17517_s1 + $0x40] sm:$0xff] }
 0x73e   :  { %5494 = vmatpush.msra.mxu0 %v14141_v5  ;;  %v4166_v30 = vadd.f32 %v4165_v38, %v3958_v19  ;;  %v17814_v61 = vand.u32 4294901760, %v14145_v57  ;;  %v17815_v38 = vand.u32 4294901760, %v14160_v15  ;;  %v4307_v46 = vand.u32 4294901760, %v4306_v0 }
 0x73f   :  { %4300 = vmatmul.f32.gmra.mxu2 %v4299_v9  ;;  %4561 = vmatmul.f32.gmra.mxu3 %v14051_v22  ;;  %v14174_v8 = vadd.f32 %v14073_v11, %v4676_v23  ;;  %v14178_v9 = vand.u32 4294901760, %v5442_v28  ;;  %v14181_v12 = vsub.f32 %v5443_v35, %v14157_v6  ;;  %v5542_v11 = vand.u32 4294901760, %v5541_v63 }
 0x740   :  { %5496 = vmatpush.msra.mxu0 %v14157_v6  ;;  %v5547_v23 = vsub.f32 %v14145_v57, %v17814_v61  ;;  %v5553_v19 = vsub.f32 %v14160_v15, %v17815_v38  ;;  %v14204_v61 = vpop.f32.mrf.mxu0  ;;  %v5440_v38 = vld [vmem:[%s17517_s1 + $0x38] sm:$0xff] }
 0x741   :  { %17812 = vst [vmem:[#allocation50_spill] sm:$0xff] %v14174_v8  ;;  %4764 = vmatmul.f32.gmra.mxu0 %v14066_v36  ;;  %4979 = vmatmul.f32.gmra.mxu1 %v17813_v1  ;;  %v17562_v36 = vand.u32 4294901760, %v14181_v12  ;;  %v14199_v1 = vand.u32 4294901760, %v5441_v2  ;;  %v14202_v63 = vsub.f32 %v5442_v28, %v14178_v9  ;;  %v14215_v16 = vand.u32 4294901760, %v5440_v38  ;;  %v14217_v0 = vpop.f32.mrf.mxu1 }
 0x742   :  { %v4173_v50 = vpop.f32.mrf.mxu2  ;;  %v4498_v35 = vpop.f32.mrf.mxu3  ;;  %5498 = vmatpush.msra.mxu0 %v14178_v9  ;;  %5543 = vmatpush.msra.mxu1 %v5542_v11  ;;  %v5548_v8 = vand.u32 4294901760, %v5547_v23  ;;  %v5554_v22 = vand.u32 4294901760, %v5553_v19  ;;  %v14221_v11 = vsub.f32 %v3895_v4, %v14186_v7  ;;  %v5438_v4 = vld [vmem:[%s17517_s1 + $0x28] sm:$0xff] }
 0x743   :  { %v4499_v27 = vadd.f32 %v4498_v35, %v4166_v30  ;;  %v5559_v20 = vsub.f32 %v14181_v12, %v17562_v36  ;;  %v17563_v28 = vand.u32 4294901760, %v14202_v63  ;;  %v14224_v23 = vsub.f32 %v5441_v2, %v14199_v1  ;;  %v5439_v35 = vld [vmem:[%s17517_s1 + $0x30] sm:$0xff] }
 0x744   :  { %5500 = vmatpush.msra.mxu0 %v14199_v1  ;;  %5549 = vmatpush.msra.mxu1 %v5548_v8  ;;  %v14233_v42 = vand.u32 4294901760, %v5439_v35  ;;  %v17816_v8 = vand.u32 4294901760, %v14164_v31 }
 0x745   :  { %v4681_v30 = vadd.f32 %v14114_v58, %v4499_v27  ;;  %v5560_v19 = vand.u32 4294901760, %v5559_v20  ;;  %v5565_v36 = vsub.f32 %v14202_v63, %v17563_v28  ;;  %v14236_v27 = vsub.f32 %v5440_v38, %v14215_v16  ;;  %v3963_v28 = vpop.permute.xlu1 %3962 }
 0x746   :  { %5502 = vmatpush.msra.mxu0 %v14215_v16  ;;  %v4314_v58 = vsub.f32 %v14164_v31, %v17816_v8  ;;  %5555 = vmatpush.msra.mxu1 %v5554_v22  ;;  %v14257_v20 = vsub.f32 %v5439_v35, %v14233_v42  ;;  %v4174_v55 = vadd.f32 %v4173_v50, %v3963_v28  ;;  %v17819_v22 = vand.u32 4294901760, %v14224_v23  ;;  %v5437_v8 = vld [vmem:[%s17517_s1 + $0x20] sm:$0xff] }
 0x747   :  { %4308 = vmatmul.f32.gmra.mxu2 %v4307_v46  ;;  %4565 = vmatmul.f32.gmra.mxu3 %v14062_v3  ;;  %v14247_v2 = vadd.f32 %v14127_v13, %v4681_v30  ;;  %v3896_v46 = vld [vmem:[%s17528_s8 + $0xc8] sm:$0xff]  ;;  %v5566_v38 = vand.u32 4294901760, %v5565_v36  ;;  %v14254_v3 = vand.u32 4294901760, %v5438_v4  ;;  %v17818_v13 = vand.u32 4294901760, %v14087_v52 }
 0x748   :  { %5504 = vmatpush.msra.mxu0 %v14233_v42  ;;  %v5571_v36 = vsub.f32 %v14224_v23, %v17819_v22  ;;  %5561 = vmatpush.msra.mxu1 %v5560_v19  ;;  %v17820_v50 = vand.u32 4294901760, %v14236_v27  ;;  %v14274_v35 = vand.u32 4294901760, %v5437_v8  ;;  %v4315_v30 = vand.u32 4294901760, %v4314_v58  ;;  %v5436_v19 = vld [vmem:[%s17517_s1 + $0x18] sm:$0xff] }
 0x749   :  { %17817 = vst [vmem:[#allocation51_spill] sm:$0xff] %v14247_v2  ;;  %4769 = vmatmul.f32.gmra.mxu0 %v14087_v52  ;;  %4985 = vmatmul.f32.gmra.mxu1 %v17818_v13  ;;  %v17574_v52 = vand.u32 4294901760, %v14257_v20  ;;  %v14277_v13 = vsub.f32 %v5438_v4, %v14254_v3  ;;  %v14279_v24 = vand.u32 4294901760, %v3896_v46  ;;  %v14289_v32 = vand.u32 4294901760, %v5436_v19 }
 0x74a   :  { %v4181_v2 = vpop.f32.mrf.mxu2  ;;  %v4502_v39 = vpop.f32.mrf.mxu3  ;;  %v5577_v28 = vsub.f32 %v14236_v27, %v17820_v50  ;;  %5506 = vmatpush.msra.mxu0 %v14254_v3  ;;  %v5572_v44 = vand.u32 4294901760, %v5571_v36  ;;  %5567 = vmatpush.msra.mxu1 %v5566_v38  ;;  %v17822_v58 = vand.u32 4294901760, %v14221_v11  ;;  %v14296_v38 = vsub.f32 %v5437_v8, %v14274_v35 }
 0x74b   :  { %v4503_v22 = vadd.f32 %v4502_v39, %v4174_v55  ;;  %17821 = vst [vmem:[#allocation52_spill] sm:$0xff] %v14279_v24  ;;  %v5583_v51 = vsub.f32 %v14257_v20, %v17574_v52  ;;  %v17577_v4 = vand.u32 4294901760, %v14277_v13  ;;  %v4690_v39 = vpop.f32.mrf.mxu0  ;;  %v14312_v8 = vsub.f32 %v3896_v46, %v14279_v24 }
 0x74c   :  { %v5578_v50 = vand.u32 4294901760, %v5577_v28  ;;  %5508 = vmatpush.msra.mxu0 %v14274_v35  ;;  %v4322_v36 = vsub.f32 %v14221_v11, %v17822_v58  ;;  %v5435_v28 = vld [vmem:[%s17517_s1 + $0x10] sm:$0xff]  ;;  %5573 = vmatpush.msra.mxu1 %v5572_v44  ;;  %v4890_v58 = vpop.f32.mrf.mxu1  ;;  %v5434_v44 = vld [vmem:[%s17517_s1 + $0x8] sm:$0xff]  ;;  %v4182_v18 = vadd.f32 %v4181_v2, %v3968_v49 }
 0x74d   :  { %v4686_v55 = vadd.f32 %v14204_v61, %v4503_v22  ;;  %v5584_v52 = vand.u32 4294901760, %v5583_v51  ;;  %v5589_v17 = vsub.f32 %v14277_v13, %v17577_v4  ;;  %v14305_v61 = vand.u32 4294901760, %v5435_v28 }
 0x74e   :  { %5510 = vmatpush.msra.mxu0 %v14289_v32  ;;  %v14308_v22 = vsub.f32 %v5436_v19, %v14289_v32  ;;  %v3897_v19 = vld [vmem:[%s17528_s8 + $0xd0] sm:$0xff]  ;;  %5579 = vmatpush.msra.mxu1 %v5578_v50  ;;  %v5433_v50 = vld [vmem:[%s17517_s1] sm:$0xff] }
 0x74f   :  { %4316 = vmatmul.f32.gmra.mxu2 %v4315_v30  ;;  %4569 = vmatmul.f32.gmra.mxu3 %v14075_v10  ;;  %v14319_v4 = vadd.f32 %v14217_v0, %v4686_v55  ;;  %v5590_v30 = vand.u32 4294901760, %v5589_v17  ;;  %v14326_v10 = vand.u32 4294901760, %v5434_v44  ;;  %v14329_v51 = vsub.f32 %v5435_v28, %v14305_v61 }
 0x750   :  { %5512 = vmatpush.msra.mxu0 %v14305_v61  ;;  %v17824_v0 = vand.u32 4294901760, %v14164_v31  ;;  %v4323_v55 = vand.u32 4294901760, %v4322_v36  ;;  %5585 = vmatpush.msra.mxu1 %v5584_v52  ;;  %v17826_v28 = vand.u32 4294901760, %v14308_v22  ;;  %v14345_v2 = vand.u32 4294901760, %v5433_v50 }
 0x751   :  { %17823 = vst [vmem:[#allocation53_spill] sm:$0xff] %v14319_v4  ;;  %4774 = vmatmul.f32.gmra.mxu0 %v14164_v31  ;;  %v17825_v4 = vand.u32 4294901760, %v14296_v38  ;;  %v17595_v31 = vand.u32 4294901760, %v14329_v51  ;;  %v14348_v36 = vsub.f32 %v5434_v44, %v14326_v10  ;;  %v14351_v26 = vand.u32 4294901760, %v3897_v19 }
 0x752   :  { %4991 = vmatmul.f32.gmra.mxu1 %v17824_v0  ;;  %v4189_v46 = vpop.f32.mrf.mxu2  ;;  %v4506_v21 = vpop.f32.mrf.mxu3  ;;  %v5601_v49 = vsub.f32 %v14308_v22, %v17826_v28  ;;  %5514 = vmatpush.msra.mxu0 %v14326_v10  ;;  %v4329_v0 = vand.u32 4294901760, %v14312_v8  ;;  %v14359_v29 = vsub.f32 %v5433_v50, %v14345_v2 }
 0x753   :  { %v5595_v17 = vsub.f32 %v14296_v38, %v17825_v4  ;;  %v4507_v4 = vadd.f32 %v4506_v21, %v4182_v18  ;;  %17827 = vst [vmem:[#allocation54_spill] sm:$0xff] %v14351_v26  ;;  %5591 = vmatpush.msra.mxu1 %v5590_v30  ;;  %v5607_v28 = vsub.f32 %v14329_v51, %v17595_v31  ;;  %v17594_v25 = vand.u32 4294901760, %v14348_v36 }
 0x754   :  { %v5602_v52 = vand.u32 4294901760, %v5601_v49  ;;  %5516 = vmatpush.msra.mxu0 %v14345_v2  ;;  %v17598_v30 = vand.u32 4294901760, %v14359_v29  ;;  %v4330_v49 = vsub.f32 %v14312_v8, %v4329_v0  ;;  %v14369_v50 = vsub.f32 %v3897_v19, %v14351_v26 }
 0x755   :  { %v5596_v41 = vand.u32 4294901760, %v5595_v17  ;;  %v4691_v44 = vadd.f32 %v4690_v39, %v4507_v4  ;;  %v5608_v21 = vand.u32 4294901760, %v5607_v28  ;;  %v5613_v18 = vsub.f32 %v14348_v36, %v17594_v25  ;;  %v4695_v17 = vpop.f32.mrf.mxu0  ;;  %v3973_v4 = vpop.permute.xlu0 %3972 }
 0x756   :  { %5629 = vmatpush.msrb.mxu0 %v14091_v43  ;;  %v4896_v25 = vpop.f32.mrf.mxu1  ;;  %v4190_v31 = vadd.f32 %v4189_v46, %v3973_v4  ;;  %v3899_v4 = vld [vmem:[%s17528_s8 + $0xe0] sm:$0xff] }
 0x757   :  { %5597 = vmatpush.msra.mxu1 %v5596_v41  ;;  %4324 = vmatmul.f32.gmra.mxu2 %v4323_v55  ;;  %v14371_v39 = vadd.f32 %v4890_v58, %v4691_v44  ;;  %v3898_v41 = vld [vmem:[%s17528_s8 + $0xd8] sm:$0xff]  ;;  %v5614_v28 = vand.u32 4294901760, %v5613_v18  ;;  %v5619_v55 = vsub.f32 %v14359_v29, %v17598_v30  ;;  %v17829_v58 = vand.u32 4294901760, %v14221_v11 }
 0x758   :  { %4573 = vmatmul.f32.gmra.mxu3 %v14129_v48  ;;  %5632 = vmatpush.msrb.mxu0 %v14112_v56  ;;  %v4331_v18 = vand.u32 4294901760, %v4330_v49  ;;  %v4337_v48 = vand.u32 4294901760, %v14369_v50  ;;  %v14385_v30 = vand.u32 4294901760, %v3898_v41  ;;  %v3978_v49 = vpop.permute.xlu1 %3977 }
 0x759   :  { %17828 = vst [vmem:[#allocation55_spill] sm:$0xff] %v14371_v39  ;;  %5603 = vmatpush.msra.mxu1 %v5602_v52  ;;  %4779 = vmatmul.f32.gmra.mxu0 %v14221_v11  ;;  %v5620_v39 = vand.u32 4294901760, %v5619_v55 }
 0x75a   :  { %4997 = vmatmul.f32.gmra.mxu1 %v17829_v58  ;;  %v4197_v19 = vpop.f32.mrf.mxu2  ;;  %v4510_v44 = vpop.f32.mrf.mxu3  ;;  %5635 = vmatpush.msrb.mxu0 %v14132_v59  ;;  %17830 = vst [vmem:[#allocation56_spill] sm:$0xff] %v14385_v30  ;;  %v4338_v11 = vsub.f32 %v14369_v50, %v4337_v48 }
 0x75b   :  { %5609 = vmatpush.msra.mxu1 %v5608_v21  ;;  %v4511_v52 = vadd.f32 %v4510_v44, %v4190_v31  ;;  %v4344_v21 = vsub.f32 %v3898_v41, %v14385_v30  ;;  %v14402_v44 = vand.u32 4294901760, %v3899_v4 }
 0x75c   :  { %5638 = vmatpush.msrb.mxu0 %v14145_v57  ;;  %v4339_v41 = vand.u32 4294901760, %v4338_v11  ;;  %v3900_v11 = vld [vmem:[%s17528_s8 + $0xe8] sm:$0xff] }
 0x75d   :  { %5615 = vmatpush.msra.mxu1 %v5614_v28  ;;  %v4696_v46 = vadd.f32 %v4695_v17, %v4511_v52  ;;  %v4700_v17 = vpop.f32.mrf.mxu0  ;;  %v4345_v58 = vand.u32 4294901760, %v4344_v21  ;;  %17831 = vst [vmem:[#allocation57_spill] sm:$0xff] %v14402_v44 }
 0x75e   :  { %5641 = vmatpush.msrb.mxu0 %v14160_v15  ;;  %v4902_v52 = vpop.f32.mrf.mxu1 }
 0x75f   :  { %5621 = vmatpush.msra.mxu1 %v5620_v39  ;;  %4332 = vmatmul.f32.gmra.mxu2 %v4331_v18  ;;  %v14392_v31 = vadd.f32 %v4896_v25, %v4696_v46  ;;  %v4198_v39 = vadd.f32 %v4197_v19, %v3978_v49  ;;  %v3983_v46 = vpop.permute.xlu2 %3982 }
 0x760   :  { %4577 = vmatmul.f32.gmra.mxu3 %v14186_v7  ;;  %5644 = vmatpush.msrb.mxu0 %v14181_v12 }
 0x761   :  { %5682 = vmatpush.msrb.mxu1 %v14081_v53  ;;  %4784 = vmatmul.f32.gmra.mxu0 %v14312_v8  ;;  %v4346_v8 = vsub.f32 %v4344_v21, %v4345_v58 }
 0x762   :  { %5003 = vmatmul.f32.gmra.mxu1 %v4329_v0  ;;  %v4205_v28 = vpop.f32.mrf.mxu2  ;;  %v4514_v55 = vpop.f32.mrf.mxu3  ;;  %5647 = vmatpush.msrb.mxu0 %v14202_v63  ;;  %v4352_v0 = vsub.f32 %v3899_v4, %v14402_v44 }
 0x763   :  { %5684 = vmatpush.msrb.mxu1 %v14093_v62  ;;  %v4515_v25 = vadd.f32 %v4514_v55, %v4198_v39  ;;  %v4206_v49 = vadd.f32 %v4205_v28, %v3983_v46  ;;  %v4347_v55 = vand.u32 4294901760, %v4346_v8  ;;  %v3988_v46 = vpop.permute.xlu0 %3987 }
 0x764   :  { %5650 = vmatpush.msrb.mxu0 %v14224_v23 }
 0x765   :  { %5686 = vmatpush.msrb.mxu1 %v14109_v45  ;;  %v4701_v19 = vadd.f32 %v4700_v17, %v4515_v25  ;;  %v4353_v25 = vand.u32 4294901760, %v4352_v0 }
 0x766   :  { %5653 = vmatpush.msrb.mxu0 %v14236_v27 }
 0x767   :  { %5688 = vmatpush.msrb.mxu1 %v14125_v40  ;;  %4340 = vmatmul.f32.gmra.mxu2 %v4339_v41  ;;  %v14410_v18 = vadd.f32 %v4902_v52, %v4701_v19  ;;  %v14420_v41 = vand.u32 4294901760, %v3900_v11  ;;  %v4705_v52 = vpop.f32.mrf.mxu0  ;;  %v4908_v19 = vpop.f32.mrf.mxu1 }
 0x768   :  { %4581 = vmatmul.f32.gmra.mxu3 %v14279_v24  ;;  %5656 = vmatpush.msrb.mxu0 %v14257_v20 }
 0x769   :  { %17832 = vst [vmem:[#allocation58_spill] sm:$0xff] %v14410_v18  ;;  %5690 = vmatpush.msrb.mxu1 %v14141_v5  ;;  %4789 = vmatmul.f32.gmra.mxu0 %v14369_v50  ;;  %v4360_v50 = vsub.f32 %v3900_v11, %v14420_v41 }
 0x76a   :  { %5009 = vmatmul.f32.gmra.mxu1 %v4337_v48  ;;  %v4213_v17 = vpop.f32.mrf.mxu2  ;;  %v4518_v39 = vpop.f32.mrf.mxu3  ;;  %5659 = vmatpush.msrb.mxu0 %v14277_v13  ;;  %17833 = vst [vmem:[#allocation59_spill] sm:$0xff] %v14420_v41  ;;  %v4354_v48 = vsub.f32 %v4352_v0, %v4353_v25 }
 0x76b   :  { %5692 = vmatpush.msrb.mxu1 %v14157_v6  ;;  %v4519_v4 = vadd.f32 %v4518_v39, %v4206_v49  ;;  %v3901_v49 = vld [vmem:[%s17528_s8 + $0xf0] sm:$0xff]  ;;  %v4214_v39 = vadd.f32 %v4213_v17, %v3988_v46  ;;  %v3993_v17 = vpop.permute.xlu1 %3992 }
 0x76c   :  { %5662 = vmatpush.msrb.mxu0 %v14296_v38 }
 0x76d   :  { %5694 = vmatpush.msrb.mxu1 %v14178_v9  ;;  %v4706_v28 = vadd.f32 %v4705_v52, %v4519_v4  ;;  %v4355_v52 = vand.u32 4294901760, %v4354_v48  ;;  %v3902_v48 = vld [vmem:[%s17528_s8 + $0xf8] sm:$0xff] }
 0x76e   :  { %5665 = vmatpush.msrb.mxu0 %v14308_v22 }
 0x76f   :  { %5696 = vmatpush.msrb.mxu1 %v14199_v1  ;;  %4348 = vmatmul.f32.gmra.mxu2 %v4347_v55  ;;  %v14428_v8 = vadd.f32 %v4908_v19, %v4706_v28  ;;  %v4361_v28 = vand.u32 4294901760, %v4360_v50  ;;  %v14439_v19 = vand.u32 4294901760, %v3901_v49 }
 0x770   :  { %4585 = vmatmul.f32.gmra.mxu3 %v14351_v26  ;;  %5668 = vmatpush.msrb.mxu0 %v14329_v51 }
 0x771   :  { %17834 = vst [vmem:[#allocation60_spill] sm:$0xff] %v14428_v8  ;;  %5698 = vmatpush.msrb.mxu1 %v14215_v16  ;;  %4794 = vmatmul.f32.gmra.mxu0 %v4344_v21  ;;  %v4362_v21 = vsub.f32 %v4360_v50, %v4361_v28  ;;  %v14453_v8 = vand.u32 4294901760, %v3902_v48 }
 0x772   :  { %5015 = vmatmul.f32.gmra.mxu1 %v4345_v58  ;;  %v4221_v4 = vpop.f32.mrf.mxu2  ;;  %v4522_v55 = vpop.f32.mrf.mxu3  ;;  %5671 = vmatpush.msrb.mxu0 %v14348_v36  ;;  %17836 = vst [vmem:[#allocation62_spill] sm:$0xff] %v14439_v19  ;;  %v4368_v58 = vsub.f32 %v3901_v49, %v14439_v19 }
 0x773   :  { %5700 = vmatpush.msrb.mxu1 %v14233_v42  ;;  %v14437_v11 = vadd.f32 %v4522_v55, %v4214_v39  ;;  %v4222_v46 = vadd.f32 %v4221_v4, %v3993_v17  ;;  %17838 = vst [vmem:[#allocation64_spill] sm:$0xff] %v14453_v8 }
 0x774   :  { %5674 = vmatpush.msrb.mxu0 %v14359_v29 }
 0x775   :  { %17835 = vst [vmem:[#allocation61_spill] sm:$0xff] %v14437_v11  ;;  %5702 = vmatpush.msrb.mxu1 %v14254_v3  ;;  %v4369_v11 = vand.u32 4294901760, %v4368_v58 }
 0x777   :  { %5704 = vmatpush.msrb.mxu1 %v14274_v35  ;;  %4356 = vmatmul.f32.gmra.mxu2 %v4355_v52  ;;  %v4370_v49 = vsub.f32 %v4368_v58, %v4369_v11 }
 0x778   :  { %4589 = vmatmul.f32.gmra.mxu3 %v14385_v30  ;;  %v4363_v30 = vand.u32 4294901760, %v4362_v21  ;;  %v5478_v21 = vld.sshfl [vmem:[#allocation1] sm:$0xff pattern:$0x75316420] }
 0x779   :  { %5706 = vmatpush.msrb.mxu1 %v14289_v32  ;;  %4799 = vmatmul.f32.gmra.mxu0 %v4352_v0  ;;  %v4376_v0 = vsub.f32 %v3902_v48, %v14453_v8  ;;  %v14461_v18 = vand.u32 4294901760, %v5478_v21 }
 0x77a   :  { %5021 = vmatmul.f32.gmra.mxu1 %v4353_v25  ;;  %v4229_v39 = vpop.f32.mrf.mxu2  ;;  %v4526_v55 = vpop.f32.mrf.mxu3 }
 0x77b   :  { %5708 = vmatpush.msrb.mxu1 %v14305_v61  ;;  %v14451_v52 = vadd.f32 %v4526_v55, %v4222_v46  ;;  %v3998_v25 = vpop.permute.xlu2 %3997  ;;  %v4377_v26 = vand.u32 4294901760, %v4376_v0 }
 0x77c   :  { %v4230_v4 = vadd.f32 %v4229_v39, %v3998_v25 }
 0x77d   :  { %17837 = vst [vmem:[#allocation63_spill] sm:$0xff] %v14451_v52  ;;  %5710 = vmatpush.msrb.mxu1 %v14326_v10  ;;  %v4371_v52 = vand.u32 4294901760, %v4370_v49  ;;  %v4008_v49 = vpop.permute.xlu1 %4007 }
 0x77f   :  { %5712 = vmatpush.msrb.mxu1 %v14345_v2  ;;  %4364 = vmatmul.f32.gmra.mxu2 %v4363_v30  ;;  %v4378_v30 = vsub.f32 %v4376_v0, %v4377_v26 }
 0x780   :  { %4593 = vmatmul.f32.gmra.mxu3 %v14402_v44  ;;  %v4003_v44 = vpop.permute.xlu0 %4002 }
 0x781   :  { %4804 = vmatmul.f32.gmra.mxu0 %v4360_v50  ;;  %v5518_v50 = vsub.f32 %v5478_v21, %v14461_v18  ;;  %v4379_v25 = vand.u32 4294901760, %v4378_v30  ;;  %v17840_v21 = vand.u32 4294901760, %v14091_v43 }
 0x782   :  { %5027 = vmatmul.f32.gmra.mxu1 %v4361_v28  ;;  %v4237_v17 = vpop.f32.mrf.mxu2  ;;  %v4530_v46 = vpop.f32.mrf.mxu3 }
 0x783   :  { %v14459_v55 = vadd.f32 %v4530_v46, %v4230_v4  ;;  %v4238_v24 = vadd.f32 %v4237_v17, %v4003_v44  ;;  %v5519_v4 = vand.u32 4294901760, %v5518_v50 }
 0x785   :  { %v5520_v46 = vsub.f32 %v5518_v50, %v5519_v4 }
 0x787   :  { %4372 = vmatmul.f32.gmra.mxu2 %v4371_v52 }
 0x788   :  { %4597 = vmatmul.f32.gmra.mxu3 %v14420_v41  ;;  %v4018_v43 = vpop.permute.xlu0 %4017 }
 0x789   :  { %4809 = vmatmul.f32.gmra.mxu0 %v4368_v58 }
 0x78a   :  { %5033 = vmatmul.f32.gmra.mxu1 %v4369_v11  ;;  %v4245_v28 = vpop.f32.mrf.mxu2  ;;  %v4534_v48 = vpop.f32.mrf.mxu3  ;;  %v5521_v11 = vand.u32 4294901760, %v5520_v46 }
 0x78b   :  { %v14465_v39 = vadd.f32 %v4534_v48, %v4238_v24  ;;  %v4246_v52 = vadd.f32 %v4245_v28, %v4008_v49  ;;  %v4013_v24 = vpop.permute.xlu2 %4012  ;;  %v17842_v28 = vand.u32 4294901760, %v14112_v56  ;;  %v17843_v48 = vand.u32 4294901760, %v14132_v59  ;;  %v5461_v49 = vld [vmem:[%s17517_s1 + $0xe0] sm:$0xff] }
 0x78f   :  { %4380 = vmatmul.f32.gmra.mxu2 %v4379_v25  ;;  %v17849_v25 = vand.u32 4294901760, %v14224_v23 }
 0x790   :  { %4601 = vmatmul.f32.gmra.mxu3 %v14439_v19 }
 0x791   :  { %4814 = vmatmul.f32.gmra.mxu0 %v4376_v0 }
 0x792   :  { %5039 = vmatmul.f32.gmra.mxu1 %v4377_v26  ;;  %v4253_v41 = vpop.f32.mrf.mxu2  ;;  %v4538_v44 = vpop.f32.mrf.mxu3 }
 0x793   :  { %v14468_v58 = vadd.f32 %v4538_v44, %v4246_v52  ;;  %v4254_v17 = vadd.f32 %v4253_v41, %v4013_v24  ;;  %v17844_v41 = vand.u32 4294901760, %v14145_v57  ;;  %v17847_v57 = vand.u32 4294901760, %v14181_v12  ;;  %v5462_v12 = vld [vmem:[%s17517_s1 + $0xe8] sm:$0xff] }
 0x794   :  { %v17852_v24 = vand.u32 4294901760, %v14257_v20 }
 0x795   :  { %17839 = vst [vmem:[#allocation65_spill] sm:$0xff] %v14468_v58 }
 0x797   :  { %5108 = vmatmul.f32.vlgmr.msra.gmra.mxu2 %v13709_v14 }
 0x798   :  { %4605 = vmatmul.f32.gmra.mxu3 %v14453_v8 }
 0x799   :  { %5522 = vmatmul.f32.vlgmr.msra.gmra.mxu0 %v5521_v11  ;;  %v5460_v11 = vld [vmem:[%s17517_s1 + $0xd8] sm:$0xff] }
 0x79a   :  { %5623 = vmatmul.f32.vlgmr.msra.gmra.mxu1 %v14461_v18  ;;  %5723 = vmatpush.msra.mxu0 %v17840_v21  ;;  %v4261_v0 = vpop.f32.mrf.mxu2  ;;  %v4542_v26 = vpop.f32.mrf.mxu3  ;;  %v17853_v21 = vand.u32 4294901760, %v14277_v13  ;;  %v17854_v13 = vand.u32 4294901760, %v14296_v38  ;;  %v17855_v38 = vand.u32 4294901760, %v14308_v22  ;;  %v5456_v22 = vld [vmem:[%s17517_s1 + $0xb8] sm:$0xff] }
 0x79b   :  { %5790 = vmatpush.msra.mxu1 %v14081_v53  ;;  %v14476_v30 = vadd.f32 %v4542_v26, %v4254_v17  ;;  %v4262_v53 = vadd.f32 %v4261_v0, %v4018_v43  ;;  %v5459_v17 = vld [vmem:[%s17517_s1 + $0xd0] sm:$0xff]  ;;  %v5458_v26 = vld [vmem:[%s17517_s1 + $0xc8] sm:$0xff] }
 0x79c   :  { %5727 = vmatpush.msra.mxu0 %v17842_v28  ;;  %v4028_v28 = vpop.permute.xlu2 %4027  ;;  %v14570_v43 = vand.u32 4294901760, %v5459_v17 }
 0x79d   :  { %17841 = vst [vmem:[#allocation66_spill] sm:$0xff] %v14476_v30  ;;  %5792 = vmatpush.msra.mxu1 %v14093_v62  ;;  %v17845_v62 = vand.u32 4294901760, %v14160_v15  ;;  %v17848_v15 = vand.u32 4294901760, %v14202_v63 }
 0x79e   :  { %5731 = vmatpush.msra.mxu0 %v17843_v48 }
 0x79f   :  { %5794 = vmatpush.msra.mxu1 %v14109_v45  ;;  %5112 = vmatmul.f32.gmra.mxu2 %v13765_v54 }
 0x7a0   :  { %5269 = vmatmul.f32.vlgmr.msra.gmra.mxu3 %v13709_v14  ;;  %5735 = vmatpush.msra.mxu0 %v17844_v41  ;;  %v5464_v14 = vld [vmem:[%s17517_s1 + $0xf8] sm:$0xff]  ;;  %v5457_v41 = vld [vmem:[%s17517_s1 + $0xc0] sm:$0xff] }
 0x7a1   :  { %5796 = vmatpush.msra.mxu1 %v14125_v40  ;;  %5677 = vmatmul.f32.vlgmr.msrb.gmra.mxu0 %v5518_v50  ;;  %v5463_v40 = vld [vmem:[%s17517_s1 + $0xf0] sm:$0xff]  ;;  %v14508_v50 = vpop.f32.mrf.mxu0 }
 0x7a2   :  { %5716 = vmatmul.f32.vlgmr.msrb.gmra.mxu1 %v5519_v4  ;;  %5739 = vmatpush.msra.mxu0 %v17845_v62  ;;  %v4269_v59 = vpop.f32.mrf.mxu2  ;;  %v4546_v56 = vpop.f32.mrf.mxu3  ;;  %v14518_v63 = vand.u32 4294901760, %v5463_v40  ;;  %v14577_v62 = vand.u32 4294901760, %v5458_v26 }
 0x7a3   :  { %5798 = vmatpush.msra.mxu1 %v14141_v5  ;;  %v14492_v45 = vadd.f32 %v4546_v56, %v4262_v53  ;;  %v14506_v5 = vand.u32 4294901760, %v5464_v14 }
 0x7a4   :  { %5743 = vmatpush.msra.mxu0 %v17847_v57 }
 0x7a5   :  { %17846 = vst [vmem:[#allocation67_spill] sm:$0xff] %v14492_v45  ;;  %5800 = vmatpush.msra.mxu1 %v14157_v6  ;;  %v4023_v6 = vpop.permute.xlu1 %4022  ;;  %v14529_v23 = vsub.f32 %v5464_v14, %v14506_v5 }
 0x7a6   :  { %5747 = vmatpush.msra.mxu0 %v17848_v15  ;;  %v4270_v4 = vadd.f32 %v4269_v59, %v4023_v6 }
 0x7a7   :  { %5802 = vmatpush.msra.mxu1 %v14178_v9  ;;  %5116 = vmatmul.f32.gmra.mxu2 %v13807_v33  ;;  %v14520_v9 = vpop.f32.mrf.mxu1  ;;  %v17616_v0 = vand.u32 4294901760, %v14529_v23 }
 0x7a8   :  { %5273 = vmatmul.f32.gmra.mxu3 %v13765_v54  ;;  %5751 = vmatpush.msra.mxu0 %v17849_v25  ;;  %v17850_v54 = vand.u32 4294901760, %v14236_v27  ;;  %v14542_v27 = vsub.f32 %v5463_v40, %v14518_v63 }
 0x7a9   :  { %5804 = vmatpush.msra.mxu1 %v14199_v1  ;;  %v14531_v1 = vand.u32 4294901760, %v5462_v12  ;;  %v14575_v53 = vpop.f32.mrf.mxu0  ;;  %v5870_v56 = vsub.f32 %v14529_v23, %v17616_v0 }
 0x7aa   :  { %5755 = vmatpush.msra.mxu0 %v17850_v54  ;;  %v4277_v52 = vpop.f32.mrf.mxu2  ;;  %v4550_v46 = vpop.f32.mrf.mxu3  ;;  %v5455_v54 = vld [vmem:[%s17517_s1 + $0xb0] sm:$0xff] }
 0x7ab   :  { %5806 = vmatpush.msra.mxu1 %v14215_v16  ;;  %v14533_v44 = vadd.f32 %v4550_v46, %v4270_v4  ;;  %v14544_v16 = vand.u32 4294901760, %v5461_v49  ;;  %v14554_v20 = vsub.f32 %v5462_v12, %v14531_v1  ;;  %v14593_v12 = vand.u32 4294901760, %v5457_v41 }
 0x7ac   :  { %5759 = vmatpush.msra.mxu0 %v17852_v24  ;;  %v14606_v4 = vsub.f32 %v5459_v17, %v14570_v43  ;;  %v17859_v17 = vand.u32 4294901760, %v14359_v29  ;;  %v5453_v29 = vld [vmem:[%s17517_s1 + $0xa0] sm:$0xff] }
 0x7ad   :  { %17851 = vst [vmem:[#allocation68_spill] sm:$0xff] %v14533_v44  ;;  %5808 = vmatpush.msra.mxu1 %v14233_v42  ;;  %v14556_v42 = vand.u32 4294901760, %v5460_v11  ;;  %v14568_v48 = vsub.f32 %v5461_v49, %v14544_v16  ;;  %v17613_v14 = vand.u32 4294901760, %v14554_v20  ;;  %v14609_v49 = vsub.f32 %v5458_v26, %v14577_v62 }
 0x7ae   :  { %5763 = vmatpush.msra.mxu0 %v17853_v21  ;;  %v14626_v24 = vsub.f32 %v5457_v41, %v14593_v12 }
 0x7af   :  { %5810 = vmatpush.msra.mxu1 %v14254_v3  ;;  %5120 = vmatmul.f32.gmra.mxu2 %v13834_v37  ;;  %v17614_v3 = vand.u32 4294901760, %v14542_v27  ;;  %v14587_v57 = vsub.f32 %v5460_v11, %v14556_v42  ;;  %v14589_v40 = vpop.f32.mrf.mxu1  ;;  %v17612_v25 = vand.u32 4294901760, %v14568_v48  ;;  %v14621_v11 = vand.u32 4294901760, %v5456_v22 }
 0x7b0   :  { %5277 = vmatmul.f32.gmra.mxu3 %v13807_v33  ;;  %5767 = vmatpush.msra.mxu0 %v17854_v13  ;;  %v4278_v33 = vadd.f32 %v4277_v52, %v4028_v28  ;;  %v5882_v52 = vsub.f32 %v14554_v20, %v17613_v14  ;;  %v14638_v28 = vand.u32 4294901760, %v5455_v54  ;;  %v17610_v41 = vand.u32 4294901760, %v14609_v49 }
 0x7b1   :  { %5812 = vmatpush.msra.mxu1 %v14274_v35  ;;  %v5876_v6 = vsub.f32 %v14542_v27, %v17614_v3  ;;  %v17611_v46 = vand.u32 4294901760, %v14587_v57  ;;  %v5888_v26 = vsub.f32 %v14568_v48, %v17612_v25 }
 0x7b2   :  { %5771 = vmatpush.msra.mxu0 %v17855_v38  ;;  %v4285_v35 = vpop.f32.mrf.mxu2  ;;  %v4554_v59 = vpop.f32.mrf.mxu3  ;;  %v5883_v38 = vand.u32 4294901760, %v5882_v52  ;;  %v14668_v52 = vsub.f32 %v5455_v54, %v14638_v28 }
 0x7b3   :  { %5814 = vmatpush.msra.mxu1 %v14289_v32  ;;  %v14591_v15 = vadd.f32 %v4554_v59, %v4278_v33  ;;  %v17857_v32 = vand.u32 4294901760, %v14329_v51  ;;  %v17858_v51 = vand.u32 4294901760, %v14348_v36  ;;  %v4033_v36 = vpop.permute.xlu0 %4032  ;;  %v5877_v21 = vand.u32 4294901760, %v5876_v6 }
 0x7b4   :  { %v4286_v13 = vadd.f32 %v4285_v35, %v4033_v36  ;;  %v5894_v35 = vsub.f32 %v14587_v57, %v17611_v46  ;;  %v14651_v59 = vsub.f32 %v5456_v22, %v14621_v11  ;;  %v17615_v6 = vand.u32 4294901760, %v14626_v24 }
 0x7b5   :  { %17856 = vst [vmem:[#allocation69_spill] sm:$0xff] %v14591_v15  ;;  %5775 = vmatpush.msra.mxu0 %v17857_v32  ;;  %5816 = vmatpush.msra.mxu1 %v14305_v61  ;;  %v5871_v61 = vand.u32 4294901760, %v5870_v56  ;;  %v14655_v56 = vpop.f32.mrf.mxu0  ;;  %v14670_v36 = vand.u32 4294901760, %v5453_v29 }
 0x7b7   :  { %5779 = vmatpush.msra.mxu0 %v17858_v51  ;;  %5818 = vmatpush.msra.mxu1 %v14326_v10  ;;  %v5454_v10 = vld [vmem:[%s17517_s1 + $0xa8] sm:$0xff]  ;;  %v5452_v51 = vld [vmem:[%s17517_s1 + $0x98] sm:$0xff]  ;;  %v14698_v25 = vsub.f32 %v5453_v29, %v14670_v36 }
 0x7b8   :  { %5124 = vmatmul.f32.gmra.mxu2 %v13851_v60  ;;  %5281 = vmatmul.f32.gmra.mxu3 %v13834_v37  ;;  %v17609_v37 = vand.u32 4294901760, %v14606_v4 }
 0x7b9   :  { %5783 = vmatpush.msra.mxu0 %v17859_v17  ;;  %5820 = vmatpush.msra.mxu1 %v14345_v2  ;;  %v14672_v17 = vpop.f32.mrf.mxu1 }
 0x7ba   :  { %5785 = vmatmul.f32.vlgmr.msra.gmra.mxu0 %v14461_v18  ;;  %5822 = vmatmul.f32.vlgmr.msra.gmra.mxu1 %v14461_v18  ;;  %v4293_v2 = vpop.f32.mrf.mxu2  ;;  %v4558_v33 = vpop.f32.mrf.mxu3  ;;  %v14653_v18 = vand.u32 4294901760, %v5454_v10  ;;  %v5900_v22 = vsub.f32 %v14606_v4, %v17609_v37  ;;  %v14685_v37 = vand.u32 4294901760, %v5452_v51 }
 0x7bb   :  { %5827 = vmatpush.msrb.mxu0 %v14506_v5  ;;  %5872 = vmatpush.msrb.mxu1 %v5871_v61  ;;  %v14657_v32 = vadd.f32 %v4558_v33, %v4286_v13  ;;  %v5889_v61 = vand.u32 4294901760, %v5888_v26  ;;  %v5906_v13 = vsub.f32 %v14609_v49, %v17610_v41  ;;  %v5895_v26 = vand.u32 4294901760, %v5894_v35  ;;  %v4038_v35 = vpop.permute.xlu1 %4037 }
 0x7bc   :  { %v14683_v54 = vsub.f32 %v5454_v10, %v14653_v18  ;;  %v5912_v41 = vsub.f32 %v14626_v24, %v17615_v6  ;;  %v5901_v10 = vand.u32 4294901760, %v5900_v22  ;;  %v5449_v6 = vld [vmem:[%s17517_s1 + $0x80] sm:$0xff]  ;;  %v14711_v46 = vsub.f32 %v5452_v51, %v14685_v37 }
 0x7bd   :  { %17860 = vst [vmem:[#allocation70_spill] sm:$0xff] %v14657_v32  ;;  %5829 = vmatpush.msrb.mxu0 %v14518_v63  ;;  %5878 = vmatpush.msrb.mxu1 %v5877_v21  ;;  %v5451_v21 = vld [vmem:[%s17517_s1 + $0x90] sm:$0xff]  ;;  %v5907_v3 = vand.u32 4294901760, %v5906_v13  ;;  %v5479_v13 = vld.sshfl [vmem:[#allocation1 + $0x8] sm:$0xff pattern:$0x75316420]  ;;  %v14727_v44 = vpop.f32.mrf.mxu0 }
 0x7be   :  { %v14700_v14 = vand.u32 4294901760, %v5451_v21  ;;  %v5913_v32 = vand.u32 4294901760, %v5912_v41  ;;  %v14725_v51 = vand.u32 4294901760, %v5449_v6  ;;  %v14729_v45 = vand.u32 4294901760, %v5479_v13 }
 0x7bf   :  { %5831 = vmatpush.msrb.mxu0 %v14531_v1  ;;  %5884 = vmatpush.msrb.mxu1 %v5883_v38  ;;  %v5450_v38 = vld [vmem:[%s17517_s1 + $0x88] sm:$0xff] }
 0x7c0   :  { %5128 = vmatmul.f32.gmra.mxu2 %v13870_v47  ;;  %5285 = vmatmul.f32.gmra.mxu3 %v13851_v60  ;;  %v4294_v60 = vadd.f32 %v4293_v2, %v4038_v35  ;;  %v14713_v2 = vand.u32 4294901760, %v5450_v38  ;;  %v14723_v29 = vsub.f32 %v5451_v21, %v14700_v14  ;;  %v14752_v30 = vsub.f32 %v5479_v13, %v14729_v45 }
 0x7c1   :  { %5833 = vmatpush.msrb.mxu0 %v14544_v16  ;;  %5890 = vmatpush.msrb.mxu1 %v5889_v61  ;;  %v17861_v61 = vand.u32 4294901760, %v14651_v59  ;;  %v14739_v21 = vpop.f32.mrf.mxu1 }
 0x7c2   :  { %v4301_v0 = vpop.f32.mrf.mxu2  ;;  %v4562_v33 = vpop.f32.mrf.mxu3 }
 0x7c3   :  { %5835 = vmatpush.msrb.mxu0 %v14556_v42  ;;  %5896 = vmatpush.msrb.mxu1 %v5895_v26  ;;  %v5918_v22 = vsub.f32 %v14651_v59, %v17861_v61  ;;  %v14715_v35 = vadd.f32 %v4562_v33, %v4294_v60  ;;  %v17863_v26 = vand.u32 4294901760, %v14668_v52  ;;  %v17864_v33 = vand.u32 4294901760, %v14683_v54  ;;  %v4043_v61 = vpop.permute.xlu2 %4042 }
 0x7c5   :  { %17862 = vst [vmem:[#allocation71_spill] sm:$0xff] %v14715_v35  ;;  %5837 = vmatpush.msrb.mxu0 %v14570_v43  ;;  %5902 = vmatpush.msrb.mxu1 %v5901_v10  ;;  %v5924_v15 = vsub.f32 %v14668_v52, %v17863_v26  ;;  %v5919_v41 = vand.u32 4294901760, %v5918_v22  ;;  %v5930_v10 = vsub.f32 %v14683_v54, %v17864_v33  ;;  %v17865_v22 = vand.u32 4294901760, %v14698_v25 }
 0x7c6   :  { %v14737_v26 = vsub.f32 %v5450_v38, %v14713_v2  ;;  %v14749_v38 = vsub.f32 %v5449_v6, %v14725_v51  ;;  %v4302_v35 = vadd.f32 %v4301_v0, %v4043_v61  ;;  %v17868_v6 = vand.u32 4294901760, %v14723_v29 }
 0x7c7   :  { %5839 = vmatpush.msrb.mxu0 %v14577_v62  ;;  %5908 = vmatpush.msrb.mxu1 %v5907_v3  ;;  %v5925_v3 = vand.u32 4294901760, %v5924_v15  ;;  %v5936_v33 = vsub.f32 %v14698_v25, %v17865_v22  ;;  %v17866_v15 = vand.u32 4294901760, %v14711_v46 }
 0x7c8   :  { %5132 = vmatmul.f32.gmra.mxu2 %v13889_v34  ;;  %5289 = vmatmul.f32.gmra.mxu3 %v13870_v47  ;;  %v17619_v22 = vand.u32 4294901760, %v14737_v26  ;;  %v5948_v13 = vsub.f32 %v14723_v29, %v17868_v6  ;;  %v17622_v61 = vand.u32 4294901760, %v14749_v38 }
 0x7c9   :  { %5841 = vmatpush.msrb.mxu0 %v14593_v12  ;;  %5914 = vmatpush.msrb.mxu1 %v5913_v32  ;;  %v5931_v32 = vand.u32 4294901760, %v5930_v10  ;;  %v5942_v58 = vsub.f32 %v14711_v46, %v17866_v15  ;;  %v5937_v0 = vand.u32 4294901760, %v5936_v33  ;;  %v4048_v33 = vpop.permute.xlu0 %4047 }
 0x7ca   :  { %v4309_v47 = vpop.f32.mrf.mxu2  ;;  %v4566_v8 = vpop.f32.mrf.mxu3  ;;  %v5949_v15 = vand.u32 4294901760, %v5948_v13 }
 0x7cb   :  { %5843 = vmatpush.msrb.mxu0 %v14621_v11  ;;  %5920 = vmatpush.msrb.mxu1 %v5919_v41  ;;  %v14759_v60 = vadd.f32 %v4566_v8, %v4302_v35  ;;  %v17623_v41 = vand.u32 4294901760, %v14752_v30  ;;  %v5943_v10 = vand.u32 4294901760, %v5942_v58  ;;  %v5954_v8 = vsub.f32 %v14737_v26, %v17619_v22  ;;  %v14771_v35 = vpop.f32.mrf.mxu0  ;;  %v14779_v58 = vpop.f32.mrf.mxu1 }
 0x7cc   :  { %17869 = vst [vmem:[#allocation73_spill] sm:$0xff] %v14771_v35  ;;  %v4310_v6 = vadd.f32 %v4309_v47, %v4048_v33  ;;  %v17872_v47 = vld [vmem:[#allocation34_spill] sm:$0xff]  ;;  %v4053_v33 = vpop.permute.xlu1 %4052 }
 0x7cd   :  { %17867 = vst [vmem:[#allocation72_spill] sm:$0xff] %v14759_v60  ;;  %5845 = vmatpush.msrb.mxu0 %v14638_v28  ;;  %5926 = vmatpush.msrb.mxu1 %v5925_v3  ;;  %v17870_v3 = vld [vmem:[#allocation27_spill] sm:$0xff]  ;;  %v5861_v22 = vsub.f32 %v14752_v30, %v17623_v41  ;;  %v5955_v35 = vand.u32 4294901760, %v5954_v8 }
 0x7cf   :  { %5847 = vmatpush.msrb.mxu0 %v14653_v18  ;;  %5932 = vmatpush.msrb.mxu1 %v5931_v32  ;;  %v5960_v32 = vsub.f32 %v14749_v38, %v17622_v61  ;;  %v5862_v13 = vand.u32 4294901760, %v5861_v22 }
 0x7d0   :  { %5136 = vmatmul.f32.gmra.mxu2 %v17870_v3  ;;  %5293 = vmatmul.f32.gmra.mxu3 %v13889_v34 }
 0x7d1   :  { %5849 = vmatpush.msrb.mxu0 %v14670_v36  ;;  %5938 = vmatpush.msrb.mxu1 %v5937_v0  ;;  %v5961_v0 = vand.u32 4294901760, %v5960_v32 }
 0x7d2   :  { %v4317_v60 = vpop.f32.mrf.mxu2  ;;  %v4570_v34 = vpop.f32.mrf.mxu3 }
 0x7d3   :  { %5851 = vmatpush.msrb.mxu0 %v14685_v37  ;;  %5944 = vmatpush.msrb.mxu1 %v5943_v10  ;;  %v14785_v19 = vadd.f32 %v4570_v34, %v4310_v6  ;;  %v14792_v10 = vpop.f32.mrf.mxu0  ;;  %v4318_v8 = vadd.f32 %v4317_v60, %v4053_v33  ;;  %v17874_v60 = vld [vmem:[#allocation2_spill] sm:$0xff] }
 0x7d5   :  { %17871 = vst [vmem:[#allocation27_spill] sm:$0xff] %v14785_v19  ;;  %5853 = vmatpush.msrb.mxu0 %v14700_v14  ;;  %5950 = vmatpush.msrb.mxu1 %v5949_v15  ;;  %v14797_v15 = vpop.f32.mrf.mxu1 }
 0x7d7   :  { %5855 = vmatpush.msrb.mxu0 %v14713_v2  ;;  %5956 = vmatpush.msrb.mxu1 %v5955_v35 }
 0x7d8   :  { %5140 = vmatmul.f32.gmra.mxu2 %v17872_v47  ;;  %5297 = vmatmul.f32.gmra.mxu3 %v17870_v3  ;;  %v4058_v3 = vpop.permute.xlu2 %4057 }
 0x7d9   :  { %5857 = vmatpush.msrb.mxu0 %v14725_v51  ;;  %5962 = vmatpush.msrb.mxu1 %v5961_v0 }
 0x7da   :  { %5863 = vmatmul.f32.vlgmr.msrb.gmra.mxu0 %v5862_v13  ;;  %5964 = vmatmul.f32.vlgmr.msrb.gmra.mxu1 %v14729_v45  ;;  %v4325_v22 = vpop.f32.mrf.mxu2 }
 0x7db   :  { %5970 = vmatpush.msra.mxu0 %v14529_v23  ;;  %6023 = vmatpush.msra.mxu1 %v14506_v5  ;;  %v4574_v35 = vpop.f32.mrf.mxu3  ;;  %v4326_v6 = vadd.f32 %v4325_v22, %v4058_v3  ;;  %v14811_v13 = vpop.f32.mrf.mxu0 }
 0x7dc   :  { %v14799_v32 = vadd.f32 %v4574_v35, %v4318_v8  ;;  %v17876_v8 = vld [vmem:[#allocation32_spill] sm:$0xff]  ;;  %v4063_v22 = vpop.permute.xlu0 %4062 }
 0x7dd   :  { %5973 = vmatpush.msra.mxu0 %v14542_v27  ;;  %6025 = vmatpush.msra.mxu1 %v14518_v63 }
 0x7de   :  { %17873 = vst [vmem:[#allocation34_spill] sm:$0xff] %v14799_v32 }
 0x7df   :  { %5976 = vmatpush.msra.mxu0 %v14554_v20  ;;  %6027 = vmatpush.msra.mxu1 %v14531_v1 }
 0x7e0   :  { %5144 = vmatmul.f32.gmra.mxu2 %v17874_v60  ;;  %5301 = vmatmul.f32.gmra.mxu3 %v17872_v47  ;;  %v14817_v47 = vpop.f32.mrf.mxu1 }
 0x7e1   :  { %5979 = vmatpush.msra.mxu0 %v14568_v48  ;;  %6029 = vmatpush.msra.mxu1 %v14544_v16 }
 0x7e2   :  { %v4333_v34 = vpop.f32.mrf.mxu2 }
 0x7e3   :  { %5982 = vmatpush.msra.mxu0 %v14587_v57  ;;  %6031 = vmatpush.msra.mxu1 %v14556_v42  ;;  %v4578_v0 = vpop.f32.mrf.mxu3  ;;  %v4334_v35 = vadd.f32 %v4333_v34, %v4063_v22  ;;  %v14831_v61 = vpop.f32.mrf.mxu0  ;;  %v17878_v34 = vld [vmem:[#allocation30_spill] sm:$0xff] }
 0x7e4   :  { %v14813_v33 = vadd.f32 %v4578_v0, %v4326_v6  ;;  %v4068_v22 = vpop.permute.xlu1 %4067 }
 0x7e5   :  { %5985 = vmatpush.msra.mxu0 %v14606_v4  ;;  %6033 = vmatpush.msra.mxu1 %v14570_v43 }
 0x7e6   :  { %17875 = vst [vmem:[#allocation2_spill] sm:$0xff] %v14813_v33  ;;  %v17881_v33 = vld [vmem:[#allocation28_spill] sm:$0xff] }
 0x7e7   :  { %5988 = vmatpush.msra.mxu0 %v14609_v49  ;;  %6035 = vmatpush.msra.mxu1 %v14577_v62 }
 0x7e8   :  { %5148 = vmatmul.f32.gmra.mxu2 %v17876_v8  ;;  %5305 = vmatmul.f32.gmra.mxu3 %v17874_v60  ;;  %v14835_v60 = vpop.f32.mrf.mxu1 }
 0x7e9   :  { %5991 = vmatpush.msra.mxu0 %v14626_v24  ;;  %6037 = vmatpush.msra.mxu1 %v14593_v12 }
 0x7ea   :  { %v4341_v3 = vpop.f32.mrf.mxu2 }
 0x7eb   :  { %5994 = vmatpush.msra.mxu0 %v14651_v59  ;;  %6039 = vmatpush.msra.mxu1 %v14621_v11  ;;  %v4582_v6 = vpop.f32.mrf.mxu3 }
 0x7ec   :  { %v14827_v0 = vadd.f32 %v4582_v6, %v4334_v35  ;;  %v4342_v35 = vadd.f32 %v4341_v3, %v4068_v22  ;;  %v4073_v3 = vpop.permute.xlu2 %4072 }
 0x7ed   :  { %5997 = vmatpush.msra.mxu0 %v14668_v52  ;;  %6041 = vmatpush.msra.mxu1 %v14638_v28 }
 0x7ee   :  { %17877 = vst [vmem:[#allocation32_spill] sm:$0xff] %v14827_v0 }
 0x7ef   :  { %6000 = vmatpush.msra.mxu0 %v14683_v54  ;;  %6043 = vmatpush.msra.mxu1 %v14653_v18 }
 0x7f0   :  { %5152 = vmatmul.f32.gmra.mxu2 %v17878_v34  ;;  %5309 = vmatmul.f32.gmra.mxu3 %v17876_v8  ;;  %v14849_v8 = vpop.f32.mrf.mxu0 }
 0x7f1   :  { %6003 = vmatpush.msra.mxu0 %v14698_v25  ;;  %6045 = vmatpush.msra.mxu1 %v14670_v36  ;;  %17880 = vst [vmem:[#allocation74_spill] sm:$0xff] %v14849_v8  ;;  %v17884_v8 = vand.u32 4294901760, %v14542_v27 }
 0x7f2   :  { %v4349_v6 = vpop.f32.mrf.mxu2 }
 0x7f3   :  { %6006 = vmatpush.msra.mxu0 %v14711_v46  ;;  %6047 = vmatpush.msra.mxu1 %v14685_v37  ;;  %v4586_v41 = vpop.f32.mrf.mxu3  ;;  %v4350_v22 = vadd.f32 %v4349_v6, %v4073_v3  ;;  %v17885_v6 = vand.u32 4294901760, %v14554_v20 }
 0x7f4   :  { %v14843_v0 = vadd.f32 %v4586_v41, %v4342_v35  ;;  %v14855_v41 = vpop.f32.mrf.mxu1  ;;  %v17882_v35 = vand.u32 4294901760, %v14752_v30 }
 0x7f5   :  { %6009 = vmatpush.msra.mxu0 %v14723_v29  ;;  %6049 = vmatpush.msra.mxu1 %v14700_v14 }
 0x7f6   :  { %17879 = vst [vmem:[#allocation30_spill] sm:$0xff] %v14843_v0  ;;  %v17883_v0 = vand.u32 4294901760, %v14529_v23  ;;  %v4078_v23 = vpop.permute.xlu0 %4077 }
 0x7f7   :  { %6012 = vmatpush.msra.mxu0 %v14737_v26  ;;  %6051 = vmatpush.msra.mxu1 %v14713_v2 }
 0x7f8   :  { %5156 = vmatmul.f32.gmra.mxu2 %v17881_v33  ;;  %5313 = vmatmul.f32.gmra.mxu3 %v17878_v34 }
 0x7f9   :  { %6015 = vmatpush.msra.mxu0 %v14749_v38  ;;  %6053 = vmatpush.msra.mxu1 %v14725_v51 }
 0x7fa   :  { %6018 = vmatmul.f32.vlgmr.msra.gmra.mxu0 %v14752_v30  ;;  %6057 = vmatmul.f32.vlgmr.msra.gmra.mxu1 %v17882_v35  ;;  %v4357_v32 = vpop.f32.mrf.mxu2  ;;  %v17886_v30 = vld [vmem:[#allocation25_spill] sm:$0xff] }
 0x7fb   :  { %6064 = vmatpush.msrb.mxu0 %v17883_v0  ;;  %6131 = vmatpush.msrb.mxu1 %v14506_v5  ;;  %v4590_v34 = vpop.f32.mrf.mxu3  ;;  %v17887_v5 = vand.u32 4294901760, %v14568_v48  ;;  %v14876_v0 = vpop.f32.mrf.mxu0  ;;  %v4358_v27 = vadd.f32 %v4357_v32, %v4078_v23  ;;  %v5472_v48 = vld [vmem:[%s17517_s1 + $0x138] sm:$0xff] }
 0x7fc   :  { %v14863_v19 = vadd.f32 %v4590_v34, %v4350_v22  ;;  %v14897_v32 = vand.u32 4294901760, %v5472_v48  ;;  %v17892_v22 = vand.u32 4294901760, %v14626_v24  ;;  %v17893_v34 = vand.u32 4294901760, %v14651_v59 }
 0x7fd   :  { %6068 = vmatpush.msrb.mxu0 %v17884_v8  ;;  %6133 = vmatpush.msrb.mxu1 %v14518_v63  ;;  %v17888_v63 = vand.u32 4294901760, %v14587_v57  ;;  %v14881_v8 = vpop.f32.mrf.mxu1  ;;  %v5471_v57 = vld [vmem:[%s17517_s1 + $0x130] sm:$0xff]  ;;  %v17894_v59 = vand.u32 4294901760, %v14668_v52 }
 0x7fe   :  { %v14916_v23 = vsub.f32 %v5472_v48, %v14897_v32  ;;  %v5480_v48 = vld.sshfl [vmem:[#allocation1 + $0x10] sm:$0xff pattern:$0x75316420] }
 0x7ff   :  { %6072 = vmatpush.msrb.mxu0 %v17885_v6  ;;  %6135 = vmatpush.msrb.mxu1 %v14531_v1 }
 0x800   :  { %5160 = vmatmul.f32.gmra.mxu2 %v17886_v30  ;;  %5317 = vmatmul.f32.gmra.mxu3 %v17881_v33  ;;  %v17891_v33 = vld [vmem:[#allocation15_spill] sm:$0xff]  ;;  %v17624_v52 = vand.u32 4294901760, %v14916_v23 }
 0x801   :  { %6076 = vmatpush.msrb.mxu0 %v17887_v5  ;;  %6137 = vmatpush.msrb.mxu1 %v14544_v16  ;;  %v17889_v16 = vand.u32 4294901760, %v14606_v4  ;;  %v5470_v4 = vld [vmem:[%s17517_s1 + $0x128] sm:$0xff] }
 0x802   :  { %v4365_v20 = vpop.f32.mrf.mxu2  ;;  %v14918_v24 = vand.u32 4294901760, %v5470_v4 }
 0x803   :  { %6080 = vmatpush.msrb.mxu0 %v17888_v63  ;;  %6139 = vmatpush.msrb.mxu1 %v14556_v42  ;;  %v4594_v1 = vpop.f32.mrf.mxu3  ;;  %v17890_v42 = vand.u32 4294901760, %v14609_v49  ;;  %v14907_v49 = vand.u32 4294901760, %v5471_v57 }
 0x804   :  { %v14883_v3 = vadd.f32 %v4594_v1, %v4358_v27  ;;  %v5468_v27 = vld [vmem:[%s17517_s1 + $0x118] sm:$0xff]  ;;  %v5467_v1 = vld [vmem:[%s17517_s1 + $0x110] sm:$0xff] }
 0x805   :  { %6084 = vmatpush.msrb.mxu0 %v17889_v16  ;;  %6141 = vmatpush.msrb.mxu1 %v14570_v43  ;;  %v4083_v43 = vpop.permute.xlu1 %4082  ;;  %v17895_v16 = vand.u32 4294901760, %v14683_v54  ;;  %v17897_v54 = vand.u32 4294901760, %v14698_v25 }
 0x806   :  { %v4366_v35 = vadd.f32 %v4365_v20, %v4083_v43  ;;  %v14935_v20 = vpop.f32.mrf.mxu1  ;;  %v5466_v43 = vld [vmem:[%s17517_s1 + $0x108] sm:$0xff] }
 0x807   :  { %6088 = vmatpush.msrb.mxu0 %v17890_v42  ;;  %6143 = vmatpush.msrb.mxu1 %v14577_v62  ;;  %v5469_v62 = vld [vmem:[%s17517_s1 + $0x120] sm:$0xff]  ;;  %v17896_v42 = vld [vmem:[#allocation14_spill] sm:$0xff] }
 0x808   :  { %5164 = vmatmul.f32.gmra.mxu2 %v17891_v33  ;;  %5321 = vmatmul.f32.gmra.mxu3 %v17886_v30  ;;  %v14933_v63 = vand.u32 4294901760, %v5469_v62 }
 0x809   :  { %6092 = vmatpush.msrb.mxu0 %v17892_v22  ;;  %6145 = vmatpush.msrb.mxu1 %v14593_v12  ;;  %v14920_v12 = vpop.f32.mrf.mxu0  ;;  %v4088_v22 = vpop.permute.xlu2 %4087 }
 0x80a   :  { %v4373_v6 = vpop.f32.mrf.mxu2 }
 0x80b   :  { %6096 = vmatpush.msrb.mxu0 %v17893_v34  ;;  %6147 = vmatpush.msrb.mxu1 %v14621_v11  ;;  %v4598_v30 = vpop.f32.mrf.mxu3  ;;  %v14931_v11 = vsub.f32 %v5471_v57, %v14907_v49  ;;  %v14947_v57 = vand.u32 4294901760, %v5468_v27  ;;  %v5483_v34 = vsel %vm90_vm0, %v5480_v48, 0 }
 0x80c   :  { %v14922_v5 = vadd.f32 %v4598_v30, %v4366_v35  ;;  %v14961_v35 = vand.u32 4294901760, %v5467_v1  ;;  %v5465_v30 = vld [vmem:[%s17517_s1 + $0x100] sm:$0xff] }
 0x80d   :  { %6100 = vmatpush.msrb.mxu0 %v17894_v59  ;;  %6149 = vmatpush.msrb.mxu1 %v14638_v28  ;;  %v14945_v28 = vsub.f32 %v5470_v4, %v14918_v24  ;;  %v14959_v4 = vsub.f32 %v5469_v62, %v14933_v63  ;;  %v17898_v59 = vand.u32 4294901760, %v14711_v46  ;;  %v6211_v62 = vsub.f32 %v14916_v23, %v17624_v52 }
 0x80e   :  { %v14975_v48 = vsub.f32 %v5468_v27, %v14947_v57  ;;  %v17900_v46 = vand.u32 4294901760, %v14723_v29  ;;  %v14991_v27 = vand.u32 4294901760, %v5465_v30  ;;  %v14993_v52 = vand.u32 4294901760, %v5483_v34 }
 0x80f   :  { %6104 = vmatpush.msrb.mxu0 %v17895_v16  ;;  %6151 = vmatpush.msrb.mxu1 %v14653_v18  ;;  %v17625_v18 = vand.u32 4294901760, %v14931_v11  ;;  %v17626_v16 = vand.u32 4294901760, %v14945_v28  ;;  %v17901_v29 = vand.u32 4294901760, %v14737_v26  ;;  %v4093_v26 = vpop.permute.xlu0 %4092 }
 0x810   :  { %5168 = vmatmul.f32.gmra.mxu2 %v17896_v42  ;;  %5325 = vmatmul.f32.gmra.mxu3 %v17891_v33  ;;  %v4374_v33 = vadd.f32 %v4373_v6, %v4088_v22  ;;  %v14977_v6 = vand.u32 4294901760, %v5466_v43 }
 0x811   :  { %6108 = vmatpush.msrb.mxu0 %v17897_v54  ;;  %6153 = vmatpush.msrb.mxu1 %v14670_v36  ;;  %v17902_v54 = vld [vmem:[#allocation20_spill] sm:$0xff] }
 0x812   :  { %v4381_v25 = vpop.f32.mrf.mxu2 }
 0x813   :  { %6112 = vmatpush.msrb.mxu0 %v17898_v59  ;;  %6155 = vmatpush.msrb.mxu1 %v14685_v37  ;;  %v4602_v36 = vpop.f32.mrf.mxu3  ;;  %v6217_v37 = vsub.f32 %v14931_v11, %v17625_v18  ;;  %v14989_v59 = vsub.f32 %v5467_v1, %v14961_v35  ;;  %v15005_v1 = vsub.f32 %v5466_v43, %v14977_v6  ;;  %v15007_v18 = vpop.f32.mrf.mxu1 }
 0x814   :  { %v14979_v22 = vadd.f32 %v4602_v36, %v4374_v33  ;;  %v14995_v33 = vpop.f32.mrf.mxu0  ;;  %v6223_v36 = vsub.f32 %v14945_v28, %v17626_v16 }
 0x815   :  { %6116 = vmatpush.msrb.mxu0 %v17900_v46  ;;  %6157 = vmatpush.msrb.mxu1 %v14700_v14  ;;  %v6212_v14 = vand.u32 4294901760, %v6211_v62  ;;  %v17904_v62 = vand.u32 4294901760, %v14959_v4  ;;  %v15019_v46 = vsub.f32 %v5465_v30, %v14991_v27  ;;  %v17627_v30 = vand.u32 4294901760, %v15005_v1 }
 0x816   :  { %17899 = vst [vmem:[#allocation28_spill] sm:$0xff] %v14979_v22  ;;  %v15022_v22 = vsub.f32 %v5483_v34, %v14993_v52 }
 0x817   :  { %6120 = vmatpush.msrb.mxu0 %v17901_v29  ;;  %6159 = vmatpush.msrb.mxu1 %v14713_v2  ;;  %v17903_v29 = vand.u32 4294901760, %v14749_v38  ;;  %v6218_v2 = vand.u32 4294901760, %v6217_v37  ;;  %v6229_v16 = vsub.f32 %v14959_v4, %v17904_v62  ;;  %v6224_v37 = vand.u32 4294901760, %v6223_v36 }
 0x818   :  { %5172 = vmatmul.f32.gmra.mxu2 %v17902_v54  ;;  %5329 = vmatmul.f32.gmra.mxu3 %v17896_v42  ;;  %v4382_v42 = vadd.f32 %v4381_v25, %v4093_v26  ;;  %v6193_v36 = vand.u32 4294901760, %v15022_v22 }
 0x819   :  { %6124 = vmatpush.msrb.mxu0 %v17903_v29  ;;  %6161 = vmatpush.msrb.mxu1 %v14725_v51  ;;  %v17905_v29 = vand.u32 4294901760, %v14975_v48  ;;  %v6230_v34 = vand.u32 4294901760, %v6229_v16 }
 0x81a   :  { %6126 = vmatmul.f32.vlgmr.msrb.gmra.mxu0 %v14729_v45  ;;  %6163 = vmatmul.f32.vlgmr.msrb.gmra.mxu1 %v14729_v45  ;;  %v5109_v38 = vpop.f32.mrf.mxu2  ;;  %v17907_v45 = vand.u32 4294901760, %v14989_v59 }
 0x81b   :  { %6176 = vmatpush.msra.mxu0 %v14897_v32  ;;  %6213 = vmatpush.msra.mxu1 %v6212_v14  ;;  %v4606_v51 = vpop.f32.mrf.mxu3  ;;  %v6235_v62 = vsub.f32 %v14975_v48, %v17905_v29  ;;  %v17628_v14 = vand.u32 4294901760, %v15019_v46 }
 0x81c   :  { %v15031_v43 = vadd.f32 %v4606_v51, %v4382_v42  ;;  %v6241_v25 = vsub.f32 %v14989_v59, %v17907_v45  ;;  %v6247_v42 = vsub.f32 %v15005_v1, %v17627_v30  ;;  %v15043_v51 = vpop.f32.mrf.mxu0  ;;  %v6194_v30 = vsub.f32 %v15022_v22, %v6193_v36 }
 0x81d   :  { %6178 = vmatpush.msra.mxu0 %v14907_v49  ;;  %6219 = vmatpush.msra.mxu1 %v6218_v2  ;;  %v6236_v26 = vand.u32 4294901760, %v6235_v62  ;;  %v17908_v2 = vld [vmem:[#allocation18_spill] sm:$0xff]  ;;  %v6253_v29 = vsub.f32 %v15019_v46, %v17628_v14  ;;  %v17909_v62 = vld [vmem:[#allocation44_spill] sm:$0xff] }
 0x81e   :  { %17906 = vst [vmem:[#allocation25_spill] sm:$0xff] %v15031_v43  ;;  %v6242_v16 = vand.u32 4294901760, %v6241_v25  ;;  %v5110_v45 = vadd.f32 %v5109_v38, %v17909_v62  ;;  %v6195_v38 = vand.u32 4294901760, %v6194_v30  ;;  %v17910_v62 = vld [vmem:[#allocation37_spill] sm:$0xff] }
 0x81f   :  { %6180 = vmatpush.msra.mxu0 %v14918_v24  ;;  %6225 = vmatpush.msra.mxu1 %v6224_v37  ;;  %v15051_v37 = vpop.f32.mrf.mxu1  ;;  %v6254_v14 = vand.u32 4294901760, %v6253_v29 }
 0x820   :  { %5176 = vmatmul.f32.gmra.mxu2 %v17908_v2  ;;  %5333 = vmatmul.f32.gmra.mxu3 %v17902_v54 }
 0x821   :  { %6182 = vmatpush.msra.mxu0 %v14933_v63  ;;  %6231 = vmatpush.msra.mxu1 %v6230_v34  ;;  %v6248_v34 = vand.u32 4294901760, %v6247_v42 }
 0x822   :  { %v5113_v54 = vpop.f32.mrf.mxu2 }
 0x823   :  { %6184 = vmatpush.msra.mxu0 %v14947_v57  ;;  %6237 = vmatpush.msra.mxu1 %v6236_v26  ;;  %v5270_v43 = vpop.f32.mrf.mxu3  ;;  %v17911_v26 = vld [vmem:[#allocation46_spill] sm:$0xff] }
 0x824   :  { %v5271_v25 = vadd.f32 %v5270_v43, %v5110_v45  ;;  %v15067_v43 = vpop.f32.mrf.mxu0  ;;  %v5114_v42 = vadd.f32 %v5113_v54, %v17911_v26 }
 0x825   :  { %6186 = vmatpush.msra.mxu0 %v14961_v35  ;;  %6243 = vmatpush.msra.mxu1 %v6242_v16 }
 0x826   :  { %5398 = vst.msk [vmem:[%s17529_s12] sm:$0xff] %vm5397_vm7, %v5271_v25 }
 0x827   :  { %6188 = vmatpush.msra.mxu0 %v14977_v6  ;;  %6249 = vmatpush.msra.mxu1 %v6248_v34  ;;  %v15073_v29 = vpop.f32.mrf.mxu1 }
 0x828   :  { %5180 = vmatmul.f32.gmra.mxu2 %v17910_v62  ;;  %5337 = vmatmul.f32.gmra.mxu3 %v17908_v2  ;;  %v17913_v2 = vld [vmem:[#allocation48_spill] sm:$0xff] }
 0x829   :  { %6190 = vmatpush.msra.mxu0 %v14991_v27  ;;  %6255 = vmatpush.msra.mxu1 %v6254_v14  ;;  %v17912_v14 = vld [vmem:[#allocation39_spill] sm:$0xff] }
 0x82a   :  { %6196 = vmatmul.f32.vlgmr.msra.gmra.mxu0 %v6195_v38  ;;  %6257 = vmatmul.f32.vlgmr.msra.gmra.mxu1 %v14993_v52  ;;  %v5117_v30 = vpop.f32.mrf.mxu2 }
 0x82b   :  { %6271 = vmatpush.msrb.mxu0 %v14916_v23  ;;  %6308 = vmatpush.msrb.mxu1 %v14897_v32  ;;  %v5274_v16 = vpop.f32.mrf.mxu3  ;;  %v5118_v54 = vadd.f32 %v5117_v30, %v17913_v2  ;;  %v17915_v30 = vld [vmem:[#allocation50_spill] sm:$0xff] }
 0x82c   :  { %v5275_v45 = vadd.f32 %v5274_v16, %v5114_v42  ;;  %v15090_v38 = vpop.f32.mrf.mxu0  ;;  %v17914_v42 = vld [vmem:[#allocation42_spill] sm:$0xff] }
 0x82d   :  { %6274 = vmatpush.msrb.mxu0 %v14931_v11  ;;  %6310 = vmatpush.msrb.mxu1 %v14907_v49 }
 0x82e   :  { %5399 = vst.msk [vmem:[%s17529_s12 + $0x8] sm:$0xff] %vm5397_vm7, %v5275_v45  ;;  %v17916_v45 = vand.u32 4294901760, %v14916_v23  ;;  %v17918_v23 = vand.u32 4294901760, %v14945_v28 }
 0x82f   :  { %6277 = vmatpush.msrb.mxu0 %v14945_v28  ;;  %6312 = vmatpush.msrb.mxu1 %v14918_v24 }
 0x830   :  { %5184 = vmatmul.f32.gmra.mxu2 %v17912_v14  ;;  %5341 = vmatmul.f32.gmra.mxu3 %v17910_v62  ;;  %v15094_v62 = vpop.f32.mrf.mxu1 }
 0x831   :  { %6280 = vmatpush.msrb.mxu0 %v14959_v4  ;;  %6314 = vmatpush.msrb.mxu1 %v14933_v63 }
 0x832   :  { %v5121_v34 = vpop.f32.mrf.mxu2 }
 0x833   :  { %6283 = vmatpush.msrb.mxu0 %v14975_v48  ;;  %6316 = vmatpush.msrb.mxu1 %v14947_v57  ;;  %v5278_v25 = vpop.f32.mrf.mxu3  ;;  %v5122_v16 = vadd.f32 %v5121_v34, %v17915_v30  ;;  %v17922_v34 = vand.u32 4294901760, %v14975_v48  ;;  %v17926_v48 = vand.u32 4294901760, %v15019_v46 }
 0x834   :  { %v5279_v26 = vadd.f32 %v5278_v25, %v5118_v54 }
 0x835   :  { %6286 = vmatpush.msrb.mxu0 %v14989_v59  ;;  %6318 = vmatpush.msrb.mxu1 %v14961_v35 }
 0x836   :  { %5400 = vst.msk [vmem:[%s17529_s12 + $0x10] sm:$0xff] %vm5397_vm7, %v5279_v26  ;;  %v15116_v26 = vpop.f32.mrf.mxu0 }
 0x837   :  { %6289 = vmatpush.msrb.mxu0 %v15005_v1  ;;  %6320 = vmatpush.msrb.mxu1 %v14977_v6 }
 0x838   :  { %5188 = vmatmul.f32.gmra.mxu2 %v17914_v42  ;;  %5345 = vmatmul.f32.gmra.mxu3 %v17912_v14  ;;  %v17917_v14 = vand.u32 4294901760, %v14931_v11  ;;  %v17921_v11 = vld [vmem:[#allocation51_spill] sm:$0xff] }
 0x839   :  { %6292 = vmatpush.msrb.mxu0 %v15019_v46  ;;  %6322 = vmatpush.msrb.mxu1 %v14991_v27  ;;  %v17928_v46 = vld [vmem:[#allocation49_spill] sm:$0xff] }
 0x83a   :  { %6295 = vmatmul.f32.vlgmr.msrb.gmra.mxu0 %v15022_v22  ;;  %6326 = vmatmul.f32.vlgmr.msrb.gmra.mxu1 %v6193_v36  ;;  %v17919_v22 = vld [vmem:[#allocation45_spill] sm:$0xff] }
 0x83b   :  { %6341 = vmatpush.msra.mxu0 %v17916_v45  ;;  %6384 = vmatpush.msra.mxu1 %v14897_v32  ;;  %v5125_v2 = vpop.f32.mrf.mxu2  ;;  %v5282_v54 = vpop.f32.mrf.mxu3 }
 0x83c   :  { %v5283_v25 = vadd.f32 %v5282_v54, %v5122_v16  ;;  %v15125_v32 = vpop.f32.mrf.mxu1  ;;  %v5126_v36 = vadd.f32 %v5125_v2, %v17921_v11  ;;  %v17923_v16 = vand.u32 4294901760, %v14989_v59  ;;  %v17927_v59 = vld [vmem:[#allocation53_spill] sm:$0xff]  ;;  %v17929_v2 = vld [vmem:[#allocation55_spill] sm:$0xff] }
 0x83d   :  { %6345 = vmatpush.msra.mxu0 %v17917_v14  ;;  %6386 = vmatpush.msra.mxu1 %v14907_v49  ;;  %v17920_v49 = vand.u32 4294901760, %v14959_v4 }
 0x83e   :  { %5401 = vst.msk [vmem:[%s17529_s12 + $0x18] sm:$0xff] %vm5397_vm7, %v5283_v25  ;;  %v15146_v4 = vpop.f32.mrf.mxu0 }
 0x83f   :  { %6349 = vmatpush.msra.mxu0 %v17918_v23  ;;  %6388 = vmatpush.msra.mxu1 %v14918_v24 }
 0x840   :  { %5192 = vmatmul.f32.gmra.mxu2 %v17919_v22  ;;  %5349 = vmatmul.f32.gmra.mxu3 %v17914_v42 }
 0x841   :  { %6353 = vmatpush.msra.mxu0 %v17920_v49  ;;  %6390 = vmatpush.msra.mxu1 %v14933_v63  ;;  %v17924_v63 = vand.u32 4294901760, %v15005_v1 }
 0x843   :  { %6357 = vmatpush.msra.mxu0 %v17922_v34  ;;  %6392 = vmatpush.msra.mxu1 %v14947_v57  ;;  %v5129_v28 = vpop.f32.mrf.mxu2  ;;  %v5286_v24 = vpop.f32.mrf.mxu3  ;;  %v17925_v57 = vld [vmem:[#allocation47_spill] sm:$0xff] }
 0x844   :  { %v5287_v30 = vadd.f32 %v5286_v24, %v5126_v36  ;;  %v5130_v42 = vadd.f32 %v5129_v28, %v17927_v59  ;;  %v17930_v24 = vld [vmem:[#allocation52_spill] sm:$0xff] }
 0x845   :  { %6361 = vmatpush.msra.mxu0 %v17923_v16  ;;  %6394 = vmatpush.msra.mxu1 %v14961_v35  ;;  %v15153_v35 = vpop.f32.mrf.mxu1 }
 0x846   :  { %5402 = vst.msk [vmem:[%s17529_s12 + $0x20] sm:$0xff] %vm5397_vm7, %v5287_v30  ;;  %v17931_v30 = vld [vmem:[#allocation58_spill] sm:$0xff] }
 0x847   :  { %6365 = vmatpush.msra.mxu0 %v17924_v63  ;;  %6396 = vmatpush.msra.mxu1 %v14977_v6 }
 0x848   :  { %5196 = vmatmul.f32.gmra.mxu2 %v17925_v57  ;;  %5353 = vmatmul.f32.gmra.mxu3 %v17919_v22 }
 0x849   :  { %6369 = vmatpush.msra.mxu0 %v17926_v48  ;;  %6398 = vmatpush.msra.mxu1 %v14991_v27  ;;  %v15164_v27 = vpop.f32.mrf.mxu0 }
 0x84a   :  { %6371 = vmatmul.f32.vlgmr.msra.gmra.mxu0 %v14993_v52  ;;  %6400 = vmatmul.f32.vlgmr.msra.gmra.mxu1 %v14993_v52 }
 0x84b   :  { %v5133_v6 = vpop.f32.mrf.mxu2  ;;  %v5290_v1 = vpop.f32.mrf.mxu3 }
 0x84c   :  { %v5291_v45 = vadd.f32 %v5290_v1, %v5130_v42  ;;  %v5134_v54 = vadd.f32 %v5133_v6, %v17929_v2  ;;  %v17932_v42 = vld [vmem:[#allocation54_spill] sm:$0xff]  ;;  %v17933_v6 = vld [vmem:[#allocation60_spill] sm:$0xff] }
 0x84d   :  { %v15167_v23 = vpop.f32.mrf.mxu1 }
 0x84e   :  { %5403 = vst.msk [vmem:[%s17529_s12 + $0x28] sm:$0xff] %vm5397_vm7, %v5291_v45 }
 0x850   :  { %5200 = vmatmul.f32.gmra.mxu2 %v17928_v46  ;;  %5357 = vmatmul.f32.gmra.mxu3 %v17925_v57 }
 0x851   :  { %v15176_v36 = vpop.f32.mrf.mxu0 }
 0x853   :  { %v5137_v25 = vpop.f32.mrf.mxu2  ;;  %v5294_v14 = vpop.f32.mrf.mxu3 }
 0x854   :  { %v5295_v52 = vadd.f32 %v5294_v14, %v5134_v54  ;;  %v5138_v22 = vadd.f32 %v5137_v25, %v14392_v31 }
 0x855   :  { %v15178_v28 = vpop.f32.mrf.mxu1 }
 0x856   :  { %5404 = vst.msk [vmem:[%s17529_s12 + $0x30] sm:$0xff] %vm5397_vm7, %v5295_v52  ;;  %v17935_v52 = vld [vmem:[#allocation56_spill] sm:$0xff] }
 0x858   :  { %5204 = vmatmul.f32.gmra.mxu2 %v14186_v7  ;;  %5361 = vmatmul.f32.gmra.mxu3 %v17928_v46  ;;  %v17934_v46 = vld [vmem:[#allocation61_spill] sm:$0xff] }
 0x859   :  { %v15187_v48 = vpop.f32.mrf.mxu0  ;;  %v4711_v2 = vadd.f32 %v14508_v50, %v17934_v46  ;;  %v17936_v50 = vld [vmem:[#allocation63_spill] sm:$0xff] }
 0x85b   :  { %v5141_v49 = vpop.f32.mrf.mxu2  ;;  %v5298_v11 = vpop.f32.mrf.mxu3  ;;  %v4915_v14 = vadd.f32 %v14520_v9, %v4711_v2 }
 0x85c   :  { %v5299_v34 = vadd.f32 %v5298_v11, %v5138_v22  ;;  %v5142_v16 = vadd.f32 %v5141_v49, %v17931_v30 }
 0x85d   :  { %v15193_v59 = vpop.f32.mrf.mxu1 }
 0x85e   :  { %5405 = vst.msk [vmem:[%s17529_s12 + $0x38] sm:$0xff] %vm5397_vm7, %v5299_v34 }
 0x860   :  { %5208 = vmatmul.f32.gmra.mxu2 %v17930_v24  ;;  %5365 = vmatmul.f32.gmra.mxu3 %v14186_v7 }
 0x861   :  { %v15204_v25 = vpop.f32.mrf.mxu0 }
 0x863   :  { %v5145_v63 = vpop.f32.mrf.mxu2  ;;  %v5302_v31 = vpop.f32.mrf.mxu3 }
 0x864   :  { %v5303_v57 = vadd.f32 %v5302_v31, %v5142_v16  ;;  %v5146_v7 = vadd.f32 %v5145_v63, %v17933_v6  ;;  %v17937_v16 = vld [vmem:[#allocation57_spill] sm:$0xff] }
 0x865   :  { %v15209_v22 = vpop.f32.mrf.mxu1 }
 0x866   :  { %5406 = vst.msk [vmem:[%s17529_s12 + $0x40] sm:$0xff] %vm5397_vm7, %v5303_v57 }
 0x868   :  { %5212 = vmatmul.f32.gmra.mxu2 %v17932_v42  ;;  %5369 = vmatmul.f32.gmra.mxu3 %v17930_v24  ;;  %v4716_v24 = vadd.f32 %v14575_v53, %v17936_v50  ;;  %v4721_v53 = vadd.f32 %v14655_v56, %v14459_v55  ;;  %v4726_v55 = vadd.f32 %v14727_v44, %v14465_v39  ;;  %v17940_v50 = vld [vmem:[#allocation65_spill] sm:$0xff] }
 0x869   :  { %v15220_v63 = vpop.f32.mrf.mxu0 }
 0x86a   :  { %v4921_v9 = vadd.f32 %v14589_v40, %v4716_v24  ;;  %v4927_v40 = vadd.f32 %v14672_v17, %v4721_v53  ;;  %v4933_v17 = vadd.f32 %v14739_v21, %v4726_v55  ;;  %v17941_v24 = vld [vmem:[#allocation73_spill] sm:$0xff]  ;;  %v17943_v53 = vld [vmem:[#allocation66_spill] sm:$0xff] }
 0x86b   :  { %v5149_v1 = vpop.f32.mrf.mxu2  ;;  %v5306_v45 = vpop.f32.mrf.mxu3  ;;  %v4731_v39 = vadd.f32 %v17941_v24, %v17940_v50 }
 0x86c   :  { %v5307_v54 = vadd.f32 %v5306_v45, %v5146_v7  ;;  %v5150_v49 = vadd.f32 %v5149_v1, %v4915_v14  ;;  %v17938_v1 = vld [vmem:[#allocation59_spill] sm:$0xff] }
 0x86d   :  { %v15224_v7 = vpop.f32.mrf.mxu1  ;;  %v4939_v21 = vadd.f32 %v14779_v58, %v4731_v39 }
 0x86e   :  { %5407 = vst.msk [vmem:[%s17529_s12 + $0x48] sm:$0xff] %vm5397_vm7, %v5307_v54 }
 0x870   :  { %5216 = vmatmul.f32.gmra.mxu2 %v17935_v52  ;;  %5373 = vmatmul.f32.gmra.mxu3 %v17932_v42 }
 0x871   :  { %v5523_v54 = vpop.f32.mrf.mxu0 }
 0x873   :  { %v5153_v11 = vpop.f32.mrf.mxu2  ;;  %v5310_v34 = vpop.f32.mrf.mxu3 }
 0x874   :  { %v5311_v30 = vadd.f32 %v5310_v34, %v5150_v49  ;;  %v5154_v31 = vadd.f32 %v5153_v11, %v4921_v9 }
 0x875   :  { %v5624_v14 = vpop.f32.mrf.mxu1 }
 0x876   :  { %5408 = vst.msk [vmem:[%s17529_s12 + $0x50] sm:$0xff] %vm5397_vm7, %v5311_v30 }
 0x878   :  { %5220 = vmatmul.f32.gmra.mxu2 %v17937_v16  ;;  %5377 = vmatmul.f32.gmra.mxu3 %v17935_v52  ;;  %v17939_v52 = vld [vmem:[#allocation62_spill] sm:$0xff] }
 0x879   :  { %v5678_v30 = vpop.f32.mrf.mxu0 }
 0x87b   :  { %v5157_v57 = vpop.f32.mrf.mxu2  ;;  %v5314_v42 = vpop.f32.mrf.mxu3 }
 0x87c   :  { %v5315_v6 = vadd.f32 %v5314_v42, %v5154_v31  ;;  %v5158_v45 = vadd.f32 %v5157_v57, %v4927_v40 }
 0x87d   :  { %v5717_v9 = vpop.f32.mrf.mxu1 }
 0x87e   :  { %5409 = vst.msk [vmem:[%s17529_s12 + $0x58] sm:$0xff] %vm5397_vm7, %v5315_v6  ;;  %v4736_v6 = vadd.f32 %v14792_v10, %v17943_v53 }
 0x880   :  { %5224 = vmatmul.f32.gmra.mxu2 %v17938_v1  ;;  %5381 = vmatmul.f32.gmra.mxu3 %v17937_v16  ;;  %v17942_v16 = vld [vmem:[#allocation64_spill] sm:$0xff]  ;;  %v4945_v58 = vadd.f32 %v14797_v15, %v4736_v6  ;;  %v17946_v6 = vld [vmem:[#allocation69_spill] sm:$0xff] }
 0x883   :  { %v5161_v46 = vpop.f32.mrf.mxu2  ;;  %v5318_v2 = vpop.f32.mrf.mxu3 }
 0x884   :  { %v5319_v56 = vadd.f32 %v5318_v2, %v5158_v45  ;;  %v5162_v49 = vadd.f32 %v5161_v46, %v4933_v17 }
 0x885   :  { %v5823_v45 = vpop.f32.mrf.mxu1 }
 0x886   :  { %5410 = vst.msk [vmem:[%s17529_s12 + $0x60] sm:$0xff] %vm5397_vm7, %v5319_v56  ;;  %v17944_v56 = vld [vmem:[#allocation67_spill] sm:$0xff] }
 0x887   :  { %v4741_v17 = vadd.f32 %v14811_v13, %v17944_v56 }
 0x888   :  { %5228 = vmatmul.f32.gmra.mxu2 %v17939_v52  ;;  %5385 = vmatmul.f32.gmra.mxu3 %v17938_v1  ;;  %v5786_v1 = vpop.f32.mrf.mxu0 }
 0x889   :  { %v4951_v15 = vadd.f32 %v14817_v47, %v4741_v17 }
 0x88b   :  { %v5165_v11 = vpop.f32.mrf.mxu2  ;;  %v5322_v34 = vpop.f32.mrf.mxu3 }
 0x88c   :  { %v5323_v44 = vadd.f32 %v5322_v34, %v5162_v49  ;;  %v5166_v31 = vadd.f32 %v5165_v11, %v4939_v21  ;;  %v17945_v21 = vld [vmem:[#allocation68_spill] sm:$0xff] }
 0x88d   :  { %v5965_v34 = vpop.f32.mrf.mxu1 }
 0x88e   :  { %5411 = vst.msk [vmem:[%s17529_s12 + $0x68] sm:$0xff] %vm5397_vm7, %v5323_v44 }
 0x890   :  { %5232 = vmatmul.f32.gmra.mxu2 %v17942_v16  ;;  %5389 = vmatmul.f32.gmra.mxu3 %v17939_v52  ;;  %v5625_v52 = vadd.f32 %v5624_v14, %v5523_v54  ;;  %v5864_v11 = vpop.f32.mrf.mxu0 }
 0x892   :  { %v5679_v49 = vadd.f32 %v5678_v30, %v5625_v52  ;;  %v17948_v52 = vld [vmem:[#allocation70_spill] sm:$0xff] }
 0x893   :  { %v5169_v57 = vpop.f32.mrf.mxu2  ;;  %v5326_v42 = vpop.f32.mrf.mxu3 }
 0x894   :  { %v5327_v40 = vadd.f32 %v5326_v42, %v5166_v31  ;;  %v5170_v46 = vadd.f32 %v5169_v57, %v4945_v58  ;;  %v5718_v50 = vadd.f32 %v5717_v9, %v5679_v49 }
 0x895   :  { %v6058_v30 = vpop.f32.mrf.mxu1 }
 0x896   :  { %5412 = vst.msk [vmem:[%s17529_s12 + $0x70] sm:$0xff] %vm5397_vm7, %v5327_v40  ;;  %v5787_v13 = vadd.f32 %v5786_v1, %v5718_v50  ;;  %v17947_v40 = vld [vmem:[#allocation74_spill] sm:$0xff] }
 0x897   :  { %v4751_v58 = vadd.f32 %v17947_v40, %v17946_v6 }
 0x898   :  { %5393 = vmatmul.f32.gmra.mxu3 %v17942_v16  ;;  %v4746_v16 = vadd.f32 %v14831_v61, %v17945_v21  ;;  %v6019_v14 = vpop.f32.mrf.mxu0  ;;  %v5824_v31 = vadd.f32 %v5823_v45, %v5787_v13 }
 0x899   :  { %v4963_v45 = vadd.f32 %v14855_v41, %v4751_v58 }
 0x89a   :  { %v4957_v57 = vadd.f32 %v14835_v60, %v4746_v16  ;;  %v5865_v47 = vadd.f32 %v5864_v11, %v5824_v31 }
 0x89b   :  { %v5173_v2 = vpop.f32.mrf.mxu2  ;;  %v5330_v55 = vpop.f32.mrf.mxu3 }
 0x89c   :  { %v5331_v10 = vadd.f32 %v5330_v55, %v5170_v46  ;;  %v5174_v24 = vadd.f32 %v5173_v2, %v4951_v15  ;;  %v5966_v1 = vadd.f32 %v5965_v34, %v5865_v47  ;;  %v6404_v34 = vld [vmem:[%s17522_s2] sm:$0xff] }
 0x89d   :  { %v6164_v2 = vpop.f32.mrf.mxu1 }
 0x89e   :  { %5413 = vst.msk [vmem:[%s17529_s12 + $0x78] sm:$0xff] %vm5397_vm7, %v5331_v10  ;;  %v6020_v55 = vadd.f32 %v6019_v14, %v5966_v1  ;;  %v4756_v10 = vadd.f32 %v14876_v0, %v17948_v52 }
 0x8a0   :  { %v6127_v46 = vpop.f32.mrf.mxu0  ;;  %v6059_v49 = vadd.f32 %v6058_v30, %v6020_v55 }
 0x8a2   :  { %v6128_v15 = vadd.f32 %v6127_v46, %v6059_v49  ;;  %v17950_v46 = vld [vmem:[#allocation72_spill] sm:$0xff] }
 0x8a3   :  { %v5177_v39 = vpop.f32.mrf.mxu2  ;;  %v5334_v44 = vpop.f32.mrf.mxu3 }
 0x8a4   :  { %v5335_v54 = vadd.f32 %v5334_v44, %v5174_v24  ;;  %v5178_v9 = vadd.f32 %v5177_v39, %v4957_v57  ;;  %v4969_v24 = vadd.f32 %v14881_v8, %v4756_v10  ;;  %v6489_v39 = vsel %vm1096_vm1, %v6404_v34, 0  ;;  %v6405_v8 = vld [vmem:[%s17522_s2 + $0x8] sm:$0xff] }
 0x8a5   :  { %v6165_v44 = vadd.f32 %v6164_v2, %v6128_v15  ;;  %v15291_v13 = vand.u32 4294901760, %v6489_v39  ;;  %v4766_v2 = vadd.f32 %v14995_v33, %v17950_v46 }
 0x8a6   :  { %5414 = vst.msk [vmem:[%s17529_s12 + $0x80] sm:$0xff] %vm5397_vm7, %v5335_v54  ;;  %v17949_v54 = vld [vmem:[#allocation71_spill] sm:$0xff] }
 0x8a7   :  { %v6258_v41 = vpop.f32.mrf.mxu1  ;;  %v4761_v14 = vadd.f32 %v14920_v12, %v17949_v54  ;;  %v6492_v12 = vsel %vm1096_vm1, %v6405_v8, 0  ;;  %v4981_v49 = vadd.f32 %v15007_v18, %v4766_v2  ;;  %v6407_v18 = vld [vmem:[%s17522_s2 + $0x18] sm:$0xff] }
 0x8a8   :  { %v6197_v50 = vpop.f32.mrf.mxu0 }
 0x8a9   :  { %v6198_v30 = vadd.f32 %v6197_v50, %v6165_v44  ;;  %v17951_v50 = vld [vmem:[#allocation27_spill] sm:$0xff] }
 0x8ab   :  { %v5181_v42 = vpop.f32.mrf.mxu2  ;;  %v5338_v53 = vpop.f32.mrf.mxu3 }
 0x8ac   :  { %v5339_v61 = vadd.f32 %v5338_v53, %v5178_v9  ;;  %v5182_v60 = vadd.f32 %v5181_v42, %v4963_v45  ;;  %v6545_v9 = vsub.f32 %v6489_v39, %v15291_v13  ;;  %v6259_v42 = vadd.f32 %v6258_v41, %v6198_v30 }
 0x8ad   :  { %v4975_v53 = vadd.f32 %v14935_v20, %v4761_v14  ;;  %v15307_v45 = vand.u32 4294901760, %v6492_v12  ;;  %v6406_v20 = vld [vmem:[%s17522_s2 + $0x10] sm:$0xff]  ;;  %v4771_v41 = vadd.f32 %v15043_v51, %v17951_v50 }
 0x8ae   :  { %5415 = vst.msk [vmem:[%s17529_s12 + $0x88] sm:$0xff] %vm5397_vm7, %v5339_v61  ;;  %v6546_v1 = vand.u32 4294901760, %v6545_v9 }
 0x8af   :  { %v6553_v33 = vsub.f32 %v6492_v12, %v15307_v45  ;;  %v4987_v30 = vadd.f32 %v15051_v37, %v4771_v41 }
 0x8b0   :  { %v6547_v52 = vsub.f32 %v6545_v9, %v6546_v1 }
 0x8b3   :  { %v5185_v56 = vpop.f32.mrf.mxu2  ;;  %v5342_v17 = vpop.f32.mrf.mxu3 }
 0x8b4   :  { %v5343_v11 = vadd.f32 %v5342_v17, %v5182_v60  ;;  %v5186_v0 = vadd.f32 %v5185_v56, %v4969_v24  ;;  %v6548_v24 = vand.u32 4294901760, %v6547_v52 }
 0x8b6   :  { %5416 = vst.msk [vmem:[%s17529_s12 + $0x90] sm:$0xff] %vm5397_vm7, %v5343_v11  ;;  %v6495_v11 = vsel %vm1096_vm1, %v6406_v20, 0 }
 0x8b7   :  { %v6296_v57 = vpop.f32.mrf.mxu0  ;;  %v6327_v47 = vpop.f32.mrf.mxu1  ;;  %v15322_v54 = vand.u32 4294901760, %v6495_v11 }
 0x8b8   :  { %v6297_v6 = vadd.f32 %v6296_v57, %v6259_v42 }
 0x8b9   :  { %v6561_v8 = vsub.f32 %v6495_v11, %v15322_v54 }
 0x8ba   :  { %v6328_v60 = vadd.f32 %v6327_v47, %v6297_v6  ;;  %v6498_v47 = vsel %vm1096_vm1, %v6407_v18, 0 }
 0x8bb   :  { %v5189_v21 = vpop.f32.mrf.mxu2  ;;  %v5346_v16 = vpop.f32.mrf.mxu3  ;;  %v6562_v37 = vand.u32 4294901760, %v6561_v8 }
 0x8bc   :  { %v5347_v31 = vadd.f32 %v5346_v16, %v5186_v0  ;;  %v5190_v40 = vadd.f32 %v5189_v21, %v4975_v53  ;;  %v6554_v16 = vand.u32 4294901760, %v6553_v33  ;;  %v17952_v53 = vld [vmem:[#allocation34_spill] sm:$0xff] }
 0x8bd   :  { %v4776_v12 = vadd.f32 %v15067_v43, %v17952_v53 }
 0x8be   :  { %5417 = vst.msk [vmem:[%s17529_s12 + $0x98] sm:$0xff] %vm5397_vm7, %v5347_v31  ;;  %v6555_v31 = vsub.f32 %v6553_v33, %v6554_v16 }
 0x8bf   :  { %v4993_v43 = vadd.f32 %v15073_v29, %v4776_v12  ;;  %v6409_v29 = vld [vmem:[%s17522_s2 + $0x28] sm:$0xff] }
 0x8c3   :  { %v5193_v58 = vpop.f32.mrf.mxu2  ;;  %v5350_v61 = vpop.f32.mrf.mxu3 }
 0x8c4   :  { %v5351_v55 = vadd.f32 %v5350_v61, %v5190_v40  ;;  %v5194_v15 = vadd.f32 %v5193_v58, %v4981_v49  ;;  %v6556_v61 = vand.u32 4294901760, %v6555_v31 }
 0x8c6   :  { %5418 = vst.msk [vmem:[%s17529_s12 + $0xa0] sm:$0xff] %vm5397_vm7, %v5351_v55  ;;  %v6563_v55 = vsub.f32 %v6561_v8, %v6562_v37 }
 0x8c7   :  { %v6372_v56 = vpop.f32.mrf.mxu0  ;;  %v6401_v17 = vpop.f32.mrf.mxu1 }
 0x8c8   :  { %v6373_v10 = vadd.f32 %v6372_v56, %v6328_v60  ;;  %v6564_v11 = vand.u32 4294901760, %v6563_v55  ;;  %v4796_v55 = vadd.f32 %v15164_v27, %v14863_v19 }
 0x8ca   :  { %v6402_v34 = vadd.f32 %v6401_v17, %v6373_v10  ;;  %v17953_v17 = vld [vmem:[#allocation2_spill] sm:$0xff]  ;;  %v5017_v19 = vadd.f32 %v15167_v23, %v4796_v55 }
 0x8cb   :  { %v5197_v39 = vpop.f32.mrf.mxu2  ;;  %v5354_v44 = vpop.f32.mrf.mxu3  ;;  %v4781_v52 = vadd.f32 %v15090_v38, %v17953_v17  ;;  %v6413_v23 = vld [vmem:[%s17522_s2 + $0x48] sm:$0xff] }
 0x8cc   :  { %v6525_v0 = vsel %vm1133_vm2, %v6402_v34, 0  ;;  %v5355_v21 = vadd.f32 %v5354_v44, %v5194_v15  ;;  %v5198_v42 = vadd.f32 %v5197_v39, %v4987_v30  ;;  %v17954_v44 = vld [vmem:[#allocation32_spill] sm:$0xff] }
 0x8cd   :  { %v6542_v14 = vand.u32 4294901760, %v6525_v0  ;;  %v4999_v38 = vadd.f32 %v15094_v62, %v4781_v52  ;;  %v6410_v62 = vld [vmem:[%s17522_s2 + $0x30] sm:$0xff] }
 0x8ce   :  { %5419 = vst.msk [vmem:[%s17529_s12 + $0xa8] sm:$0xff] %vm5397_vm7, %v5355_v21 }
 0x8cf   :  { %v6657_v51 = vsub.f32 %v6525_v0, %v6542_v14  ;;  %6543 = vmatpush.msrb.mxu0 %v6542_v14  ;;  %6806 = vmatpush.msrb.mxu3 %v6542_v14  ;;  %v4786_v0 = vadd.f32 %v15116_v26, %v17954_v44 }
 0x8d0   :  { %6549 = vmatmul.f32.vlgmr.msrb.gmra.mxu0 %v6548_v24  ;;  %6810 = vmatmul.f32.vlgmr.msrb.gmra.mxu3 %v6546_v1  ;;  %v15336_v1 = vand.u32 4294901760, %v6498_v47  ;;  %v6504_v24 = vsel %vm1096_vm1, %v6409_v29, 0 }
 0x8d1   :  { %6728 = vmatpush.msrb.mxu2 %v6657_v51  ;;  %v6658_v57 = vand.u32 4294901760, %v6657_v51  ;;  %v15366_v30 = vand.u32 4294901760, %v6504_v24  ;;  %v5005_v26 = vadd.f32 %v15125_v32, %v4786_v0  ;;  %v6411_v32 = vld [vmem:[%s17522_s2 + $0x38] sm:$0xff]  ;;  %v6516_v0 = vsel %vm1096_vm1, %v6413_v23, 0 }
 0x8d2   :  { %6731 = vmatmul.f32.vlgmr.msrb.gmra.mxu2 %v6545_v9  ;;  %v6408_v9 = vld [vmem:[%s17522_s2 + $0x20] sm:$0xff]  ;;  %v6569_v60 = vsub.f32 %v6498_v47, %v15336_v1 }
 0x8d3   :  { %6898 = vmatpush.msra.mxu0 %v6658_v57  ;;  %v6659_v6 = vsub.f32 %v6657_v51, %v6658_v57  ;;  %v5201_v40 = vpop.f32.mrf.mxu2  ;;  %v5358_v58 = vpop.f32.mrf.mxu3  ;;  %v6501_v20 = vsel %vm1096_vm1, %v6408_v9, 0  ;;  %v6507_v57 = vsel %vm1096_vm1, %v6410_v62, 0  ;;  %v6510_v9 = vsel %vm1096_vm1, %v6411_v32, 0 }
 0x8d4   :  { %v5359_v46 = vadd.f32 %v5358_v58, %v5198_v42  ;;  %v5202_v56 = vadd.f32 %v5201_v40, %v4993_v43  ;;  %v6570_v15 = vand.u32 4294901760, %v6569_v60  ;;  %v15351_v50 = vand.u32 4294901760, %v6501_v20  ;;  %v17955_v42 = vld [vmem:[#allocation30_spill] sm:$0xff] }
 0x8d5   :  { %v6660_v2 = vand.u32 4294901760, %v6659_v6  ;;  %v4791_v53 = vadd.f32 %v15146_v4, %v17955_v42  ;;  %v17956_v42 = vld [vmem:[#allocation28_spill] sm:$0xff] }
 0x8d6   :  { %5420 = vst.msk [vmem:[%s17529_s12 + $0xb0] sm:$0xff] %vm5397_vm7, %v5359_v46  ;;  %v6577_v41 = vsub.f32 %v6501_v20, %v15351_v50  ;;  %v15381_v46 = vand.u32 4294901760, %v6507_v57 }
 0x8d7   :  { %6661 = vmatpush.msrb.mxu1 %v6660_v2  ;;  %v5011_v4 = vadd.f32 %v15153_v35, %v4791_v53  ;;  %v6412_v35 = vld [vmem:[%s17522_s2 + $0x40] sm:$0xff]  ;;  %v4811_v53 = vadd.f32 %v15204_v25, %v17956_v42 }
 0x8d8   :  { %6557 = vmatmul.f32.gmra.mxu0 %v6556_v61  ;;  %6663 = vmatmul.f32.vlgmr.msrb.gmra.mxu1 %v15291_v13  ;;  %v6578_v51 = vand.u32 4294901760, %v6577_v41  ;;  %v6593_v2 = vsub.f32 %v6507_v57, %v15381_v46 }
 0x8d9   :  { %6964 = vmatpush.msra.mxu1 %v6542_v14  ;;  %6816 = vmatmul.f32.gmra.mxu3 %v6554_v16  ;;  %v5035_v25 = vadd.f32 %v15209_v22, %v4811_v53 }
 0x8da   :  { %6736 = vmatmul.f32.gmra.mxu2 %v6553_v33  ;;  %v6571_v33 = vsub.f32 %v6569_v60, %v6570_v15  ;;  %v6579_v31 = vsub.f32 %v6577_v41, %v6578_v51  ;;  %v6594_v52 = vand.u32 4294901760, %v6593_v2 }
 0x8db   :  { %v5205_v10 = vpop.f32.mrf.mxu2  ;;  %v5362_v49 = vpop.f32.mrf.mxu3 }
 0x8dc   :  { %v5363_v34 = vadd.f32 %v5362_v49, %v5202_v56  ;;  %v5206_v39 = vadd.f32 %v5205_v10, %v4999_v38  ;;  %v6572_v14 = vand.u32 4294901760, %v6571_v33  ;;  %v6580_v40 = vand.u32 4294901760, %v6579_v31 }
 0x8dd   :  { %v15396_v10 = vand.u32 4294901760, %v6510_v9  ;;  %v6595_v27 = vsub.f32 %v6593_v2, %v6594_v52  ;;  %v15426_v31 = vand.u32 4294901760, %v6516_v0 }
 0x8de   :  { %5421 = vst.msk [vmem:[%s17529_s12 + $0xb8] sm:$0xff] %vm5397_vm7, %v5363_v34 }
 0x8df   :  { %v6601_v49 = vsub.f32 %v6510_v9, %v15396_v10  ;;  %v6596_v33 = vand.u32 4294901760, %v6595_v27 }
 0x8e0   :  { %6565 = vmatmul.f32.gmra.mxu0 %v6564_v11  ;;  %6667 = vmatmul.f32.gmra.mxu1 %v15307_v45  ;;  %v6513_v11 = vsel %vm1096_vm1, %v6412_v35, 0 }
 0x8e1   :  { %6822 = vmatmul.f32.gmra.mxu3 %v6562_v37 }
 0x8e2   :  { %6741 = vmatmul.f32.gmra.mxu2 %v6561_v8  ;;  %v6585_v8 = vsub.f32 %v6504_v24, %v15366_v30  ;;  %v6602_v24 = vand.u32 4294901760, %v6601_v49 }
 0x8e3   :  { %v5209_v21 = vpop.f32.mrf.mxu2  ;;  %v5366_v16 = vpop.f32.mrf.mxu3 }
 0x8e4   :  { %v5367_v18 = vadd.f32 %v5366_v16, %v5206_v39  ;;  %v5210_v47 = vadd.f32 %v5209_v21, %v5005_v26  ;;  %v6586_v61 = vand.u32 4294901760, %v6585_v8  ;;  %v15411_v39 = vand.u32 4294901760, %v6513_v11 }
 0x8e5   :  { %v4806_v16 = vadd.f32 %v15187_v48, %v14922_v5 }
 0x8e6   :  { %5422 = vst.msk [vmem:[%s17529_s12 + $0xc0] sm:$0xff] %vm5397_vm7, %v5367_v18  ;;  %v6587_v37 = vsub.f32 %v6585_v8, %v6586_v61  ;;  %v6609_v44 = vsub.f32 %v6513_v11, %v15411_v39 }
 0x8e7   :  { %v5029_v5 = vadd.f32 %v15193_v59, %v4806_v16  ;;  %v6415_v59 = vld [vmem:[%s17522_s2 + $0x58] sm:$0xff] }
 0x8e8   :  { %6573 = vmatmul.f32.gmra.mxu0 %v6572_v14  ;;  %6671 = vmatmul.f32.gmra.mxu1 %v15322_v54  ;;  %v6588_v56 = vand.u32 4294901760, %v6587_v37  ;;  %v6610_v26 = vand.u32 4294901760, %v6609_v44 }
 0x8e9   :  { %6828 = vmatmul.f32.gmra.mxu3 %v6570_v15  ;;  %v4801_v15 = vadd.f32 %v15176_v36, %v14883_v3  ;;  %v6603_v36 = vsub.f32 %v6601_v49, %v6602_v24 }
 0x8ea   :  { %6746 = vmatmul.f32.gmra.mxu2 %v6569_v60  ;;  %v6611_v48 = vsub.f32 %v6609_v44, %v6610_v26 }
 0x8eb   :  { %v5213_v12 = vpop.f32.mrf.mxu2  ;;  %v5370_v6 = vpop.f32.mrf.mxu3  ;;  %v5023_v3 = vadd.f32 %v15178_v28, %v4801_v15  ;;  %v6414_v28 = vld [vmem:[%s17522_s2 + $0x50] sm:$0xff] }
 0x8ec   :  { %v5371_v58 = vadd.f32 %v5370_v6, %v5210_v47  ;;  %v5214_v43 = vadd.f32 %v5213_v12, %v5011_v4  ;;  %v6519_v57 = vsel %vm1096_vm1, %v6414_v28, 0  ;;  %v6612_v6 = vand.u32 4294901760, %v6611_v48 }
 0x8ee   :  { %5423 = vst.msk [vmem:[%s17529_s12 + $0xc8] sm:$0xff] %vm5397_vm7, %v5371_v58 }
 0x8f0   :  { %6581 = vmatmul.f32.gmra.mxu0 %v6580_v40  ;;  %6675 = vmatmul.f32.gmra.mxu1 %v15336_v1 }
 0x8f1   :  { %6834 = vmatmul.f32.gmra.mxu3 %v6578_v51  ;;  %v6604_v51 = vand.u32 4294901760, %v6603_v36 }
 0x8f2   :  { %6751 = vmatmul.f32.gmra.mxu2 %v6577_v41 }
 0x8f3   :  { %v5217_v60 = vpop.f32.mrf.mxu2  ;;  %v5374_v20 = vpop.f32.mrf.mxu3 }
 0x8f4   :  { %v5375_v17 = vadd.f32 %v5374_v20, %v5214_v43  ;;  %v5218_v34 = vadd.f32 %v5217_v60, %v5017_v19  ;;  %v17957_v43 = vld [vmem:[#allocation25_spill] sm:$0xff] }
 0x8f5   :  { %v4816_v55 = vadd.f32 %v15220_v63, %v17957_v43 }
 0x8f6   :  { %5424 = vst.msk [vmem:[%s17529_s12 + $0xd0] sm:$0xff] %vm5397_vm7, %v5375_v17 }
 0x8f7   :  { %v5041_v35 = vadd.f32 %v15224_v7, %v4816_v55 }
 0x8f8   :  { %6589 = vmatmul.f32.gmra.mxu0 %v6588_v56  ;;  %6679 = vmatmul.f32.gmra.mxu1 %v15351_v50 }
 0x8f9   :  { %6840 = vmatmul.f32.gmra.mxu3 %v6586_v61  ;;  %v15441_v61 = vand.u32 4294901760, %v6519_v57 }
 0x8fa   :  { %6756 = vmatmul.f32.gmra.mxu2 %v6585_v8  ;;  %v6617_v8 = vsub.f32 %v6516_v0, %v15426_v31 }
 0x8fb   :  { %v5221_v29 = vpop.f32.mrf.mxu2  ;;  %v5378_v38 = vpop.f32.mrf.mxu3  ;;  %v6625_v37 = vsub.f32 %v6519_v57, %v15441_v61 }
 0x8fc   :  { %v5379_v41 = vadd.f32 %v5378_v38, %v5218_v34  ;;  %v5222_v21 = vadd.f32 %v5221_v29, %v5023_v3  ;;  %v6618_v58 = vand.u32 4294901760, %v6617_v8 }
 0x8fd   :  { %v6626_v17 = vand.u32 4294901760, %v6625_v37 }
 0x8fe   :  { %5425 = vst.msk [vmem:[%s17529_s12 + $0xd8] sm:$0xff] %vm5397_vm7, %v5379_v41  ;;  %v6619_v4 = vsub.f32 %v6617_v8, %v6618_v58 }
 0x8ff   :  { %v6627_v19 = vsub.f32 %v6625_v37, %v6626_v17 }
 0x900   :  { %6597 = vmatmul.f32.gmra.mxu0 %v6596_v33  ;;  %6683 = vmatmul.f32.gmra.mxu1 %v15366_v30  ;;  %v6620_v20 = vand.u32 4294901760, %v6619_v4 }
 0x901   :  { %6846 = vmatmul.f32.gmra.mxu3 %v6594_v52  ;;  %v6628_v11 = vand.u32 4294901760, %v6627_v19 }
 0x902   :  { %6761 = vmatmul.f32.gmra.mxu2 %v6593_v2  ;;  %v6522_v2 = vsel %vm1096_vm1, %v6415_v59, 0 }
 0x903   :  { %v5225_v14 = vpop.f32.mrf.mxu2  ;;  %v5382_v18 = vpop.f32.mrf.mxu3  ;;  %v15456_v52 = vand.u32 4294901760, %v6522_v2 }
 0x904   :  { %v5383_v62 = vadd.f32 %v5382_v18, %v5222_v21  ;;  %v5226_v47 = vadd.f32 %v5225_v14, %v5029_v5  ;;  %v7030_v14 = vld [vmem:[%s17523_s4 + $0x18] sm:$0xff] }
 0x905   :  { %v6633_v63 = vsub.f32 %v6522_v2, %v15456_v52 }
 0x906   :  { %5426 = vst.msk [vmem:[%s17529_s12 + $0xe0] sm:$0xff] %vm5397_vm7, %v5383_v62  ;;  %v15542_v62 = vand.u32 4294901760, %v7030_v14 }
 0x907   :  { %v6634_v15 = vand.u32 4294901760, %v6633_v63 }
 0x908   :  { %6605 = vmatmul.f32.gmra.mxu0 %v6604_v51  ;;  %6687 = vmatmul.f32.gmra.mxu1 %v15381_v46 }
 0x909   :  { %6852 = vmatmul.f32.gmra.mxu3 %v6602_v24  ;;  %v6635_v29 = vsub.f32 %v6633_v63, %v6634_v15 }
 0x90a   :  { %6766 = vmatmul.f32.gmra.mxu2 %v6601_v49 }
 0x90b   :  { %v5386_v12 = vpop.f32.mrf.mxu3  ;;  %v5229_v32 = vpop.f32.mrf.mxu2  ;;  %v6636_v7 = vand.u32 4294901760, %v6635_v29 }
 0x90c   :  { %v5387_v40 = vadd.f32 %v5386_v12, %v5226_v47  ;;  %v5230_v9 = vadd.f32 %v5229_v32, %v5035_v25  ;;  %v7028_v47 = vld [vmem:[%s17523_s4 + $0x8] sm:$0xff] }
 0x90e   :  { %5427 = vst.msk [vmem:[%s17529_s12 + $0xe8] sm:$0xff] %vm5397_vm7, %v5387_v40  ;;  %v7087_v40 = vand.u32 4294901760, %v7028_v47 }
 0x910   :  { %6613 = vmatmul.f32.gmra.mxu0 %v6612_v6  ;;  %6691 = vmatmul.f32.gmra.mxu1 %v15396_v10  ;;  %v7223_v4 = vsub.f32 %v7028_v47, %v7087_v40 }
 0x911   :  { %6858 = vmatmul.f32.gmra.mxu3 %v6610_v26  ;;  %v7029_v26 = vld [vmem:[%s17523_s4 + $0x10] sm:$0xff] }
 0x912   :  { %6771 = vmatmul.f32.gmra.mxu2 %v6609_v44  ;;  %v7085_v57 = vand.u32 4294901760, %v7029_v26  ;;  %v7224_v55 = vand.u32 4294901760, %v7223_v4 }
 0x913   :  { %v5390_v60 = vpop.f32.mrf.mxu3  ;;  %v5233_v22 = vpop.f32.mrf.mxu2 }
 0x914   :  { %v5391_v56 = vadd.f32 %v5390_v60, %v5230_v9  ;;  %v5234_v27 = vadd.f32 %v5233_v22, %v5041_v35  ;;  %v7217_v6 = vsub.f32 %v7029_v26, %v7085_v57 }
 0x916   :  { %5428 = vst.msk [vmem:[%s17529_s12 + $0xf0] sm:$0xff] %vm5397_vm7, %v5391_v56  ;;  %v7218_v59 = vand.u32 4294901760, %v7217_v6 }
 0x918   :  { %6621 = vmatmul.f32.gmra.mxu0 %v6620_v20  ;;  %6695 = vmatmul.f32.gmra.mxu1 %v15411_v39  ;;  %v7219_v2 = vsub.f32 %v7217_v6, %v7218_v59 }
 0x919   :  { %6864 = vmatmul.f32.gmra.mxu3 %v6618_v58  ;;  %v7027_v58 = vld [vmem:[%s17523_s4] sm:$0xff] }
 0x91a   :  { %6776 = vmatmul.f32.gmra.mxu2 %v6617_v8  ;;  %v7211_v8 = vsub.f32 %v7030_v14, %v15542_v62  ;;  %v7089_v25 = vand.u32 4294901760, %v7027_v58  ;;  %v7220_v56 = vand.u32 4294901760, %v7219_v2 }
 0x91b   :  { %v5394_v49 = vpop.f32.mrf.mxu3 }
 0x91c   :  { %v5395_v34 = vadd.f32 %v5394_v49, %v5234_v27  ;;  %v7212_v12 = vand.u32 4294901760, %v7211_v8  ;;  %v7229_v9 = vsub.f32 %v7027_v58, %v7089_v25 }
 0x91e   :  { %5429 = vst.msk [vmem:[%s17529_s12 + $0xf8] sm:$0xff] %vm5397_vm7, %v5395_v34  ;;  %v7213_v32 = vsub.f32 %v7211_v8, %v7212_v12 }
 0x920   :  { %6629 = vmatmul.f32.gmra.mxu0 %v6628_v11  ;;  %6699 = vmatmul.f32.gmra.mxu1 %v15426_v31 }
 0x921   :  { %6870 = vmatmul.f32.gmra.mxu3 %v6626_v17  ;;  %v7230_v17 = vand.u32 4294901760, %v7229_v9 }
 0x922   :  { %6781 = vmatmul.f32.gmra.mxu2 %v6625_v37  ;;  %v7214_v37 = vand.u32 4294901760, %v7213_v32 }
 0x923   :  { %v7231_v22 = vsub.f32 %v7229_v9, %v7230_v17 }
 0x928   :  { %6637 = vmatmul.f32.gmra.mxu0 %v6636_v7  ;;  %6703 = vmatmul.f32.gmra.mxu1 %v15441_v61  ;;  %v17958_v7 = vld [vmem:[#allocation16_spill] sm:$0xff] }
 0x929   :  { %6876 = vmatmul.f32.gmra.mxu3 %v6634_v15 }
 0x92a   :  { %6786 = vmatmul.f32.gmra.mxu2 %v6633_v63  ;;  %v7232_v63 = vand.u32 4294901760, %v7231_v22 }
 0x930   :  { %6707 = vmatmul.f32.gmra.mxu1 %v15456_v52  ;;  %6900 = vmatmul.f32.vlgmr.msra.gmra.mxu0 %v15291_v13 }
 0x938   :  { %6904 = vmatmul.f32.gmra.mxu0 %v15307_v45  ;;  %6966 = vmatmul.f32.vlgmr.msra.gmra.mxu1 %v15291_v13 }
 0x940   :  { %6908 = vmatmul.f32.gmra.mxu0 %v15322_v54  ;;  %6970 = vmatmul.f32.gmra.mxu1 %v15307_v45 }
 0x948   :  { %6912 = vmatmul.f32.gmra.mxu0 %v15336_v1  ;;  %6974 = vmatmul.f32.gmra.mxu1 %v15322_v54 }
 0x94d   :  { %v15479_v38 = vpop.f32.mrf.mxu0 }
 0x950   :  { %6916 = vmatmul.f32.gmra.mxu0 %v15351_v50  ;;  %6978 = vmatmul.f32.gmra.mxu1 %v15336_v1 }
 0x953   :  { %v6811_v35 = vpop.f32.mrf.mxu3 }
 0x955   :  { %v15483_v33 = vpop.f32.mrf.mxu0  ;;  %v15485_v41 = vpop.f32.mrf.mxu1 }
 0x956   :  { %v6732_v43 = vpop.f32.mrf.mxu2 }
 0x958   :  { %6920 = vmatmul.f32.gmra.mxu0 %v15366_v30  ;;  %6982 = vmatmul.f32.gmra.mxu1 %v15351_v50 }
 0x95c   :  { %v6817_v34 = vpop.f32.mrf.mxu3 }
 0x95d   :  { %v15489_v13 = vpop.f32.mrf.mxu0  ;;  %v15491_v45 = vpop.f32.mrf.mxu1 }
 0x95e   :  { %v6737_v11 = vpop.f32.mrf.mxu2 }
 0x960   :  { %6924 = vmatmul.f32.gmra.mxu0 %v15381_v46  ;;  %6986 = vmatmul.f32.gmra.mxu1 %v15366_v30 }
 0x965   :  { %v15495_v54 = vpop.f32.mrf.mxu0  ;;  %v15497_v24 = vpop.f32.mrf.mxu1 }
 0x968   :  { %6928 = vmatmul.f32.gmra.mxu0 %v15396_v10  ;;  %6990 = vmatmul.f32.gmra.mxu1 %v15381_v46 }
 0x96d   :  { %v15501_v1 = vpop.f32.mrf.mxu0  ;;  %v15503_v23 = vpop.f32.mrf.mxu1 }
 0x970   :  { %6932 = vmatmul.f32.gmra.mxu0 %v15411_v39  ;;  %6994 = vmatmul.f32.gmra.mxu1 %v15396_v10  ;;  %v7032_v10 = vld [vmem:[%s17523_s4 + $0x28] sm:$0xff] }
 0x971   :  { %v15526_v0 = vand.u32 4294901760, %v7032_v10 }
 0x973   :  { %v7199_v21 = vsub.f32 %v7032_v10, %v15526_v0  ;;  %7383 = vmatpush.msrb.mxu1 %v15526_v0  ;;  %7080 = vmatpush.msra.mxu2 %v15526_v0  ;;  %v6551_v10 = vadd.f32 %v15479_v38, %v17958_v7 }
 0x975   :  { %v15507_v50 = vpop.f32.mrf.mxu0  ;;  %v15509_v3 = vpop.f32.mrf.mxu1  ;;  %v7200_v18 = vand.u32 4294901760, %v7199_v21  ;;  %7295 = vmatpush.msrb.mxu0 %v7199_v21 }
 0x977   :  { %v7201_v5 = vsub.f32 %v7199_v21, %v7200_v18  ;;  %v6823_v21 = vpop.f32.mrf.mxu3 }
 0x978   :  { %6936 = vmatmul.f32.gmra.mxu0 %v15426_v31  ;;  %6998 = vmatmul.f32.gmra.mxu1 %v15411_v39  ;;  %v7031_v39 = vld [vmem:[%s17523_s4 + $0x20] sm:$0xff] }
 0x979   :  { %v15534_v16 = vand.u32 4294901760, %v7031_v39  ;;  %v7202_v42 = vand.u32 4294901760, %v7201_v5 }
 0x97b   :  { %v7205_v51 = vsub.f32 %v7031_v39, %v15534_v16  ;;  %7385 = vmatpush.msrb.mxu1 %v15534_v16  ;;  %7082 = vmatpush.msra.mxu2 %v15534_v16  ;;  %v6742_v39 = vpop.f32.mrf.mxu2 }
 0x97c   :  { %7203 = vmatpush.msra.mxu3 %v7202_v42 }
 0x97d   :  { %v15513_v30 = vpop.f32.mrf.mxu0  ;;  %v15515_v36 = vpop.f32.mrf.mxu1  ;;  %v7206_v48 = vand.u32 4294901760, %v7205_v51  ;;  %7298 = vmatpush.msrb.mxu0 %v7205_v51  ;;  %7387 = vmatpush.msrb.mxu1 %v15542_v62 }
 0x97e   :  { %7084 = vmatpush.msra.mxu2 %v15542_v62 }
 0x97f   :  { %v7207_v53 = vsub.f32 %v7205_v51, %v7206_v48  ;;  %7301 = vmatpush.msrb.mxu0 %v7211_v8  ;;  %7389 = vmatpush.msrb.mxu1 %v7085_v57  ;;  %v17959_v51 = vld [vmem:[#allocation36_spill] sm:$0xff]  ;;  %v6829_v38 = vpop.f32.mrf.mxu3 }
 0x980   :  { %6940 = vmatmul.f32.gmra.mxu0 %v15441_v61  ;;  %7002 = vmatmul.f32.gmra.mxu1 %v15426_v31 }
 0x981   :  { %7086 = vmatpush.msra.mxu2 %v7085_v57  ;;  %7304 = vmatpush.msrb.mxu0 %v7217_v6 }
 0x982   :  { %7391 = vmatpush.msrb.mxu1 %v7087_v40 }
 0x983   :  { %7088 = vmatpush.msra.mxu2 %v7087_v40  ;;  %7307 = vmatpush.msrb.mxu0 %v7223_v4 }
 0x984   :  { %7393 = vmatpush.msrb.mxu1 %v7089_v25 }
 0x985   :  { %v15519_v46 = vpop.f32.mrf.mxu0  ;;  %v15521_v44 = vpop.f32.mrf.mxu1  ;;  %7090 = vmatpush.msra.mxu2 %v7089_v25  ;;  %7310 = vmatpush.msrb.mxu0 %v7229_v9  ;;  %v17961_v9 = vld [vmem:[#allocation35_spill] sm:$0xff] }
 0x987   :  { %7480 = vmatpush.msrb.mxu2 %v7200_v18 }
 0x988   :  { %6944 = vmatmul.f32.gmra.mxu0 %v15456_v52  ;;  %7006 = vmatmul.f32.gmra.mxu1 %v15441_v61  ;;  %v7208_v61 = vand.u32 4294901760, %v7207_v53 }
 0x989   :  { %7484 = vmatpush.msrb.mxu2 %v7206_v48  ;;  %v6747_v48 = vpop.f32.mrf.mxu2 }
 0x98a   :  { %7209 = vmatpush.msra.mxu3 %v7208_v61 }
 0x98b   :  { %7488 = vmatpush.msrb.mxu2 %v7212_v12  ;;  %v17960_v12 = vld [vmem:[#allocation8_spill] sm:$0xff] }
 0x98c   :  { %7215 = vmatpush.msra.mxu3 %v7214_v37 }
 0x98d   :  { %v15549_v31 = vpop.f32.mrf.mxu0  ;;  %v15551_v28 = vpop.f32.mrf.mxu1  ;;  %7492 = vmatpush.msrb.mxu2 %v7218_v59 }
 0x98e   :  { %7221 = vmatpush.msra.mxu3 %v7220_v56 }
 0x98f   :  { %7496 = vmatpush.msrb.mxu2 %v7224_v55 }
 0x990   :  { %7010 = vmatmul.f32.gmra.mxu1 %v15456_v52  ;;  %v7225_v52 = vsub.f32 %v7223_v4, %v7224_v55  ;;  %v6835_v55 = vpop.f32.mrf.mxu3 }
 0x991   :  { %7500 = vmatpush.msrb.mxu2 %v7230_v17  ;;  %v6752_v61 = vpop.f32.mrf.mxu2 }
 0x992   :  { %v7226_v19 = vand.u32 4294901760, %v7225_v52 }
 0x994   :  { %7227 = vmatpush.msra.mxu3 %v7226_v19 }
 0x995   :  { %v15563_v60 = vpop.f32.mrf.mxu0  ;;  %v15565_v20 = vpop.f32.mrf.mxu1 }
 0x996   :  { %7233 = vmatpush.msra.mxu3 %v7232_v63 }
 0x998   :  { %7561 = vmatpush.msrb.mxu3 %v15526_v0  ;;  %v6665_v0 = vadd.f32 %v15485_v41, %v6551_v10  ;;  %v6567_v41 = vadd.f32 %v15489_v13, %v17960_v12  ;;  %v17963_v12 = vld [vmem:[#allocation9_spill] sm:$0xff] }
 0x999   :  { %v6757_v7 = vpop.f32.mrf.mxu2 }
 0x99a   :  { %7563 = vmatpush.msrb.mxu3 %v15534_v16  ;;  %v6733_v18 = vadd.f32 %v6732_v43, %v6665_v0  ;;  %v6575_v43 = vadd.f32 %v15495_v54, %v17961_v9  ;;  %v17962_v0 = vld [vmem:[#allocation24_spill] sm:$0xff]  ;;  %v17964_v9 = vld [vmem:[#allocation33_spill] sm:$0xff] }
 0x99c   :  { %7565 = vmatpush.msrb.mxu3 %v15542_v62  ;;  %v6559_v62 = vadd.f32 %v15483_v33, %v17959_v51  ;;  %v6812_v26 = vadd.f32 %v6811_v35, %v6733_v18  ;;  %v6677_v22 = vadd.f32 %v15503_v23, %v6575_v43  ;;  %v6599_v43 = vadd.f32 %v15513_v30, %v17964_v9 }
 0x99d   :  { %v15567_v27 = vpop.f32.mrf.mxu0  ;;  %v15569_v49 = vpop.f32.mrf.mxu1 }
 0x99e   :  { %7567 = vmatpush.msrb.mxu3 %v7085_v57  ;;  %v6669_v5 = vadd.f32 %v15491_v45, %v6559_v62 }
 0x9a0   :  { %7569 = vmatpush.msrb.mxu3 %v7087_v40  ;;  %v6738_v42 = vadd.f32 %v6737_v11, %v6669_v5  ;;  %v6673_v40 = vadd.f32 %v15497_v24, %v6567_v41 }
 0x9a1   :  { %v6762_v41 = vpop.f32.mrf.mxu2 }
 0x9a2   :  { %7571 = vmatpush.msrb.mxu3 %v7089_v25  ;;  %v6818_v45 = vadd.f32 %v6817_v34, %v6738_v42  ;;  %v6743_v4 = vadd.f32 %v6742_v39, %v6673_v40  ;;  %v6748_v34 = vadd.f32 %v6747_v48, %v6677_v22 }
 0x9a4   :  { %v6824_v52 = vadd.f32 %v6823_v21, %v6743_v4  ;;  %v6583_v21 = vadd.f32 %v15501_v1, %v17962_v0  ;;  %v6830_v51 = vadd.f32 %v6829_v38, %v6748_v34  ;;  %v6591_v38 = vadd.f32 %v15507_v50, %v17963_v12 }
 0x9a5   :  { %v15574_v15 = vpop.f32.mrf.mxu0  ;;  %v15576_v29 = vpop.f32.mrf.mxu1 }
 0x9a6   :  { %v6681_v62 = vadd.f32 %v15509_v3, %v6583_v21 }
 0x9a9   :  { %v6767_v22 = vpop.f32.mrf.mxu2 }
 0x9ad   :  { %v15581_v14 = vpop.f32.mrf.mxu1  ;;  %v6901_v16 = vpop.f32.mrf.mxu0 }
 0x9ae   :  { %v6902_v8 = vadd.f32 %v6901_v16, %v6812_v26  ;;  %v6841_v26 = vpop.f32.mrf.mxu3 }
 0x9b5   :  { %v6905_v57 = vpop.f32.mrf.mxu0  ;;  %v6967_v47 = vpop.f32.mrf.mxu1 }
 0x9b6   :  { %v6968_v53 = vadd.f32 %v6967_v47, %v6902_v8  ;;  %v6906_v32 = vadd.f32 %v6905_v57, %v6818_v45  ;;  %v6753_v47 = vadd.f32 %v6752_v61, %v6681_v62  ;;  %v6847_v50 = vpop.f32.mrf.mxu3 }
 0x9b8   :  { %10848 = vst.msk [vmem:[%s17524_s10 + $0x60] sm:$0xff] %vm1624_vm3, %v6968_v53  ;;  %v7034_v33 = vsel %vm1624_vm3, %v6968_v53, 0  ;;  %v6836_v40 = vadd.f32 %v6835_v55, %v6753_v47 }
 0x9b9   :  { %v15593_v6 = vand.u32 4294901760, %v7034_v33 }
 0x9bb   :  { %v7092_v58 = vsub.f32 %v7034_v33, %v15593_v6  ;;  %7235 = vmatmul.f32.vlgmr.msra.gmra.mxu3 %v15593_v6 }
 0x9bd   :  { %v7093_v59 = vand.u32 4294901760, %v7092_v58  ;;  %v6909_v13 = vpop.f32.mrf.mxu0  ;;  %v6971_v25 = vpop.f32.mrf.mxu1  ;;  %7313 = vmatmul.f32.vlgmr.msrb.gmra.mxu0 %v7092_v58 }
 0x9be   :  { %v6972_v37 = vadd.f32 %v6971_v25, %v6906_v32  ;;  %v6910_v54 = vadd.f32 %v6909_v13, %v6824_v52  ;;  %v6689_v52 = vadd.f32 %v15521_v44, %v6599_v43 }
 0x9bf   :  { %v7094_v2 = vsub.f32 %v7092_v58, %v7093_v59  ;;  %7397 = vmatmul.f32.vlgmr.msrb.gmra.mxu1 %v7093_v59  ;;  %v6685_v58 = vadd.f32 %v15515_v36, %v6591_v38 }
 0x9c0   :  { %10849 = vst.msk [vmem:[%s17524_s10 + $0x68] sm:$0xff] %vm1624_vm3, %v6972_v37  ;;  %v7037_v24 = vsel %vm1624_vm3, %v6972_v37, 0 }
 0x9c1   :  { %v7095_v56 = vand.u32 4294901760, %v7094_v2  ;;  %v15605_v17 = vand.u32 4294901760, %v7037_v24  ;;  %v6758_v4 = vadd.f32 %v6757_v7, %v6685_v58  ;;  %v6853_v7 = vpop.f32.mrf.mxu3 }
 0x9c3   :  { %7096 = vmatmul.f32.vlgmr.msra.gmra.mxu2 %v7095_v56  ;;  %7239 = vmatmul.f32.gmra.mxu3 %v15605_v17  ;;  %v7100_v35 = vsub.f32 %v7037_v24, %v15605_v17  ;;  %v6842_v56 = vadd.f32 %v6841_v26, %v6758_v4  ;;  %v6772_v26 = vpop.f32.mrf.mxu2  ;;  %v17967_v4 = vld [vmem:[#allocation31_spill] sm:$0xff] }
 0x9c5   :  { %v6913_v19 = vpop.f32.mrf.mxu0  ;;  %v6975_v63 = vpop.f32.mrf.mxu1  ;;  %7318 = vmatmul.f32.gmra.mxu0 %v7100_v35  ;;  %v7101_v11 = vand.u32 4294901760, %v7100_v35 }
 0x9c6   :  { %v6976_v10 = vadd.f32 %v6975_v63, %v6910_v54  ;;  %v6914_v1 = vadd.f32 %v6913_v19, %v6830_v51 }
 0x9c7   :  { %7403 = vmatmul.f32.gmra.mxu1 %v7101_v11  ;;  %v7102_v39 = vsub.f32 %v7100_v35, %v7101_v11  ;;  %v6763_v11 = vadd.f32 %v6762_v41, %v6689_v52 }
 0x9c8   :  { %10850 = vst.msk [vmem:[%s17524_s10 + $0x70] sm:$0xff] %vm1624_vm3, %v6976_v10  ;;  %v7040_v23 = vsel %vm1624_vm3, %v6976_v10, 0 }
 0x9c9   :  { %v15617_v16 = vand.u32 4294901760, %v7040_v23  ;;  %v7103_v18 = vand.u32 4294901760, %v7102_v39  ;;  %v17965_v39 = vld [vmem:[#allocation21_spill] sm:$0xff]  ;;  %v6859_v12 = vpop.f32.mrf.mxu3 }
 0x9ca   :  { %v6607_v0 = vadd.f32 %v15519_v46, %v17965_v39 }
 0x9cb   :  { %7104 = vmatmul.f32.gmra.mxu2 %v7103_v18  ;;  %7243 = vmatmul.f32.gmra.mxu3 %v15617_v16  ;;  %v7108_v5 = vsub.f32 %v7040_v23, %v15617_v16  ;;  %v6848_v18 = vadd.f32 %v6847_v50, %v6763_v11 }
 0x9cc   :  { %v6693_v51 = vadd.f32 %v15551_v28, %v6607_v0 }
 0x9cd   :  { %v6917_v48 = vpop.f32.mrf.mxu0  ;;  %v6979_v8 = vpop.f32.mrf.mxu1  ;;  %7323 = vmatmul.f32.gmra.mxu0 %v7108_v5  ;;  %v7109_v57 = vand.u32 4294901760, %v7108_v5 }
 0x9ce   :  { %v6980_v42 = vadd.f32 %v6979_v8, %v6914_v1  ;;  %v6918_v32 = vadd.f32 %v6917_v48, %v6836_v40  ;;  %v6768_v8 = vadd.f32 %v6767_v22, %v6693_v51 }
 0x9cf   :  { %7409 = vmatmul.f32.gmra.mxu1 %v7109_v57  ;;  %v7110_v53 = vsub.f32 %v7108_v5, %v7109_v57 }
 0x9d0   :  { %10851 = vst.msk [vmem:[%s17524_s10 + $0x78] sm:$0xff] %vm1624_vm3, %v6980_v42  ;;  %v7043_v3 = vsel %vm1624_vm3, %v6980_v42, 0  ;;  %v17966_v42 = vld [vmem:[#allocation11_spill] sm:$0xff] }
 0x9d1   :  { %v15629_v33 = vand.u32 4294901760, %v7043_v3  ;;  %v7111_v45 = vand.u32 4294901760, %v7110_v53  ;;  %v6615_v53 = vadd.f32 %v15549_v31, %v17966_v42 }
 0x9d3   :  { %7112 = vmatmul.f32.gmra.mxu2 %v7111_v45  ;;  %7247 = vmatmul.f32.gmra.mxu3 %v15629_v33  ;;  %v7116_v61 = vsub.f32 %v7043_v3, %v15629_v33  ;;  %v6854_v3 = vadd.f32 %v6853_v7, %v6768_v8  ;;  %v6697_v45 = vadd.f32 %v15565_v20, %v6615_v53 }
 0x9d5   :  { %v6921_v59 = vpop.f32.mrf.mxu0  ;;  %v6983_v13 = vpop.f32.mrf.mxu1  ;;  %7328 = vmatmul.f32.gmra.mxu0 %v7116_v61  ;;  %v7117_v25 = vand.u32 4294901760, %v7116_v61 }
 0x9d6   :  { %v6984_v37 = vadd.f32 %v6983_v13, %v6918_v32  ;;  %v6922_v30 = vadd.f32 %v6921_v59, %v6842_v56  ;;  %v6773_v32 = vadd.f32 %v6772_v26, %v6697_v45  ;;  %v6777_v13 = vpop.f32.mrf.mxu2 }
 0x9d7   :  { %7415 = vmatmul.f32.gmra.mxu1 %v7117_v25  ;;  %v7118_v2 = vsub.f32 %v7116_v61, %v7117_v25 }
 0x9d8   :  { %10852 = vst.msk [vmem:[%s17524_s10 + $0x80] sm:$0xff] %vm1624_vm3, %v6984_v37  ;;  %v7046_v36 = vsel %vm1624_vm3, %v6984_v37, 0  ;;  %v6623_v37 = vadd.f32 %v15563_v60, %v17967_v4  ;;  %v6860_v43 = vadd.f32 %v6859_v12, %v6773_v32 }
 0x9d9   :  { %v15641_v55 = vand.u32 4294901760, %v7046_v36  ;;  %v7119_v24 = vand.u32 4294901760, %v7118_v2 }
 0x9db   :  { %7120 = vmatmul.f32.gmra.mxu2 %v7119_v24  ;;  %7251 = vmatmul.f32.gmra.mxu3 %v15641_v55  ;;  %v7124_v35 = vsub.f32 %v7046_v36, %v15641_v55  ;;  %v6701_v36 = vadd.f32 %v15569_v49, %v6623_v37  ;;  %v6865_v24 = vpop.f32.mrf.mxu3 }
 0x9dd   :  { %v6925_v54 = vpop.f32.mrf.mxu0  ;;  %v6987_v19 = vpop.f32.mrf.mxu1  ;;  %7333 = vmatmul.f32.gmra.mxu0 %v7124_v35  ;;  %v7125_v63 = vand.u32 4294901760, %v7124_v35 }
 0x9de   :  { %v6988_v34 = vadd.f32 %v6987_v19, %v6922_v30  ;;  %v6926_v46 = vadd.f32 %v6925_v54, %v6848_v18  ;;  %v6778_v30 = vadd.f32 %v6777_v13, %v6701_v36 }
 0x9df   :  { %7421 = vmatmul.f32.gmra.mxu1 %v7125_v63  ;;  %v7126_v10 = vsub.f32 %v7124_v35, %v7125_v63  ;;  %v17968_v63 = vld [vmem:[#allocation5_spill] sm:$0xff] }
 0x9e0   :  { %10853 = vst.msk [vmem:[%s17524_s10 + $0x88] sm:$0xff] %vm1624_vm3, %v6988_v34  ;;  %v7049_v44 = vsel %vm1624_vm3, %v6988_v34, 0  ;;  %v6631_v11 = vadd.f32 %v15567_v27, %v17968_v63  ;;  %v6782_v34 = vpop.f32.mrf.mxu2  ;;  %v6866_v39 = vadd.f32 %v6865_v24, %v6778_v30 }
 0x9e1   :  { %v15653_v21 = vand.u32 4294901760, %v7049_v44  ;;  %v7127_v23 = vand.u32 4294901760, %v7126_v10 }
 0x9e2   :  { %v6705_v0 = vadd.f32 %v15576_v29, %v6631_v11 }
 0x9e3   :  { %7128 = vmatmul.f32.gmra.mxu2 %v7127_v23  ;;  %7255 = vmatmul.f32.gmra.mxu3 %v15653_v21  ;;  %v7132_v62 = vsub.f32 %v7049_v44, %v15653_v21  ;;  %v6871_v23 = vpop.f32.mrf.mxu3 }
 0x9e5   :  { %v6929_v5 = vpop.f32.mrf.mxu0  ;;  %v6991_v1 = vpop.f32.mrf.mxu1  ;;  %7338 = vmatmul.f32.gmra.mxu0 %v7132_v62  ;;  %v7133_v48 = vand.u32 4294901760, %v7132_v62 }
 0x9e6   :  { %v6992_v57 = vadd.f32 %v6991_v1, %v6926_v46  ;;  %v6930_v31 = vadd.f32 %v6929_v5, %v6854_v3  ;;  %v17969_v1 = vld [vmem:[#allocation12_spill] sm:$0xff] }
 0x9e7   :  { %7427 = vmatmul.f32.gmra.mxu1 %v7133_v48  ;;  %v7134_v47 = vsub.f32 %v7132_v62, %v7133_v48  ;;  %v6783_v62 = vadd.f32 %v6782_v34, %v6705_v0  ;;  %v6639_v48 = vadd.f32 %v15574_v15, %v17969_v1 }
 0x9e8   :  { %10854 = vst.msk [vmem:[%s17524_s10 + $0x90] sm:$0xff] %vm1624_vm3, %v6992_v57  ;;  %v7052_v28 = vsel %vm1624_vm3, %v6992_v57, 0  ;;  %v6787_v53 = vpop.f32.mrf.mxu2 }
 0x9e9   :  { %v15665_v38 = vand.u32 4294901760, %v7052_v28  ;;  %v7135_v41 = vand.u32 4294901760, %v7134_v47  ;;  %v6872_v47 = vadd.f32 %v6871_v23, %v6783_v62  ;;  %v6709_v42 = vadd.f32 %v15581_v14, %v6639_v48 }
 0x9eb   :  { %7136 = vmatmul.f32.gmra.mxu2 %v7135_v41  ;;  %7259 = vmatmul.f32.gmra.mxu3 %v15665_v38  ;;  %v7140_v40 = vsub.f32 %v7052_v28, %v15665_v38  ;;  %v6788_v3 = vadd.f32 %v6787_v53, %v6709_v42 }
 0x9ed   :  { %v6933_v58 = vpop.f32.mrf.mxu0  ;;  %v6995_v61 = vpop.f32.mrf.mxu1  ;;  %7343 = vmatmul.f32.gmra.mxu0 %v7140_v40  ;;  %v7141_v50 = vand.u32 4294901760, %v7140_v40 }
 0x9ee   :  { %v6996_v59 = vadd.f32 %v6995_v61, %v6930_v31  ;;  %v6934_v60 = vadd.f32 %v6933_v58, %v6860_v43 }
 0x9ef   :  { %7433 = vmatmul.f32.gmra.mxu1 %v7141_v50  ;;  %v7142_v25 = vsub.f32 %v7140_v40, %v7141_v50  ;;  %v6877_v40 = vpop.f32.mrf.mxu3 }
 0x9f0   :  { %10855 = vst.msk [vmem:[%s17524_s10 + $0x98] sm:$0xff] %vm1624_vm3, %v6996_v59  ;;  %v7055_v20 = vsel %vm1624_vm3, %v6996_v59, 0  ;;  %v6878_v32 = vadd.f32 %v6877_v40, %v6788_v3 }
 0x9f1   :  { %v15677_v2 = vand.u32 4294901760, %v7055_v20  ;;  %v7143_v9 = vand.u32 4294901760, %v7142_v25 }
 0x9f3   :  { %7144 = vmatmul.f32.gmra.mxu2 %v7143_v9  ;;  %7263 = vmatmul.f32.gmra.mxu3 %v15677_v2  ;;  %v7148_v56 = vsub.f32 %v7055_v20, %v15677_v2 }
 0x9f5   :  { %v6937_v52 = vpop.f32.mrf.mxu0  ;;  %v6999_v22 = vpop.f32.mrf.mxu1  ;;  %7348 = vmatmul.f32.gmra.mxu0 %v7148_v56  ;;  %v7149_v35 = vand.u32 4294901760, %v7148_v56 }
 0x9f6   :  { %v7000_v54 = vadd.f32 %v6999_v22, %v6934_v60  ;;  %v6938_v27 = vadd.f32 %v6937_v52, %v6866_v39 }
 0x9f7   :  { %7439 = vmatmul.f32.gmra.mxu1 %v7149_v35  ;;  %v7150_v19 = vsub.f32 %v7148_v56, %v7149_v35 }
 0x9f8   :  { %10856 = vst.msk [vmem:[%s17524_s10 + $0xa0] sm:$0xff] %vm1624_vm3, %v7000_v54  ;;  %v7058_v49 = vsel %vm1624_vm3, %v7000_v54, 0 }
 0x9f9   :  { %v15689_v7 = vand.u32 4294901760, %v7058_v49  ;;  %v7151_v10 = vand.u32 4294901760, %v7150_v19 }
 0x9fb   :  { %7152 = vmatmul.f32.gmra.mxu2 %v7151_v10  ;;  %7267 = vmatmul.f32.gmra.mxu3 %v15689_v7  ;;  %v7156_v44 = vsub.f32 %v7058_v49, %v15689_v7 }
 0x9fd   :  { %v7003_v18 = vpop.f32.mrf.mxu1  ;;  %7353 = vmatmul.f32.gmra.mxu0 %v7156_v44  ;;  %v7157_v51 = vand.u32 4294901760, %v7156_v44  ;;  %v6941_v46 = vpop.f32.mrf.mxu0 }
 0x9fe   :  { %v7004_v26 = vadd.f32 %v7003_v18, %v6938_v27  ;;  %v6942_v15 = vadd.f32 %v6941_v46, %v6872_v47 }
 0x9ff   :  { %7445 = vmatmul.f32.gmra.mxu1 %v7157_v51  ;;  %v7158_v5 = vsub.f32 %v7156_v44, %v7157_v51 }
 0xa00   :  { %10857 = vst.msk [vmem:[%s17524_s10 + $0xa8] sm:$0xff] %vm1624_vm3, %v7004_v26  ;;  %v7061_v29 = vsel %vm1624_vm3, %v7004_v26, 0 }
 0xa01   :  { %v15701_v8 = vand.u32 4294901760, %v7061_v29  ;;  %v7159_v57 = vand.u32 4294901760, %v7158_v5 }
 0xa03   :  { %7160 = vmatmul.f32.gmra.mxu2 %v7159_v57  ;;  %7271 = vmatmul.f32.gmra.mxu3 %v15701_v8  ;;  %v7164_v28 = vsub.f32 %v7061_v29, %v15701_v8 }
 0xa05   :  { %v7007_v12 = vpop.f32.mrf.mxu1  ;;  %7358 = vmatmul.f32.gmra.mxu0 %v7164_v28  ;;  %v7165_v41 = vand.u32 4294901760, %v7164_v28  ;;  %v6945_v58 = vpop.f32.mrf.mxu0 }
 0xa06   :  { %v7008_v45 = vadd.f32 %v7007_v12, %v6942_v15  ;;  %v6946_v13 = vadd.f32 %v6945_v58, %v6878_v32 }
 0xa07   :  { %7451 = vmatmul.f32.gmra.mxu1 %v7165_v41  ;;  %v7166_v31 = vsub.f32 %v7164_v28, %v7165_v41 }
 0xa08   :  { %10858 = vst.msk [vmem:[%s17524_s10 + $0xb0] sm:$0xff] %vm1624_vm3, %v7008_v45  ;;  %v7064_v14 = vsel %vm1624_vm3, %v7008_v45, 0 }
 0xa09   :  { %v7171_v61 = vand.u32 4294901760, %v7064_v14  ;;  %v7167_v50 = vand.u32 4294901760, %v7166_v31 }
 0xa0b   :  { %7168 = vmatmul.f32.gmra.mxu2 %v7167_v50  ;;  %7275 = vmatmul.f32.gmra.mxu3 %v7171_v61  ;;  %v7172_v59 = vsub.f32 %v7064_v14, %v7171_v61 }
 0xa0d   :  { %v7011_v25 = vpop.f32.mrf.mxu1  ;;  %7363 = vmatmul.f32.gmra.mxu0 %v7172_v59  ;;  %v7173_v4 = vand.u32 4294901760, %v7172_v59 }
 0xa0e   :  { %v7012_v37 = vadd.f32 %v7011_v25, %v6946_v13 }
 0xa0f   :  { %7457 = vmatmul.f32.gmra.mxu1 %v7173_v4  ;;  %v7174_v20 = vsub.f32 %v7172_v59, %v7173_v4 }
 0xa10   :  { %10859 = vst.msk [vmem:[%s17524_s10 + $0xb8] sm:$0xff] %vm1624_vm3, %v7012_v37  ;;  %v7067_v9 = vsel %vm1624_vm3, %v7012_v37, 0 }
 0xa11   :  { %v7179_v43 = vand.u32 4294901760, %v7067_v9  ;;  %v7175_v36 = vand.u32 4294901760, %v7174_v20 }
 0xa13   :  { %7176 = vmatmul.f32.gmra.mxu2 %v7175_v36  ;;  %7279 = vmatmul.f32.gmra.mxu3 %v7179_v43  ;;  %v7180_v24 = vsub.f32 %v7067_v9, %v7179_v43 }
 0xa15   :  { %7368 = vmatmul.f32.gmra.mxu0 %v7180_v24  ;;  %v7181_v56 = vand.u32 4294901760, %v7180_v24 }
 0xa17   :  { %7463 = vmatmul.f32.gmra.mxu1 %v7181_v56  ;;  %v7182_v60 = vsub.f32 %v7180_v24, %v7181_v56 }
 0xa19   :  { %v7183_v52 = vand.u32 4294901760, %v7182_v60 }
 0xa1b   :  { %7184 = vmatmul.f32.gmra.mxu2 %v7183_v52  ;;  %7573 = vmatmul.f32.vlgmr.msrb.gmra.mxu3 %v15593_v6 }
 0xa23   :  { %7502 = vmatmul.f32.vlgmr.msrb.gmra.mxu2 %v15593_v6  ;;  %7577 = vmatmul.f32.gmra.mxu3 %v15605_v17 }
 0xa2b   :  { %7506 = vmatmul.f32.gmra.mxu2 %v15605_v17  ;;  %7581 = vmatmul.f32.gmra.mxu3 %v15617_v16 }
 0xa33   :  { %7510 = vmatmul.f32.gmra.mxu2 %v15617_v16  ;;  %7585 = vmatmul.f32.gmra.mxu3 %v15629_v33 }
 0xa3a   :  { %v15760_v39 = vpop.f32.mrf.mxu0 }
 0xa3b   :  { %7514 = vmatmul.f32.gmra.mxu2 %v15629_v33  ;;  %7589 = vmatmul.f32.gmra.mxu3 %v15641_v55  ;;  %17970 = vst [vmem:[#allocation15_spill] sm:$0xff] %v15760_v39 }
 0xa3c   :  { %v15762_v0 = vpop.f32.mrf.mxu1 }
 0xa3d   :  { %17971 = vst [vmem:[#allocation14_spill] sm:$0xff] %v15762_v0 }
 0xa3e   :  { %v15725_v22 = vpop.f32.mrf.mxu3 }
 0xa42   :  { %v15764_v23 = vpop.f32.mrf.mxu0 }
 0xa43   :  { %7518 = vmatmul.f32.gmra.mxu2 %v15641_v55  ;;  %7593 = vmatmul.f32.gmra.mxu3 %v15653_v21 }
 0xa44   :  { %v15766_v62 = vpop.f32.mrf.mxu1 }
 0xa45   :  { %17972 = vst [vmem:[#allocation20_spill] sm:$0xff] %v15766_v62 }
 0xa46   :  { %v15729_v6 = vpop.f32.mrf.mxu2  ;;  %v15731_v35 = vpop.f32.mrf.mxu3 }
 0xa4a   :  { %v15768_v26 = vpop.f32.mrf.mxu0 }
 0xa4b   :  { %7522 = vmatmul.f32.gmra.mxu2 %v15653_v21  ;;  %7597 = vmatmul.f32.gmra.mxu3 %v15665_v38 }
 0xa4c   :  { %v15772_v1 = vpop.f32.mrf.mxu1 }
 0xa4d   :  { %17974 = vst [vmem:[#allocation44_spill] sm:$0xff] %v15772_v1 }
 0xa4e   :  { %v15735_v17 = vpop.f32.mrf.mxu2  ;;  %v15737_v16 = vpop.f32.mrf.mxu3 }
 0xa53   :  { %7526 = vmatmul.f32.gmra.mxu2 %v15665_v38  ;;  %7601 = vmatmul.f32.gmra.mxu3 %v15677_v2 }
 0xa54   :  { %v15780_v57 = vpop.f32.mrf.mxu1 }
 0xa56   :  { %v15741_v33 = vpop.f32.mrf.mxu2  ;;  %v15743_v55 = vpop.f32.mrf.mxu3 }
 0xa5b   :  { %7530 = vmatmul.f32.gmra.mxu2 %v15677_v2  ;;  %7605 = vmatmul.f32.gmra.mxu3 %v15689_v7 }
 0xa5c   :  { %v15786_v28 = vpop.f32.mrf.mxu1 }
 0xa5e   :  { %v15747_v30 = vpop.f32.mrf.mxu2  ;;  %v15749_v21 = vpop.f32.mrf.mxu3 }
 0xa63   :  { %7534 = vmatmul.f32.gmra.mxu2 %v15689_v7  ;;  %7609 = vmatmul.f32.gmra.mxu3 %v15701_v8 }
 0xa64   :  { %v7428_v40 = vpop.f32.mrf.mxu1 }
 0xa66   :  { %v15753_v54 = vpop.f32.mrf.mxu2  ;;  %v15755_v38 = vpop.f32.mrf.mxu3 }
 0xa6b   :  { %7538 = vmatmul.f32.gmra.mxu2 %v15701_v8  ;;  %7613 = vmatmul.f32.gmra.mxu3 %v7171_v61  ;;  %v15778_v8 = vpop.f32.mrf.mxu0 }
 0xa6e   :  { %v15758_v19 = vpop.f32.mrf.mxu2  ;;  %v7260_v2 = vpop.f32.mrf.mxu3 }
 0xa73   :  { %7542 = vmatmul.f32.gmra.mxu2 %v7171_v61  ;;  %7617 = vmatmul.f32.gmra.mxu3 %v7179_v43  ;;  %v7334_v53 = vpop.f32.mrf.mxu0  ;;  %v7434_v61 = vpop.f32.mrf.mxu1 }
 0xa76   :  { %v7145_v63 = vpop.f32.mrf.mxu2  ;;  %v7264_v11 = vpop.f32.mrf.mxu3 }
 0xa7b   :  { %7546 = vmatmul.f32.gmra.mxu2 %v7179_v43  ;;  %v7339_v41 = vpop.f32.mrf.mxu0  ;;  %v7440_v13 = vpop.f32.mrf.mxu1 }
 0xa7e   :  { %v7153_v49 = vpop.f32.mrf.mxu2  ;;  %v7268_v34 = vpop.f32.mrf.mxu3 }
 0xa83   :  { %v7344_v31 = vpop.f32.mrf.mxu0  ;;  %v7446_v20 = vpop.f32.mrf.mxu1 }
 0xa86   :  { %v7161_v7 = vpop.f32.mrf.mxu2  ;;  %v7272_v10 = vpop.f32.mrf.mxu3 }
 0xa8b   :  { %v7349_v59 = vpop.f32.mrf.mxu0  ;;  %v7452_v56 = vpop.f32.mrf.mxu1 }
 0xa8e   :  { %v7169_v44 = vpop.f32.mrf.mxu2  ;;  %v7276_v27 = vpop.f32.mrf.mxu3 }
 0xa8f   :  { %v7273_v52 = vadd.f32 %v7272_v10, %v7169_v44  ;;  %v7253_v10 = vadd.f32 %v15749_v21, %v15753_v54 }
 0xa93   :  { %v7354_v37 = vpop.f32.mrf.mxu0 }
 0xa96   :  { %v7177_v18 = vpop.f32.mrf.mxu2  ;;  %v7280_v51 = vpop.f32.mrf.mxu3 }
 0xa9b   :  { %v7359_v36 = vpop.f32.mrf.mxu0 }
 0xa9e   :  { %v7185_v46 = vpop.f32.mrf.mxu2  ;;  %v15770_v5 = vpop.f32.mrf.mxu3 }
 0xa9f   :  { %17973 = vst [vmem:[#allocation18_spill] sm:$0xff] %v15770_v5  ;;  %v7277_v5 = vadd.f32 %v7276_v27, %v7177_v18  ;;  %v7281_v1 = vadd.f32 %v7280_v51, %v7185_v46  ;;  %v7335_v46 = vadd.f32 %v7334_v53, %v7253_v10 }
 0xaa6   :  { %v15774_v48 = vpop.f32.mrf.mxu2  ;;  %v15776_v29 = vpop.f32.mrf.mxu3 }
 0xaa7   :  { %17975 = vst [vmem:[#allocation37_spill] sm:$0xff] %v15774_v48  ;;  %v7269_v48 = vadd.f32 %v7268_v34, %v7161_v7 }
 0xaa8   :  { %17976 = vst [vmem:[#allocation46_spill] sm:$0xff] %v15776_v29  ;;  %v7364_v29 = vpop.f32.mrf.mxu0 }
 0xaa9   :  { %v7365_v0 = vadd.f32 %v7364_v29, %v7277_v5  ;;  %v7355_v62 = vadd.f32 %v7354_v37, %v7269_v48  ;;  %v7621_v37 = vld [vmem:[%s17525_s5] sm:$0xff] }
 0xaab   :  { %v7447_v34 = vadd.f32 %v7446_v20, %v7355_v62  ;;  %v17990_v20 = vld [vmem:[#allocation20_spill] sm:$0xff] }
 0xaae   :  { %v15782_v47 = vpop.f32.mrf.mxu2  ;;  %v15784_v42 = vpop.f32.mrf.mxu3 }
 0xaaf   :  { %17977 = vst [vmem:[#allocation39_spill] sm:$0xff] %v15782_v47  ;;  %v7360_v47 = vadd.f32 %v7359_v36, %v7273_v52 }
 0xab0   :  { %17978 = vst [vmem:[#allocation48_spill] sm:$0xff] %v15784_v42  ;;  %v7369_v7 = vpop.f32.mrf.mxu0 }
 0xab1   :  { %v7453_v39 = vadd.f32 %v7452_v56, %v7360_v47  ;;  %v7370_v5 = vadd.f32 %v7369_v7, %v7281_v1 }
 0xab6   :  { %v15788_v15 = vpop.f32.mrf.mxu2  ;;  %v15790_v12 = vpop.f32.mrf.mxu3 }
 0xab7   :  { %17979 = vst [vmem:[#allocation42_spill] sm:$0xff] %v15788_v15  ;;  %v7458_v15 = vpop.f32.mrf.mxu1 }
 0xab8   :  { %17980 = vst [vmem:[#allocation50_spill] sm:$0xff] %v15790_v12  ;;  %v7265_v12 = vadd.f32 %v7264_v11, %v7153_v49 }
 0xabe   :  { %v15792_v3 = vpop.f32.mrf.mxu2  ;;  %v15794_v45 = vpop.f32.mrf.mxu3 }
 0xabf   :  { %17981 = vst [vmem:[#allocation45_spill] sm:$0xff] %v15792_v3  ;;  %v7350_v3 = vadd.f32 %v7349_v59, %v7265_v12  ;;  %v7464_v29 = vpop.f32.mrf.mxu1 }
 0xac0   :  { %17982 = vst [vmem:[#allocation51_spill] sm:$0xff] %v15794_v45  ;;  %v7261_v45 = vadd.f32 %v7260_v2, %v7145_v63  ;;  %v7249_v2 = vadd.f32 %v15743_v55, %v15747_v30 }
 0xac2   :  { %v7345_v44 = vadd.f32 %v7344_v31, %v7261_v45  ;;  %v7330_v62 = vadd.f32 %v15778_v8, %v7249_v2 }
 0xac4   :  { %v7435_v21 = vadd.f32 %v7434_v61, %v7345_v44 }
 0xac6   :  { %v15796_v14 = vpop.f32.mrf.mxu2  ;;  %v15798_v58 = vpop.f32.mrf.mxu3  ;;  %v17988_v59 = vld [vmem:[#allocation45_spill] sm:$0xff] }
 0xac7   :  { %17983 = vst [vmem:[#allocation47_spill] sm:$0xff] %v15798_v58  ;;  %v7257_v58 = vadd.f32 %v15755_v38, %v15758_v19  ;;  %v7441_v38 = vadd.f32 %v7440_v13, %v7350_v3  ;;  %v7417_v3 = vadd.f32 %v15780_v57, %v7330_v62 }
 0xac9   :  { %v7340_v63 = vadd.f32 %v7339_v41, %v7257_v58  ;;  %v7516_v13 = vadd.f32 %v17988_v59, %v7417_v3 }
 0xacb   :  { %v7429_v30 = vadd.f32 %v7428_v40, %v7340_v63  ;;  %v7734_v63 = vsel %vm2343_vm4, %v7621_v37, 0 }
 0xace   :  { %v7523_v50 = vpop.f32.mrf.mxu2  ;;  %v15800_v32 = vpop.f32.mrf.mxu3 }
 0xacf   :  { %17984 = vst [vmem:[#allocation53_spill] sm:$0xff] %v15800_v32  ;;  %v7459_v32 = vadd.f32 %v7458_v15, %v7365_v0  ;;  %v7245_v0 = vadd.f32 %v15737_v16, %v15741_v33  ;;  %v7237_v15 = vadd.f32 %v15725_v22, %v15729_v6  ;;  %v7423_v33 = vadd.f32 %v15786_v28, %v7335_v46  ;;  %v17986_v28 = vld [vmem:[#allocation15_spill] sm:$0xff]  ;;  %v17997_v46 = vld [vmem:[#allocation48_spill] sm:$0xff] }
 0xad0   :  { %v7524_v12 = vadd.f32 %v7523_v50, %v7429_v30  ;;  %v17987_v50 = vld [vmem:[#allocation44_spill] sm:$0xff]  ;;  %v17998_v30 = vld [vmem:[#allocation46_spill] sm:$0xff] }
 0xad1   :  { %v7325_v16 = vadd.f32 %v15768_v26, %v7245_v0  ;;  %v7520_v45 = vadd.f32 %v15796_v14, %v7423_v33  ;;  %v7315_v61 = vadd.f32 %v17986_v28, %v7237_v15 }
 0xad6   :  { %v7527_v25 = vpop.f32.mrf.mxu2  ;;  %v7602_v4 = vpop.f32.mrf.mxu3  ;;  %v17985_v40 = vld [vmem:[#allocation53_spill] sm:$0xff] }
 0xad7   :  { %v7528_v55 = vadd.f32 %v7527_v25, %v7435_v21 }
 0xad9   :  { %v7599_v31 = vadd.f32 %v17985_v40, %v7528_v55  ;;  %v15888_v55 = vand.u32 4294901760, %v7734_v63 }
 0xade   :  { %v7531_v9 = vpop.f32.mrf.mxu2  ;;  %v7606_v43 = vpop.f32.mrf.mxu3 }
 0xadf   :  { %v7532_v54 = vadd.f32 %v7531_v9, %v7441_v38 }
 0xae1   :  { %v7603_v41 = vadd.f32 %v7602_v4, %v7532_v54 }
 0xae3   :  { %v15834_v57 = vand.u32 4294901760, %v7603_v41 }
 0xae5   :  { %v15868_v38 = vsub.f32 %v7603_v41, %v15834_v57  ;;  %v17999_v41 = vld [vmem:[#allocation18_spill] sm:$0xff] }
 0xae6   :  { %v7535_v24 = vpop.f32.mrf.mxu2  ;;  %v7610_v60 = vpop.f32.mrf.mxu3 }
 0xae7   :  { %v7536_v19 = vadd.f32 %v7535_v24, %v7447_v34  ;;  %v17992_v24 = vld [vmem:[#allocation51_spill] sm:$0xff] }
 0xae8   :  { %v7591_v56 = vadd.f32 %v17992_v24, %v7520_v45  ;;  %v17994_v34 = vld [vmem:[#allocation39_spill] sm:$0xff] }
 0xae9   :  { %v7607_v47 = vadd.f32 %v7606_v43, %v7536_v19  ;;  %v17991_v43 = vld [vmem:[#allocation42_spill] sm:$0xff] }
 0xaea   :  { %v15873_v54 = vand.u32 4294901760, %v7591_v56 }
 0xaeb   :  { %v15825_v22 = vand.u32 4294901760, %v7607_v47 }
 0xaec   :  { %v15911_v3 = vsub.f32 %v7591_v56, %v15873_v54 }
 0xaed   :  { %v15855_v10 = vsub.f32 %v7607_v47, %v15825_v22 }
 0xaee   :  { %v7539_v42 = vpop.f32.mrf.mxu2  ;;  %v7614_v27 = vpop.f32.mrf.mxu3 }
 0xaef   :  { %v7540_v11 = vadd.f32 %v7539_v42, %v7453_v39  ;;  %v7241_v39 = vadd.f32 %v15731_v35, %v15735_v17  ;;  %v7465_v42 = vadd.f32 %v7464_v29, %v7370_v5  ;;  %v7962_v29 = vand.u32 4294901760, %v15855_v10 }
 0xaf1   :  { %v7611_v48 = vadd.f32 %v7610_v60, %v7540_v11  ;;  %v7320_v8 = vadd.f32 %v15764_v23, %v7241_v39  ;;  %v17989_v23 = vld [vmem:[#allocation47_spill] sm:$0xff]  ;;  %v15847_v60 = vand.u32 4294901760, %v7599_v31  ;;  %v7963_v40 = vsub.f32 %v15855_v10, %v7962_v29 }
 0xaf2   :  { %v7595_v25 = vadd.f32 %v17989_v23, %v7524_v12  ;;  %v7622_v12 = vld [vmem:[%s17525_s5 + $0x8] sm:$0xff] }
 0xaf3   :  { %v15819_v35 = vand.u32 4294901760, %v7611_v48  ;;  %v7405_v9 = vadd.f32 %v17990_v20, %v7320_v8  ;;  %v7737_v28 = vsel %vm2343_vm4, %v7622_v12, 0  ;;  %v7964_v37 = vand.u32 4294901760, %v7963_v40 }
 0xaf4   :  { %v15862_v7 = vand.u32 4294901760, %v7595_v25 }
 0xaf5   :  { %v15839_v4 = vsub.f32 %v7611_v48, %v15819_v35  ;;  %v7508_v11 = vadd.f32 %v17994_v34, %v7405_v9  ;;  %v15877_v48 = vsub.f32 %v7599_v31, %v15847_v60 }
 0xaf6   :  { %v7543_v18 = vpop.f32.mrf.mxu2  ;;  %v7618_v58 = vpop.f32.mrf.mxu3  ;;  %v15900_v33 = vsub.f32 %v7595_v25, %v15862_v7  ;;  %v7986_v25 = vand.u32 4294901760, %v15911_v3 }
 0xaf7   :  { %v7544_v49 = vadd.f32 %v7543_v18, %v7459_v32  ;;  %v7411_v32 = vadd.f32 %v17987_v50, %v7325_v16  ;;  %v7956_v19 = vand.u32 4294901760, %v15839_v4  ;;  %v7579_v47 = vadd.f32 %v17998_v30, %v7508_v11 }
 0xaf8   :  { %v7974_v31 = vand.u32 4294901760, %v15877_v48  ;;  %v7980_v59 = vand.u32 4294901760, %v15900_v33 }
 0xaf9   :  { %v7615_v51 = vadd.f32 %v7614_v27, %v7544_v49  ;;  %v7512_v36 = vadd.f32 %v17991_v43, %v7411_v32  ;;  %v17993_v27 = vld [vmem:[#allocation14_spill] sm:$0xff]  ;;  %v7957_v16 = vsub.f32 %v15839_v4, %v7956_v19  ;;  %v15947_v43 = vand.u32 4294901760, %v7737_v28 }
 0xafa   :  { %v7399_v18 = vadd.f32 %v17993_v27, %v7315_v61  ;;  %v17995_v49 = vld [vmem:[#allocation50_spill] sm:$0xff]  ;;  %v7975_v20 = vsub.f32 %v15877_v48, %v7974_v31  ;;  %v7981_v24 = vsub.f32 %v15900_v33, %v7980_v59 }
 0xafb   :  { %v15813_v1 = vand.u32 4294901760, %v7615_v51  ;;  %v7587_v2 = vadd.f32 %v17995_v49, %v7516_v13  ;;  %v7583_v21 = vadd.f32 %v17997_v46, %v7512_v36  ;;  %v7958_v61 = vand.u32 4294901760, %v7957_v16 }
 0xafc   :  { %v7976_v49 = vand.u32 4294901760, %v7975_v20  ;;  %v7982_v46 = vand.u32 4294901760, %v7981_v24 }
 0xafd   :  { %v15828_v26 = vsub.f32 %v7615_v51, %v15813_v1  ;;  %v17996_v51 = vld [vmem:[#allocation37_spill] sm:$0xff]  ;;  %v15907_v8 = vand.u32 4294901760, %v7583_v21 }
 0xafe   :  { %v7547_v53 = vpop.f32.mrf.mxu2  ;;  %v7504_v0 = vadd.f32 %v17996_v51, %v7399_v18  ;;  %v7623_v18 = vld [vmem:[%s17525_s5 + $0x10] sm:$0xff]  ;;  %v7818_v51 = vsub.f32 %v7737_v28, %v15947_v43 }
 0xaff   :  { %v7548_v17 = vadd.f32 %v7547_v53, %v7465_v42  ;;  %v7950_v44 = vand.u32 4294901760, %v15828_v26  ;;  %v15891_v42 = vand.u32 4294901760, %v7587_v2  ;;  %v7968_v53 = vand.u32 4294901760, %v15868_v38 }
 0xb00   :  { %v15939_v23 = vsub.f32 %v7583_v21, %v15907_v8  ;;  %v7819_v16 = vand.u32 4294901760, %v7818_v51 }
 0xb01   :  { %v7619_v6 = vadd.f32 %v7618_v58, %v7548_v17  ;;  %v7951_v62 = vsub.f32 %v15828_v26, %v7950_v44  ;;  %v7575_v17 = vadd.f32 %v17999_v41, %v7504_v0  ;;  %v15919_v58 = vsub.f32 %v7734_v63, %v15888_v55 }
 0xb02   :  { %v7969_v50 = vsub.f32 %v15868_v38, %v7968_v53  ;;  %v15931_v32 = vsub.f32 %v7587_v2, %v15891_v42  ;;  %v7998_v11 = vand.u32 4294901760, %v15939_v23  ;;  %v7987_v2 = vsub.f32 %v15911_v3, %v7986_v25 }
 0xb03   :  { %v15836_v14 = vand.u32 4294901760, %v7619_v6  ;;  %v7952_v45 = vand.u32 4294901760, %v7951_v62  ;;  %v15934_v13 = vand.u32 4294901760, %v7575_v17  ;;  %v7811_v9 = vand.u32 4294901760, %v15919_v58 }
 0xb04   :  { %v7970_v36 = vand.u32 4294901760, %v7969_v50  ;;  %v7992_v27 = vand.u32 4294901760, %v15931_v32  ;;  %v7740_v0 = vsel %vm2343_vm4, %v7623_v18, 0  ;;  %v7999_v62 = vsub.f32 %v15939_v23, %v7998_v11 }
 0xb05   :  { %v15850_v52 = vsub.f32 %v7619_v6, %v15836_v14  ;;  %7786 = vmatpush.msra.mxu0 %v15836_v14  ;;  %8205 = vmatpush.msra.mxu3 %v15836_v14  ;;  %v15921_v6 = vand.u32 4294901760, %v7579_v47  ;;  %v15965_v34 = vsub.f32 %v7575_v17, %v15934_v13  ;;  %v7812_v63 = vsub.f32 %v15919_v58, %v7811_v9 }
 0xb06   :  { %v7993_v21 = vsub.f32 %v15931_v32, %v7992_v27  ;;  %v15989_v12 = vand.u32 4294901760, %v7740_v0  ;;  %v8000_v40 = vand.u32 4294901760, %v7999_v62 }
 0xb07   :  { %7788 = vmatpush.msra.mxu0 %v15813_v1  ;;  %8085 = vmatpush.msra.mxu2 %v15850_v52  ;;  %v7944_v5 = vand.u32 4294901760, %v15850_v52  ;;  %v15956_v56 = vsub.f32 %v7579_v47, %v15921_v6  ;;  %v8010_v30 = vand.u32 4294901760, %v15965_v34  ;;  %v7988_v47 = vand.u32 4294901760, %v7987_v2 }
 0xb08   :  { %8207 = vmatpush.msra.mxu3 %v15813_v1  ;;  %v7994_v41 = vand.u32 4294901760, %v7993_v21  ;;  %v7826_v50 = vsub.f32 %v7740_v0, %v15989_v12 }
 0xb09   :  { %7790 = vmatpush.msra.mxu0 %v15819_v35  ;;  %8088 = vmatpush.msra.mxu2 %v15828_v26  ;;  %v7945_v39 = vsub.f32 %v15850_v52, %v7944_v5  ;;  %v8011_v28 = vsub.f32 %v15965_v34, %v8010_v30  ;;  %v7625_v52 = vld [vmem:[%s17525_s5 + $0x20] sm:$0xff] }
 0xb0a   :  { %8209 = vmatpush.msra.mxu3 %v15819_v35  ;;  %v7827_v18 = vand.u32 4294901760, %v7826_v50 }
 0xb0b   :  { %7792 = vmatpush.msra.mxu0 %v15825_v22  ;;  %8091 = vmatpush.msra.mxu2 %v15839_v4  ;;  %v7946_v15 = vand.u32 4294901760, %v7945_v39  ;;  %v8004_v39 = vand.u32 4294901760, %v15956_v56  ;;  %v7746_v4 = vsel %vm2343_vm4, %v7625_v52, 0 }
 0xb0c   :  { %8211 = vmatpush.msra.mxu3 %v15825_v22  ;;  %v7828_v26 = vsub.f32 %v7826_v50, %v7827_v18 }
 0xb0d   :  { %7794 = vmatpush.msra.mxu0 %v15834_v57  ;;  %7947 = vmatpush.msra.mxu1 %v7946_v15  ;;  %v7813_v15 = vand.u32 4294901760, %v7812_v63  ;;  %v8005_v17 = vsub.f32 %v15956_v56, %v8004_v39 }
 0xb0e   :  { %8094 = vmatpush.msra.mxu2 %v15855_v10  ;;  %8213 = vmatpush.msra.mxu3 %v15834_v57  ;;  %v7829_v10 = vand.u32 4294901760, %v7828_v26 }
 0xb0f   :  { %7796 = vmatpush.msra.mxu0 %v15847_v60  ;;  %7953 = vmatpush.msra.mxu1 %v7952_v45  ;;  %v7624_v45 = vld [vmem:[%s17525_s5 + $0x18] sm:$0xff]  ;;  %v8006_v20 = vand.u32 4294901760, %v8005_v17 }
 0xb10   :  { %8097 = vmatpush.msra.mxu2 %v15868_v38  ;;  %8215 = vmatpush.msra.mxu3 %v15847_v60  ;;  %v7632_v17 = vld [vmem:[%s17525_s5 + $0x58] sm:$0xff] }
 0xb11   :  { %7798 = vmatpush.msra.mxu0 %v15862_v7  ;;  %7959 = vmatpush.msra.mxu1 %v7958_v61  ;;  %v7820_v61 = vsub.f32 %v7818_v51, %v7819_v16 }
 0xb12   :  { %8100 = vmatpush.msra.mxu2 %v15877_v48  ;;  %8217 = vmatpush.msra.mxu3 %v15862_v7 }
 0xb13   :  { %7800 = vmatpush.msra.mxu0 %v15873_v54  ;;  %7965 = vmatpush.msra.mxu1 %v7964_v37  ;;  %v7743_v37 = vsel %vm2343_vm4, %v7624_v45, 0  ;;  %v7821_v24 = vand.u32 4294901760, %v7820_v61 }
 0xb14   :  { %8103 = vmatpush.msra.mxu2 %v15900_v33  ;;  %8219 = vmatpush.msra.mxu3 %v15873_v54 }
 0xb15   :  { %7802 = vmatpush.msra.mxu0 %v15891_v42  ;;  %7971 = vmatpush.msra.mxu1 %v7970_v36  ;;  %v8012_v36 = vand.u32 4294901760, %v8011_v28  ;;  %v7767_v28 = vsel %vm2343_vm4, %v7632_v17, 0 }
 0xb16   :  { %8106 = vmatpush.msra.mxu2 %v15911_v3  ;;  %8221 = vmatpush.msra.mxu3 %v15891_v42 }
 0xb17   :  { %7804 = vmatpush.msra.mxu0 %v15907_v8  ;;  %7977 = vmatpush.msra.mxu1 %v7976_v49  ;;  %v16013_v49 = vand.u32 4294901760, %v7743_v37 }
 0xb18   :  { %8109 = vmatpush.msra.mxu2 %v15931_v32  ;;  %8223 = vmatpush.msra.mxu3 %v15907_v8 }
 0xb19   :  { %7806 = vmatpush.msra.mxu0 %v15921_v6  ;;  %7983 = vmatpush.msra.mxu1 %v7982_v46 }
 0xb1a   :  { %8112 = vmatpush.msra.mxu2 %v15939_v23  ;;  %8225 = vmatpush.msra.mxu3 %v15921_v6 }
 0xb1b   :  { %7808 = vmatpush.msra.mxu0 %v15934_v13  ;;  %7989 = vmatpush.msra.mxu1 %v7988_v47 }
 0xb1c   :  { %8115 = vmatpush.msra.mxu2 %v15956_v56  ;;  %8227 = vmatpush.msra.mxu3 %v15934_v13 }
 0xb1d   :  { %7814 = vmatmul.f32.vlgmr.msra.gmra.mxu0 %v7813_v15  ;;  %7995 = vmatpush.msra.mxu1 %v7994_v41 }
 0xb1e   :  { %8332 = vmatpush.msrb.mxu0 %v7944_v5  ;;  %8118 = vmatpush.msra.mxu2 %v15965_v34 }
 0xb1f   :  { %8001 = vmatpush.msra.mxu1 %v8000_v40  ;;  %8121 = vmatmul.f32.vlgmr.msra.gmra.mxu2 %v15919_v58 }
 0xb20   :  { %8336 = vmatpush.msrb.mxu0 %v7950_v44  ;;  %8231 = vmatmul.f32.vlgmr.msra.gmra.mxu3 %v7811_v9  ;;  %v7834_v44 = vsub.f32 %v7743_v37, %v16013_v49  ;;  %v16109_v37 = vand.u32 4294901760, %v7767_v28 }
 0xb21   :  { %8007 = vmatpush.msra.mxu1 %v8006_v20  ;;  %v7633_v20 = vld [vmem:[%s17525_s5 + $0x60] sm:$0xff] }
 0xb22   :  { %8340 = vmatpush.msrb.mxu0 %v7956_v19  ;;  %v7835_v5 = vand.u32 4294901760, %v7834_v44 }
 0xb23   :  { %8013 = vmatpush.msra.mxu1 %v8012_v36 }
 0xb24   :  { %8344 = vmatpush.msrb.mxu0 %v7962_v29  ;;  %8015 = vmatmul.f32.vlgmr.msra.gmra.mxu1 %v15888_v55 }
 0xb25   :  { %7822 = vmatmul.f32.gmra.mxu0 %v7821_v24  ;;  %8447 = vmatpush.msrb.mxu1 %v15836_v14  ;;  %v16032_v14 = vand.u32 4294901760, %v7746_v4  ;;  %v7898_v24 = vsub.f32 %v7767_v28, %v16109_v37 }
 0xb26   :  { %8348 = vmatpush.msrb.mxu0 %v7968_v53 }
 0xb27   :  { %8449 = vmatpush.msrb.mxu1 %v15813_v1  ;;  %8126 = vmatmul.f32.gmra.mxu2 %v7818_v51  ;;  %v7626_v1 = vld [vmem:[%s17525_s5 + $0x28] sm:$0xff]  ;;  %v7842_v38 = vsub.f32 %v7746_v4, %v16032_v14  ;;  %v7899_v26 = vand.u32 4294901760, %v7898_v24 }
 0xb28   :  { %8352 = vmatpush.msrb.mxu0 %v7974_v31  ;;  %8237 = vmatmul.f32.gmra.mxu3 %v7819_v16  ;;  %v7634_v4 = vld [vmem:[%s17525_s5 + $0x68] sm:$0xff] }
 0xb29   :  { %8451 = vmatpush.msrb.mxu1 %v15819_v35  ;;  %v7836_v35 = vsub.f32 %v7834_v44, %v7835_v5  ;;  %v7843_v48 = vand.u32 4294901760, %v7842_v38 }
 0xb2a   :  { %8356 = vmatpush.msrb.mxu0 %v7980_v59 }
 0xb2b   :  { %8453 = vmatpush.msrb.mxu1 %v15825_v22  ;;  %v7749_v22 = vsel %vm2343_vm4, %v7626_v1, 0  ;;  %v7837_v19 = vand.u32 4294901760, %v7836_v35  ;;  %v7773_v1 = vsel %vm2343_vm4, %v7634_v4, 0 }
 0xb2c   :  { %8360 = vmatpush.msrb.mxu0 %v7986_v25  ;;  %8019 = vmatmul.f32.gmra.mxu1 %v15947_v43 }
 0xb2d   :  { %7830 = vmatmul.f32.gmra.mxu0 %v7829_v10  ;;  %8455 = vmatpush.msrb.mxu1 %v15834_v57  ;;  %v16052_v57 = vand.u32 4294901760, %v7749_v22  ;;  %v7900_v10 = vsub.f32 %v7898_v24, %v7899_v26 }
 0xb2e   :  { %8364 = vmatpush.msrb.mxu0 %v7992_v27 }
 0xb2f   :  { %8457 = vmatpush.msrb.mxu1 %v15847_v60  ;;  %8131 = vmatmul.f32.gmra.mxu2 %v7826_v50  ;;  %v7627_v60 = vld [vmem:[%s17525_s5 + $0x30] sm:$0xff]  ;;  %v7850_v29 = vsub.f32 %v7749_v22, %v16052_v57  ;;  %v7901_v35 = vand.u32 4294901760, %v7900_v10  ;;  %v16125_v22 = vand.u32 4294901760, %v7773_v1 }
 0xb30   :  { %8368 = vmatpush.msrb.mxu0 %v7998_v11  ;;  %8243 = vmatmul.f32.gmra.mxu3 %v7827_v18  ;;  %v7752_v33 = vsel %vm2343_vm4, %v7627_v60, 0  ;;  %v7630_v11 = vld [vmem:[%s17525_s5 + $0x48] sm:$0xff]  ;;  %v7770_v18 = vsel %vm2343_vm4, %v7633_v20, 0 }
 0xb31   :  { %8459 = vmatpush.msrb.mxu1 %v15862_v7  ;;  %v7844_v7 = vsub.f32 %v7842_v38, %v7843_v48  ;;  %v7851_v53 = vand.u32 4294901760, %v7850_v29  ;;  %v16068_v3 = vand.u32 4294901760, %v7752_v33  ;;  %v7761_v51 = vsel %vm2343_vm4, %v7630_v11, 0 }
 0xb32   :  { %8372 = vmatpush.msrb.mxu0 %v8004_v39  ;;  %v16093_v21 = vand.u32 4294901760, %v7761_v51  ;;  %v7631_v39 = vld [vmem:[%s17525_s5 + $0x50] sm:$0xff]  ;;  %v7914_v60 = vsub.f32 %v7773_v1, %v16125_v22 }
 0xb33   :  { %8461 = vmatpush.msrb.mxu1 %v15873_v54  ;;  %v7845_v54 = vand.u32 4294901760, %v7844_v7  ;;  %v7852_v31 = vsub.f32 %v7850_v29, %v7851_v53  ;;  %v7764_v47 = vsel %vm2343_vm4, %v7631_v39, 0 }
 0xb34   :  { %8376 = vmatpush.msrb.mxu0 %v8010_v30  ;;  %8023 = vmatmul.f32.gmra.mxu1 %v15989_v12  ;;  %v7882_v30 = vsub.f32 %v7761_v51, %v16093_v21  ;;  %v16101_v41 = vand.u32 4294901760, %v7764_v47 }
 0xb35   :  { %7838 = vmatmul.f32.gmra.mxu0 %v7837_v19  ;;  %8463 = vmatpush.msrb.mxu1 %v15891_v42  ;;  %v7628_v42 = vld [vmem:[%s17525_s5 + $0x38] sm:$0xff]  ;;  %v7635_v19 = vld [vmem:[%s17525_s5 + $0x70] sm:$0xff] }
 0xb36   :  { %v7755_v58 = vsel %vm2343_vm4, %v7628_v42, 0  ;;  %v7883_v16 = vand.u32 4294901760, %v7882_v30  ;;  %v7890_v40 = vsub.f32 %v7764_v47, %v16101_v41  ;;  %v7776_v7 = vsel %vm2343_vm4, %v7635_v19, 0 }
 0xb37   :  { %8465 = vmatpush.msrb.mxu1 %v15907_v8  ;;  %8136 = vmatmul.f32.gmra.mxu2 %v7834_v44  ;;  %v7858_v8 = vsub.f32 %v7752_v33, %v16068_v3  ;;  %v16077_v59 = vand.u32 4294901760, %v7755_v58  ;;  %v16117_v44 = vand.u32 4294901760, %v7770_v18  ;;  %v7915_v33 = vand.u32 4294901760, %v7914_v60 }
 0xb38   :  { %8249 = vmatmul.f32.gmra.mxu3 %v7835_v5  ;;  %v7884_v45 = vsub.f32 %v7882_v30, %v7883_v16  ;;  %v7891_v50 = vand.u32 4294901760, %v7890_v40 }
 0xb39   :  { %8467 = vmatpush.msrb.mxu1 %v15921_v6  ;;  %v7853_v6 = vand.u32 4294901760, %v7852_v31  ;;  %v7859_v32 = vand.u32 4294901760, %v7858_v8  ;;  %v7866_v25 = vsub.f32 %v7755_v58, %v16077_v59  ;;  %v7906_v5 = vsub.f32 %v7770_v18, %v16117_v44 }
 0xb3a   :  { %v7885_v61 = vand.u32 4294901760, %v7884_v45  ;;  %v7892_v36 = vsub.f32 %v7890_v40, %v7891_v50  ;;  %v7916_v42 = vsub.f32 %v7914_v60, %v7915_v33 }
 0xb3b   :  { %8469 = vmatpush.msrb.mxu1 %v15934_v13  ;;  %v7629_v13 = vld [vmem:[%s17525_s5 + $0x40] sm:$0xff]  ;;  %v7860_v23 = vsub.f32 %v7858_v8, %v7859_v32  ;;  %v7867_v27 = vand.u32 4294901760, %v7866_v25 }
 0xb3c   :  { %8027 = vmatmul.f32.gmra.mxu1 %v16013_v49  ;;  %v7758_v9 = vsel %vm2343_vm4, %v7629_v13, 0  ;;  %v7893_v52 = vand.u32 4294901760, %v7892_v36  ;;  %v7917_v58 = vand.u32 4294901760, %v7916_v42 }
 0xb3d   :  { %7846 = vmatmul.f32.gmra.mxu0 %v7845_v54  ;;  %v7861_v56 = vand.u32 4294901760, %v7860_v23  ;;  %v16085_v34 = vand.u32 4294901760, %v7758_v9  ;;  %v7868_v2 = vsub.f32 %v7866_v25, %v7867_v27  ;;  %v16133_v54 = vand.u32 4294901760, %v7776_v7 }
 0xb3f   :  { %8141 = vmatmul.f32.gmra.mxu2 %v7842_v38  ;;  %v7874_v63 = vsub.f32 %v7758_v9, %v16085_v34  ;;  %v7869_v0 = vand.u32 4294901760, %v7868_v2  ;;  %v7907_v38 = vand.u32 4294901760, %v7906_v5  ;;  %v7922_v31 = vsub.f32 %v7776_v7, %v16133_v54 }
 0xb40   :  { %8255 = vmatmul.f32.gmra.mxu3 %v7843_v48 }
 0xb41   :  { %v7875_v46 = vand.u32 4294901760, %v7874_v63  ;;  %v7908_v48 = vsub.f32 %v7906_v5, %v7907_v38 }
 0xb43   :  { %v7876_v62 = vsub.f32 %v7874_v63, %v7875_v46 }
 0xb44   :  { %8031 = vmatmul.f32.gmra.mxu1 %v16032_v14 }
 0xb45   :  { %7854 = vmatmul.f32.gmra.mxu0 %v7853_v6  ;;  %v7877_v15 = vand.u32 4294901760, %v7876_v62  ;;  %v7923_v6 = vand.u32 4294901760, %v7922_v31 }
 0xb47   :  { %8146 = vmatmul.f32.gmra.mxu2 %v7850_v29  ;;  %v7909_v29 = vand.u32 4294901760, %v7908_v48  ;;  %v7924_v13 = vsub.f32 %v7922_v31, %v7923_v6 }
 0xb48   :  { %8261 = vmatmul.f32.gmra.mxu3 %v7851_v53  ;;  %v7636_v53 = vld [vmem:[%s17525_s5 + $0x78] sm:$0xff] }
 0xb4c   :  { %8035 = vmatmul.f32.gmra.mxu1 %v16052_v57 }
 0xb4d   :  { %7862 = vmatmul.f32.gmra.mxu0 %v7861_v56 }
 0xb4f   :  { %8151 = vmatmul.f32.gmra.mxu2 %v7858_v8  ;;  %v7779_v8 = vsel %vm2343_vm4, %v7636_v53, 0 }
 0xb50   :  { %8267 = vmatmul.f32.gmra.mxu3 %v7859_v32  ;;  %v16141_v32 = vand.u32 4294901760, %v7779_v8 }
 0xb52   :  { %v7930_v23 = vsub.f32 %v7779_v8, %v16141_v32 }
 0xb54   :  { %8039 = vmatmul.f32.gmra.mxu1 %v16068_v3  ;;  %v7931_v9 = vand.u32 4294901760, %v7930_v23 }
 0xb55   :  { %7870 = vmatmul.f32.gmra.mxu0 %v7869_v0 }
 0xb56   :  { %v7932_v56 = vsub.f32 %v7930_v23, %v7931_v9 }
 0xb57   :  { %8156 = vmatmul.f32.gmra.mxu2 %v7866_v25  ;;  %v7925_v25 = vand.u32 4294901760, %v7924_v13 }
 0xb58   :  { %8273 = vmatmul.f32.gmra.mxu3 %v7867_v27  ;;  %v7933_v27 = vand.u32 4294901760, %v7932_v56 }
 0xb5c   :  { %8043 = vmatmul.f32.gmra.mxu1 %v16077_v59 }
 0xb5d   :  { %7878 = vmatmul.f32.gmra.mxu0 %v7877_v15 }
 0xb5f   :  { %8161 = vmatmul.f32.gmra.mxu2 %v7874_v63 }
 0xb60   :  { %8279 = vmatmul.f32.gmra.mxu3 %v7875_v46 }
 0xb64   :  { %8047 = vmatmul.f32.gmra.mxu1 %v16085_v34 }
 0xb65   :  { %7886 = vmatmul.f32.gmra.mxu0 %v7885_v61 }
 0xb67   :  { %8166 = vmatmul.f32.gmra.mxu2 %v7882_v30 }
 0xb68   :  { %8285 = vmatmul.f32.gmra.mxu3 %v7883_v16 }
 0xb6c   :  { %8051 = vmatmul.f32.gmra.mxu1 %v16093_v21 }
 0xb6d   :  { %7894 = vmatmul.f32.gmra.mxu0 %v7893_v52  ;;  %v8568_v52 = vld [vmem:[%s17526_s7] sm:$0xff] }
 0xb6f   :  { %8171 = vmatmul.f32.gmra.mxu2 %v7890_v40 }
 0xb70   :  { %8291 = vmatmul.f32.gmra.mxu3 %v7891_v50 }
 0xb74   :  { %8055 = vmatmul.f32.gmra.mxu1 %v16101_v41 }
 0xb75   :  { %7902 = vmatmul.f32.gmra.mxu0 %v7901_v35 }
 0xb77   :  { %8176 = vmatmul.f32.gmra.mxu2 %v7898_v24 }
 0xb78   :  { %8297 = vmatmul.f32.gmra.mxu3 %v7899_v26 }
 0xb7c   :  { %8059 = vmatmul.f32.gmra.mxu1 %v16109_v37 }
 0xb7d   :  { %7910 = vmatmul.f32.gmra.mxu0 %v7909_v29 }
 0xb7f   :  { %8181 = vmatmul.f32.gmra.mxu2 %v7906_v5 }
 0xb80   :  { %8303 = vmatmul.f32.gmra.mxu3 %v7907_v38 }
 0xb84   :  { %8063 = vmatmul.f32.gmra.mxu1 %v16117_v44 }
 0xb85   :  { %7918 = vmatmul.f32.gmra.mxu0 %v7917_v58 }
 0xb87   :  { %8186 = vmatmul.f32.gmra.mxu2 %v7914_v60 }
 0xb88   :  { %8309 = vmatmul.f32.gmra.mxu3 %v7915_v33 }
 0xb8c   :  { %8067 = vmatmul.f32.gmra.mxu1 %v16125_v22 }
 0xb8d   :  { %7926 = vmatmul.f32.gmra.mxu0 %v7925_v25 }
 0xb8f   :  { %8191 = vmatmul.f32.gmra.mxu2 %v7922_v31 }
 0xb90   :  { %8315 = vmatmul.f32.gmra.mxu3 %v7923_v6 }
 0xb94   :  { %8071 = vmatmul.f32.gmra.mxu1 %v16133_v54 }
 0xb95   :  { %7934 = vmatmul.f32.gmra.mxu0 %v7933_v27 }
 0xb97   :  { %8196 = vmatmul.f32.gmra.mxu2 %v7930_v23  ;;  %v18000_v23 = vld [vmem:[#allocation22_spill] sm:$0xff] }
 0xb98   :  { %8321 = vmatmul.f32.gmra.mxu3 %v7931_v9 }
 0xb9a   :  { %v16147_v11 = vpop.f32.mrf.mxu0 }
 0xb9b   :  { %v7816_v25 = vadd.f32 %v16147_v11, %v18000_v23 }
 0xb9c   :  { %8075 = vmatmul.f32.gmra.mxu1 %v16141_v32 }
 0xb9d   :  { %8378 = vmatmul.f32.vlgmr.msrb.gmra.mxu0 %v15888_v55 }
 0xba1   :  { %v16151_v2 = vpop.f32.mrf.mxu1 }
 0xba2   :  { %v16153_v63 = vpop.f32.mrf.mxu0  ;;  %v16217_v28 = vpop.f32.mrf.mxu2  ;;  %v8017_v9 = vadd.f32 %v16151_v2, %v7816_v25 }
 0xba3   :  { %v8232_v36 = vpop.f32.mrf.mxu3 }
 0xba4   :  { %8471 = vmatmul.f32.vlgmr.msrb.gmra.mxu1 %v15888_v55  ;;  %v8123_v27 = vadd.f32 %v16217_v28, %v8017_v9 }
 0xba5   :  { %8382 = vmatmul.f32.gmra.mxu0 %v15947_v43 }
 0xba9   :  { %v16157_v51 = vpop.f32.mrf.mxu1 }
 0xbaa   :  { %v16159_v0 = vpop.f32.mrf.mxu0  ;;  %v8127_v19 = vpop.f32.mrf.mxu2 }
 0xbab   :  { %v8238_v53 = vpop.f32.mrf.mxu3 }
 0xbac   :  { %8475 = vmatmul.f32.gmra.mxu1 %v15947_v43 }
 0xbad   :  { %8386 = vmatmul.f32.gmra.mxu0 %v15989_v12 }
 0xbb1   :  { %v16163_v46 = vpop.f32.mrf.mxu1 }
 0xbb2   :  { %v16165_v39 = vpop.f32.mrf.mxu0 }
 0xbb3   :  { %v8244_v58 = vpop.f32.mrf.mxu3 }
 0xbb4   :  { %8479 = vmatmul.f32.gmra.mxu1 %v15989_v12 }
 0xbb5   :  { %8390 = vmatmul.f32.gmra.mxu0 %v16013_v49 }
 0xbb9   :  { %v16169_v62 = vpop.f32.mrf.mxu1 }
 0xbba   :  { %v16171_v55 = vpop.f32.mrf.mxu0 }
 0xbbc   :  { %8483 = vmatmul.f32.gmra.mxu1 %v16013_v49 }
 0xbbd   :  { %8394 = vmatmul.f32.gmra.mxu0 %v16032_v14 }
 0xbc1   :  { %v16175_v30 = vpop.f32.mrf.mxu1 }
 0xbc2   :  { %v16177_v43 = vpop.f32.mrf.mxu0 }
 0xbc4   :  { %8487 = vmatmul.f32.gmra.mxu1 %v16032_v14 }
 0xbc5   :  { %8398 = vmatmul.f32.gmra.mxu0 %v16052_v57 }
 0xbc9   :  { %v16181_v47 = vpop.f32.mrf.mxu1 }
 0xbca   :  { %v16183_v12 = vpop.f32.mrf.mxu0 }
 0xbcc   :  { %8491 = vmatmul.f32.gmra.mxu1 %v16052_v57 }
 0xbcd   :  { %8402 = vmatmul.f32.gmra.mxu0 %v16068_v3 }
 0xbd1   :  { %v16187_v15 = vpop.f32.mrf.mxu1 }
 0xbd2   :  { %v16189_v49 = vpop.f32.mrf.mxu0 }
 0xbd4   :  { %8495 = vmatmul.f32.gmra.mxu1 %v16068_v3 }
 0xbd5   :  { %8406 = vmatmul.f32.gmra.mxu0 %v16077_v59 }
 0xbd9   :  { %v16193_v16 = vpop.f32.mrf.mxu1 }
 0xbda   :  { %v16195_v14 = vpop.f32.mrf.mxu0 }
 0xbdc   :  { %8499 = vmatmul.f32.gmra.mxu1 %v16077_v59 }
 0xbdd   :  { %8410 = vmatmul.f32.gmra.mxu0 %v16085_v34 }
 0xbe1   :  { %v16199_v17 = vpop.f32.mrf.mxu1 }
 0xbe2   :  { %v16201_v57 = vpop.f32.mrf.mxu0 }
 0xbe4   :  { %8503 = vmatmul.f32.gmra.mxu1 %v16085_v34 }
 0xbe5   :  { %8414 = vmatmul.f32.gmra.mxu0 %v16093_v21 }
 0xbe9   :  { %v16205_v45 = vpop.f32.mrf.mxu1 }
 0xbea   :  { %v16207_v3 = vpop.f32.mrf.mxu0 }
 0xbec   :  { %8507 = vmatmul.f32.gmra.mxu1 %v16093_v21  ;;  %v8570_v21 = vld [vmem:[%s17526_s7 + $0x10] sm:$0xf] }
 0xbed   :  { %8418 = vmatmul.f32.gmra.mxu0 %v16101_v41  ;;  %v8620_v50 = vsel %vm3230_vm5, %v8570_v21, 0 }
 0xbee   :  { %v8635_v20 = vand.u32 4294901760, %v8620_v50 }
 0xbf0   :  { %v8784_v24 = vsub.f32 %v8620_v50, %v8635_v20  ;;  %8983 = vmatpush.msra.mxu1 %v8635_v20  ;;  %8636 = vmatpush.msrb.mxu2 %v8635_v20  ;;  %v8250_v50 = vpop.f32.mrf.mxu3 }
 0xbf1   :  { %v16211_v40 = vpop.f32.mrf.mxu1 }
 0xbf2   :  { %v16213_v59 = vpop.f32.mrf.mxu0  ;;  %v8785_v26 = vand.u32 4294901760, %v8784_v24  ;;  %8881 = vmatpush.msra.mxu0 %v8784_v24 }
 0xbf4   :  { %8511 = vmatmul.f32.gmra.mxu1 %v16101_v41  ;;  %v8569_v41 = vld [vmem:[%s17526_s7 + $0x8] sm:$0xff]  ;;  %v8786_v1 = vsub.f32 %v8784_v24, %v8785_v26  ;;  %v8233_v24 = vadd.f32 %v8232_v36, %v8123_v27 }
 0xbf5   :  { %8422 = vmatmul.f32.gmra.mxu0 %v16109_v37  ;;  %v8637_v18 = vand.u32 4294901760, %v8569_v41 }
 0xbf6   :  { %v8787_v48 = vand.u32 4294901760, %v8786_v1 }
 0xbf7   :  { %v8790_v4 = vsub.f32 %v8569_v41, %v8637_v18  ;;  %8985 = vmatpush.msra.mxu1 %v8637_v18  ;;  %8638 = vmatpush.msrb.mxu2 %v8637_v18 }
 0xbf8   :  { %8788 = vmatpush.msrb.mxu3 %v8787_v48 }
 0xbf9   :  { %v16219_v34 = vpop.f32.mrf.mxu1  ;;  %v8791_v35 = vand.u32 4294901760, %v8790_v4  ;;  %8884 = vmatpush.msra.mxu0 %v8790_v4 }
 0xbfa   :  { %v16221_v61 = vpop.f32.mrf.mxu0 }
 0xbfb   :  { %v8792_v60 = vsub.f32 %v8790_v4, %v8791_v35 }
 0xbfc   :  { %8515 = vmatmul.f32.gmra.mxu1 %v16109_v37  ;;  %v8639_v37 = vand.u32 4294901760, %v8568_v52 }
 0xbfd   :  { %8426 = vmatmul.f32.gmra.mxu0 %v16117_v44  ;;  %v8793_v29 = vand.u32 4294901760, %v8792_v60 }
 0xbfe   :  { %v8796_v38 = vsub.f32 %v8568_v52, %v8639_v37  ;;  %8987 = vmatpush.msra.mxu1 %v8639_v37  ;;  %8640 = vmatpush.msrb.mxu2 %v8639_v37 }
 0xbff   :  { %8794 = vmatpush.msrb.mxu3 %v8793_v29 }
 0xc00   :  { %v8797_v7 = vand.u32 4294901760, %v8796_v38  ;;  %8887 = vmatpush.msra.mxu0 %v8796_v38  ;;  %9101 = vmatpush.msra.mxu2 %v8785_v26 }
 0xc01   :  { %v16235_v10 = vpop.f32.mrf.mxu1 }
 0xc02   :  { %v16237_v5 = vpop.f32.mrf.mxu0  ;;  %v8798_v33 = vsub.f32 %v8796_v38, %v8797_v7  ;;  %9105 = vmatpush.msra.mxu2 %v8791_v35  ;;  %v16265_v35 = vpop.f32.mrf.mxu3 }
 0xc04   :  { %8519 = vmatmul.f32.gmra.mxu1 %v16117_v44  ;;  %v8799_v42 = vand.u32 4294901760, %v8798_v33  ;;  %9109 = vmatpush.msra.mxu2 %v8797_v7  ;;  %v8132_v44 = vpop.f32.mrf.mxu2  ;;  %v18003_v33 = vld [vmem:[#allocation23_spill] sm:$0xff] }
 0xc05   :  { %8430 = vmatmul.f32.gmra.mxu0 %v16125_v22 }
 0xc06   :  { %8800 = vmatpush.msrb.mxu3 %v8799_v42 }
 0xc08   :  { %9189 = vmatpush.msra.mxu3 %v8635_v20  ;;  %v18001_v20 = vld [vmem:[#allocation29_spill] sm:$0xff] }
 0xc09   :  { %v16241_v31 = vpop.f32.mrf.mxu1  ;;  %v7824_v41 = vadd.f32 %v16153_v63, %v18001_v20 }
 0xc0a   :  { %v16243_v8 = vpop.f32.mrf.mxu0  ;;  %9191 = vmatpush.msra.mxu3 %v8637_v18  ;;  %v8262_v27 = vpop.f32.mrf.mxu3 }
 0xc0b   :  { %v8021_v11 = vadd.f32 %v16157_v51, %v7824_v41 }
 0xc0c   :  { %8523 = vmatmul.f32.gmra.mxu1 %v16125_v22  ;;  %9193 = vmatpush.msra.mxu3 %v8639_v37  ;;  %v8137_v22 = vpop.f32.mrf.mxu2  ;;  %v18002_v37 = vld [vmem:[#allocation26_spill] sm:$0xff] }
 0xc0d   :  { %8434 = vmatmul.f32.gmra.mxu0 %v16133_v54  ;;  %v8128_v26 = vadd.f32 %v8127_v19, %v8021_v11  ;;  %v7832_v1 = vadd.f32 %v16159_v0, %v18002_v37 }
 0xc0f   :  { %v8239_v38 = vadd.f32 %v8238_v53, %v8128_v26  ;;  %v8025_v63 = vadd.f32 %v16163_v46, %v7832_v1  ;;  %v7840_v53 = vadd.f32 %v16165_v39, %v18003_v33 }
 0xc11   :  { %v16247_v6 = vpop.f32.mrf.mxu1  ;;  %v8133_v0 = vadd.f32 %v8132_v44, %v8025_v63  ;;  %v8029_v9 = vadd.f32 %v16169_v62, %v7840_v53 }
 0xc12   :  { %v16249_v13 = vpop.f32.mrf.mxu0 }
 0xc13   :  { %v8245_v25 = vadd.f32 %v8244_v58, %v8133_v0  ;;  %v8138_v58 = vadd.f32 %v8137_v22, %v8029_v9 }
 0xc14   :  { %8527 = vmatmul.f32.gmra.mxu1 %v16133_v54  ;;  %v8142_v18 = vpop.f32.mrf.mxu2 }
 0xc15   :  { %8438 = vmatmul.f32.gmra.mxu0 %v16141_v32  ;;  %v8251_v1 = vadd.f32 %v8250_v50, %v8138_v58  ;;  %v18006_v58 = vld [vmem:[#allocation13_spill] sm:$0xff] }
 0xc19   :  { %v16256_v56 = vpop.f32.mrf.mxu1 }
 0xc1a   :  { %v8379_v21 = vpop.f32.mrf.mxu0 }
 0xc1b   :  { %v8380_v54 = vadd.f32 %v8379_v21, %v8233_v24 }
 0xc1c   :  { %8531 = vmatmul.f32.gmra.mxu1 %v16141_v32  ;;  %v8147_v29 = vpop.f32.mrf.mxu2 }
 0xc21   :  { %v8472_v52 = vpop.f32.mrf.mxu1 }
 0xc22   :  { %v8383_v2 = vpop.f32.mrf.mxu0  ;;  %v8473_v4 = vadd.f32 %v8472_v52, %v8380_v54  ;;  %v18004_v52 = vld [vmem:[#allocation6_spill] sm:$0xff] }
 0xc23   :  { %v8384_v36 = vadd.f32 %v8383_v2, %v8239_v38  ;;  %v7848_v26 = vadd.f32 %v16171_v55, %v18004_v52 }
 0xc24   :  { %v10860_v28 = vadd.f32 -256.0, %v8473_v4  ;;  %v8152_v4 = vpop.f32.mrf.mxu2 }
 0xc26   :  { %10876 = vst.msk [vmem:[%s17527_s11 + $0x80] sm:$0xff] %vm3162_vm6, %v10860_v28  ;;  %v8572_v32 = vsel %vm3162_vm6, %v10860_v28, 0  ;;  %v8033_v28 = vadd.f32 %v16175_v30, %v7848_v26 }
 0xc27   :  { %v16273_v51 = vand.u32 4294901760, %v8572_v32 }
 0xc29   :  { %v8642_v19 = vsub.f32 %v8572_v32, %v16273_v51  ;;  %v8476_v48 = vpop.f32.mrf.mxu1  ;;  %8802 = vmatmul.f32.vlgmr.msrb.gmra.mxu3 %v16273_v51 }
 0xc2a   :  { %v8387_v60 = vpop.f32.mrf.mxu0  ;;  %v8477_v7 = vadd.f32 %v8476_v48, %v8384_v36  ;;  %v8268_v36 = vpop.f32.mrf.mxu3 }
 0xc2b   :  { %v8643_v46 = vand.u32 4294901760, %v8642_v19  ;;  %8890 = vmatmul.f32.vlgmr.msra.gmra.mxu0 %v8642_v19  ;;  %v8388_v41 = vadd.f32 %v8387_v60, %v8245_v25  ;;  %v18005_v60 = vld [vmem:[#allocation4_spill] sm:$0xff] }
 0xc2c   :  { %v10861_v42 = vadd.f32 -256.0, %v8477_v7  ;;  %v7856_v7 = vadd.f32 %v16177_v43, %v18005_v60 }
 0xc2d   :  { %v8644_v23 = vsub.f32 %v8642_v19, %v8643_v46  ;;  %8991 = vmatmul.f32.vlgmr.msra.gmra.mxu1 %v8643_v46  ;;  %v8143_v19 = vadd.f32 %v8142_v18, %v8033_v28 }
 0xc2e   :  { %10877 = vst.msk [vmem:[%s17527_s11 + $0x88] sm:$0xff] %vm3162_vm6, %v10861_v42  ;;  %v8575_v44 = vsel %vm3162_vm6, %v10861_v42, 0  ;;  %v8037_v42 = vadd.f32 %v16181_v47, %v7856_v7 }
 0xc2f   :  { %v8645_v21 = vand.u32 4294901760, %v8644_v23  ;;  %v16285_v20 = vand.u32 4294901760, %v8575_v44  ;;  %v8257_v53 = vadd.f32 %v16265_v35, %v8143_v19  ;;  %v8157_v23 = vpop.f32.mrf.mxu2 }
 0xc31   :  { %v8480_v24 = vpop.f32.mrf.mxu1  ;;  %8646 = vmatmul.f32.vlgmr.msrb.gmra.mxu2 %v8645_v21  ;;  %8806 = vmatmul.f32.gmra.mxu3 %v16285_v20  ;;  %v8650_v39 = vsub.f32 %v8575_v44, %v16285_v20  ;;  %v8148_v21 = vadd.f32 %v8147_v29, %v8037_v42 }
 0xc32   :  { %v8391_v62 = vpop.f32.mrf.mxu0  ;;  %v8481_v11 = vadd.f32 %v8480_v24, %v8388_v41  ;;  %v8274_v24 = vpop.f32.mrf.mxu3 }
 0xc33   :  { %8895 = vmatmul.f32.gmra.mxu0 %v8650_v39  ;;  %v8651_v54 = vand.u32 4294901760, %v8650_v39  ;;  %v8392_v32 = vadd.f32 %v8391_v62, %v8251_v1  ;;  %v7864_v62 = vadd.f32 %v16183_v12, %v18006_v58  ;;  %v8263_v52 = vadd.f32 %v8262_v27, %v8148_v21 }
 0xc34   :  { %v10862_v2 = vadd.f32 -256.0, %v8481_v11 }
 0xc35   :  { %8997 = vmatmul.f32.gmra.mxu1 %v8651_v54  ;;  %v8652_v37 = vsub.f32 %v8650_v39, %v8651_v54  ;;  %v8041_v26 = vadd.f32 %v16187_v15, %v7864_v62 }
 0xc36   :  { %10878 = vst.msk [vmem:[%s17527_s11 + $0x90] sm:$0xff] %vm3162_vm6, %v10862_v2  ;;  %v8578_v22 = vsel %vm3162_vm6, %v10862_v2, 0 }
 0xc37   :  { %v16297_v38 = vand.u32 4294901760, %v8578_v22  ;;  %v8653_v63 = vand.u32 4294901760, %v8652_v37  ;;  %v8162_v28 = vpop.f32.mrf.mxu2  ;;  %v8153_v27 = vadd.f32 %v8152_v4, %v8041_v26 }
 0xc39   :  { %v8484_v55 = vpop.f32.mrf.mxu1  ;;  %8654 = vmatmul.f32.gmra.mxu2 %v8653_v63  ;;  %8810 = vmatmul.f32.gmra.mxu3 %v16297_v38  ;;  %v8658_v50 = vsub.f32 %v8578_v22, %v16297_v38 }
 0xc3a   :  { %v8395_v30 = vpop.f32.mrf.mxu0  ;;  %v8485_v48 = vadd.f32 %v8484_v55, %v8392_v32  ;;  %v18007_v55 = vld [vmem:[#allocation19_spill] sm:$0xff] }
 0xc3b   :  { %8900 = vmatmul.f32.gmra.mxu0 %v8658_v50  ;;  %v8659_v0 = vand.u32 4294901760, %v8658_v50  ;;  %v8396_v44 = vadd.f32 %v8395_v30, %v8257_v53  ;;  %v8280_v30 = vpop.f32.mrf.mxu3 }
 0xc3c   :  { %v10863_v46 = vadd.f32 -256.0, %v8485_v48 }
 0xc3d   :  { %9003 = vmatmul.f32.gmra.mxu1 %v8659_v0  ;;  %v8660_v33 = vsub.f32 %v8658_v50, %v8659_v0  ;;  %v7872_v50 = vadd.f32 %v16189_v49, %v18007_v55  ;;  %v8269_v0 = vadd.f32 %v8268_v36, %v8153_v27 }
 0xc3e   :  { %10879 = vst.msk [vmem:[%s17527_s11 + $0x98] sm:$0xff] %vm3162_vm6, %v10863_v46  ;;  %v8581_v18 = vsel %vm3162_vm6, %v10863_v46, 0 }
 0xc3f   :  { %v16310_v25 = vand.u32 4294901760, %v8581_v18  ;;  %v8661_v9 = vand.u32 4294901760, %v8660_v33  ;;  %v8045_v60 = vadd.f32 %v16193_v16, %v7872_v50 }
 0xc41   :  { %v8488_v43 = vpop.f32.mrf.mxu1  ;;  %8662 = vmatmul.f32.gmra.mxu2 %v8661_v9  ;;  %8814 = vmatmul.f32.gmra.mxu3 %v16310_v25  ;;  %v8666_v35 = vsub.f32 %v8581_v18, %v16310_v25  ;;  %v8158_v36 = vadd.f32 %v8157_v23, %v8045_v60  ;;  %v8167_v18 = vpop.f32.mrf.mxu2  ;;  %v18010_v60 = vld [vmem:[#allocation7_spill] sm:$0xff] }
 0xc42   :  { %v8399_v47 = vpop.f32.mrf.mxu0  ;;  %v8489_v41 = vadd.f32 %v8488_v43, %v8396_v44  ;;  %v18008_v44 = vld [vmem:[#allocation17_spill] sm:$0xff] }
 0xc43   :  { %8905 = vmatmul.f32.gmra.mxu0 %v8666_v35  ;;  %v8667_v39 = vand.u32 4294901760, %v8666_v35  ;;  %v8400_v1 = vadd.f32 %v8399_v47, %v8263_v52  ;;  %v7880_v43 = vadd.f32 %v16195_v14, %v18008_v44  ;;  %v8275_v47 = vadd.f32 %v8274_v24, %v8158_v36 }
 0xc44   :  { %v10864_v11 = vadd.f32 -256.0, %v8489_v41 }
 0xc45   :  { %9009 = vmatmul.f32.gmra.mxu1 %v8667_v39  ;;  %v8668_v54 = vsub.f32 %v8666_v35, %v8667_v39  ;;  %v8049_v41 = vadd.f32 %v16199_v17, %v7880_v43  ;;  %v8286_v39 = vpop.f32.mrf.mxu3 }
 0xc46   :  { %10880 = vst.msk [vmem:[%s17527_s11 + $0xa0] sm:$0xff] %vm3162_vm6, %v10864_v11  ;;  %v8584_v29 = vsel %vm3162_vm6, %v10864_v11, 0 }
 0xc47   :  { %v16322_v2 = vand.u32 4294901760, %v8584_v29  ;;  %v8669_v37 = vand.u32 4294901760, %v8668_v54  ;;  %v8163_v24 = vadd.f32 %v8162_v28, %v8049_v41  ;;  %v18011_v41 = vld [vmem:[#allocation3_spill] sm:$0xff] }
 0xc49   :  { %v8492_v22 = vpop.f32.mrf.mxu1  ;;  %8670 = vmatmul.f32.gmra.mxu2 %v8669_v37  ;;  %8818 = vmatmul.f32.gmra.mxu3 %v16322_v2  ;;  %v8674_v12 = vsub.f32 %v8584_v29, %v16322_v2  ;;  %v18009_v29 = vld [vmem:[#allocation10_spill] sm:$0xff]  ;;  %v8281_v27 = vadd.f32 %v8280_v30, %v8163_v24 }
 0xc4a   :  { %v8403_v15 = vpop.f32.mrf.mxu0  ;;  %v8493_v63 = vadd.f32 %v8492_v22, %v8400_v1  ;;  %v7888_v37 = vadd.f32 %v16201_v57, %v18009_v29  ;;  %v8172_v22 = vpop.f32.mrf.mxu2 }
 0xc4b   :  { %8910 = vmatmul.f32.gmra.mxu0 %v8674_v12  ;;  %v8675_v32 = vand.u32 4294901760, %v8674_v12  ;;  %v8404_v33 = vadd.f32 %v8403_v15, %v8269_v0 }
 0xc4c   :  { %v10865_v19 = vadd.f32 -256.0, %v8493_v63  ;;  %v8053_v15 = vadd.f32 %v16205_v45, %v7888_v37 }
 0xc4d   :  { %9015 = vmatmul.f32.gmra.mxu1 %v8675_v32  ;;  %v8676_v48 = vsub.f32 %v8674_v12, %v8675_v32  ;;  %v8292_v50 = vpop.f32.mrf.mxu3 }
 0xc4e   :  { %10881 = vst.msk [vmem:[%s17527_s11 + $0xa8] sm:$0xff] %vm3162_vm6, %v10865_v19  ;;  %v8587_v4 = vsel %vm3162_vm6, %v10865_v19, 0  ;;  %v8168_v30 = vadd.f32 %v8167_v18, %v8053_v15 }
 0xc4f   :  { %v16334_v7 = vand.u32 4294901760, %v8587_v4  ;;  %v8677_v46 = vand.u32 4294901760, %v8676_v48 }
 0xc51   :  { %v8496_v53 = vpop.f32.mrf.mxu1  ;;  %8678 = vmatmul.f32.gmra.mxu2 %v8677_v46  ;;  %8822 = vmatmul.f32.gmra.mxu3 %v16334_v7  ;;  %v8682_v49 = vsub.f32 %v8587_v4, %v16334_v7  ;;  %v7896_v4 = vadd.f32 %v16207_v3, %v18010_v60 }
 0xc52   :  { %v8407_v42 = vpop.f32.mrf.mxu0  ;;  %v8497_v16 = vadd.f32 %v8496_v53, %v8404_v33  ;;  %v8287_v53 = vadd.f32 %v8286_v39, %v8168_v30 }
 0xc53   :  { %8915 = vmatmul.f32.gmra.mxu0 %v8682_v49  ;;  %v8683_v9 = vand.u32 4294901760, %v8682_v49  ;;  %v8408_v11 = vadd.f32 %v8407_v42, %v8275_v47  ;;  %v8177_v42 = vpop.f32.mrf.mxu2 }
 0xc54   :  { %v10866_v35 = vadd.f32 -256.0, %v8497_v16 }
 0xc55   :  { %9021 = vmatmul.f32.gmra.mxu1 %v8683_v9  ;;  %v8684_v21 = vsub.f32 %v8682_v49, %v8683_v9  ;;  %v8057_v49 = vadd.f32 %v16211_v40, %v7896_v4 }
 0xc56   :  { %10882 = vst.msk [vmem:[%s17527_s11 + $0xb0] sm:$0xff] %vm3162_vm6, %v10866_v35  ;;  %v8590_v23 = vsel %vm3162_vm6, %v10866_v35, 0 }
 0xc57   :  { %v16346_v58 = vand.u32 4294901760, %v8590_v23  ;;  %v8685_v62 = vand.u32 4294901760, %v8684_v21  ;;  %v8173_v43 = vadd.f32 %v8172_v22, %v8057_v49  ;;  %v8298_v21 = vpop.f32.mrf.mxu3 }
 0xc59   :  { %v8500_v54 = vpop.f32.mrf.mxu1  ;;  %8686 = vmatmul.f32.gmra.mxu2 %v8685_v62  ;;  %8826 = vmatmul.f32.gmra.mxu3 %v16346_v58  ;;  %v8690_v14 = vsub.f32 %v8590_v23, %v16346_v58  ;;  %v7904_v23 = vadd.f32 %v16213_v59, %v18011_v41 }
 0xc5a   :  { %v8411_v17 = vpop.f32.mrf.mxu0  ;;  %v8501_v52 = vadd.f32 %v8500_v54, %v8408_v11  ;;  %v8293_v11 = vadd.f32 %v8292_v50, %v8173_v43 }
 0xc5b   :  { %8920 = vmatmul.f32.gmra.mxu0 %v8690_v14  ;;  %v8691_v26 = vand.u32 4294901760, %v8690_v14  ;;  %v8412_v55 = vadd.f32 %v8411_v17, %v8281_v27  ;;  %v8061_v54 = vadd.f32 %v16219_v34, %v7904_v23  ;;  %v18014_v23 = vld [vmem:[#allocation41_spill] sm:$0xff] }
 0xc5c   :  { %v10867_v1 = vadd.f32 -256.0, %v8501_v52 }
 0xc5d   :  { %9027 = vmatmul.f32.gmra.mxu1 %v8691_v26  ;;  %v8692_v12 = vsub.f32 %v8690_v14, %v8691_v26  ;;  %v8182_v26 = vpop.f32.mrf.mxu2  ;;  %v8178_v37 = vadd.f32 %v8177_v42, %v8061_v54 }
 0xc5e   :  { %10883 = vst.msk [vmem:[%s17527_s11 + $0xb8] sm:$0xff] %vm3162_vm6, %v10867_v1  ;;  %v8593_v28 = vsel %vm3162_vm6, %v10867_v1, 0 }
 0xc5f   :  { %v16358_v63 = vand.u32 4294901760, %v8593_v28  ;;  %v8693_v32 = vand.u32 4294901760, %v8692_v12  ;;  %v18012_v12 = vld [vmem:[#allocation40_spill] sm:$0xff] }
 0xc60   :  { %v7912_v27 = vadd.f32 %v16221_v61, %v18012_v12 }
 0xc61   :  { %v8504_v57 = vpop.f32.mrf.mxu1  ;;  %8694 = vmatmul.f32.gmra.mxu2 %v8693_v32  ;;  %8830 = vmatmul.f32.gmra.mxu3 %v16358_v63  ;;  %v8698_v19 = vsub.f32 %v8593_v28, %v16358_v63  ;;  %v8304_v28 = vpop.f32.mrf.mxu3 }
 0xc62   :  { %v8415_v45 = vpop.f32.mrf.mxu0  ;;  %v8505_v48 = vadd.f32 %v8504_v57, %v8412_v55  ;;  %v8299_v55 = vadd.f32 %v8298_v21, %v8178_v37  ;;  %v8065_v50 = vadd.f32 %v16235_v10, %v7912_v27  ;;  %v18015_v27 = vld [vmem:[#allocation43_spill] sm:$0xff] }
 0xc63   :  { %8925 = vmatmul.f32.gmra.mxu0 %v8698_v19  ;;  %v8699_v0 = vand.u32 4294901760, %v8698_v19  ;;  %v8416_v9 = vadd.f32 %v8415_v45, %v8287_v53 }
 0xc64   :  { %v10868_v46 = vadd.f32 -256.0, %v8505_v48 }
 0xc65   :  { %9033 = vmatmul.f32.gmra.mxu1 %v8699_v0  ;;  %v8700_v33 = vsub.f32 %v8698_v19, %v8699_v0  ;;  %v8183_v0 = vadd.f32 %v8182_v26, %v8065_v50  ;;  %v8187_v4 = vpop.f32.mrf.mxu2 }
 0xc66   :  { %10884 = vst.msk [vmem:[%s17527_s11 + $0xc0] sm:$0xff] %vm3162_vm6, %v10868_v46  ;;  %v8596_v36 = vsel %vm3162_vm6, %v10868_v46, 0 }
 0xc67   :  { %v16370_v16 = vand.u32 4294901760, %v8596_v36  ;;  %v8701_v18 = vand.u32 4294901760, %v8700_v33  ;;  %v18013_v33 = vld [vmem:[#allocation38_spill] sm:$0xff]  ;;  %v8305_v42 = vadd.f32 %v8304_v28, %v8183_v0 }
 0xc68   :  { %v7920_v53 = vadd.f32 %v16237_v5, %v18013_v33 }
 0xc69   :  { %v8508_v44 = vpop.f32.mrf.mxu1  ;;  %8702 = vmatmul.f32.gmra.mxu2 %v8701_v18  ;;  %8834 = vmatmul.f32.gmra.mxu3 %v16370_v16  ;;  %v8706_v3 = vsub.f32 %v8596_v36, %v16370_v16 }
 0xc6a   :  { %v8419_v40 = vpop.f32.mrf.mxu0  ;;  %v8509_v35 = vadd.f32 %v8508_v44, %v8416_v9  ;;  %v8069_v18 = vadd.f32 %v16241_v31, %v7920_v53  ;;  %v8310_v44 = vpop.f32.mrf.mxu3 }
 0xc6b   :  { %8930 = vmatmul.f32.gmra.mxu0 %v8706_v3  ;;  %v8707_v47 = vand.u32 4294901760, %v8706_v3  ;;  %v8420_v52 = vadd.f32 %v8419_v40, %v8293_v11 }
 0xc6c   :  { %v10869_v39 = vadd.f32 -256.0, %v8509_v35  ;;  %v8188_v21 = vadd.f32 %v8187_v4, %v8069_v18 }
 0xc6d   :  { %9039 = vmatmul.f32.gmra.mxu1 %v8707_v47  ;;  %v8708_v62 = vsub.f32 %v8706_v3, %v8707_v47  ;;  %v8192_v11 = vpop.f32.mrf.mxu2 }
 0xc6e   :  { %10885 = vst.msk [vmem:[%s17527_s11 + $0xc8] sm:$0xff] %vm3162_vm6, %v10869_v39  ;;  %v8599_v14 = vsel %vm3162_vm6, %v10869_v39, 0  ;;  %v7928_v39 = vadd.f32 %v16243_v8, %v18014_v23 }
 0xc6f   :  { %v16382_v24 = vand.u32 4294901760, %v8599_v14  ;;  %v8709_v17 = vand.u32 4294901760, %v8708_v62 }
 0xc71   :  { %v8512_v29 = vpop.f32.mrf.mxu1  ;;  %8710 = vmatmul.f32.gmra.mxu2 %v8709_v17  ;;  %8838 = vmatmul.f32.gmra.mxu3 %v16382_v24  ;;  %v8714_v59 = vsub.f32 %v8599_v14, %v16382_v24  ;;  %v8311_v14 = vadd.f32 %v8310_v44, %v8188_v21  ;;  %v8073_v17 = vadd.f32 %v16247_v6, %v7928_v39 }
 0xc72   :  { %v8423_v34 = vpop.f32.mrf.mxu0  ;;  %v8513_v1 = vadd.f32 %v8512_v29, %v8420_v52  ;;  %v8316_v37 = vpop.f32.mrf.mxu3 }
 0xc73   :  { %8935 = vmatmul.f32.gmra.mxu0 %v8714_v59  ;;  %v8715_v22 = vand.u32 4294901760, %v8714_v59  ;;  %v8424_v45 = vadd.f32 %v8423_v34, %v8299_v55 }
 0xc74   :  { %v10870_v15 = vadd.f32 -256.0, %v8513_v1  ;;  %v8193_v1 = vadd.f32 %v8192_v11, %v8073_v17 }
 0xc75   :  { %9045 = vmatmul.f32.gmra.mxu1 %v8715_v22  ;;  %v8716_v32 = vsub.f32 %v8714_v59, %v8715_v22 }
 0xc76   :  { %10886 = vst.msk [vmem:[%s17527_s11 + $0xd0] sm:$0xff] %vm3162_vm6, %v10870_v15  ;;  %v8602_v57 = vsel %vm3162_vm6, %v10870_v15, 0  ;;  %v7936_v15 = vadd.f32 %v16249_v13, %v18015_v27  ;;  %v8317_v55 = vadd.f32 %v8316_v37, %v8193_v1 }
 0xc77   :  { %v16394_v19 = vand.u32 4294901760, %v8602_v57  ;;  %v8717_v30 = vand.u32 4294901760, %v8716_v32 }
 0xc78   :  { %v8077_v50 = vadd.f32 %v16256_v56, %v7936_v15 }
 0xc79   :  { %v8516_v48 = vpop.f32.mrf.mxu1  ;;  %8718 = vmatmul.f32.gmra.mxu2 %v8717_v30  ;;  %8842 = vmatmul.f32.gmra.mxu3 %v16394_v19  ;;  %v8722_v61 = vsub.f32 %v8602_v57, %v16394_v19  ;;  %v8197_v30 = vpop.f32.mrf.mxu2 }
 0xc7a   :  { %v8427_v60 = vpop.f32.mrf.mxu0  ;;  %v8517_v10 = vadd.f32 %v8516_v48, %v8424_v45 }
 0xc7b   :  { %8940 = vmatmul.f32.gmra.mxu0 %v8722_v61  ;;  %v8723_v46 = vand.u32 4294901760, %v8722_v61  ;;  %v8428_v40 = vadd.f32 %v8427_v60, %v8305_v42  ;;  %v8198_v60 = vadd.f32 %v8197_v30, %v8077_v50 }
 0xc7c   :  { %v10871_v49 = vadd.f32 -256.0, %v8517_v10  ;;  %v8322_v10 = vpop.f32.mrf.mxu3 }
 0xc7d   :  { %9051 = vmatmul.f32.gmra.mxu1 %v8723_v46  ;;  %v8724_v36 = vsub.f32 %v8722_v61, %v8723_v46 }
 0xc7e   :  { %10887 = vst.msk [vmem:[%s17527_s11 + $0xd8] sm:$0xff] %vm3162_vm6, %v10871_v49  ;;  %v8605_v9 = vsel %vm3162_vm6, %v10871_v49, 0  ;;  %v8323_v49 = vadd.f32 %v8322_v10, %v8198_v60 }
 0xc7f   :  { %v16406_v3 = vand.u32 4294901760, %v8605_v9  ;;  %v8725_v43 = vand.u32 4294901760, %v8724_v36 }
 0xc81   :  { %v8520_v35 = vpop.f32.mrf.mxu1  ;;  %8726 = vmatmul.f32.gmra.mxu2 %v8725_v43  ;;  %8846 = vmatmul.f32.gmra.mxu3 %v16406_v3  ;;  %v8730_v5 = vsub.f32 %v8605_v9, %v16406_v3 }
 0xc82   :  { %v8431_v31 = vpop.f32.mrf.mxu0  ;;  %v8521_v47 = vadd.f32 %v8520_v35, %v8428_v40 }
 0xc83   :  { %8945 = vmatmul.f32.gmra.mxu0 %v8730_v5  ;;  %v8731_v41 = vand.u32 4294901760, %v8730_v5  ;;  %v8432_v59 = vadd.f32 %v8431_v31, %v8311_v14 }
 0xc84   :  { %v10872_v62 = vadd.f32 -256.0, %v8521_v47 }
 0xc85   :  { %9057 = vmatmul.f32.gmra.mxu1 %v8731_v41  ;;  %v8732_v54 = vsub.f32 %v8730_v5, %v8731_v41 }
 0xc86   :  { %10888 = vst.msk [vmem:[%s17527_s11 + $0xe0] sm:$0xff] %vm3162_vm6, %v10872_v62  ;;  %v8608_v52 = vsel %vm3162_vm6, %v10872_v62, 0 }
 0xc87   :  { %v16418_v26 = vand.u32 4294901760, %v8608_v52  ;;  %v8733_v29 = vand.u32 4294901760, %v8732_v54 }
 0xc89   :  { %v8524_v8 = vpop.f32.mrf.mxu1  ;;  %8734 = vmatmul.f32.gmra.mxu2 %v8733_v29  ;;  %8850 = vmatmul.f32.gmra.mxu3 %v16418_v26  ;;  %v8738_v34 = vsub.f32 %v8608_v52, %v16418_v26 }
 0xc8a   :  { %v8525_v6 = vadd.f32 %v8524_v8, %v8432_v59  ;;  %v8435_v22 = vpop.f32.mrf.mxu0 }
 0xc8b   :  { %8950 = vmatmul.f32.gmra.mxu0 %v8738_v34  ;;  %v8739_v12 = vand.u32 4294901760, %v8738_v34  ;;  %v8436_v61 = vadd.f32 %v8435_v22, %v8317_v55 }
 0xc8c   :  { %v10873_v28 = vadd.f32 -256.0, %v8525_v6 }
 0xc8d   :  { %9063 = vmatmul.f32.gmra.mxu1 %v8739_v12  ;;  %v8740_v32 = vsub.f32 %v8738_v34, %v8739_v12 }
 0xc8e   :  { %10889 = vst.msk [vmem:[%s17527_s11 + $0xe8] sm:$0xff] %vm3162_vm6, %v10873_v28  ;;  %v8611_v57 = vsel %vm3162_vm6, %v10873_v28, 0 }
 0xc8f   :  { %v16430_v45 = vand.u32 4294901760, %v8611_v57  ;;  %v8741_v48 = vand.u32 4294901760, %v8740_v32 }
 0xc91   :  { %v8528_v0 = vpop.f32.mrf.mxu1  ;;  %8742 = vmatmul.f32.gmra.mxu2 %v8741_v48  ;;  %8854 = vmatmul.f32.gmra.mxu3 %v16430_v45  ;;  %v8746_v13 = vsub.f32 %v8611_v57, %v16430_v45 }
 0xc92   :  { %v8529_v56 = vadd.f32 %v8528_v0, %v8436_v61  ;;  %v8439_v33 = vpop.f32.mrf.mxu0 }
 0xc93   :  { %8955 = vmatmul.f32.gmra.mxu0 %v8746_v13  ;;  %v8747_v4 = vand.u32 4294901760, %v8746_v13  ;;  %v8440_v9 = vadd.f32 %v8439_v33, %v8323_v49 }
 0xc94   :  { %v10874_v46 = vadd.f32 -256.0, %v8529_v56 }
 0xc95   :  { %9069 = vmatmul.f32.gmra.mxu1 %v8747_v4  ;;  %v8748_v53 = vsub.f32 %v8746_v13, %v8747_v4 }
 0xc96   :  { %10890 = vst.msk [vmem:[%s17527_s11 + $0xf0] sm:$0xff] %vm3162_vm6, %v10874_v46  ;;  %v8614_v36 = vsel %vm3162_vm6, %v10874_v46, 0 }
 0xc97   :  { %v16439_v42 = vand.u32 4294901760, %v8614_v36  ;;  %v8749_v18 = vand.u32 4294901760, %v8748_v53 }
 0xc99   :  { %v8532_v44 = vpop.f32.mrf.mxu1  ;;  %8750 = vmatmul.f32.gmra.mxu2 %v8749_v18  ;;  %8858 = vmatmul.f32.gmra.mxu3 %v16439_v42  ;;  %v8754_v43 = vsub.f32 %v8614_v36, %v16439_v42 }
 0xc9a   :  { %v8533_v40 = vadd.f32 %v8532_v44, %v8440_v9 }
 0xc9b   :  { %8960 = vmatmul.f32.gmra.mxu0 %v8754_v43  ;;  %v8755_v35 = vand.u32 4294901760, %v8754_v43 }
 0xc9c   :  { %v10875_v5 = vadd.f32 -256.0, %v8533_v40 }
 0xc9d   :  { %9075 = vmatmul.f32.gmra.mxu1 %v8755_v35  ;;  %v8756_v21 = vsub.f32 %v8754_v43, %v8755_v35 }
 0xc9e   :  { %10891 = vst.msk [vmem:[%s17527_s11 + $0xf8] sm:$0xff] %vm3162_vm6, %v10875_v5  ;;  %v8617_v31 = vsel %vm3162_vm6, %v10875_v5, 0 }
 0xc9f   :  { %v16448_v47 = vand.u32 4294901760, %v8617_v31  ;;  %v8757_v41 = vand.u32 4294901760, %v8756_v21 }
 0xca1   :  { %8758 = vmatmul.f32.gmra.mxu2 %v8757_v41  ;;  %8862 = vmatmul.f32.gmra.mxu3 %v16448_v47  ;;  %v8762_v23 = vsub.f32 %v8617_v31, %v16448_v47 }
 0xca3   :  { %8965 = vmatmul.f32.gmra.mxu0 %v8762_v23  ;;  %v8763_v39 = vand.u32 4294901760, %v8762_v23 }
 0xca5   :  { %9081 = vmatmul.f32.gmra.mxu1 %v8763_v39  ;;  %v8764_v62 = vsub.f32 %v8762_v23, %v8763_v39 }
 0xca7   :  { %v8765_v11 = vand.u32 4294901760, %v8764_v62 }
 0xca8   :  { %v16511_v0 = vpop.f32.mrf.mxu0 }
 0xca9   :  { %8766 = vmatmul.f32.gmra.mxu2 %v8765_v11  ;;  %9195 = vmatmul.f32.vlgmr.msra.gmra.mxu3 %v16273_v51 }
 0xcac   :  { %v8803_v54 = vpop.f32.mrf.mxu3 }
 0xcb0   :  { %v16521_v56 = vpop.f32.mrf.mxu0 }
 0xcb1   :  { %9111 = vmatmul.f32.vlgmr.msra.gmra.mxu2 %v16273_v51  ;;  %9199 = vmatmul.f32.gmra.mxu3 %v16285_v20 }
 0xcb4   :  { %v8647_v14 = vpop.f32.mrf.mxu2  ;;  %v8807_v17 = vpop.f32.mrf.mxu3 }
 0xcb5   :  { %v16455_v52 = vadd.f32 %v8803_v54, %v8647_v14 }
 0xcb9   :  { %9115 = vmatmul.f32.gmra.mxu2 %v16285_v20  ;;  %9203 = vmatmul.f32.gmra.mxu3 %v16297_v38 }
 0xcbc   :  { %v8655_v29 = vpop.f32.mrf.mxu2  ;;  %v8811_v59 = vpop.f32.mrf.mxu3 }
 0xcbd   :  { %v16459_v37 = vadd.f32 %v8807_v17, %v8655_v29 }
 0xcc1   :  { %9119 = vmatmul.f32.gmra.mxu2 %v16297_v38  ;;  %9207 = vmatmul.f32.gmra.mxu3 %v16310_v25 }
 0xcc4   :  { %v8663_v8 = vpop.f32.mrf.mxu2  ;;  %v8815_v51 = vpop.f32.mrf.mxu3 }
 0xcc5   :  { %v16463_v34 = vadd.f32 %v8811_v59, %v8663_v8 }
 0xcc7   :  { %18016 = vst [vmem:[#allocation49_spill] sm:$0xff] %v16463_v34 }
 0xcc9   :  { %9123 = vmatmul.f32.gmra.mxu2 %v16310_v25  ;;  %9211 = vmatmul.f32.gmra.mxu3 %v16322_v2 }
 0xccc   :  { %v8671_v1 = vpop.f32.mrf.mxu2  ;;  %v8819_v20 = vpop.f32.mrf.mxu3 }
 0xccd   :  { %v16467_v6 = vadd.f32 %v8815_v51, %v8671_v1 }
 0xccf   :  { %18017 = vst [vmem:[#allocation55_spill] sm:$0xff] %v16467_v6 }
 0xcd1   :  { %9127 = vmatmul.f32.gmra.mxu2 %v16322_v2  ;;  %9215 = vmatmul.f32.gmra.mxu3 %v16334_v7 }
 0xcd4   :  { %v8679_v22 = vpop.f32.mrf.mxu2  ;;  %v8823_v38 = vpop.f32.mrf.mxu3 }
 0xcd5   :  { %v16471_v12 = vadd.f32 %v8819_v20, %v8679_v22 }
 0xcd9   :  { %9131 = vmatmul.f32.gmra.mxu2 %v16334_v7  ;;  %9219 = vmatmul.f32.gmra.mxu3 %v16346_v58 }
 0xcdc   :  { %v8687_v27 = vpop.f32.mrf.mxu2  ;;  %v8827_v25 = vpop.f32.mrf.mxu3 }
 0xcdd   :  { %v16475_v15 = vadd.f32 %v8823_v38, %v8687_v27 }
 0xce1   :  { %9135 = vmatmul.f32.gmra.mxu2 %v16346_v58  ;;  %9223 = vmatmul.f32.gmra.mxu3 %v16358_v63 }
 0xce4   :  { %v8695_v28 = vpop.f32.mrf.mxu2  ;;  %v8831_v2 = vpop.f32.mrf.mxu3 }
 0xce5   :  { %v16479_v32 = vadd.f32 %v8827_v25, %v8695_v28 }
 0xce9   :  { %9139 = vmatmul.f32.gmra.mxu2 %v16358_v63  ;;  %9227 = vmatmul.f32.gmra.mxu3 %v16370_v16 }
 0xcec   :  { %v8703_v55 = vpop.f32.mrf.mxu2  ;;  %v16483_v7 = vpop.f32.mrf.mxu3 }
 0xced   :  { %v16485_v50 = vadd.f32 %v8831_v2, %v8703_v55 }
 0xcf1   :  { %9143 = vmatmul.f32.gmra.mxu2 %v16370_v16  ;;  %9231 = vmatmul.f32.gmra.mxu3 %v16382_v24 }
 0xcf4   :  { %v16489_v58 = vpop.f32.mrf.mxu2  ;;  %v16491_v57 = vpop.f32.mrf.mxu3 }
 0xcf9   :  { %9147 = vmatmul.f32.gmra.mxu2 %v16382_v24  ;;  %9235 = vmatmul.f32.gmra.mxu3 %v16394_v19 }
 0xcfc   :  { %v16495_v63 = vpop.f32.mrf.mxu2  ;;  %v16497_v30 = vpop.f32.mrf.mxu3 }
 0xd01   :  { %9151 = vmatmul.f32.gmra.mxu2 %v16394_v19  ;;  %9239 = vmatmul.f32.gmra.mxu3 %v16406_v3  ;;  %v16515_v19 = vpop.f32.mrf.mxu1 }
 0xd02   :  { %18018 = vst [vmem:[#allocation52_spill] sm:$0xff] %v16515_v19 }
 0xd04   :  { %v16501_v48 = vpop.f32.mrf.mxu2  ;;  %v16503_v16 = vpop.f32.mrf.mxu3 }
 0xd09   :  { %9155 = vmatmul.f32.gmra.mxu2 %v16406_v3  ;;  %9243 = vmatmul.f32.gmra.mxu3 %v16418_v26  ;;  %v16525_v4 = vpop.f32.mrf.mxu1 }
 0xd0a   :  { %18019 = vst [vmem:[#allocation58_spill] sm:$0xff] %v16525_v4 }
 0xd0c   :  { %v16507_v61 = vpop.f32.mrf.mxu2  ;;  %v16509_v24 = vpop.f32.mrf.mxu3 }
 0xd0d   :  { %v8848_v34 = vadd.f32 %v16503_v16, %v16507_v61 }
 0xd11   :  { %9159 = vmatmul.f32.gmra.mxu2 %v16418_v26  ;;  %9247 = vmatmul.f32.gmra.mxu3 %v16430_v45  ;;  %v16529_v26 = vpop.f32.mrf.mxu0  ;;  %v16533_v53 = vpop.f32.mrf.mxu1 }
 0xd12   :  { %18020 = vst [vmem:[#allocation54_spill] sm:$0xff] %v16529_v26 }
 0xd13   :  { %18021 = vst [vmem:[#allocation60_spill] sm:$0xff] %v16533_v53 }
 0xd14   :  { %v16517_v13 = vpop.f32.mrf.mxu2  ;;  %v16519_v60 = vpop.f32.mrf.mxu3 }
 0xd15   :  { %v8852_v26 = vadd.f32 %v16509_v24, %v16517_v13  ;;  %v8836_v24 = vadd.f32 %v16483_v7, %v16489_v58 }
 0xd19   :  { %9163 = vmatmul.f32.gmra.mxu2 %v16430_v45  ;;  %9251 = vmatmul.f32.gmra.mxu3 %v16439_v42  ;;  %v16540_v36 = vpop.f32.mrf.mxu0  ;;  %v16542_v18 = vpop.f32.mrf.mxu1 }
 0xd1a   :  { %18023 = vst [vmem:[#allocation56_spill] sm:$0xff] %v16540_v36  ;;  %v8844_v36 = vadd.f32 %v16497_v30, %v16501_v48 }
 0xd1b   :  { %18024 = vst [vmem:[#allocation63_spill] sm:$0xff] %v16542_v18 }
 0xd1c   :  { %v8751_v3 = vpop.f32.mrf.mxu2  ;;  %v8859_v10 = vpop.f32.mrf.mxu3 }
 0xd1d   :  { %v8856_v18 = vadd.f32 %v16519_v60, %v8751_v3 }
 0xd21   :  { %9167 = vmatmul.f32.gmra.mxu2 %v16439_v42  ;;  %9255 = vmatmul.f32.gmra.mxu3 %v16448_v47  ;;  %v16548_v44 = vpop.f32.mrf.mxu0  ;;  %v16550_v43 = vpop.f32.mrf.mxu1 }
 0xd22   :  { %18027 = vst [vmem:[#allocation62_spill] sm:$0xff] %v16550_v43 }
 0xd24   :  { %v8759_v46 = vpop.f32.mrf.mxu2  ;;  %v16531_v33 = vpop.f32.mrf.mxu3 }
 0xd29   :  { %9171 = vmatmul.f32.gmra.mxu2 %v16448_v47  ;;  %v16556_v5 = vpop.f32.mrf.mxu0  ;;  %v16562_v47 = vpop.f32.mrf.mxu1 }
 0xd2a   :  { %18032 = vst [vmem:[#allocation67_spill] sm:$0xff] %v16562_v47 }
 0xd2c   :  { %v16536_v45 = vpop.f32.mrf.mxu2  ;;  %v16538_v49 = vpop.f32.mrf.mxu3 }
 0xd2d   :  { %18022 = vst [vmem:[#allocation61_spill] sm:$0xff] %v16538_v49  ;;  %v8864_v3 = vadd.f32 %v16531_v33, %v16536_v45 }
 0xd31   :  { %v16564_v41 = vpop.f32.mrf.mxu0  ;;  %v16570_v62 = vpop.f32.mrf.mxu1 }
 0xd34   :  { %v16544_v42 = vpop.f32.mrf.mxu2  ;;  %v16546_v9 = vpop.f32.mrf.mxu3 }
 0xd35   :  { %18025 = vst [vmem:[#allocation57_spill] sm:$0xff] %v16544_v42 }
 0xd36   :  { %18026 = vst [vmem:[#allocation59_spill] sm:$0xff] %v16546_v9 }
 0xd39   :  { %v16576_v14 = vpop.f32.mrf.mxu0  ;;  %v16578_v17 = vpop.f32.mrf.mxu1 }
 0xd3c   :  { %v16552_v40 = vpop.f32.mrf.mxu2  ;;  %v16554_v35 = vpop.f32.mrf.mxu3 }
 0xd3d   :  { %18028 = vst [vmem:[#allocation65_spill] sm:$0xff] %v16552_v40 }
 0xd3e   :  { %18029 = vst [vmem:[#allocation73_spill] sm:$0xff] %v16554_v35 }
 0xd41   :  { %v8931_v8 = vpop.f32.mrf.mxu0  ;;  %v16584_v51 = vpop.f32.mrf.mxu1 }
 0xd44   :  { %v16558_v21 = vpop.f32.mrf.mxu2  ;;  %v16560_v31 = vpop.f32.mrf.mxu3 }
 0xd45   :  { %18030 = vst [vmem:[#allocation64_spill] sm:$0xff] %v16558_v21 }
 0xd46   :  { %18031 = vst [vmem:[#allocation66_spill] sm:$0xff] %v16560_v31 }
 0xd49   :  { %v8936_v22 = vpop.f32.mrf.mxu0  ;;  %v9046_v25 = vpop.f32.mrf.mxu1 }
 0xd4c   :  { %v16566_v23 = vpop.f32.mrf.mxu2  ;;  %v16568_v39 = vpop.f32.mrf.mxu3 }
 0xd4d   :  { %18033 = vst [vmem:[#allocation68_spill] sm:$0xff] %v16566_v23 }
 0xd4e   :  { %18034 = vst [vmem:[#allocation69_spill] sm:$0xff] %v16568_v39 }
 0xd51   :  { %v8941_v28 = vpop.f32.mrf.mxu0  ;;  %v9052_v49 = vpop.f32.mrf.mxu1 }
 0xd52   :  { %v8942_v13 = vadd.f32 %v8941_v28, %v8844_v36 }
 0xd54   :  { %v16572_v11 = vpop.f32.mrf.mxu2  ;;  %v16574_v54 = vpop.f32.mrf.mxu3 }
 0xd55   :  { %18035 = vst [vmem:[#allocation74_spill] sm:$0xff] %v16572_v11 }
 0xd56   :  { %18036 = vst [vmem:[#allocation70_spill] sm:$0xff] %v16574_v54 }
 0xd59   :  { %v8946_v42 = vpop.f32.mrf.mxu0  ;;  %v9058_v31 = vpop.f32.mrf.mxu1 }
 0xd5a   :  { %v8947_v60 = vadd.f32 %v8946_v42, %v8848_v34  ;;  %v9053_v42 = vadd.f32 %v9052_v49, %v8942_v13 }
 0xd5c   :  { %v16580_v29 = vpop.f32.mrf.mxu2  ;;  %v16582_v59 = vpop.f32.mrf.mxu3 }
 0xd5d   :  { %18037 = vst [vmem:[#allocation71_spill] sm:$0xff] %v16580_v29 }
 0xd5e   :  { %18038 = vst [vmem:[#allocation72_spill] sm:$0xff] %v16582_v59 }
 0xd61   :  { %v8951_v39 = vpop.f32.mrf.mxu0  ;;  %v9064_v21 = vpop.f32.mrf.mxu1 }
 0xd62   :  { %v8952_v6 = vadd.f32 %v8951_v39, %v8852_v26  ;;  %v9059_v39 = vadd.f32 %v9058_v31, %v8947_v60 }
 0xd64   :  { %v16586_v1 = vpop.f32.mrf.mxu2  ;;  %v16588_v20 = vpop.f32.mrf.mxu3  ;;  %v18052_v13 = vld [vmem:[#allocation71_spill] sm:$0xff] }
 0xd65   :  { %18039 = vst [vmem:[#allocation27_spill] sm:$0xff] %v16586_v1 }
 0xd66   :  { %18040 = vst [vmem:[#allocation34_spill] sm:$0xff] %v16588_v20  ;;  %v8860_v20 = vadd.f32 %v8859_v10, %v8759_v46 }
 0xd69   :  { %v8956_v23 = vpop.f32.mrf.mxu0  ;;  %v9070_v59 = vpop.f32.mrf.mxu1 }
 0xd6c   :  { %v16590_v38 = vpop.f32.mrf.mxu2  ;;  %v16592_v27 = vpop.f32.mrf.mxu3 }
 0xd6d   :  { %18041 = vst [vmem:[#allocation2_spill] sm:$0xff] %v16592_v27  ;;  %v8957_v27 = vadd.f32 %v8956_v23, %v8856_v18  ;;  %v9065_v18 = vadd.f32 %v9064_v21, %v8952_v6  ;;  %v8922_v21 = vadd.f32 %v16564_v41, %v16479_v32 }
 0xd6f   :  { %v9071_v10 = vadd.f32 %v9070_v59, %v8957_v27  ;;  %v18044_v27 = vld [vmem:[#allocation55_spill] sm:$0xff] }
 0xd71   :  { %v8961_v29 = vpop.f32.mrf.mxu0  ;;  %v9076_v47 = vpop.f32.mrf.mxu1 }
 0xd72   :  { %v8962_v1 = vadd.f32 %v8961_v29, %v8860_v20 }
 0xd74   :  { %v16594_v2 = vpop.f32.mrf.mxu2  ;;  %v16596_v55 = vpop.f32.mrf.mxu3  ;;  %v9077_v46 = vadd.f32 %v9076_v47, %v8962_v1  ;;  %v8927_v47 = vadd.f32 %v16576_v14, %v16485_v50  ;;  %v16624_v50 = vadd.f32 %v16511_v0, %v16455_v52  ;;  %v8897_v52 = vadd.f32 %v16521_v56, %v16459_v37  ;;  %v18046_v37 = vld [vmem:[#allocation67_spill] sm:$0xff] }
 0xd75   :  { %18042 = vst [vmem:[#allocation32_spill] sm:$0xff] %v16596_v55  ;;  %v8840_v55 = vadd.f32 %v16491_v57, %v16495_v63  ;;  %v8932_v63 = vadd.f32 %v8931_v8, %v8836_v24  ;;  %v8912_v0 = vadd.f32 %v16548_v44, %v16471_v12  ;;  %v18048_v44 = vld [vmem:[#allocation2_spill] sm:$0xff] }
 0xd77   :  { %v8937_v30 = vadd.f32 %v8936_v22, %v8840_v55 }
 0xd79   :  { %v8966_v48 = vpop.f32.mrf.mxu0  ;;  %v9082_v7 = vpop.f32.mrf.mxu1  ;;  %v9047_v58 = vadd.f32 %v9046_v25, %v8937_v30  ;;  %v18045_v25 = vld [vmem:[#allocation56_spill] sm:$0xff] }
 0xd7a   :  { %v8967_v26 = vadd.f32 %v8966_v48, %v8864_v3  ;;  %v8907_v28 = vadd.f32 %v18045_v25, %v18044_v27 }
 0xd7c   :  { %v9148_v9 = vpop.f32.mrf.mxu2  ;;  %v16598_v35 = vpop.f32.mrf.mxu3 }
 0xd7d   :  { %v9149_v8 = vadd.f32 %v9148_v9, %v9047_v58 }
 0xd84   :  { %v9152_v40 = vpop.f32.mrf.mxu2  ;;  %v9240_v19 = vpop.f32.mrf.mxu3 }
 0xd85   :  { %v9153_v59 = vadd.f32 %v9152_v40, %v9053_v42  ;;  %v8917_v40 = vadd.f32 %v16556_v5, %v16475_v15  ;;  %v9029_v15 = vadd.f32 %v16570_v62, %v8922_v21 }
 0xd87   :  { %v9237_v41 = vadd.f32 %v16598_v35, %v9153_v59  ;;  %v9023_v56 = vadd.f32 %v18046_v37, %v8917_v40  ;;  %v18063_v37 = vld [vmem:[#allocation52_spill] sm:$0xff] }
 0xd89   :  { %v16655_v55 = vand.u32 4294901760, %v9237_v41 }
 0xd8b   :  { %v16695_v59 = vsub.f32 %v9237_v41, %v16655_v55  ;;  %v18060_v41 = vld [vmem:[#allocation58_spill] sm:$0xff] }
 0xd8c   :  { %v9156_v4 = vpop.f32.mrf.mxu2  ;;  %v9244_v54 = vpop.f32.mrf.mxu3 }
 0xd8d   :  { %v9157_v33 = vadd.f32 %v9156_v4, %v9059_v39 }
 0xd8f   :  { %v9241_v49 = vadd.f32 %v9240_v19, %v9157_v33  ;;  %v18056_v33 = vld [vmem:[#allocation72_spill] sm:$0xff] }
 0xd91   :  { %v16643_v20 = vand.u32 4294901760, %v9241_v49 }
 0xd94   :  { %v9160_v53 = vpop.f32.mrf.mxu2  ;;  %v9248_v11 = vpop.f32.mrf.mxu3 }
 0xd95   :  { %v9161_v57 = vadd.f32 %v9160_v53, %v9065_v18  ;;  %v9041_v53 = vadd.f32 %v16584_v51, %v8932_v63  ;;  %v9133_v18 = vadd.f32 %v18052_v13, %v9023_v56  ;;  %v18055_v63 = vld [vmem:[#allocation74_spill] sm:$0xff]  ;;  %v8993_v56 = vadd.f32 %v18063_v37, %v16624_v50  ;;  %v18066_v13 = vld [vmem:[#allocation57_spill] sm:$0xff] }
 0xd97   :  { %v9245_v36 = vadd.f32 %v9244_v54, %v9161_v57  ;;  %v9035_v54 = vadd.f32 %v16578_v17, %v8927_v47  ;;  %v9145_v14 = vadd.f32 %v16594_v2, %v9041_v53  ;;  %v18043_v17 = vld [vmem:[#allocation32_spill] sm:$0xff]  ;;  %v18047_v2 = vld [vmem:[#allocation27_spill] sm:$0xff] }
 0xd98   :  { %v9233_v1 = vadd.f32 %v18043_v17, %v9149_v8  ;;  %v9137_v12 = vadd.f32 %v18047_v2, %v9029_v15  ;;  %v18054_v57 = vld [vmem:[#allocation63_spill] sm:$0xff]  ;;  %v18058_v53 = vld [vmem:[#allocation68_spill] sm:$0xff]  ;;  %v18059_v8 = vld [vmem:[#allocation70_spill] sm:$0xff] }
 0xd99   :  { %v16631_v51 = vand.u32 4294901760, %v9245_v36  ;;  %v9141_v5 = vadd.f32 %v16590_v38, %v9035_v54  ;;  %v9229_v62 = vadd.f32 %v18048_v44, %v9145_v14  ;;  %v18064_v2 = vld [vmem:[#allocation65_spill] sm:$0xff]  ;;  %v18065_v44 = vld [vmem:[#allocation66_spill] sm:$0xff] }
 0xd9a   :  { %v16671_v30 = vand.u32 4294901760, %v9233_v1 }
 0xd9b   :  { %v16663_v60 = vsub.f32 %v9245_v36, %v16631_v51  ;;  %v16683_v47 = vand.u32 4294901760, %v9229_v62 }
 0xd9c   :  { %v9164_v43 = vpop.f32.mrf.mxu2  ;;  %v9252_v16 = vpop.f32.mrf.mxu3  ;;  %v16710_v14 = vsub.f32 %v9233_v1, %v16671_v30 }
 0xd9d   :  { %v9165_v23 = vadd.f32 %v9164_v43, %v9071_v10  ;;  %v9083_v43 = vadd.f32 %v9082_v7, %v8967_v26  ;;  %v18049_v10 = vld [vmem:[#allocation49_spill] sm:$0xff]  ;;  %v16677_v26 = vsub.f32 %v9241_v49, %v16643_v20  ;;  %v9792_v36 = vand.u32 4294901760, %v16663_v60 }
 0xd9e   :  { %v9217_v49 = vadd.f32 %v18059_v8, %v9133_v18  ;;  %v9113_v18 = vadd.f32 %v18066_v13, %v8993_v56 }
 0xd9f   :  { %v9249_v45 = vadd.f32 %v9248_v11, %v9165_v23  ;;  %v18053_v23 = vld [vmem:[#allocation34_spill] sm:$0xff]  ;;  %v9793_v1 = vsub.f32 %v16663_v60, %v9792_v36 }
 0xda1   :  { %v16620_v4 = vand.u32 4294901760, %v9249_v45 }
 0xda3   :  { %v16648_v22 = vsub.f32 %v9249_v45, %v16620_v4  ;;  %v9221_v45 = vadd.f32 %v18056_v33, %v9137_v12 }
 0xda4   :  { %v9168_v61 = vpop.f32.mrf.mxu2  ;;  %v9256_v32 = vpop.f32.mrf.mxu3 }
 0xda5   :  { %v9169_v29 = vadd.f32 %v9168_v61, %v9077_v46  ;;  %v18050_v46 = vld [vmem:[#allocation54_spill] sm:$0xff]  ;;  %v9786_v39 = vand.u32 4294901760, %v16648_v22  ;;  %v16716_v27 = vand.u32 4294901760, %v9221_v45 }
 0xda6   :  { %v8902_v24 = vadd.f32 %v18050_v46, %v18049_v10  ;;  %v16731_v46 = vand.u32 4294901760, %v9217_v49 }
 0xda7   :  { %v9253_v34 = vadd.f32 %v9252_v16, %v9169_v29  ;;  %v18051_v16 = vld [vmem:[#allocation62_spill] sm:$0xff]  ;;  %v9225_v29 = vadd.f32 %v18053_v23, %v9141_v5  ;;  %v9787_v54 = vsub.f32 %v16648_v22, %v9786_v39  ;;  %v18062_v5 = vld [vmem:[#allocation69_spill] sm:$0xff] }
 0xda8   :  { %v9017_v61 = vadd.f32 %v18051_v16, %v8912_v0  ;;  %v18061_v0 = vld [vmem:[#allocation64_spill] sm:$0xff]  ;;  %v18067_v23 = vld [vmem:[#allocation73_spill] sm:$0xff] }
 0xda9   :  { %v16615_v6 = vand.u32 4294901760, %v9253_v34 }
 0xdaa   :  { %v9129_v42 = vadd.f32 %v18055_v63, %v9017_v61  ;;  %v9810_v61 = vand.u32 4294901760, %v16710_v14  ;;  %v16753_v63 = vsub.f32 %v9221_v45, %v16716_v27 }
 0xdab   :  { %v16634_v9 = vsub.f32 %v9253_v34, %v16615_v6  ;;  %v9011_v34 = vadd.f32 %v18054_v57, %v8907_v28  ;;  %v16724_v28 = vsub.f32 %v9229_v62, %v16683_v47  ;;  %v9259_v62 = vld [vmem:[%s17528_s8] sm:$0xff] }
 0xdac   :  { %v9172_v31 = vpop.f32.mrf.mxu2  ;;  %v9213_v17 = vadd.f32 %v18062_v5, %v9129_v42 }
 0xdad   :  { %v9173_v11 = vadd.f32 %v9172_v31, %v9083_v43  ;;  %v9780_v3 = vand.u32 4294901760, %v16634_v9  ;;  %v18057_v43 = vld [vmem:[#allocation60_spill] sm:$0xff]  ;;  %v9125_v31 = vadd.f32 %v18058_v53, %v9011_v34  ;;  %v9816_v33 = vand.u32 4294901760, %v16724_v28 }
 0xdae   :  { %v9005_v21 = vadd.f32 %v18057_v43, %v8902_v24  ;;  %v9788_v24 = vand.u32 4294901760, %v9787_v54  ;;  %v16748_v34 = vand.u32 4294901760, %v9213_v17  ;;  %v9811_v53 = vsub.f32 %v16710_v14, %v9810_v61 }
 0xdaf   :  { %v9257_v19 = vadd.f32 %v9256_v32, %v9173_v11  ;;  %v9781_v58 = vsub.f32 %v16634_v9, %v9780_v3  ;;  %v16701_v11 = vand.u32 4294901760, %v9225_v29  ;;  %v9798_v32 = vand.u32 4294901760, %v16677_v26 }
 0xdb0   :  { %v9121_v15 = vadd.f32 %v18061_v0, %v9005_v21  ;;  %v9209_v10 = vadd.f32 %v18065_v44, %v9125_v31  ;;  %v16772_v31 = vsub.f32 %v9217_v49, %v16731_v46  ;;  %v9817_v49 = vsub.f32 %v16724_v28, %v9816_v33 }
 0xdb1   :  { %v16645_v35 = vand.u32 4294901760, %v9257_v19  ;;  %v9782_v25 = vand.u32 4294901760, %v9781_v58  ;;  %v9799_v50 = vsub.f32 %v16677_v26, %v9798_v32  ;;  %v16743_v16 = vsub.f32 %v9225_v29, %v16701_v11  ;;  %v18068_v58 = vld [vmem:[#allocation59_spill] sm:$0xff] }
 0xdb2   :  { %v9205_v57 = vadd.f32 %v18067_v23, %v9121_v15  ;;  %v9794_v29 = vand.u32 4294901760, %v9793_v1  ;;  %v16763_v21 = vand.u32 4294901760, %v9209_v10  ;;  %v9828_v15 = vand.u32 4294901760, %v16753_v63 }
 0xdb3   :  { %v16658_v38 = vsub.f32 %v9257_v19, %v16645_v35  ;;  %9484 = vmatpush.msrb.mxu0 %v16645_v35  ;;  %10207 = vmatpush.msrb.mxu3 %v16645_v35  ;;  %v8999_v19 = vadd.f32 %v18060_v41, %v8897_v52  ;;  %v9804_v52 = vand.u32 4294901760, %v16695_v59  ;;  %v9800_v45 = vand.u32 4294901760, %v9799_v50 }
 0xdb4   :  { %v9822_v8 = vand.u32 4294901760, %v16743_v16  ;;  %v16776_v41 = vand.u32 4294901760, %v9205_v57  ;;  %v9812_v1 = vand.u32 4294901760, %v9811_v53  ;;  %v16803_v56 = vsub.f32 %v9209_v10, %v16763_v21 }
 0xdb5   :  { %9486 = vmatpush.msrb.mxu0 %v16615_v6  ;;  %9999 = vmatpush.msrb.mxu2 %v16658_v38  ;;  %v9774_v48 = vand.u32 4294901760, %v16658_v38  ;;  %v9117_v12 = vadd.f32 %v18064_v2, %v8999_v19  ;;  %v9805_v42 = vsub.f32 %v16695_v59, %v9804_v52  ;;  %v16781_v19 = vsub.f32 %v9213_v17, %v16748_v34  ;;  %v9260_v17 = vld [vmem:[%s17528_s8 + $0x8] sm:$0xff] }
 0xdb6   :  { %10209 = vmatpush.msrb.mxu3 %v16615_v6  ;;  %v9823_v37 = vsub.f32 %v16743_v16, %v9822_v8  ;;  %v9834_v2 = vand.u32 4294901760, %v16772_v31  ;;  %v16811_v44 = vsub.f32 %v9205_v57, %v16776_v41  ;;  %v9829_v10 = vsub.f32 %v16753_v63, %v9828_v15 }
 0xdb7   :  { %9488 = vmatpush.msrb.mxu0 %v16620_v4  ;;  %10002 = vmatpush.msrb.mxu2 %v16634_v9  ;;  %v9775_v7 = vsub.f32 %v16658_v38, %v9774_v48  ;;  %v9201_v43 = vadd.f32 %v18068_v58, %v9117_v12  ;;  %v9806_v0 = vand.u32 4294901760, %v9805_v42  ;;  %v16819_v13 = vand.u32 4294901760, %v9260_v17 }
 0xdb8   :  { %10211 = vmatpush.msrb.mxu3 %v16620_v4  ;;  %v9835_v23 = vsub.f32 %v16772_v31, %v9834_v2  ;;  %v17629_v58 = vand.u32 4294901760, %v16811_v44 }
 0xdb9   :  { %9490 = vmatpush.msrb.mxu0 %v16631_v51  ;;  %10005 = vmatpush.msrb.mxu2 %v16648_v22  ;;  %v9776_v40 = vand.u32 4294901760, %v9775_v7  ;;  %v16760_v7 = vand.u32 4294901760, %v9259_v62  ;;  %v9263_v22 = vld [vmem:[%s17528_s8 + $0x20] sm:$0xff] }
 0xdba   :  { %10213 = vmatpush.msrb.mxu3 %v16631_v51 }
 0xdbb   :  { %9492 = vmatpush.msrb.mxu0 %v16643_v20  ;;  %9777 = vmatpush.msrb.mxu1 %v9776_v40  ;;  %v18069_v40 = vld [vmem:[#allocation61_spill] sm:$0xff]  ;;  %v16789_v5 = vsub.f32 %v9259_v62, %v16760_v7  ;;  %v9840_v62 = vand.u32 4294901760, %v16781_v19 }
 0xdbc   :  { %10008 = vmatpush.msrb.mxu2 %v16663_v60  ;;  %10215 = vmatpush.msrb.mxu3 %v16643_v20  ;;  %v9197_v54 = vadd.f32 %v18069_v40, %v9113_v18  ;;  %v9824_v18 = vand.u32 4294901760, %v9823_v37  ;;  %v9524_v40 = vsub.f32 %v9260_v17, %v16819_v13  ;;  %v9853_v17 = vsub.f32 %v16811_v44, %v17629_v58 }
 0xdbd   :  { %9494 = vmatpush.msrb.mxu0 %v16655_v55  ;;  %9783 = vmatpush.msrb.mxu1 %v9782_v25  ;;  %v16791_v25 = vand.u32 4294901760, %v9201_v43  ;;  %v9517_v50 = vand.u32 4294901760, %v16789_v5 }
 0xdbe   :  { %10011 = vmatpush.msrb.mxu2 %v16677_v26  ;;  %10217 = vmatpush.msrb.mxu3 %v16655_v55  ;;  %v16806_v12 = vand.u32 4294901760, %v9197_v54  ;;  %v9264_v26 = vld [vmem:[%s17528_s8 + $0x28] sm:$0xff] }
 0xdbf   :  { %9496 = vmatpush.msrb.mxu0 %v16671_v30  ;;  %9789 = vmatpush.msrb.mxu1 %v9788_v24  ;;  %v9818_v24 = vand.u32 4294901760, %v9817_v49  ;;  %v16828_v57 = vsub.f32 %v9201_v43, %v16791_v25  ;;  %v9841_v43 = vsub.f32 %v16781_v19, %v9840_v62  ;;  %v9518_v53 = vsub.f32 %v16789_v5, %v9517_v50 }
 0xdc0   :  { %10014 = vmatpush.msrb.mxu2 %v16695_v59  ;;  %10219 = vmatpush.msrb.mxu3 %v16671_v30  ;;  %v16834_v42 = vsub.f32 %v9197_v54, %v16806_v12  ;;  %v9261_v54 = vld [vmem:[%s17528_s8 + $0x10] sm:$0xff]  ;;  %v18070_v59 = vand.u32 4294901760, %v16803_v56 }
 0xdc1   :  { %9498 = vmatpush.msrb.mxu0 %v16683_v47  ;;  %9795 = vmatpush.msrb.mxu1 %v9794_v29  ;;  %v17630_v29 = vand.u32 4294901760, %v16803_v56 }
 0xdc2   :  { %10017 = vmatpush.msrb.mxu2 %v16710_v14  ;;  %10221 = vmatpush.msrb.mxu3 %v16683_v47  ;;  %v9864_v37 = vand.u32 4294901760, %v16834_v42 }
 0xdc3   :  { %9500 = vmatpush.msrb.mxu0 %v16701_v11  ;;  %9801 = vmatpush.msrb.mxu1 %v9800_v45  ;;  %v9830_v45 = vand.u32 4294901760, %v9829_v10  ;;  %v9847_v49 = vsub.f32 %v16803_v56, %v17630_v29  ;;  %v9519_v10 = vand.u32 4294901760, %v9518_v53 }
 0xdc4   :  { %10020 = vmatpush.msrb.mxu2 %v16724_v28  ;;  %10223 = vmatpush.msrb.mxu3 %v16701_v11  ;;  %v9865_v53 = vsub.f32 %v16834_v42, %v9864_v37 }
 0xdc5   :  { %9502 = vmatpush.msrb.mxu0 %v16716_v27  ;;  %9807 = vmatpush.msrb.mxu1 %v9806_v0  ;;  %v9836_v0 = vand.u32 4294901760, %v9835_v23  ;;  %v16860_v23 = vand.u32 4294901760, %v9261_v54 }
 0xdc6   :  { %10023 = vmatpush.msrb.mxu2 %v16743_v16  ;;  %10225 = vmatpush.msrb.mxu3 %v16716_v27 }
 0xdc7   :  { %9504 = vmatpush.msrb.mxu0 %v16731_v46  ;;  %9813 = vmatpush.msrb.mxu1 %v9812_v1  ;;  %v9858_v1 = vand.u32 4294901760, %v16828_v57  ;;  %v9532_v29 = vsub.f32 %v9261_v54, %v16860_v23 }
 0xdc8   :  { %10026 = vmatpush.msrb.mxu2 %v16753_v63  ;;  %10227 = vmatpush.msrb.mxu3 %v16731_v46 }
 0xdc9   :  { %9506 = vmatpush.msrb.mxu0 %v16748_v34  ;;  %9819 = vmatpush.msrb.mxu1 %v9818_v24  ;;  %v9842_v24 = vand.u32 4294901760, %v9841_v43  ;;  %v9859_v58 = vsub.f32 %v16828_v57, %v9858_v1  ;;  %v9854_v43 = vand.u32 4294901760, %v9853_v17 }
 0xdca   :  { %10029 = vmatpush.msrb.mxu2 %v16772_v31  ;;  %10229 = vmatpush.msrb.mxu3 %v16748_v34 }
 0xdcb   :  { %9508 = vmatpush.msrb.mxu0 %v16763_v21  ;;  %9825 = vmatpush.msrb.mxu1 %v9824_v18  ;;  %v9525_v18 = vand.u32 4294901760, %v9524_v40  ;;  %v9860_v17 = vand.u32 4294901760, %v9859_v58  ;;  %v9270_v58 = vld [vmem:[%s17528_s8 + $0x58] sm:$0xff] }
 0xdcc   :  { %10032 = vmatpush.msrb.mxu2 %v16781_v19  ;;  %10231 = vmatpush.msrb.mxu3 %v16763_v21 }
 0xdcd   :  { %9510 = vmatpush.msrb.mxu0 %v16776_v41  ;;  %9831 = vmatpush.msrb.mxu1 %v9830_v45  ;;  %v9848_v45 = vand.u32 4294901760, %v9847_v49  ;;  %v9262_v49 = vld [vmem:[%s17528_s8 + $0x18] sm:$0xff] }
 0xdce   :  { %10035 = vmatpush.msrb.mxu2 %v16803_v56  ;;  %10233 = vmatpush.msrb.mxu3 %v16776_v41  ;;  %v16883_v38 = vand.u32 4294901760, %v9262_v49 }
 0xdcf   :  { %9512 = vmatpush.msrb.mxu0 %v16791_v25  ;;  %9837 = vmatpush.msrb.mxu1 %v9836_v0  ;;  %v9526_v0 = vsub.f32 %v9524_v40, %v9525_v18 }
 0xdd0   :  { %10038 = vmatpush.msrb.mxu2 %v16811_v44  ;;  %10235 = vmatpush.msrb.mxu3 %v16791_v25 }
 0xdd1   :  { %9514 = vmatpush.msrb.mxu0 %v16806_v12  ;;  %9843 = vmatpush.msrb.mxu1 %v9842_v24  ;;  %v9866_v24 = vand.u32 4294901760, %v9865_v53  ;;  %v9527_v54 = vand.u32 4294901760, %v9526_v0 }
 0xdd2   :  { %10041 = vmatpush.msrb.mxu2 %v16828_v57  ;;  %10237 = vmatpush.msrb.mxu3 %v16806_v12 }
 0xdd3   :  { %9520 = vmatmul.f32.vlgmr.msrb.gmra.mxu0 %v9519_v10  ;;  %9849 = vmatpush.msrb.mxu1 %v9848_v45  ;;  %v9533_v10 = vand.u32 4294901760, %v9532_v29 }
 0xdd4   :  { %10434 = vmatpush.msra.mxu0 %v9774_v48  ;;  %10044 = vmatpush.msrb.mxu2 %v16834_v42  ;;  %v16901_v48 = vand.u32 4294901760, %v9263_v22 }
 0xdd5   :  { %9855 = vmatpush.msrb.mxu1 %v9854_v43  ;;  %10047 = vmatmul.f32.vlgmr.msrb.gmra.mxu2 %v16789_v5  ;;  %v9534_v9 = vsub.f32 %v9532_v29, %v9533_v10  ;;  %v9271_v43 = vld [vmem:[%s17528_s8 + $0x60] sm:$0xff] }
 0xdd6   :  { %10438 = vmatpush.msra.mxu0 %v9780_v3  ;;  %10241 = vmatmul.f32.vlgmr.msrb.gmra.mxu3 %v9517_v50  ;;  %v9540_v3 = vsub.f32 %v9262_v49, %v16883_v38  ;;  %v16990_v49 = vand.u32 4294901760, %v9271_v43 }
 0xdd7   :  { %9861 = vmatpush.msrb.mxu1 %v9860_v17 }
 0xdd8   :  { %10442 = vmatpush.msra.mxu0 %v9786_v39  ;;  %v9541_v60 = vand.u32 4294901760, %v9540_v3  ;;  %v16920_v39 = vand.u32 4294901760, %v9264_v26 }
 0xdd9   :  { %9867 = vmatpush.msrb.mxu1 %v9866_v24  ;;  %v9612_v24 = vsub.f32 %v9271_v43, %v16990_v49 }
 0xdda   :  { %10446 = vmatpush.msra.mxu0 %v9792_v36  ;;  %9869 = vmatmul.f32.vlgmr.msrb.gmra.mxu1 %v16760_v7  ;;  %v9265_v36 = vld [vmem:[%s17528_s8 + $0x30] sm:$0xff] }
 0xddb   :  { %9528 = vmatmul.f32.gmra.mxu0 %v9527_v54  ;;  %10625 = vmatpush.msra.mxu1 %v16645_v35  ;;  %v9535_v35 = vand.u32 4294901760, %v9534_v9  ;;  %v9272_v54 = vld [vmem:[%s17528_s8 + $0x68] sm:$0xff]  ;;  %v9613_v9 = vand.u32 4294901760, %v9612_v24 }
 0xddc   :  { %10450 = vmatpush.msra.mxu0 %v9798_v32  ;;  %v16939_v32 = vand.u32 4294901760, %v9265_v36 }
 0xddd   :  { %10627 = vmatpush.msra.mxu1 %v16615_v6  ;;  %10052 = vmatmul.f32.gmra.mxu2 %v9524_v40  ;;  %v9542_v6 = vsub.f32 %v9540_v3, %v9541_v60 }
 0xdde   :  { %10454 = vmatpush.msra.mxu0 %v9804_v52  ;;  %10247 = vmatmul.f32.gmra.mxu3 %v9525_v18  ;;  %v9564_v28 = vsub.f32 %v9265_v36, %v16939_v32  ;;  %v9266_v52 = vld [vmem:[%s17528_s8 + $0x38] sm:$0xff] }
 0xddf   :  { %10629 = vmatpush.msra.mxu1 %v16620_v4  ;;  %v9548_v4 = vsub.f32 %v9263_v22, %v16901_v48  ;;  %v9614_v22 = vsub.f32 %v9612_v24, %v9613_v9 }
 0xde0   :  { %10458 = vmatpush.msra.mxu0 %v9810_v61  ;;  %v9565_v16 = vand.u32 4294901760, %v9564_v28  ;;  %v16954_v61 = vand.u32 4294901760, %v9266_v52 }
 0xde1   :  { %10631 = vmatpush.msra.mxu1 %v16631_v51  ;;  %v9543_v51 = vand.u32 4294901760, %v9542_v6  ;;  %v9615_v6 = vand.u32 4294901760, %v9614_v22 }
 0xde2   :  { %10462 = vmatpush.msra.mxu0 %v9816_v33  ;;  %9873 = vmatmul.f32.gmra.mxu1 %v16819_v13  ;;  %v9572_v63 = vsub.f32 %v9266_v52, %v16954_v61  ;;  %v9267_v33 = vld [vmem:[%s17528_s8 + $0x40] sm:$0xff] }
 0xde3   :  { %9536 = vmatmul.f32.gmra.mxu0 %v9535_v35  ;;  %10633 = vmatpush.msra.mxu1 %v16643_v20  ;;  %v9549_v20 = vand.u32 4294901760, %v9548_v4 }
 0xde4   :  { %10466 = vmatpush.msra.mxu0 %v9822_v8  ;;  %v9573_v31 = vand.u32 4294901760, %v9572_v63  ;;  %v16962_v8 = vand.u32 4294901760, %v9267_v33 }
 0xde5   :  { %10635 = vmatpush.msra.mxu1 %v16655_v55  ;;  %10057 = vmatmul.f32.gmra.mxu2 %v9532_v29  ;;  %v9550_v55 = vsub.f32 %v9548_v4, %v9549_v20 }
 0xde6   :  { %10470 = vmatpush.msra.mxu0 %v9828_v15  ;;  %10253 = vmatmul.f32.gmra.mxu3 %v9533_v10  ;;  %v9580_v19 = vsub.f32 %v9267_v33, %v16962_v8  ;;  %v9268_v15 = vld [vmem:[%s17528_s8 + $0x48] sm:$0xff] }
 0xde7   :  { %10637 = vmatpush.msra.mxu1 %v16671_v30  ;;  %v9556_v30 = vsub.f32 %v9264_v26, %v16920_v39  ;;  %v16969_v56 = vand.u32 4294901760, %v9268_v15 }
 0xde8   :  { %10474 = vmatpush.msra.mxu0 %v9834_v2 }
 0xde9   :  { %10639 = vmatpush.msra.mxu1 %v16683_v47  ;;  %v18071_v47 = vand.u32 4294901760, %v16811_v44  ;;  %v9557_v14 = vand.u32 4294901760, %v9556_v30  ;;  %v9269_v44 = vld [vmem:[%s17528_s8 + $0x50] sm:$0xff] }
 0xdea   :  { %10478 = vmatpush.msra.mxu0 %v9840_v62  ;;  %9877 = vmatmul.f32.gmra.mxu1 %v16860_v23  ;;  %v16976_v57 = vand.u32 4294901760, %v9269_v44 }
 0xdeb   :  { %9544 = vmatmul.f32.gmra.mxu0 %v9543_v51  ;;  %10641 = vmatpush.msra.mxu1 %v16701_v11  ;;  %v9551_v11 = vand.u32 4294901760, %v9550_v55  ;;  %v9274_v55 = vld [vmem:[%s17528_s8 + $0x78] sm:$0xff] }
 0xdec   :  { %10482 = vmatpush.msra.mxu0 %v18070_v59  ;;  %v9596_v42 = vsub.f32 %v9269_v44, %v16976_v57  ;;  %v17011_v36 = vand.u32 4294901760, %v9274_v55 }
 0xded   :  { %10643 = vmatpush.msra.mxu1 %v16716_v27  ;;  %10062 = vmatmul.f32.gmra.mxu2 %v9540_v3  ;;  %v9558_v27 = vsub.f32 %v9556_v30, %v9557_v14  ;;  %v16997_v3 = vand.u32 4294901760, %v9272_v54 }
 0xdee   :  { %10486 = vmatpush.msra.mxu0 %v18071_v47  ;;  %10259 = vmatmul.f32.gmra.mxu3 %v9541_v60  ;;  %v9273_v60 = vld [vmem:[%s17528_s8 + $0x70] sm:$0xff] }
 0xdef   :  { %10645 = vmatpush.msra.mxu1 %v16731_v46  ;;  %v9559_v46 = vand.u32 4294901760, %v9558_v27  ;;  %v9620_v35 = vsub.f32 %v9272_v54, %v16997_v3  ;;  %v17004_v26 = vand.u32 4294901760, %v9273_v60 }
 0xdf0   :  { %10490 = vmatpush.msra.mxu0 %v9858_v1  ;;  %v9597_v1 = vand.u32 4294901760, %v9596_v42 }
 0xdf1   :  { %10647 = vmatpush.msra.mxu1 %v16748_v34  ;;  %v9566_v34 = vsub.f32 %v9564_v28, %v9565_v16 }
 0xdf2   :  { %10494 = vmatpush.msra.mxu0 %v9864_v37  ;;  %9881 = vmatmul.f32.gmra.mxu1 %v16883_v38  ;;  %v16983_v37 = vand.u32 4294901760, %v9270_v58  ;;  %v9598_v18 = vsub.f32 %v9596_v42, %v9597_v1 }
 0xdf3   :  { %9552 = vmatmul.f32.gmra.mxu0 %v9551_v11  ;;  %10649 = vmatpush.msra.mxu1 %v16763_v21  ;;  %v9567_v21 = vand.u32 4294901760, %v9566_v34  ;;  %v9636_v11 = vsub.f32 %v9274_v55, %v17011_v36  ;;  %v9276_v34 = vld [vmem:[%s17528_s8 + $0x88] sm:$0xff] }
 0xdf4   :  { %v9604_v45 = vsub.f32 %v9270_v58, %v16983_v37  ;;  %v9599_v53 = vand.u32 4294901760, %v9598_v18 }
 0xdf5   :  { %10651 = vmatpush.msra.mxu1 %v16776_v41  ;;  %10067 = vmatmul.f32.gmra.mxu2 %v9548_v4  ;;  %v9574_v41 = vsub.f32 %v9572_v63, %v9573_v31  ;;  %v9621_v4 = vand.u32 4294901760, %v9620_v35 }
 0xdf6   :  { %10265 = vmatmul.f32.gmra.mxu3 %v9549_v20  ;;  %v9605_v0 = vand.u32 4294901760, %v9604_v45  ;;  %v9628_v20 = vsub.f32 %v9273_v60, %v17004_v26 }
 0xdf7   :  { %10653 = vmatpush.msra.mxu1 %v16791_v25  ;;  %v9575_v5 = vand.u32 4294901760, %v9574_v41  ;;  %v9581_v25 = vand.u32 4294901760, %v9580_v19  ;;  %v9622_v51 = vsub.f32 %v9620_v35, %v9621_v4 }
 0xdf8   :  { %v9606_v17 = vsub.f32 %v9604_v45, %v9605_v0  ;;  %v9629_v59 = vand.u32 4294901760, %v9628_v20 }
 0xdf9   :  { %10655 = vmatpush.msra.mxu1 %v16806_v12  ;;  %v9582_v2 = vsub.f32 %v9580_v19, %v9581_v25  ;;  %v9588_v12 = vsub.f32 %v9268_v15, %v16969_v56 }
 0xdfa   :  { %9885 = vmatmul.f32.gmra.mxu1 %v16901_v48  ;;  %v9607_v10 = vand.u32 4294901760, %v9606_v17  ;;  %v9630_v47 = vsub.f32 %v9628_v20, %v9629_v59 }
 0xdfb   :  { %9560 = vmatmul.f32.gmra.mxu0 %v9559_v46  ;;  %v9583_v62 = vand.u32 4294901760, %v9582_v2  ;;  %v9589_v50 = vand.u32 4294901760, %v9588_v12 }
 0xdfc   :  { %v9631_v27 = vand.u32 4294901760, %v9630_v47 }
 0xdfd   :  { %10072 = vmatmul.f32.gmra.mxu2 %v9556_v30  ;;  %v9590_v29 = vsub.f32 %v9588_v12, %v9589_v50  ;;  %v9623_v30 = vand.u32 4294901760, %v9622_v51 }
 0xdfe   :  { %10271 = vmatmul.f32.gmra.mxu3 %v9557_v14  ;;  %v9275_v14 = vld [vmem:[%s17528_s8 + $0x80] sm:$0xff] }
 0xdff   :  { %v9591_v40 = vand.u32 4294901760, %v9590_v29  ;;  %v17018_v52 = vand.u32 4294901760, %v9275_v14 }
 0xe02   :  { %9889 = vmatmul.f32.gmra.mxu1 %v16920_v39 }
 0xe03   :  { %9568 = vmatmul.f32.gmra.mxu0 %v9567_v21  ;;  %v17025_v21 = vand.u32 4294901760, %v9276_v34 }
 0xe05   :  { %10077 = vmatmul.f32.gmra.mxu2 %v9564_v28  ;;  %v9637_v28 = vand.u32 4294901760, %v9636_v11  ;;  %v9652_v41 = vsub.f32 %v9276_v34, %v17025_v21 }
 0xe06   :  { %10277 = vmatmul.f32.gmra.mxu3 %v9565_v16  ;;  %v9644_v16 = vsub.f32 %v9275_v14, %v17018_v52 }
 0xe07   :  { %v9638_v46 = vsub.f32 %v9636_v11, %v9637_v28 }
 0xe08   :  { %v9645_v33 = vand.u32 4294901760, %v9644_v16 }
 0xe0a   :  { %9893 = vmatmul.f32.gmra.mxu1 %v16939_v32 }
 0xe0b   :  { %9576 = vmatmul.f32.gmra.mxu0 %v9575_v5  ;;  %v9653_v5 = vand.u32 4294901760, %v9652_v41 }
 0xe0d   :  { %10082 = vmatmul.f32.gmra.mxu2 %v9572_v63  ;;  %v9639_v63 = vand.u32 4294901760, %v9638_v46 }
 0xe0e   :  { %10283 = vmatmul.f32.gmra.mxu3 %v9573_v31  ;;  %v9646_v31 = vsub.f32 %v9644_v16, %v9645_v33 }
 0xe10   :  { %v9647_v15 = vand.u32 4294901760, %v9646_v31 }
 0xe12   :  { %9897 = vmatmul.f32.gmra.mxu1 %v16954_v61 }
 0xe13   :  { %9584 = vmatmul.f32.gmra.mxu0 %v9583_v62  ;;  %v9278_v62 = vld [vmem:[%s17528_s8 + $0x98] sm:$0xff] }
 0xe15   :  { %10087 = vmatmul.f32.gmra.mxu2 %v9580_v19  ;;  %v9277_v19 = vld [vmem:[%s17528_s8 + $0x90] sm:$0xff] }
 0xe16   :  { %10289 = vmatmul.f32.gmra.mxu3 %v9581_v25  ;;  %v17032_v25 = vand.u32 4294901760, %v9277_v19 }
 0xe18   :  { %v9660_v44 = vsub.f32 %v9277_v19, %v17032_v25 }
 0xe1a   :  { %9901 = vmatmul.f32.gmra.mxu1 %v16962_v8 }
 0xe1b   :  { %9592 = vmatmul.f32.gmra.mxu0 %v9591_v40  ;;  %v9661_v40 = vand.u32 4294901760, %v9660_v44 }
 0xe1d   :  { %10092 = vmatmul.f32.gmra.mxu2 %v9588_v12  ;;  %v9654_v12 = vsub.f32 %v9652_v41, %v9653_v5  ;;  %v9662_v17 = vsub.f32 %v9660_v44, %v9661_v40 }
 0xe1e   :  { %10295 = vmatmul.f32.gmra.mxu3 %v9589_v50  ;;  %v9326_v50 = vpop.permute.xlu1 %9325 }
 0xe1f   :  { %v9655_v58 = vand.u32 4294901760, %v9654_v12  ;;  %v9663_v60 = vand.u32 4294901760, %v9662_v17 }
 0xe22   :  { %9905 = vmatmul.f32.gmra.mxu1 %v16969_v56 }
 0xe23   :  { %9600 = vmatmul.f32.gmra.mxu0 %v9599_v53 }
 0xe25   :  { %10097 = vmatmul.f32.gmra.mxu2 %v9596_v42 }
 0xe26   :  { %10301 = vmatmul.f32.gmra.mxu3 %v9597_v1  ;;  %v17039_v1 = vand.u32 4294901760, %v9278_v62 }
 0xe2a   :  { %9909 = vmatmul.f32.gmra.mxu1 %v16976_v57 }
 0xe2b   :  { %9608 = vmatmul.f32.gmra.mxu0 %v9607_v10  ;;  %v9279_v10 = vld [vmem:[%s17528_s8 + $0xa0] sm:$0xff] }
 0xe2d   :  { %10102 = vmatmul.f32.gmra.mxu2 %v9604_v45 }
 0xe2e   :  { %10307 = vmatmul.f32.gmra.mxu3 %v9605_v0 }
 0xe32   :  { %9913 = vmatmul.f32.gmra.mxu1 %v16983_v37 }
 0xe33   :  { %9616 = vmatmul.f32.gmra.mxu0 %v9615_v6 }
 0xe35   :  { %10107 = vmatmul.f32.gmra.mxu2 %v9612_v24  ;;  %v9668_v24 = vsub.f32 %v9278_v62, %v17039_v1 }
 0xe36   :  { %10313 = vmatmul.f32.gmra.mxu3 %v9613_v9  ;;  %v9331_v9 = vpop.permute.xlu2 %9330 }
 0xe37   :  { %v9669_v6 = vand.u32 4294901760, %v9668_v24 }
 0xe39   :  { %v9670_v47 = vsub.f32 %v9668_v24, %v9669_v6 }
 0xe3a   :  { %9917 = vmatmul.f32.gmra.mxu1 %v16990_v49 }
 0xe3b   :  { %9624 = vmatmul.f32.gmra.mxu0 %v9623_v30  ;;  %v9671_v34 = vand.u32 4294901760, %v9670_v47 }
 0xe3d   :  { %10112 = vmatmul.f32.gmra.mxu2 %v9620_v35 }
 0xe3e   :  { %10319 = vmatmul.f32.gmra.mxu3 %v9621_v4  ;;  %v17048_v4 = vand.u32 4294901760, %v9279_v10 }
 0xe42   :  { %9921 = vmatmul.f32.gmra.mxu1 %v16997_v3 }
 0xe43   :  { %9632 = vmatmul.f32.gmra.mxu0 %v9631_v27  ;;  %v9280_v27 = vld [vmem:[%s17528_s8 + $0xa8] sm:$0xff] }
 0xe45   :  { %10117 = vmatmul.f32.gmra.mxu2 %v9628_v20 }
 0xe46   :  { %10325 = vmatmul.f32.gmra.mxu3 %v9629_v59 }
 0xe4a   :  { %9925 = vmatmul.f32.gmra.mxu1 %v17004_v26 }
 0xe4b   :  { %9640 = vmatmul.f32.gmra.mxu0 %v9639_v63 }
 0xe4d   :  { %10122 = vmatmul.f32.gmra.mxu2 %v9636_v11  ;;  %v9676_v11 = vsub.f32 %v9279_v10, %v17048_v4 }
 0xe4e   :  { %10331 = vmatmul.f32.gmra.mxu3 %v9637_v28  ;;  %v9336_v28 = vpop.permute.xlu0 %9335 }
 0xe4f   :  { %v9677_v63 = vand.u32 4294901760, %v9676_v11 }
 0xe50   :  { %v9521_v2 = vpop.f32.mrf.mxu0 }
 0xe51   :  { %v9522_v29 = vadd.f32 %v9521_v2, %v9326_v50  ;;  %v9678_v2 = vsub.f32 %v9676_v11, %v9677_v63  ;;  %v9341_v50 = vpop.permute.xlu1 %9340 }
 0xe52   :  { %9929 = vmatmul.f32.gmra.mxu1 %v17011_v36 }
 0xe53   :  { %9648 = vmatmul.f32.gmra.mxu0 %v9647_v15 }
 0xe55   :  { %10127 = vmatmul.f32.gmra.mxu2 %v9644_v16 }
 0xe56   :  { %10337 = vmatmul.f32.gmra.mxu3 %v9645_v33  ;;  %v17057_v33 = vand.u32 4294901760, %v9280_v27 }
 0xe57   :  { %v9870_v42 = vpop.f32.mrf.mxu1 }
 0xe58   :  { %v9529_v18 = vpop.f32.mrf.mxu0  ;;  %v9871_v45 = vadd.f32 %v9870_v42, %v9522_v29  ;;  %v10048_v43 = vpop.f32.mrf.mxu2  ;;  %v9684_v12 = vsub.f32 %v9280_v27, %v17057_v33 }
 0xe59   :  { %v10242_v53 = vpop.f32.mrf.mxu3  ;;  %v9530_v22 = vadd.f32 %v9529_v18, %v9331_v9 }
 0xe5a   :  { %v10049_v0 = vadd.f32 %v10048_v43, %v9871_v45  ;;  %9933 = vmatmul.f32.gmra.mxu1 %v17018_v52 }
 0xe5b   :  { %9656 = vmatmul.f32.gmra.mxu0 %v9655_v58  ;;  %v9679_v58 = vand.u32 4294901760, %v9678_v2 }
 0xe5c   :  { %v17043_v54 = vadd.f32 %v10242_v53, %v10049_v0 }
 0xe5d   :  { %10132 = vmatmul.f32.gmra.mxu2 %v9652_v41 }
 0xe5e   :  { %10343 = vmatmul.f32.gmra.mxu3 %v9653_v5 }
 0xe5f   :  { %v9874_v35 = vpop.f32.mrf.mxu1 }
 0xe60   :  { %v9537_v51 = vpop.f32.mrf.mxu0  ;;  %v9875_v20 = vadd.f32 %v9874_v35, %v9530_v22  ;;  %v10053_v55 = vpop.f32.mrf.mxu2 }
 0xe61   :  { %v10248_v30 = vpop.f32.mrf.mxu3  ;;  %v9538_v46 = vadd.f32 %v9537_v51, %v9336_v28  ;;  %v9346_v35 = vpop.permute.xlu2 %9345 }
 0xe62   :  { %v10054_v59 = vadd.f32 %v10053_v55, %v9875_v20  ;;  %9937 = vmatmul.f32.gmra.mxu1 %v17025_v21 }
 0xe63   :  { %9664 = vmatmul.f32.gmra.mxu0 %v9663_v60 }
 0xe64   :  { %v17052_v14 = vadd.f32 %v10248_v30, %v10054_v59 }
 0xe65   :  { %10137 = vmatmul.f32.gmra.mxu2 %v9660_v44  ;;  %v9281_v44 = vld [vmem:[%s17528_s8 + $0xb0] sm:$0xff] }
 0xe66   :  { %10349 = vmatmul.f32.gmra.mxu3 %v9661_v40  ;;  %v9685_v40 = vand.u32 4294901760, %v9684_v12  ;;  %v17066_v18 = vand.u32 4294901760, %v9281_v44 }
 0xe67   :  { %v9878_v16 = vpop.f32.mrf.mxu1 }
 0xe68   :  { %v9545_v31 = vpop.f32.mrf.mxu0  ;;  %v9879_v41 = vadd.f32 %v9878_v16, %v9538_v46  ;;  %v10058_v19 = vpop.f32.mrf.mxu2  ;;  %v9686_v10 = vsub.f32 %v9684_v12, %v9685_v40  ;;  %v9692_v9 = vsub.f32 %v9281_v44, %v17066_v18 }
 0xe69   :  { %v10254_v15 = vpop.f32.mrf.mxu3  ;;  %v9546_v29 = vadd.f32 %v9545_v31, %v9341_v50 }
 0xe6a   :  { %v10059_v5 = vadd.f32 %v10058_v19, %v9879_v41  ;;  %9941 = vmatmul.f32.gmra.mxu1 %v17032_v25  ;;  %v9687_v51 = vand.u32 4294901760, %v9686_v10  ;;  %v9693_v20 = vand.u32 4294901760, %v9692_v9 }
 0xe6b   :  { %9672 = vmatmul.f32.gmra.mxu0 %v9671_v34 }
 0xe6c   :  { %v17061_v62 = vadd.f32 %v10254_v15, %v10059_v5  ;;  %v9694_v46 = vsub.f32 %v9692_v9, %v9693_v20 }
 0xe6d   :  { %10142 = vmatmul.f32.gmra.mxu2 %v9668_v24  ;;  %v9282_v24 = vld [vmem:[%s17528_s8 + $0xb8] sm:$0xff] }
 0xe6e   :  { %10355 = vmatmul.f32.gmra.mxu3 %v9669_v6  ;;  %v17075_v55 = vand.u32 4294901760, %v9282_v24  ;;  %v9695_v19 = vand.u32 4294901760, %v9694_v46 }
 0xe6f   :  { %v9882_v42 = vpop.f32.mrf.mxu1 }
 0xe70   :  { %v9553_v45 = vpop.f32.mrf.mxu0  ;;  %v9883_v43 = vadd.f32 %v9882_v42, %v9546_v29  ;;  %v10063_v53 = vpop.f32.mrf.mxu2  ;;  %v9700_v16 = vsub.f32 %v9282_v24, %v17075_v55 }
 0xe71   :  { %v10260_v0 = vpop.f32.mrf.mxu3  ;;  %v9554_v60 = vadd.f32 %v9553_v45, %v9346_v35 }
 0xe72   :  { %v10064_v17 = vadd.f32 %v10063_v53, %v9883_v43  ;;  %9945 = vmatmul.f32.gmra.mxu1 %v17039_v1  ;;  %v9701_v15 = vand.u32 4294901760, %v9700_v16 }
 0xe73   :  { %9680 = vmatmul.f32.gmra.mxu0 %v9679_v58 }
 0xe74   :  { %v17070_v22 = vadd.f32 %v10260_v0, %v10064_v17  ;;  %v9702_v58 = vsub.f32 %v9700_v16, %v9701_v15 }
 0xe75   :  { %10147 = vmatmul.f32.gmra.mxu2 %v9676_v11  ;;  %v9283_v11 = vld [vmem:[%s17528_s8 + $0xc0] sm:$0xff] }
 0xe76   :  { %10361 = vmatmul.f32.gmra.mxu3 %v9677_v63  ;;  %v9351_v63 = vpop.permute.xlu0 %9350  ;;  %v17084_v5 = vand.u32 4294901760, %v9283_v11  ;;  %v9703_v17 = vand.u32 4294901760, %v9702_v58 }
 0xe77   :  { %v9886_v6 = vpop.f32.mrf.mxu1 }
 0xe78   :  { %v9561_v30 = vpop.f32.mrf.mxu0  ;;  %v9887_v59 = vadd.f32 %v9886_v6, %v9554_v60  ;;  %v10068_v47 = vpop.f32.mrf.mxu2  ;;  %v9708_v45 = vsub.f32 %v9283_v11, %v17084_v5 }
 0xe79   :  { %v10266_v27 = vpop.f32.mrf.mxu3  ;;  %v9562_v31 = vadd.f32 %v9561_v30, %v9351_v63 }
 0xe7a   :  { %v10069_v28 = vadd.f32 %v10068_v47, %v9887_v59  ;;  %9949 = vmatmul.f32.gmra.mxu1 %v17048_v4  ;;  %v9709_v10 = vand.u32 4294901760, %v9708_v45 }
 0xe7b   :  { %9688 = vmatmul.f32.gmra.mxu0 %v9687_v51 }
 0xe7c   :  { %v17079_v34 = vadd.f32 %v10266_v27, %v10069_v28  ;;  %v9710_v59 = vsub.f32 %v9708_v45, %v9709_v10 }
 0xe7d   :  { %10152 = vmatmul.f32.gmra.mxu2 %v9684_v12  ;;  %v9284_v12 = vld [vmem:[%s17528_s8 + $0xc8] sm:$0xff] }
 0xe7e   :  { %10367 = vmatmul.f32.gmra.mxu3 %v9685_v40  ;;  %v9356_v40 = vpop.permute.xlu1 %9355  ;;  %v17093_v24 = vand.u32 4294901760, %v9284_v12  ;;  %v9711_v11 = vand.u32 4294901760, %v9710_v59 }
 0xe7f   :  { %v9890_v41 = vpop.f32.mrf.mxu1 }
 0xe80   :  { %v9569_v2 = vpop.f32.mrf.mxu0  ;;  %v9891_v44 = vadd.f32 %v9890_v41, %v9562_v31  ;;  %v10073_v50 = vpop.f32.mrf.mxu2  ;;  %v9716_v47 = vsub.f32 %v9284_v12, %v17093_v24 }
 0xe81   :  { %v10272_v29 = vpop.f32.mrf.mxu3  ;;  %v9570_v53 = vadd.f32 %v9569_v2, %v9356_v40 }
 0xe82   :  { %v10074_v42 = vadd.f32 %v10073_v50, %v9891_v44  ;;  %9953 = vmatmul.f32.gmra.mxu1 %v17057_v33  ;;  %v9717_v63 = vand.u32 4294901760, %v9716_v47 }
 0xe83   :  { %9696 = vmatmul.f32.gmra.mxu0 %v9695_v19 }
 0xe84   :  { %v17088_v43 = vadd.f32 %v10272_v29, %v10074_v42  ;;  %v9718_v29 = vsub.f32 %v9716_v47, %v9717_v63 }
 0xe85   :  { %10157 = vmatmul.f32.gmra.mxu2 %v9692_v9  ;;  %v9285_v9 = vld [vmem:[%s17528_s8 + $0xd0] sm:$0xff] }
 0xe86   :  { %10373 = vmatmul.f32.gmra.mxu3 %v9693_v20  ;;  %v9361_v20 = vpop.permute.xlu2 %9360  ;;  %v17102_v31 = vand.u32 4294901760, %v9285_v9  ;;  %v9719_v12 = vand.u32 4294901760, %v9718_v29 }
 0xe87   :  { %v9894_v0 = vpop.f32.mrf.mxu1 }
 0xe88   :  { %v9577_v35 = vpop.f32.mrf.mxu0  ;;  %v9895_v60 = vadd.f32 %v9894_v0, %v9570_v53  ;;  %v10078_v6 = vpop.f32.mrf.mxu2  ;;  %v9724_v42 = vsub.f32 %v9285_v9, %v17102_v31 }
 0xe89   :  { %v10278_v51 = vpop.f32.mrf.mxu3  ;;  %v9578_v28 = vadd.f32 %v9577_v35, %v9361_v20  ;;  %v9288_v20 = vld [vmem:[%s17528_s8 + $0xe8] sm:$0xff] }
 0xe8a   :  { %v10079_v30 = vadd.f32 %v10078_v6, %v9895_v60  ;;  %9957 = vmatmul.f32.gmra.mxu1 %v17066_v18  ;;  %v9725_v40 = vand.u32 4294901760, %v9724_v42  ;;  %v9287_v60 = vld [vmem:[%s17528_s8 + $0xe0] sm:$0xff] }
 0xe8b   :  { %9704 = vmatmul.f32.gmra.mxu0 %v9703_v17 }
 0xe8c   :  { %v17097_v27 = vadd.f32 %v10278_v51, %v10079_v30  ;;  %v9726_v17 = vsub.f32 %v9724_v42, %v9725_v40  ;;  %v17126_v51 = vand.u32 4294901760, %v9287_v60 }
 0xe8d   :  { %10162 = vmatmul.f32.gmra.mxu2 %v9700_v16 }
 0xe8e   :  { %10379 = vmatmul.f32.gmra.mxu3 %v9701_v15  ;;  %v9286_v15 = vld [vmem:[%s17528_s8 + $0xd8] sm:$0xff]  ;;  %18072 = vst [vmem:[#allocation30_spill] sm:$0xff] %v17126_v51  ;;  %v9740_v9 = vsub.f32 %v9287_v60, %v17126_v51 }
 0xe8f   :  { %v9898_v46 = vpop.f32.mrf.mxu1  ;;  %v17115_v53 = vand.u32 4294901760, %v9286_v15  ;;  %v9290_v60 = vld [vmem:[%s17528_s8 + $0xf8] sm:$0xff] }
 0xe90   :  { %v17104_v41 = vpop.f32.mrf.mxu0  ;;  %v9899_v19 = vadd.f32 %v9898_v46, %v9578_v28  ;;  %v10083_v2 = vpop.f32.mrf.mxu2  ;;  %v9741_v46 = vand.u32 4294901760, %v9740_v9 }
 0xe91   :  { %v10284_v44 = vpop.f32.mrf.mxu3  ;;  %v9732_v35 = vsub.f32 %v9286_v15, %v17115_v53 }
 0xe92   :  { %v10084_v50 = vadd.f32 %v10083_v2, %v9899_v19  ;;  %9961 = vmatmul.f32.gmra.mxu1 %v17075_v55  ;;  %v9742_v19 = vsub.f32 %v9740_v9, %v9741_v46 }
 0xe93   :  { %9712 = vmatmul.f32.gmra.mxu0 %v9711_v11  ;;  %v9733_v6 = vand.u32 4294901760, %v9732_v35  ;;  %v17137_v11 = vand.u32 4294901760, %v9288_v20 }
 0xe94   :  { %v17108_v16 = vadd.f32 %v10284_v44, %v10084_v50  ;;  %v9289_v44 = vld [vmem:[%s17528_s8 + $0xf0] sm:$0xff]  ;;  %v9743_v29 = vand.u32 4294901760, %v9742_v19 }
 0xe95   :  { %10167 = vmatmul.f32.gmra.mxu2 %v9708_v45  ;;  %v9734_v59 = vsub.f32 %v9732_v35, %v9733_v6  ;;  %v9748_v2 = vsub.f32 %v9288_v20, %v17137_v11  ;;  %v17148_v15 = vand.u32 4294901760, %v9289_v44 }
 0xe96   :  { %10385 = vmatmul.f32.gmra.mxu3 %v9709_v10  ;;  %v9727_v10 = vand.u32 4294901760, %v9726_v17 }
 0xe97   :  { %v17113_v58 = vpop.f32.mrf.mxu1  ;;  %v9735_v28 = vand.u32 4294901760, %v9734_v59  ;;  %v9756_v17 = vsub.f32 %v9289_v44, %v17148_v15  ;;  %v17159_v59 = vand.u32 4294901760, %v9290_v60 }
 0xe98   :  { %v17117_v0 = vpop.f32.mrf.mxu0 }
 0xe99   :  { %v9764_v19 = vsub.f32 %v9290_v60, %v17159_v59 }
 0xe9a   :  { %9965 = vmatmul.f32.gmra.mxu1 %v17084_v5 }
 0xe9b   :  { %9720 = vmatmul.f32.gmra.mxu0 %v9719_v12 }
 0xe9d   :  { %10172 = vmatmul.f32.gmra.mxu2 %v9716_v47 }
 0xe9e   :  { %10391 = vmatmul.f32.gmra.mxu3 %v9717_v63 }
 0xe9f   :  { %v17124_v45 = vpop.f32.mrf.mxu1 }
 0xea0   :  { %v17128_v30 = vpop.f32.mrf.mxu0 }
 0xea2   :  { %9969 = vmatmul.f32.gmra.mxu1 %v17093_v24 }
 0xea3   :  { %9728 = vmatmul.f32.gmra.mxu0 %v9727_v10 }
 0xea5   :  { %10177 = vmatmul.f32.gmra.mxu2 %v9724_v42  ;;  %v9749_v42 = vand.u32 4294901760, %v9748_v2 }
 0xea6   :  { %10397 = vmatmul.f32.gmra.mxu3 %v9725_v40 }
 0xea7   :  { %v17135_v47 = vpop.f32.mrf.mxu1  ;;  %v9750_v40 = vsub.f32 %v9748_v2, %v9749_v42 }
 0xea8   :  { %v17139_v63 = vpop.f32.mrf.mxu0 }
 0xea9   :  { %v9751_v10 = vand.u32 4294901760, %v9750_v40 }
 0xeaa   :  { %9973 = vmatmul.f32.gmra.mxu1 %v17102_v31 }
 0xeab   :  { %9736 = vmatmul.f32.gmra.mxu0 %v9735_v28 }
 0xead   :  { %10182 = vmatmul.f32.gmra.mxu2 %v9732_v35 }
 0xeae   :  { %10403 = vmatmul.f32.gmra.mxu3 %v9733_v6  ;;  %v9757_v6 = vand.u32 4294901760, %v9756_v17 }
 0xeaf   :  { %v17146_v50 = vpop.f32.mrf.mxu1 }
 0xeb0   :  { %v17150_v12 = vpop.f32.mrf.mxu0  ;;  %v9758_v28 = vsub.f32 %v9756_v17, %v9757_v6 }
 0xeb2   :  { %9977 = vmatmul.f32.gmra.mxu1 %v17115_v53 }
 0xeb3   :  { %9744 = vmatmul.f32.gmra.mxu0 %v9743_v29 }
 0xeb5   :  { %10187 = vmatmul.f32.gmra.mxu2 %v9740_v9  ;;  %v9759_v9 = vand.u32 4294901760, %v9758_v28 }
 0xeb6   :  { %10409 = vmatmul.f32.gmra.mxu3 %v9741_v46  ;;  %v9765_v46 = vand.u32 4294901760, %v9764_v19 }
 0xeb7   :  { %v17157_v35 = vpop.f32.mrf.mxu1 }
 0xeb8   :  { %v17161_v20 = vpop.f32.mrf.mxu0  ;;  %v9766_v40 = vsub.f32 %v9764_v19, %v9765_v46 }
 0xeb9   :  { %18073 = vst [vmem:[#allocation28_spill] sm:$0xff] %v17161_v20 }
 0xeba   :  { %9981 = vmatmul.f32.gmra.mxu1 %v17126_v51 }
 0xebb   :  { %9752 = vmatmul.f32.gmra.mxu0 %v9751_v10  ;;  %v9767_v10 = vand.u32 4294901760, %v9766_v40 }
 0xebd   :  { %10192 = vmatmul.f32.gmra.mxu2 %v9748_v2 }
 0xebe   :  { %10415 = vmatmul.f32.gmra.mxu3 %v9749_v42 }
 0xebf   :  { %v17165_v44 = vpop.f32.mrf.mxu1 }
 0xec0   :  { %v17167_v29 = vpop.f32.mrf.mxu0 }
 0xec2   :  { %9985 = vmatmul.f32.gmra.mxu1 %v17137_v11 }
 0xec3   :  { %9760 = vmatmul.f32.gmra.mxu0 %v9759_v9 }
 0xec5   :  { %10197 = vmatmul.f32.gmra.mxu2 %v9756_v17 }
 0xec6   :  { %10421 = vmatmul.f32.gmra.mxu3 %v9757_v6 }
 0xec7   :  { %v17170_v20 = vpop.f32.mrf.mxu1 }
 0xec8   :  { %v17172_v51 = vpop.f32.mrf.mxu0 }
 0xeca   :  { %9989 = vmatmul.f32.gmra.mxu1 %v17148_v15 }
 0xecb   :  { %9768 = vmatmul.f32.gmra.mxu0 %v9767_v10 }
 0xecd   :  { %10202 = vmatmul.f32.gmra.mxu2 %v9764_v19 }
 0xece   :  { %10427 = vmatmul.f32.gmra.mxu3 %v9765_v46 }
 0xecf   :  { %v17175_v2 = vpop.f32.mrf.mxu1 }
 0xed0   :  { %v17177_v42 = vpop.f32.mrf.mxu0 }
 0xed2   :  { %9993 = vmatmul.f32.gmra.mxu1 %v17159_v59 }
 0xed3   :  { %10496 = vmatmul.f32.vlgmr.msra.gmra.mxu0 %v16760_v7 }
 0xed7   :  { %v17181_v17 = vpop.f32.mrf.mxu1 }
 0xed8   :  { %v17183_v60 = vpop.f32.mrf.mxu0 }
 0xeda   :  { %10657 = vmatmul.f32.vlgmr.msra.gmra.mxu1 %v16760_v7 }
 0xedb   :  { %10500 = vmatmul.f32.gmra.mxu0 %v16819_v13 }
 0xedf   :  { %v17187_v6 = vpop.f32.mrf.mxu1 }
 0xee0   :  { %v17189_v28 = vpop.f32.mrf.mxu0 }
 0xee2   :  { %10661 = vmatmul.f32.gmra.mxu1 %v16819_v13 }
 0xee3   :  { %10504 = vmatmul.f32.gmra.mxu0 %v16860_v23 }
 0xee7   :  { %v17193_v19 = vpop.f32.mrf.mxu1 }
 0xee8   :  { %v17195_v9 = vpop.f32.mrf.mxu0 }
 0xeea   :  { %10665 = vmatmul.f32.gmra.mxu1 %v16860_v23 }
 0xeeb   :  { %10508 = vmatmul.f32.gmra.mxu0 %v16883_v38 }
 0xeef   :  { %v17199_v46 = vpop.f32.mrf.mxu1 }
 0xef0   :  { %v17201_v7 = vpop.f32.mrf.mxu0 }
 0xef1   :  { %18074 = vst [vmem:[#allocation25_spill] sm:$0xff] %v17201_v7 }
 0xef2   :  { %10669 = vmatmul.f32.gmra.mxu1 %v16883_v38 }
 0xef3   :  { %10512 = vmatmul.f32.gmra.mxu0 %v16901_v48 }
 0xef7   :  { %v17205_v40 = vpop.f32.mrf.mxu1 }
 0xef8   :  { %v17207_v13 = vpop.f32.mrf.mxu0 }
 0xef9   :  { %18075 = vst [vmem:[#allocation16_spill] sm:$0xff] %v17207_v13 }
 0xefa   :  { %10673 = vmatmul.f32.gmra.mxu1 %v16901_v48 }
 0xefb   :  { %10516 = vmatmul.f32.gmra.mxu0 %v16920_v39 }
 0xeff   :  { %v17211_v10 = vpop.f32.mrf.mxu1 }
 0xf00   :  { %v17213_v23 = vpop.f32.mrf.mxu0 }
 0xf01   :  { %18076 = vst [vmem:[#allocation36_spill] sm:$0xff] %v17213_v23 }
 0xf02   :  { %10677 = vmatmul.f32.gmra.mxu1 %v16920_v39 }
 0xf03   :  { %10520 = vmatmul.f32.gmra.mxu0 %v16939_v32 }
 0xf07   :  { %v17217_v7 = vpop.f32.mrf.mxu1 }
 0xf08   :  { %v17219_v38 = vpop.f32.mrf.mxu0 }
 0xf09   :  { %18077 = vst [vmem:[#allocation8_spill] sm:$0xff] %v17219_v38 }
 0xf0a   :  { %10681 = vmatmul.f32.gmra.mxu1 %v16939_v32 }
 0xf0b   :  { %10524 = vmatmul.f32.gmra.mxu0 %v16954_v61 }
 0xf0f   :  { %v17223_v13 = vpop.f32.mrf.mxu1 }
 0xf10   :  { %v17225_v48 = vpop.f32.mrf.mxu0 }
 0xf11   :  { %18078 = vst [vmem:[#allocation35_spill] sm:$0xff] %v17225_v48 }
 0xf12   :  { %10685 = vmatmul.f32.gmra.mxu1 %v16954_v61 }
 0xf13   :  { %10528 = vmatmul.f32.gmra.mxu0 %v16962_v8 }
 0xf17   :  { %v17229_v23 = vpop.f32.mrf.mxu1 }
 0xf18   :  { %v17231_v39 = vpop.f32.mrf.mxu0 }
 0xf19   :  { %18079 = vst [vmem:[#allocation24_spill] sm:$0xff] %v17231_v39 }
 0xf1a   :  { %10689 = vmatmul.f32.gmra.mxu1 %v16962_v8 }
 0xf1b   :  { %10532 = vmatmul.f32.gmra.mxu0 %v16969_v56 }
 0xf1f   :  { %v17235_v38 = vpop.f32.mrf.mxu1 }
 0xf20   :  { %v17237_v32 = vpop.f32.mrf.mxu0 }
 0xf21   :  { %18080 = vst [vmem:[#allocation9_spill] sm:$0xff] %v17237_v32 }
 0xf22   :  { %10693 = vmatmul.f32.gmra.mxu1 %v16969_v56 }
 0xf23   :  { %10536 = vmatmul.f32.gmra.mxu0 %v16976_v57 }
 0xf27   :  { %v17241_v48 = vpop.f32.mrf.mxu1 }
 0xf28   :  { %v17243_v61 = vpop.f32.mrf.mxu0 }
 0xf29   :  { %18081 = vst [vmem:[#allocation33_spill] sm:$0xff] %v17243_v61 }
 0xf2a   :  { %10697 = vmatmul.f32.gmra.mxu1 %v16976_v57 }
 0xf2b   :  { %10540 = vmatmul.f32.gmra.mxu0 %v16983_v37 }
 0xf2f   :  { %v17247_v39 = vpop.f32.mrf.mxu1 }
 0xf30   :  { %v17249_v8 = vpop.f32.mrf.mxu0 }
 0xf31   :  { %18082 = vst [vmem:[#allocation21_spill] sm:$0xff] %v17249_v8 }
 0xf32   :  { %10701 = vmatmul.f32.gmra.mxu1 %v16983_v37 }
 0xf33   :  { %10544 = vmatmul.f32.gmra.mxu0 %v16990_v49 }
 0xf37   :  { %v17253_v32 = vpop.f32.mrf.mxu1 }
 0xf38   :  { %18083 = vst [vmem:[#allocation11_spill] sm:$0xff] %v17253_v32  ;;  %v17255_v56 = vpop.f32.mrf.mxu0 }
 0xf39   :  { %18084 = vst [vmem:[#allocation31_spill] sm:$0xff] %v17255_v56 }
 0xf3a   :  { %10705 = vmatmul.f32.gmra.mxu1 %v16990_v49 }
 0xf3b   :  { %10548 = vmatmul.f32.gmra.mxu0 %v16997_v3 }
 0xf3f   :  { %v17259_v61 = vpop.f32.mrf.mxu1 }
 0xf40   :  { %18085 = vst [vmem:[#allocation5_spill] sm:$0xff] %v17259_v61  ;;  %v17261_v57 = vpop.f32.mrf.mxu0 }
 0xf41   :  { %18086 = vst [vmem:[#allocation12_spill] sm:$0xff] %v17261_v57 }
 0xf42   :  { %10709 = vmatmul.f32.gmra.mxu1 %v16997_v3 }
 0xf43   :  { %10552 = vmatmul.f32.gmra.mxu0 %v17004_v26 }
 0xf47   :  { %v17265_v8 = vpop.f32.mrf.mxu1 }
 0xf48   :  { %18087 = vst [vmem:[#allocation53_spill] sm:$0xff] %v17265_v8  ;;  %v17267_v37 = vpop.f32.mrf.mxu0 }
 0xf49   :  { %18088 = vst [vmem:[#allocation15_spill] sm:$0xff] %v17267_v37 }
 0xf4a   :  { %10713 = vmatmul.f32.gmra.mxu1 %v17004_v26 }
 0xf4b   :  { %10556 = vmatmul.f32.gmra.mxu0 %v17011_v36 }
 0xf4f   :  { %v17271_v56 = vpop.f32.mrf.mxu1 }
 0xf50   :  { %18089 = vst [vmem:[#allocation44_spill] sm:$0xff] %v17271_v56  ;;  %v10497_v49 = vpop.f32.mrf.mxu0  ;;  %v10088_v56 = vpop.f32.mrf.mxu2 }
 0xf51   :  { %v10498_v57 = vadd.f32 %v10497_v49, %v17043_v54  ;;  %v10290_v54 = vpop.f32.mrf.mxu3 }
 0xf52   :  { %10717 = vmatmul.f32.gmra.mxu1 %v17011_v36 }
 0xf53   :  { %10560 = vmatmul.f32.gmra.mxu0 %v17018_v52 }
 0xf57   :  { %v10658_v3 = vpop.f32.mrf.mxu1 }
 0xf58   :  { %v10501_v61 = vpop.f32.mrf.mxu0  ;;  %v10659_v32 = vadd.f32 %v10658_v3, %v10498_v57 }
 0xf59   :  { %v10502_v26 = vadd.f32 %v10501_v61, %v17052_v14  ;;  %v10093_v14 = vpop.f32.mrf.mxu2  ;;  %v17296_v61 = vpop.f32.mrf.mxu3 }
 0xf5a   :  { %10892 = vst.msk [vmem:[%s17529_s12 + $0x100] sm:$0xff] %vm5397_vm7, %v10659_v32  ;;  %10721 = vmatmul.f32.gmra.mxu1 %v17018_v52 }
 0xf5b   :  { %10564 = vmatmul.f32.gmra.mxu0 %v17025_v21 }
 0xf5f   :  { %v10662_v36 = vpop.f32.mrf.mxu1 }
 0xf60   :  { %v10505_v37 = vpop.f32.mrf.mxu0  ;;  %v10663_v8 = vadd.f32 %v10662_v36, %v10502_v26 }
 0xf61   :  { %v10506_v52 = vadd.f32 %v10505_v37, %v17061_v62  ;;  %v10098_v37 = vpop.f32.mrf.mxu2  ;;  %v17306_v26 = vpop.f32.mrf.mxu3 }
 0xf62   :  { %10893 = vst.msk [vmem:[%s17529_s12 + $0x108] sm:$0xff] %vm5397_vm7, %v10663_v8  ;;  %10725 = vmatmul.f32.gmra.mxu1 %v17025_v21 }
 0xf63   :  { %10568 = vmatmul.f32.gmra.mxu0 %v17032_v25 }
 0xf67   :  { %v10666_v32 = vpop.f32.mrf.mxu1 }
 0xf68   :  { %v10509_v57 = vpop.f32.mrf.mxu0  ;;  %v10667_v49 = vadd.f32 %v10666_v32, %v10506_v52 }
 0xf69   :  { %v10510_v21 = vadd.f32 %v10509_v57, %v17070_v22 }
 0xf6a   :  { %10894 = vst.msk [vmem:[%s17529_s12 + $0x110] sm:$0xff] %vm5397_vm7, %v10667_v49  ;;  %10729 = vmatmul.f32.gmra.mxu1 %v17032_v25 }
 0xf6b   :  { %10572 = vmatmul.f32.gmra.mxu0 %v17039_v1 }
 0xf6f   :  { %v10670_v8 = vpop.f32.mrf.mxu1 }
 0xf70   :  { %v10513_v3 = vpop.f32.mrf.mxu0  ;;  %v10671_v62 = vadd.f32 %v10670_v8, %v10510_v21  ;;  %v17317_v21 = vpop.f32.mrf.mxu3 }
 0xf71   :  { %v10514_v25 = vadd.f32 %v10513_v3, %v17079_v34 }
 0xf72   :  { %10895 = vst.msk [vmem:[%s17529_s12 + $0x118] sm:$0xff] %vm5397_vm7, %v10671_v62  ;;  %10733 = vmatmul.f32.gmra.mxu1 %v17039_v1  ;;  %v17314_v1 = vpop.f32.mrf.mxu2 }
 0xf73   :  { %10576 = vmatmul.f32.gmra.mxu0 %v17048_v4 }
 0xf77   :  { %v10674_v36 = vpop.f32.mrf.mxu1 }
 0xf78   :  { %v10517_v52 = vpop.f32.mrf.mxu0  ;;  %v10675_v22 = vadd.f32 %v10674_v36, %v10514_v25  ;;  %v9366_v25 = vpop.permute.xlu0 %9365 }
 0xf79   :  { %v10518_v32 = vadd.f32 %v10517_v52, %v17088_v43  ;;  %v9586_v36 = vadd.f32 %v17104_v41, %v9366_v25  ;;  %v9371_v41 = vpop.permute.xlu1 %9370 }
 0xf7a   :  { %10896 = vst.msk [vmem:[%s17529_s12 + $0x120] sm:$0xff] %vm5397_vm7, %v10675_v22  ;;  %10737 = vmatmul.f32.gmra.mxu1 %v17048_v4  ;;  %v17326_v8 = vpop.f32.mrf.mxu2 }
 0xf7b   :  { %10580 = vmatmul.f32.gmra.mxu0 %v17057_v33 }
 0xf7f   :  { %v10678_v57 = vpop.f32.mrf.mxu1 }
 0xf80   :  { %v10521_v34 = vpop.f32.mrf.mxu0  ;;  %v10679_v49 = vadd.f32 %v10678_v57, %v10518_v32 }
 0xf81   :  { %v10522_v4 = vadd.f32 %v10521_v34, %v17097_v27  ;;  %v9903_v27 = vadd.f32 %v17113_v58, %v9586_v36 }
 0xf82   :  { %10897 = vst.msk [vmem:[%s17529_s12 + $0x128] sm:$0xff] %vm5397_vm7, %v10679_v49  ;;  %10741 = vmatmul.f32.gmra.mxu1 %v17057_v33  ;;  %v17334_v33 = vpop.f32.mrf.mxu3  ;;  %v17339_v49 = vpop.f32.mrf.mxu2 }
 0xf83   :  { %10584 = vmatmul.f32.gmra.mxu0 %v17066_v18  ;;  %v10089_v32 = vadd.f32 %v10088_v56, %v9903_v27 }
 0xf87   :  { %v10682_v3 = vpop.f32.mrf.mxu1 }
 0xf88   :  { %v10525_v43 = vpop.f32.mrf.mxu0  ;;  %v10683_v62 = vadd.f32 %v10682_v3, %v10522_v4  ;;  %v9594_v4 = vadd.f32 %v17117_v0, %v9371_v41  ;;  %v9376_v0 = vpop.permute.xlu2 %9375 }
 0xf89   :  { %v10526_v52 = vadd.f32 %v10525_v43, %v17108_v16  ;;  %v9602_v36 = vadd.f32 %v17128_v30, %v9376_v0 }
 0xf8a   :  { %10898 = vst.msk [vmem:[%s17529_s12 + $0x130] sm:$0xff] %vm5397_vm7, %v10683_v62  ;;  %10745 = vmatmul.f32.gmra.mxu1 %v17066_v18  ;;  %v10291_v18 = vadd.f32 %v10290_v54, %v10089_v32  ;;  %v9907_v16 = vadd.f32 %v17124_v45, %v9594_v4  ;;  %v17349_v58 = vpop.f32.mrf.mxu3 }
 0xf8b   :  { %10588 = vmatmul.f32.gmra.mxu0 %v17075_v55  ;;  %v9911_v54 = vadd.f32 %v17135_v47, %v9602_v36  ;;  %v18090_v36 = vld [vmem:[#allocation28_spill] sm:$0xff] }
 0xf8c   :  { %v10094_v43 = vadd.f32 %v10093_v14, %v9907_v16  ;;  %v9386_v16 = vpop.permute.xlu1 %9385 }
 0xf8e   :  { %v10297_v45 = vadd.f32 %v17296_v61, %v10094_v43 }
 0xf8f   :  { %v10686_v22 = vpop.f32.mrf.mxu1 }
 0xf90   :  { %v10529_v57 = vpop.f32.mrf.mxu0  ;;  %v10687_v34 = vadd.f32 %v10686_v22, %v10526_v52  ;;  %v10099_v22 = vadd.f32 %v10098_v37, %v9911_v54  ;;  %v9391_v0 = vpop.permute.xlu2 %9390 }
 0xf91   :  { %v10530_v56 = vadd.f32 %v10529_v57, %v10291_v18  ;;  %v9381_v57 = vpop.permute.xlu0 %9380 }
 0xf92   :  { %10899 = vst.msk [vmem:[%s17529_s12 + $0x138] sm:$0xff] %vm5397_vm7, %v10687_v34  ;;  %10749 = vmatmul.f32.gmra.mxu1 %v17075_v55  ;;  %v10118_v55 = vpop.f32.mrf.mxu2  ;;  %v17360_v27 = vpop.f32.mrf.mxu3  ;;  %v9610_v34 = vadd.f32 %v17139_v63, %v9381_v57 }
 0xf93   :  { %10592 = vmatmul.f32.gmra.mxu0 %v17084_v5 }
 0xf94   :  { %v9915_v47 = vadd.f32 %v17146_v50, %v9610_v34 }
 0xf96   :  { %v10104_v4 = vadd.f32 %v17314_v1, %v9915_v47 }
 0xf97   :  { %v10690_v3 = vpop.f32.mrf.mxu1 }
 0xf98   :  { %v10533_v62 = vpop.f32.mrf.mxu0  ;;  %v10691_v25 = vadd.f32 %v10690_v3, %v10530_v56  ;;  %v9618_v3 = vadd.f32 %v17150_v12, %v9386_v16 }
 0xf99   :  { %v10534_v14 = vadd.f32 %v10533_v62, %v10297_v45  ;;  %v9626_v45 = vadd.f32 %v18090_v36, %v9391_v0 }
 0xf9a   :  { %10900 = vst.msk [vmem:[%s17529_s12 + $0x140] sm:$0xff] %vm5397_vm7, %v10691_v25  ;;  %10753 = vmatmul.f32.gmra.mxu1 %v17084_v5  ;;  %v10303_v5 = vadd.f32 %v17306_v26, %v10099_v22  ;;  %v10123_v61 = vpop.f32.mrf.mxu2  ;;  %v10332_v56 = vpop.f32.mrf.mxu3  ;;  %v9919_v50 = vadd.f32 %v17157_v35, %v9618_v3 }
 0xf9b   :  { %10596 = vmatmul.f32.gmra.mxu0 %v17093_v24  ;;  %v9923_v54 = vadd.f32 %v17165_v44, %v9626_v45 }
 0xf9c   :  { %v10109_v62 = vadd.f32 %v17326_v8, %v9919_v50  ;;  %v9406_v50 = vpop.permute.xlu2 %9405 }
 0xf9e   :  { %v10315_v35 = vadd.f32 %v17334_v33, %v10109_v62 }
 0xf9f   :  { %v10694_v52 = vpop.f32.mrf.mxu1 }
 0xfa0   :  { %v10537_v30 = vpop.f32.mrf.mxu0  ;;  %v10695_v32 = vadd.f32 %v10694_v52, %v10534_v14  ;;  %v10114_v52 = vadd.f32 %v17339_v49, %v9923_v54 }
 0xfa1   :  { %v10538_v37 = vadd.f32 %v10537_v30, %v10303_v5 }
 0xfa2   :  { %10901 = vst.msk [vmem:[%s17529_s12 + $0x148] sm:$0xff] %vm5397_vm7, %v10695_v32  ;;  %10757 = vmatmul.f32.gmra.mxu1 %v17093_v24  ;;  %v10309_v24 = vadd.f32 %v17317_v21, %v10104_v4  ;;  %v10128_v1 = vpop.f32.mrf.mxu2  ;;  %v18091_v21 = vld [vmem:[#allocation30_spill] sm:$0xff]  ;;  %v9396_v32 = vpop.permute.xlu0 %9395 }
 0xfa3   :  { %10600 = vmatmul.f32.gmra.mxu0 %v17102_v31  ;;  %v9634_v34 = vadd.f32 %v17167_v29, %v9396_v32  ;;  %v9401_v29 = vpop.permute.xlu1 %9400 }
 0xfa4   :  { %v9642_v4 = vadd.f32 %v17172_v51, %v9401_v29  ;;  %v18092_v29 = vld [vmem:[#allocation25_spill] sm:$0xff] }
 0xfa5   :  { %v9927_v44 = vadd.f32 %v17170_v20, %v9634_v34 }
 0xfa7   :  { %v10698_v41 = vpop.f32.mrf.mxu1  ;;  %v10119_v47 = vadd.f32 %v10118_v55, %v9927_v44 }
 0xfa8   :  { %v10541_v18 = vpop.f32.mrf.mxu0  ;;  %v10699_v63 = vadd.f32 %v10698_v41, %v10538_v37 }
 0xfa9   :  { %v10542_v26 = vadd.f32 %v10541_v18, %v10309_v24  ;;  %v10327_v20 = vadd.f32 %v17360_v27, %v10119_v47 }
 0xfaa   :  { %10902 = vst.msk [vmem:[%s17529_s12 + $0x150] sm:$0xff] %vm5397_vm7, %v10699_v63  ;;  %10761 = vmatmul.f32.gmra.mxu1 %v17102_v31  ;;  %v10338_v31 = vpop.f32.mrf.mxu3  ;;  %v10133_v57 = vpop.f32.mrf.mxu2 }
 0xfab   :  { %10604 = vmatmul.f32.gmra.mxu0 %v17115_v53  ;;  %v9411_v0 = vpop.permute.xlu0 %9410 }
 0xfac   :  { %v9658_v36 = vadd.f32 %v17183_v60, %v9411_v0  ;;  %v18094_v0 = vld [vmem:[#allocation36_spill] sm:$0xff] }
 0xfaf   :  { %v10702_v43 = vpop.f32.mrf.mxu1 }
 0xfb0   :  { %v10545_v25 = vpop.f32.mrf.mxu0  ;;  %v10703_v12 = vadd.f32 %v10702_v43, %v10542_v26  ;;  %v9650_v26 = vadd.f32 %v17177_v42, %v9406_v50 }
 0xfb1   :  { %v10546_v8 = vadd.f32 %v10545_v25, %v10315_v35 }
 0xfb2   :  { %10903 = vst.msk [vmem:[%s17529_s12 + $0x158] sm:$0xff] %vm5397_vm7, %v10703_v12  ;;  %10765 = vmatmul.f32.gmra.mxu1 %v17115_v53  ;;  %v10321_v53 = vadd.f32 %v17349_v58, %v10114_v52  ;;  %v10344_v33 = vpop.f32.mrf.mxu3  ;;  %v10138_v18 = vpop.f32.mrf.mxu2  ;;  %v9931_v58 = vadd.f32 %v17175_v2, %v9642_v4  ;;  %v9935_v2 = vadd.f32 %v17181_v17, %v9650_v26 }
 0xfb3   :  { %10608 = vmatmul.f32.gmra.mxu0 %v18091_v21  ;;  %v9939_v17 = vadd.f32 %v17187_v6, %v9658_v36 }
 0xfb4   :  { %v10124_v3 = vadd.f32 %v10123_v61, %v9931_v58  ;;  %v10129_v62 = vadd.f32 %v10128_v1, %v9935_v2 }
 0xfb5   :  { %v10134_v1 = vadd.f32 %v10133_v57, %v9939_v17  ;;  %v9421_v57 = vpop.permute.xlu2 %9420 }
 0xfb7   :  { %v10706_v14 = vpop.f32.mrf.mxu1  ;;  %v10345_v52 = vadd.f32 %v10344_v33, %v10134_v1 }
 0xfb8   :  { %v10549_v22 = vpop.f32.mrf.mxu0  ;;  %v10707_v30 = vadd.f32 %v10706_v14, %v10546_v8  ;;  %v9416_v8 = vpop.permute.xlu1 %9415 }
 0xfb9   :  { %v10550_v49 = vadd.f32 %v10549_v22, %v10321_v53  ;;  %v9666_v14 = vadd.f32 %v17189_v28, %v9416_v8  ;;  %v9674_v53 = vadd.f32 %v17195_v9, %v9421_v57  ;;  %v18096_v57 = vld [vmem:[#allocation35_spill] sm:$0xff] }
 0xfba   :  { %10904 = vst.msk [vmem:[%s17529_s12 + $0x160] sm:$0xff] %vm5397_vm7, %v10707_v30  ;;  %10769 = vmatmul.f32.gmra.mxu1 %v18091_v21  ;;  %v10350_v63 = vpop.f32.mrf.mxu3  ;;  %v10143_v27 = vpop.f32.mrf.mxu2 }
 0xfbb   :  { %10612 = vmatmul.f32.gmra.mxu0 %v17137_v11  ;;  %v9947_v44 = vadd.f32 %v17199_v46, %v9674_v53 }
 0xfbf   :  { %v10710_v5 = vpop.f32.mrf.mxu1 }
 0xfc0   :  { %v10553_v37 = vpop.f32.mrf.mxu0  ;;  %v10711_v41 = vadd.f32 %v10710_v5, %v10550_v49  ;;  %v10144_v5 = vadd.f32 %v10143_v27, %v9947_v44 }
 0xfc1   :  { %v10554_v55 = vadd.f32 %v10553_v37, %v10327_v20 }
 0xfc2   :  { %10905 = vst.msk [vmem:[%s17529_s12 + $0x168] sm:$0xff] %vm5397_vm7, %v10711_v41  ;;  %10773 = vmatmul.f32.gmra.mxu1 %v17137_v11  ;;  %v10333_v11 = vadd.f32 %v10332_v56, %v10124_v3  ;;  %v10356_v42 = vpop.f32.mrf.mxu3  ;;  %v10148_v45 = vpop.f32.mrf.mxu2 }
 0xfc3   :  { %10616 = vmatmul.f32.gmra.mxu0 %v17148_v15  ;;  %v9426_v41 = vpop.permute.xlu0 %9425 }
 0xfc4   :  { %v9682_v4 = vadd.f32 %v18092_v29, %v9426_v41 }
 0xfc6   :  { %v9951_v20 = vadd.f32 %v17205_v40, %v9682_v4 }
 0xfc7   :  { %v10714_v16 = vpop.f32.mrf.mxu1 }
 0xfc8   :  { %v10557_v24 = vpop.f32.mrf.mxu0  ;;  %v10715_v51 = vadd.f32 %v10714_v16, %v10554_v55 }
 0xfc9   :  { %v10558_v43 = vadd.f32 %v10557_v24, %v10333_v11  ;;  %v9431_v24 = vpop.permute.xlu1 %9430 }
 0xfca   :  { %10906 = vst.msk [vmem:[%s17529_s12 + $0x170] sm:$0xff] %vm5397_vm7, %v10715_v51  ;;  %10777 = vmatmul.f32.gmra.mxu1 %v17148_v15  ;;  %v10339_v15 = vadd.f32 %v10338_v31, %v10129_v62  ;;  %v10362_v60 = vpop.f32.mrf.mxu3  ;;  %v10153_v34 = vpop.f32.mrf.mxu2  ;;  %v18093_v51 = vld [vmem:[#allocation16_spill] sm:$0xff] }
 0xfcb   :  { %10620 = vmatmul.f32.gmra.mxu0 %v17159_v59  ;;  %v9690_v50 = vadd.f32 %v18093_v51, %v9431_v24 }
 0xfcd   :  { %v9955_v11 = vadd.f32 %v17211_v10, %v9690_v50 }
 0xfcf   :  { %v10718_v61 = vpop.f32.mrf.mxu1 }
 0xfd0   :  { %v10561_v25 = vpop.f32.mrf.mxu0  ;;  %v10719_v12 = vadd.f32 %v10718_v61, %v10558_v43  ;;  %v10154_v43 = vadd.f32 %v10153_v34, %v9955_v11 }
 0xfd1   :  { %v10562_v56 = vadd.f32 %v10561_v25, %v10339_v15  ;;  %v9436_v25 = vpop.permute.xlu2 %9435 }
 0xfd2   :  { %10907 = vst.msk [vmem:[%s17529_s12 + $0x178] sm:$0xff] %vm5397_vm7, %v10719_v12  ;;  %10781 = vmatmul.f32.gmra.mxu1 %v17159_v59  ;;  %v9943_v59 = vadd.f32 %v17193_v19, %v9666_v14  ;;  %v10368_v33 = vpop.f32.mrf.mxu3  ;;  %v10158_v9 = vpop.f32.mrf.mxu2 }
 0xfd3   :  { %v10369_v36 = vadd.f32 %v10368_v33, %v10154_v43 }
 0xfd4   :  { %v10139_v22 = vadd.f32 %v10138_v18, %v9943_v59  ;;  %v10357_v18 = vadd.f32 %v10356_v42, %v10144_v5  ;;  %v9698_v42 = vadd.f32 %v18094_v0, %v9436_v25 }
 0xfd6   :  { %v10351_v28 = vadd.f32 %v10350_v63, %v10139_v22  ;;  %v10149_v63 = vadd.f32 %v10148_v45, %v9951_v20  ;;  %v9959_v15 = vadd.f32 %v17217_v7, %v9698_v42 }
 0xfd7   :  { %v10722_v21 = vpop.f32.mrf.mxu1 }
 0xfd8   :  { %v10565_v35 = vpop.f32.mrf.mxu0  ;;  %v10723_v54 = vadd.f32 %v10722_v21, %v10562_v56  ;;  %v10363_v26 = vadd.f32 %v10362_v60, %v10149_v63  ;;  %v10159_v45 = vadd.f32 %v10158_v9, %v9959_v15 }
 0xfd9   :  { %v10566_v31 = vadd.f32 %v10565_v35, %v10345_v52  ;;  %v9441_v35 = vpop.permute.xlu0 %9440 }
 0xfda   :  { %10908 = vst.msk [vmem:[%s17529_s12 + $0x180] sm:$0xff] %vm5397_vm7, %v10723_v54  ;;  %v10374_v46 = vpop.f32.mrf.mxu3  ;;  %v10163_v2 = vpop.f32.mrf.mxu2  ;;  %v18095_v54 = vld [vmem:[#allocation8_spill] sm:$0xff] }
 0xfdb   :  { %v9706_v8 = vadd.f32 %v18095_v54, %v9441_v35  ;;  %v10375_v60 = vadd.f32 %v10374_v46, %v10159_v45  ;;  %v18101_v35 = vld [vmem:[#allocation11_spill] sm:$0xff] }
 0xfdd   :  { %v9963_v52 = vadd.f32 %v17223_v13, %v9706_v8 }
 0xfdf   :  { %v10726_v6 = vpop.f32.mrf.mxu1 }
 0xfe0   :  { %v10569_v30 = vpop.f32.mrf.mxu0  ;;  %v10727_v32 = vadd.f32 %v10726_v6, %v10566_v31  ;;  %v10164_v31 = vadd.f32 %v10163_v2, %v9963_v52 }
 0xfe1   :  { %v10570_v49 = vadd.f32 %v10569_v30, %v10351_v28  ;;  %v9446_v30 = vpop.permute.xlu1 %9445  ;;  %v9456_v63 = vpop.permute.xlu0 %9455 }
 0xfe2   :  { %10909 = vst.msk [vmem:[%s17529_s12 + $0x188] sm:$0xff] %vm5397_vm7, %v10727_v32  ;;  %v10380_v12 = vpop.f32.mrf.mxu3  ;;  %v10168_v10 = vpop.f32.mrf.mxu2  ;;  %v9714_v34 = vadd.f32 %v18096_v57, %v9446_v30  ;;  %v18103_v30 = vld [vmem:[#allocation5_spill] sm:$0xff] }
 0xfe3   :  { %v10381_v53 = vadd.f32 %v10380_v12, %v10164_v31  ;;  %v18102_v31 = vld [vmem:[#allocation31_spill] sm:$0xff] }
 0xfe4   :  { %v9967_v28 = vadd.f32 %v17229_v23, %v9714_v34 }
 0xfe7   :  { %v10730_v19 = vpop.f32.mrf.mxu1 }
 0xfe8   :  { %v10573_v47 = vpop.f32.mrf.mxu0  ;;  %v10731_v37 = vadd.f32 %v10730_v19, %v10570_v49  ;;  %v10169_v49 = vadd.f32 %v10168_v10, %v9967_v28 }
 0xfe9   :  { %v10574_v58 = vadd.f32 %v10573_v47, %v10357_v18  ;;  %v9451_v47 = vpop.permute.xlu2 %9450 }
 0xfea   :  { %10910 = vst.msk [vmem:[%s17529_s12 + $0x190] sm:$0xff] %vm5397_vm7, %v10731_v37  ;;  %v10386_v14 = vpop.f32.mrf.mxu3  ;;  %v10173_v32 = vpop.f32.mrf.mxu2  ;;  %v18097_v37 = vld [vmem:[#allocation24_spill] sm:$0xff] }
 0xfeb   :  { %v9722_v41 = vadd.f32 %v18097_v37, %v9451_v47  ;;  %v10387_v4 = vadd.f32 %v10386_v14, %v10169_v49  ;;  %v18104_v49 = vld [vmem:[#allocation12_spill] sm:$0xff]  ;;  %v18105_v37 = vld [vmem:[#allocation53_spill] sm:$0xff] }
 0xfed   :  { %v9971_v9 = vadd.f32 %v17235_v38, %v9722_v41 }
 0xfef   :  { %v10734_v55 = vpop.f32.mrf.mxu1 }
 0xff0   :  { %v10577_v16 = vpop.f32.mrf.mxu0  ;;  %v10735_v3 = vadd.f32 %v10734_v55, %v10574_v58  ;;  %v10174_v58 = vadd.f32 %v10173_v32, %v9971_v9 }
 0xff1   :  { %v10578_v27 = vadd.f32 %v10577_v16, %v10363_v26  ;;  %v18098_v16 = vld [vmem:[#allocation9_spill] sm:$0xff]  ;;  %v9466_v10 = vpop.permute.xlu2 %9465 }
 0xff2   :  { %10911 = vst.msk [vmem:[%s17529_s12 + $0x198] sm:$0xff] %vm5397_vm7, %v10735_v3  ;;  %v10392_v44 = vpop.f32.mrf.mxu3  ;;  %v10178_v29 = vpop.f32.mrf.mxu2  ;;  %v9730_v3 = vadd.f32 %v18098_v16, %v9456_v63  ;;  %v18107_v16 = vld [vmem:[#allocation44_spill] sm:$0xff] }
 0xff3   :  { %v10393_v24 = vadd.f32 %v10392_v44, %v10174_v58 }
 0xff4   :  { %v9975_v51 = vadd.f32 %v17241_v48, %v9730_v3 }
 0xff6   :  { %v10179_v11 = vadd.f32 %v10178_v29, %v9975_v51 }
 0xff7   :  { %v10738_v40 = vpop.f32.mrf.mxu1 }
 0xff8   :  { %v10581_v61 = vpop.f32.mrf.mxu0  ;;  %v10739_v62 = vadd.f32 %v10738_v40, %v10578_v27  ;;  %v9461_v40 = vpop.permute.xlu1 %9460 }
 0xff9   :  { %v10582_v17 = vadd.f32 %v10581_v61, %v10369_v36  ;;  %v18099_v61 = vld [vmem:[#allocation33_spill] sm:$0xff] }
 0xffa   :  { %10912 = vst.msk [vmem:[%s17529_s12 + $0x1a0] sm:$0xff] %vm5397_vm7, %v10739_v62  ;;  %v10398_v23 = vpop.f32.mrf.mxu3  ;;  %v10183_v50 = vpop.f32.mrf.mxu2  ;;  %v9738_v62 = vadd.f32 %v18099_v61, %v9461_v40 }
 0xffb   :  { %v10399_v25 = vadd.f32 %v10398_v23, %v10179_v11 }
 0xffc   :  { %v9979_v12 = vadd.f32 %v17247_v39, %v9738_v62 }
 0xffe   :  { %v10184_v36 = vadd.f32 %v10183_v50, %v9979_v12 }
 0xfff   :  { %v10742_v56 = vpop.f32.mrf.mxu1 }
0x1000   :  { %v10585_v21 = vpop.f32.mrf.mxu0  ;;  %v10743_v1 = vadd.f32 %v10742_v56, %v10582_v17  ;;  %v18100_v56 = vld [vmem:[#allocation21_spill] sm:$0xff] }
0x1001   :  { %v10586_v59 = vadd.f32 %v10585_v21, %v10375_v60  ;;  %v9746_v45 = vadd.f32 %v18100_v56, %v9466_v10 }
0x1002   :  { %10913 = vst.msk [vmem:[%s17529_s12 + $0x1a8] sm:$0xff] %vm5397_vm7, %v10743_v1  ;;  %v10404_v43 = vpop.f32.mrf.mxu3  ;;  %v10188_v48 = vpop.f32.mrf.mxu2 }
0x1003   :  { %v10405_v1 = vadd.f32 %v10404_v43, %v10184_v36  ;;  %v9983_v54 = vadd.f32 %v18101_v35, %v9746_v45 }
0x1005   :  { %v10189_v14 = vadd.f32 %v10188_v48, %v9983_v54 }
0x1007   :  { %v10746_v7 = vpop.f32.mrf.mxu1 }
0x1008   :  { %v10589_v6 = vpop.f32.mrf.mxu0  ;;  %v10747_v22 = vadd.f32 %v10746_v7, %v10586_v59  ;;  %v9471_v59 = vpop.permute.xlu0 %9470 }
0x1009   :  { %v10590_v33 = vadd.f32 %v10589_v6, %v10381_v53  ;;  %v9754_v6 = vadd.f32 %v18102_v31, %v9471_v59 }
0x100a   :  { %10914 = vst.msk [vmem:[%s17529_s12 + $0x1b0] sm:$0xff] %vm5397_vm7, %v10747_v22  ;;  %v10410_v21 = vpop.f32.mrf.mxu3  ;;  %v10193_v7 = vpop.f32.mrf.mxu2 }
0x100b   :  { %v10411_v22 = vadd.f32 %v10410_v21, %v10189_v14  ;;  %v9987_v32 = vadd.f32 %v18103_v30, %v9754_v6 }
0x100d   :  { %v10194_v28 = vadd.f32 %v10193_v7, %v9987_v32 }
0x100f   :  { %v10750_v13 = vpop.f32.mrf.mxu1 }
0x1010   :  { %v10593_v19 = vpop.f32.mrf.mxu0  ;;  %v10751_v5 = vadd.f32 %v10750_v13, %v10590_v33  ;;  %v9476_v13 = vpop.permute.xlu1 %9475 }
0x1011   :  { %v10594_v18 = vadd.f32 %v10593_v19, %v10387_v4  ;;  %v9762_v19 = vadd.f32 %v18104_v49, %v9476_v13 }
0x1012   :  { %10915 = vst.msk [vmem:[%s17529_s12 + $0x1b8] sm:$0xff] %vm5397_vm7, %v10751_v5  ;;  %v10416_v57 = vpop.f32.mrf.mxu3  ;;  %v10198_v5 = vpop.f32.mrf.mxu2 }
0x1013   :  { %v10417_v47 = vadd.f32 %v10416_v57, %v10194_v28  ;;  %v9991_v41 = vadd.f32 %v18105_v37, %v9762_v19 }
0x1017   :  { %v10754_v20 = vpop.f32.mrf.mxu1 }
0x1018   :  { %v10597_v46 = vpop.f32.mrf.mxu0  ;;  %v10755_v55 = vadd.f32 %v10754_v20, %v10594_v18  ;;  %v10199_v18 = vadd.f32 %v10198_v5, %v9991_v41  ;;  %v9481_v20 = vpop.permute.xlu2 %9480 }
0x1019   :  { %v10598_v26 = vadd.f32 %v10597_v46, %v10393_v24  ;;  %v18106_v46 = vld [vmem:[#allocation15_spill] sm:$0xff] }
0x101a   :  { %10916 = vst.msk [vmem:[%s17529_s12 + $0x1c0] sm:$0xff] %vm5397_vm7, %v10755_v55  ;;  %v10422_v4 = vpop.f32.mrf.mxu3  ;;  %v9770_v55 = vadd.f32 %v18106_v46, %v9481_v20  ;;  %v10203_v24 = vpop.f32.mrf.mxu2 }
0x101b   :  { %v10423_v63 = vadd.f32 %v10422_v4, %v10199_v18 }
0x101c   :  { %v9995_v3 = vadd.f32 %v18107_v16, %v9770_v55 }
0x101f   :  { %v10758_v38 = vpop.f32.mrf.mxu1 }
0x1020   :  { %v10601_v2 = vpop.f32.mrf.mxu0  ;;  %v10759_v27 = vadd.f32 %v10758_v38, %v10598_v26  ;;  %v10204_v26 = vadd.f32 %v10203_v24, %v9995_v3 }
0x1021   :  { %v10602_v0 = vadd.f32 %v10601_v2, %v10399_v25 }
0x1022   :  { %10917 = vst.msk [vmem:[%s17529_s12 + $0x1c8] sm:$0xff] %vm5397_vm7, %v10759_v27  ;;  %v10428_v11 = vpop.f32.mrf.mxu3 }
0x1023   :  { %v10429_v27 = vadd.f32 %v10428_v11, %v10204_v26 }
0x1027   :  { %v10762_v42 = vpop.f32.mrf.mxu1 }
0x1028   :  { %v10605_v15 = vpop.f32.mrf.mxu0  ;;  %v10763_v17 = vadd.f32 %v10762_v42, %v10602_v0 }
0x1029   :  { %v10606_v8 = vadd.f32 %v10605_v15, %v10405_v1 }
0x102a   :  { %10918 = vst.msk [vmem:[%s17529_s12 + $0x1d0] sm:$0xff] %vm5397_vm7, %v10763_v17 }
0x102f   :  { %v10766_v39 = vpop.f32.mrf.mxu1 }
0x1030   :  { %v10609_v60 = vpop.f32.mrf.mxu0  ;;  %v10767_v52 = vadd.f32 %v10766_v39, %v10606_v8 }
0x1031   :  { %v10610_v34 = vadd.f32 %v10609_v60, %v10411_v22 }
0x1032   :  { %10919 = vst.msk [vmem:[%s17529_s12 + $0x1d8] sm:$0xff] %vm5397_vm7, %v10767_v52 }
0x1037   :  { %v10770_v53 = vpop.f32.mrf.mxu1 }
0x1038   :  { %v10613_v44 = vpop.f32.mrf.mxu0  ;;  %v10771_v33 = vadd.f32 %v10770_v53, %v10610_v34 }
0x1039   :  { %v10614_v29 = vadd.f32 %v10613_v44, %v10417_v47 }
0x103a   :  { %10920 = vst.msk [vmem:[%s17529_s12 + $0x1e0] sm:$0xff] %vm5397_vm7, %v10771_v33 }
0x103f   :  { %v10774_v9 = vpop.f32.mrf.mxu1 }
0x1040   :  { %v10775_v23 = vadd.f32 %v10774_v9, %v10614_v29  ;;  %v10617_v58 = vpop.f32.mrf.mxu0 }
0x1041   :  { %v10618_v51 = vadd.f32 %v10617_v58, %v10423_v63 }
0x1042   :  { %10921 = vst.msk [vmem:[%s17529_s12 + $0x1e8] sm:$0xff] %vm5397_vm7, %v10775_v23 }
0x1047   :  { %v10778_v50 = vpop.f32.mrf.mxu1 }
0x1048   :  { %v10779_v38 = vadd.f32 %v10778_v50, %v10618_v51  ;;  %v10621_v2 = vpop.f32.mrf.mxu0 }
0x1049   :  { %v10622_v40 = vadd.f32 %v10621_v2, %v10429_v27 }
0x104a   :  { %10922 = vst.msk [vmem:[%s17529_s12 + $0x1f0] sm:$0xff] %vm5397_vm7, %v10779_v38 }
0x104f   :  { %v10782_v43 = vpop.f32.mrf.mxu1 }
0x1050   :  { %v10783_v61 = vadd.f32 %v10782_v43, %v10622_v40 }
0x1052   :  { %10923 = vst.msk [vmem:[%s17529_s12 + $0x1f8] sm:$0xff] %vm5397_vm7, %v10783_v61 }

</bundles_post_ra>
